<compile_context>
chip_gen: v7x
topology: tpu7x:2x2x1
jax: 0.10.0
libtpu: 0.0.40
codegen_flags: <defaults>
</compile_context>

<pallas_src>
import jax
import jax.numpy as jnp
import numpy as np
from jax.experimental import pallas as pl
from jax.experimental.pallas import tpu as pltpu

EPS = 1e-5        # PyTorch BatchNorm default
N_SLOTS = 12      # 2 sides x 6 pokemon  (= BatchNorm2d channel count)


def _round_up(x, m):
    return ((x + m - 1) // m) * m


def _cdiv(a, b):
    return -(-a // b)


# ---------------------------------------------------------------------------
# Fused kernel: PokemonLayer + FullStateLayer + OutputLayer
# ---------------------------------------------------------------------------
def value_net_kernel(pk_ref, tail_ref,
                     pk_w_ref, pk_b_ref,
                     w1p_ref, w1t_ref, b1_ref, sc1_ref, sh1_ref,
                     w2_ref, b2_ref, sc2_ref, sh2_ref,
                     w3_ref, b3_ref, sc3_ref, sh3_ref,
                     wo_ref, bo_ref,
                     o_ref, ybuf_ref):
    f32 = jnp.float32
    bf16 = jnp.bfloat16
    n_slots, tb, slot_pad = pk_ref.shape          # (12, TILE_B, 256), static

    # --- PokemonLayer: one (12*TILE_B, 256) @ (256, 256) matmul.  The reshape
    # only merges leading dims (TILE_B is a multiple of 16 -> layout no-op).
    # BatchNorm2d is folded into w1p/b1 offline; Dropout is the identity.
    x = pk_ref[...].reshape(n_slots * tb, slot_pad)
    y = jnp.dot(x, pk_w_ref[...], preferred_element_type=f32)
    y = jnp.maximum(y + pk_b_ref[...], 0.0).astype(bf16)

    # Re-pack slot-major rows into a lane-major (TILE_B, 12*256) activation so
    # fc1 becomes a single K=3072 contraction (MXU accumulates over K; no 12x
    # RMW passes over the h1 accumulator).  Slab offsets are multiples of 256
    # lanes and TILE_B rows -> fully (8,128)-aligned, unmasked copies.
    for p in range(n_slots):
        ybuf_ref[:, p * slot_pad:(p + 1) * slot_pad] = y[p * tb:(p + 1) * tb, :]

    # --- FullStateLayer: fc1 = pokemon block (K=3072) + tail block (K=128),
    # then (Linear -> ReLU -> Dropout(id) -> folded BatchNorm1d) chain.
    h1 = jnp.dot(ybuf_ref[...], w1p_ref[...], preferred_element_type=f32)
    h1 = h1 + jnp.dot(tail_ref[...], w1t_ref[...], preferred_element_type=f32)
    h1 = jnp.maximum(h1 + b1_ref[...], 0.0) * sc1_ref[...] + sh1_ref[...]

    h2 = jnp.dot(h1.astype(bf16), w2_ref[...], preferred_element_type=f32)
    h2 = jnp.maximum(h2 + b2_ref[...], 0.0) * sc2_ref[...] + sh2_ref[...]

    h3 = jnp.dot(h2.astype(bf16), w3_ref[...], preferred_element_type=f32)
    h3 = jnp.maximum(h3 + b3_ref[...], 0.0) * sc3_ref[...] + sh3_ref[...]

    # --- OutputLayer: N=1 matmul as VPU multiply + lane reduction + sigmoid.
    logit = jnp.sum(h3 * wo_ref[...], axis=-1, keepdims=True) + bo_ref[...]
    o_ref[...] = jax.nn.sigmoid(logit)


def _resident(shape):
    """Full-array block, constant index_map: fetched once, stays in VMEM."""
    zeros = (0,) * len(shape)
    return pl.BlockSpec(shape, lambda i: zeros)


def _pick_tiles(batch, tile_b):
    """>=2 tiles (both v7x TensorCores busy) and minimal padded tail."""
    n_tiles = max(2, _cdiv(batch, tile_b))
    tile = _round_up(_cdiv(batch, n_tiles), 16)   # bf16 sublane multiple
    return tile, n_tiles, n_tiles * tile


# ---------------------------------------------------------------------------
# Input layout conversion (plain JAX).  Hoist this out of the hot path by
# calling it once per batch and reusing the result.
# ---------------------------------------------------------------------------
def prepare_inputs(kp, fields, sides, pokemon, *, tile_b=256):
    B = pokemon.shape[0]
    fin = pokemon.shape[-1]                       # 247
    slot_pad = kp["pk_w"].shape[0]                # 256
    tail_pad = kp["w1t"].shape[0]                 # 128
    TILE_B, n_tiles, B_pad = _pick_tiles(B, tile_b)
    bf16 = jnp.bfloat16

    # Pokemon features: (B, 2, 6, 247) -> slot-major (12, B_pad, 256) bf16.
    pk = pokemon.reshape(B, N_SLOTS, fin).transpose(1, 0, 2)
    pk = jnp.pad(pk, ((0, 0), (0, B_pad - B), (0, slot_pad - fin))).astype(bf16)

    # State-vector tail: [sides_flat(32), fields(21)] -> (B_pad, 128) bf16.
    # (Assumes the original cat order: pokemon(2304), sides(32), fields(21).)
    tail = jnp.concatenate([sides.reshape(B, -1), fields], axis=1)
    tail = jnp.pad(tail, ((0, B_pad - B), (0, tail_pad - tail.shape[1]))).astype(bf16)
    return pk, tail, TILE_B


# ---------------------------------------------------------------------------
# Forward pass on pre-laid-out inputs.
# ---------------------------------------------------------------------------
def value_net_forward_prelaid(kp, pk, tail, tile_b):
    n_slots, B_pad, slot_pad = pk.shape
    TILE_B = tile_b
    n_tiles = B_pad // TILE_B
    tail_pad = tail.shape[1]
    fc1_out = kp["w1p"].shape[1]
    fc2_out = kp["w2"].shape[1]
    state_out = kp["w3"].shape[1]

    in_specs = [
        pl.BlockSpec((n_slots, TILE_B, slot_pad), lambda i: (0, i, 0)),  # pokemon tile
        pl.BlockSpec((TILE_B, tail_pad), lambda i: (i, 0)),              # tail tile
        _resident(kp["pk_w"].shape),      # (256, 256) bf16
        _resident(kp["pk_b"].shape),      # (1, 256)   f32
        _resident(kp["w1p"].shape),       # (3072, 1024) bf16, BN2d folded
        _resident(kp["w1t"].shape),       # (128, 1024)  bf16
        _resident(kp["b1"].shape),
        _resident(kp["sc1"].shape),
        _resident(kp["sh1"].shape),
        _resident(kp["w2"].shape),        # (1024, 512) bf16
        _resident(kp["b2"].shape),
        _resident(kp["sc2"].shape),
        _resident(kp["sh2"].shape),
        _resident(kp["w3"].shape),        # (512, 128) bf16
        _resident(kp["b3"].shape),
        _resident(kp["sc3"].shape),
        _resident(kp["sh3"].shape),
        _resident(kp["wo"].shape),        # (1, 128) f32
        _resident(kp["bo"].shape),        # (1, 1)   f32
    ]
    out_specs = pl.BlockSpec((TILE_B, 1), lambda i: (i, 0))

    weight_bytes = sum(int(v.size) * v.dtype.itemsize for v in kp.values())
    flops = 2 * B_pad * (n_slots * slot_pad * slot_pad
                         + n_slots * slot_pad * fc1_out
                         + tail_pad * fc1_out
                         + fc1_out * fc2_out
                         + fc2_out * state_out
                         + state_out)
    bytes_accessed = (int(pk.size) * 2 + int(tail.size) * 2
                      + weight_bytes + B_pad * 4)
    cost = pl.CostEstimate(flops=int(flops), transcendentals=int(B_pad),
                           bytes_accessed=int(bytes_accessed))

    out = pl.pallas_call(
        value_net_kernel,
        out_shape=jax.ShapeDtypeStruct((B_pad, 1), jnp.float32),
        grid_spec=pltpu.PrefetchScalarGridSpec(
            num_scalar_prefetch=0,
            grid=(n_tiles,),
            in_specs=in_specs,
            out_specs=out_specs,
            scratch_shapes=[pltpu.VMEM((TILE_B, n_slots * slot_pad), jnp.bfloat16)]),
        compiler_params=pltpu.CompilerParams(
            dimension_semantics=("parallel",),            # megacore on v7x
            vmem_limit_bytes=48 * 1024 * 1024),           # > v5e's 16 MiB default, < v7x's 64 MiB
        cost_estimate=cost,
    )(pk, tail,
      kp["pk_w"], kp["pk_b"],
      kp["w1p"], kp["w1t"], kp["b1"], kp["sc1"], kp["sh1"],
      kp["w2"], kp["b2"], kp["sc2"], kp["sh2"],
      kp["w3"], kp["b3"], kp["sc3"], kp["sh3"],
      kp["wo"], kp["bo"])
    return out


def value_net_forward(kp, fields, sides, pokemon, *, tile_b=256):
    """Convenience wrapper: layout conversion + fused kernel."""
    B = pokemon.shape[0]
    pk, tail, TILE_B = prepare_inputs(kp, fields, sides, pokemon, tile_b=tile_b)
    out = value_net_forward_prelaid(kp, pk, tail, TILE_B)
    return out[:B]


# ---------------------------------------------------------------------------
# Parameter construction / folding (plain JAX, one-time prep)
# ---------------------------------------------------------------------------
def fold_bn(gamma, beta, rmean, rvar):
    scale = gamma / jnp.sqrt(rvar + EPS)
    shift = beta - rmean * scale
    return scale.astype(jnp.float32), shift.astype(jnp.float32)


def make_params(key):
    # Module dimensions implied by ValueNet.__init__.
    field_size = 21
    side_size = 16
    pokemon_in = 64 + 16 + 16 + 16 * 4 + (75 + 4 * 3)         # 247
    pokemon_out = 192
    state_in = pokemon_out * 12 + side_size * 2 + field_size  # 2357
    fc1_out, fc2_out, state_out = 1024, 512, 128

    ks = iter(jax.random.split(key, 16))

    def lin(kin, kout, k):
        w = jax.random.normal(k, (kin, kout), jnp.float32) * (1.0 / np.sqrt(kin))
        b = jnp.zeros((1, kout), jnp.float32) + 0.01
        return w, b

    def bn(n, k):
        k1, k2, k3 = jax.random.split(k, 3)
        gamma = 1.0 + 0.1 * jax.random.normal(k1, (n,), jnp.float32)
        beta = 0.05 * jax.random.normal(k2, (n,), jnp.float32)
        rmean = 0.1 * jax.random.normal(k3, (n,), jnp.float32)
        rvar = jnp.ones((n,), jnp.float32) * 0.9
        return fold_bn(gamma, beta, rmean, rvar)

    p = {}
    p["pk_w"], p["pk_b"] = lin(pokemon_in, pokemon_out, next(ks))
    p["pk_sc"], p["pk_sh"] = bn(12, next(ks))                 # BatchNorm2d(12)
    p["w1"], p["b1"] = lin(state_in, fc1_out, next(ks))
    p["sc1"], p["sh1"] = bn(fc1_out, next(ks))
    p["w2"], p["b2"] = lin(fc1_out, fc2_out, next(ks))
    p["sc2"], p["sh2"] = bn(fc2_out, next(ks))
    p["w3"], p["b3"] = lin(fc2_out, state_out, next(ks))
    p["sc3"], p["sh3"] = bn(state_out, next(ks))
    p["wo"], p["bo"] = lin(state_out, 1, next(ks))
    p["dims"] = dict(field_size=field_size, side_size=side_size,
                     pokemon_in=pokemon_in, pokemon_out=pokemon_out,
                     state_in=state_in)
    return p


def prepare_params(p):
    """One-time conversion to the kernel layout: padded, BN2d-folded, bf16."""
    bf16 = jnp.bfloat16
    fin, pok_out = p["pk_w"].shape               # 247, 192
    fin_pad = _round_up(fin, 128)                # 256 (K of pokemon matmul)
    slot_pad = _round_up(pok_out, 128)           # 256 (per-slot lane-aligned width)
    w1 = p["w1"]                                 # (2357, 1024)
    n_pok = N_SLOTS * pok_out                    # 2304
    tail_in = w1.shape[0] - n_pok                # 53
    tail_pad = _round_up(tail_in, 128)           # 128

    kp = {}
    # Pokemon fc: pad input 247->256 and output 192->256 (zero columns -> the
    # padded activation lanes are exactly 0 after ReLU).
    kp["pk_w"] = jnp.pad(p["pk_w"], ((0, fin_pad - fin),
                                     (0, slot_pad - pok_out))).astype(bf16)
    kp["pk_b"] = jnp.pad(p["pk_b"], ((0, 0), (0, slot_pad - pok_out)))

    # Fold BatchNorm2d(12) (per-slot scalar affine applied after ReLU) into the
    # fc1 pokemon-block weights/bias — algebraically exact:
    #   (y*sc_p + sh_p) @ W1p = y @ (sc_p*W1p) + sh_p * colsum(W1p)
    sc = p["pk_sc"]                              # (12,)
    sh = p["pk_sh"]                              # (12,)
    w1p = w1[:n_pok].reshape(N_SLOTS, pok_out, w1.shape[1])       # (12,192,1024)
    w1p_scaled = w1p * sc[:, None, None]
    w1p_padded = jnp.pad(w1p_scaled, ((0, 0), (0, slot_pad - pok_out), (0, 0)))
    kp["w1p"] = w1p_padded.reshape(N_SLOTS * slot_pad, w1.shape[1]).astype(bf16)
    kp["b1"] = p["b1"] + (sh[:, None] * w1p.sum(axis=1)).sum(axis=0)[None, :]

    kp["w1t"] = jnp.pad(w1[n_pok:], ((0, tail_pad - tail_in), (0, 0))).astype(bf16)
    kp["sc1"], kp["sh1"] = p["sc1"][None, :], p["sh1"][None, :]
    kp["w2"] = p["w2"].astype(bf16)
    kp["b2"], kp["sc2"], kp["sh2"] = p["b2"], p["sc2"][None, :], p["sh2"][None, :]
    kp["w3"] = p["w3"].astype(bf16)
    kp["b3"], kp["sc3"], kp["sh3"] = p["b3"], p["sc3"][None, :], p["sh3"][None, :]
    kp["wo"] = p["wo"].T                         # (1, 128) f32, applied on VPU
    kp["bo"] = p["bo"].reshape(1, 1)
    return kp


# ---------------------------------------------------------------------------
# References
# ---------------------------------------------------------------------------
def value_net_reference_matched(kp, fields, sides, pokemon):
    """Same math / quantization points as the kernel, in plain JAX."""
    bf16 = jnp.bfloat16
    B = pokemon.shape[0]
    fin = pokemon.shape[-1]
    slot_pad = kp["pk_w"].shape[0]
    tail_pad = kp["w1t"].shape[0]

    pk = pokemon.reshape(B, N_SLOTS, fin)
    pk = jnp.pad(pk, ((0, 0), (0, 0), (0, slot_pad - fin))).astype(bf16)
    y = jnp.dot(pk.reshape(B * N_SLOTS, slot_pad), kp["pk_w"],
                preferred_element_type=jnp.float32) + kp["pk_b"]
    y = jnp.maximum(y, 0.0).astype(bf16).reshape(B, N_SLOTS * slot_pad)

    tail = jnp.concatenate([sides.reshape(B, -1), fields], axis=1)
    tail = jnp.pad(tail, ((0, 0), (0, tail_pad - tail.shape[1]))).astype(bf16)

    h1 = (jnp.dot(y, kp["w1p"], preferred_element_type=jnp.float32)
          + jnp.dot(tail, kp["w1t"], preferred_element_type=jnp.float32))
    h1 = jnp.maximum(h1 + kp["b1"], 0.0) * kp["sc1"] + kp["sh1"]
    h2 = jnp.dot(h1.astype(bf16), kp["w2"], preferred_element_type=jnp.float32)
    h2 = jnp.maximum(h2 + kp["b2"], 0.0) * kp["sc2"] + kp["sh2"]
    h3 = jnp.dot(h2.astype(bf16), kp["w3"], preferred_element_type=jnp.float32)
    h3 = jnp.maximum(h3 + kp["b3"], 0.0) * kp["sc3"] + kp["sh3"]
    logit = jnp.sum(h3 * kp["wo"], axis=-1, keepdims=True) + kp["bo"]
    return jax.nn.sigmoid(logit)


def value_net_reference_f32(p, fields, sides, pokemon):
    """Eval-mode PyTorch semantics in pure f32 (the spec)."""
    B = pokemon.shape[0]
    y = pokemon.reshape(B, N_SLOTS, -1) @ p["pk_w"] + p["pk_b"]
    y = jnp.maximum(y, 0.0)
    y = y * p["pk_sc"][None, :, None] + p["pk_sh"][None, :, None]   # BN2d, channel = slot
    s = jnp.concatenate([y.reshape(B, -1), sides.reshape(B, -1), fields], axis=1)
    h1 = jnp.maximum(s @ p["w1"] + p["b1"], 0.0) * p["sc1"] + p["sh1"]
    h2 = jnp.maximum(h1 @ p["w2"] + p["b2"], 0.0) * p["sc2"] + p["sh2"]
    h3 = jnp.maximum(h2 @ p["w3"] + p["b3"], 0.0) * p["sc3"] + p["sh3"]
    return jax.nn.sigmoid(h3 @ p["wo"] + p["bo"])


if __name__ == "__main__":
    key = jax.random.PRNGKey(0)
    kp_key, kf, kside, kpk = jax.random.split(key, 4)

    params = make_params(kp_key)
    kparams = prepare_params(params)
    dims = params["dims"]

    B = 2
    fields = jax.random.normal(kf, (B, dims["field_size"]), jnp.float32)
    sides = jax.random.normal(kside, (B, 2, dims["side_size"]), jnp.float32)
    pokemon = jax.random.normal(kpk, (B, 2, 6, dims["pokemon_in"]), jnp.float32)

    fwd = jax.jit(lambda f, s, p: value_net_forward(kparams, f, s, p))
    out = jax.block_until_ready(fwd(fields, sides, pokemon))
    assert out.shape == (B, 1)

    # Tight check against a reference with identical quantization points.
    ref_q = value_net_reference_matched(kparams, fields, sides, pokemon)
    np.testing.assert_allclose(np.asarray(out), np.asarray(ref_q),
                               rtol=2e-3, atol=2e-3)

    # Looser check against pure-f32 eval-mode PyTorch semantics (bf16 budget).
    ref_f = value_net_reference_f32(params, fields, sides, pokemon)
    np.testing.assert_allclose(np.asarray(out), np.asarray(ref_f),
                               rtol=5e-2, atol=3e-2)

    print("KERNEL_OK")
</pallas_src>

<mosaic_0001>
module attributes {stable_mosaic.version = 11 : i64} {
  func.func @value_net_kernel(%arg0: i32, %arg1: memref<12x16x256xbf16, #tpu.memory_space<vmem>>, %arg2: memref<16x128xbf16, #tpu.memory_space<vmem>>, %arg3: memref<256x256xbf16, #tpu.memory_space<vmem>>, %arg4: memref<1x256xf32, #tpu.memory_space<vmem>>, %arg5: memref<3072x1024xbf16, #tpu.memory_space<vmem>>, %arg6: memref<128x1024xbf16, #tpu.memory_space<vmem>>, %arg7: memref<1x1024xf32, #tpu.memory_space<vmem>>, %arg8: memref<1x1024xf32, #tpu.memory_space<vmem>>, %arg9: memref<1x1024xf32, #tpu.memory_space<vmem>>, %arg10: memref<1024x512xbf16, #tpu.memory_space<vmem>>, %arg11: memref<1x512xf32, #tpu.memory_space<vmem>>, %arg12: memref<1x512xf32, #tpu.memory_space<vmem>>, %arg13: memref<1x512xf32, #tpu.memory_space<vmem>>, %arg14: memref<512x128xbf16, #tpu.memory_space<vmem>>, %arg15: memref<1x128xf32, #tpu.memory_space<vmem>>, %arg16: memref<1x128xf32, #tpu.memory_space<vmem>>, %arg17: memref<1x128xf32, #tpu.memory_space<vmem>>, %arg18: memref<1x128xf32, #tpu.memory_space<vmem>>, %arg19: memref<1x1xf32, #tpu.memory_space<vmem>>, %arg20: memref<16x1xf32, #tpu.memory_space<vmem>>, %arg21: memref<16x3072xbf16, #tpu.memory_space<vmem>>) attributes {dimension_semantics = [#tpu.dimension_semantics<parallel>], iteration_bounds = array<i64: 2>, scalar_prefetch = 0 : i64, scratch_operands = 1 : i64, tpu.core_type = #tpu.core_type<tc>, window_params = [{transform_indices = @transform_0, window_bounds = array<i64: 12, 16, 256>}, {transform_indices = @transform_1, window_bounds = array<i64: 16, 128>}, {pipeline_mode = #tpu.pipeline_mode<synchronous>, transform_indices = @transform_2, window_bounds = array<i64: 256, 256>}, {pipeline_mode = #tpu.pipeline_mode<synchronous>, transform_indices = @transform_3, window_bounds = array<i64: 1, 256>}, {pipeline_mode = #tpu.pipeline_mode<synchronous>, transform_indices = @transform_4, window_bounds = array<i64: 3072, 1024>}, {pipeline_mode = #tpu.pipeline_mode<synchronous>, transform_indices = @transform_5, window_bounds = array<i64: 128, 1024>}, {pipeline_mode = #tpu.pipeline_mode<synchronous>, transform_indices = @transform_6, window_bounds = array<i64: 1, 1024>}, {pipeline_mode = #tpu.pipeline_mode<synchronous>, transform_indices = @transform_7, window_bounds = array<i64: 1, 1024>}, {pipeline_mode = #tpu.pipeline_mode<synchronous>, transform_indices = @transform_8, window_bounds = array<i64: 1, 1024>}, {pipeline_mode = #tpu.pipeline_mode<synchronous>, transform_indices = @transform_9, window_bounds = array<i64: 1024, 512>}, {pipeline_mode = #tpu.pipeline_mode<synchronous>, transform_indices = @transform_10, window_bounds = array<i64: 1, 512>}, {pipeline_mode = #tpu.pipeline_mode<synchronous>, transform_indices = @transform_11, window_bounds = array<i64: 1, 512>}, {pipeline_mode = #tpu.pipeline_mode<synchronous>, transform_indices = @transform_12, window_bounds = array<i64: 1, 512>}, {pipeline_mode = #tpu.pipeline_mode<synchronous>, transform_indices = @transform_13, window_bounds = array<i64: 512, 128>}, {pipeline_mode = #tpu.pipeline_mode<synchronous>, transform_indices = @transform_14, window_bounds = array<i64: 1, 128>}, {pipeline_mode = #tpu.pipeline_mode<synchronous>, transform_indices = @transform_15, window_bounds = array<i64: 1, 128>}, {pipeline_mode = #tpu.pipeline_mode<synchronous>, transform_indices = @transform_16, window_bounds = array<i64: 1, 128>}, {pipeline_mode = #tpu.pipeline_mode<synchronous>, transform_indices = @transform_17, window_bounds = array<i64: 1, 128>}, {pipeline_mode = #tpu.pipeline_mode<synchronous>, transform_indices = @transform_18, window_bounds = array<i64: 1, 1>}, {transform_indices = @transform_19, window_bounds = array<i64: 16, 1>}]} {
    %c0 = arith.constant 0 : index
    %c0_0 = arith.constant 0 : index
    %c0_1 = arith.constant 0 : index
    %0 = vector.load %arg1[%c0, %c0_0, %c0_1] : memref<12x16x256xbf16, #tpu.memory_space<vmem>>, vector<12x16x256xbf16>
    %1 = vector.shape_cast %0 : vector<12x16x256xbf16> to vector<192x256xbf16>
    %c0_2 = arith.constant 0 : index
    %c0_3 = arith.constant 0 : index
    %2 = vector.load %arg3[%c0_2, %c0_3] : memref<256x256xbf16, #tpu.memory_space<vmem>>, vector<256x256xbf16>
    %cst = arith.constant dense<0.000000e+00> : vector<192x256xf32>
    %3 = tpu.matmul %1, %2, %cst {dimension_numbers = #tpu.dot_dimension_numbers<[1], [0], [0], [1], [0, 0, 1, 1], [], []>} : vector<192x256xbf16>, vector<256x256xbf16>, vector<192x256xf32> -> vector<192x256xf32>
    %c0_4 = arith.constant 0 : index
    %c0_5 = arith.constant 0 : index
    %4 = vector.load %arg4[%c0_4, %c0_5] : memref<1x256xf32, #tpu.memory_space<vmem>>, vector<1x256xf32>
    %5 = vector.broadcast %4 : vector<1x256xf32> to vector<192x256xf32>
    %6 = arith.addf %3, %5 : vector<192x256xf32>
    %cst_6 = arith.constant 0.000000e+00 : f32
    %7 = vector.broadcast %cst_6 : f32 to vector<192x256xf32>
    %8 = arith.maximumf %6, %7 : vector<192x256xf32>
    %9 = arith.truncf %8 : vector<192x256xf32> to vector<192x256xbf16>
    %10 = vector.extract_strided_slice %9 {offsets = [0, 0], sizes = [16, 256], strides = [1, 1]} : vector<192x256xbf16> to vector<16x256xbf16>
    %c0_7 = arith.constant 0 : index
    %c0_8 = arith.constant 0 : index
    %11 = vector.load %arg21[%c0_7, %c0_8] : memref<16x3072xbf16, #tpu.memory_space<vmem>>, vector<16x256xbf16>
    tpu.vector_store %arg21[%c0_7, %c0_8], %10 {strides = array<i32>} : memref<16x3072xbf16, #tpu.memory_space<vmem>>, vector<16x256xbf16>,
    %12 = vector.extract_strided_slice %9 {offsets = [16, 0], sizes = [16, 256], strides = [1, 1]} : vector<192x256xbf16> to vector<16x256xbf16>
    %c0_9 = arith.constant 0 : index
    %c256 = arith.constant 256 : index
    %13 = vector.load %arg21[%c0_9, %c256] : memref<16x3072xbf16, #tpu.memory_space<vmem>>, vector<16x256xbf16>
    tpu.vector_store %arg21[%c0_9, %c256], %12 {strides = array<i32>} : memref<16x3072xbf16, #tpu.memory_space<vmem>>, vector<16x256xbf16>,
    %14 = vector.extract_strided_slice %9 {offsets = [32, 0], sizes = [16, 256], strides = [1, 1]} : vector<192x256xbf16> to vector<16x256xbf16>
    %c0_10 = arith.constant 0 : index
    %c512 = arith.constant 512 : index
    %15 = vector.load %arg21[%c0_10, %c512] : memref<16x3072xbf16, #tpu.memory_space<vmem>>, vector<16x256xbf16>
    tpu.vector_store %arg21[%c0_10, %c512], %14 {strides = array<i32>} : memref<16x3072xbf16, #tpu.memory_space<vmem>>, vector<16x256xbf16>,
    %16 = vector.extract_strided_slice %9 {offsets = [48, 0], sizes = [16, 256], strides = [1, 1]} : vector<192x256xbf16> to vector<16x256xbf16>
    %c0_11 = arith.constant 0 : index
    %c768 = arith.constant 768 : index
    %17 = vector.load %arg21[%c0_11, %c768] : memref<16x3072xbf16, #tpu.memory_space<vmem>>, vector<16x256xbf16>
    tpu.vector_store %arg21[%c0_11, %c768], %16 {strides = array<i32>} : memref<16x3072xbf16, #tpu.memory_space<vmem>>, vector<16x256xbf16>,
    %18 = vector.extract_strided_slice %9 {offsets = [64, 0], sizes = [16, 256], strides = [1, 1]} : vector<192x256xbf16> to vector<16x256xbf16>
    %c0_12 = arith.constant 0 : index
    %c1024 = arith.constant 1024 : index
    %19 = vector.load %arg21[%c0_12, %c1024] : memref<16x3072xbf16, #tpu.memory_space<vmem>>, vector<16x256xbf16>
    tpu.vector_store %arg21[%c0_12, %c1024], %18 {strides = array<i32>} : memref<16x3072xbf16, #tpu.memory_space<vmem>>, vector<16x256xbf16>,
    %20 = vector.extract_strided_slice %9 {offsets = [80, 0], sizes = [16, 256], strides = [1, 1]} : vector<192x256xbf16> to vector<16x256xbf16>
    %c0_13 = arith.constant 0 : index
    %c1280 = arith.constant 1280 : index
    %21 = vector.load %arg21[%c0_13, %c1280] : memref<16x3072xbf16, #tpu.memory_space<vmem>>, vector<16x256xbf16>
    tpu.vector_store %arg21[%c0_13, %c1280], %20 {strides = array<i32>} : memref<16x3072xbf16, #tpu.memory_space<vmem>>, vector<16x256xbf16>,
    %22 = vector.extract_strided_slice %9 {offsets = [96, 0], sizes = [16, 256], strides = [1, 1]} : vector<192x256xbf16> to vector<16x256xbf16>
    %c0_14 = arith.constant 0 : index
    %c1536 = arith.constant 1536 : index
    %23 = vector.load %arg21[%c0_14, %c1536] : memref<16x3072xbf16, #tpu.memory_space<vmem>>, vector<16x256xbf16>
    tpu.vector_store %arg21[%c0_14, %c1536], %22 {strides = array<i32>} : memref<16x3072xbf16, #tpu.memory_space<vmem>>, vector<16x256xbf16>,
    %24 = vector.extract_strided_slice %9 {offsets = [112, 0], sizes = [16, 256], strides = [1, 1]} : vector<192x256xbf16> to vector<16x256xbf16>
    %c0_15 = arith.constant 0 : index
    %c1792 = arith.constant 1792 : index
    %25 = vector.load %arg21[%c0_15, %c1792] : memref<16x3072xbf16, #tpu.memory_space<vmem>>, vector<16x256xbf16>
    tpu.vector_store %arg21[%c0_15, %c1792], %24 {strides = array<i32>} : memref<16x3072xbf16, #tpu.memory_space<vmem>>, vector<16x256xbf16>,
    %26 = vector.extract_strided_slice %9 {offsets = [128, 0], sizes = [16, 256], strides = [1, 1]} : vector<192x256xbf16> to vector<16x256xbf16>
    %c0_16 = arith.constant 0 : index
    %c2048 = arith.constant 2048 : index
    %27 = vector.load %arg21[%c0_16, %c2048] : memref<16x3072xbf16, #tpu.memory_space<vmem>>, vector<16x256xbf16>
    tpu.vector_store %arg21[%c0_16, %c2048], %26 {strides = array<i32>} : memref<16x3072xbf16, #tpu.memory_space<vmem>>, vector<16x256xbf16>,
    %28 = vector.extract_strided_slice %9 {offsets = [144, 0], sizes = [16, 256], strides = [1, 1]} : vector<192x256xbf16> to vector<16x256xbf16>
    %c0_17 = arith.constant 0 : index
    %c2304 = arith.constant 2304 : index
    %29 = vector.load %arg21[%c0_17, %c2304] : memref<16x3072xbf16, #tpu.memory_space<vmem>>, vector<16x256xbf16>
    tpu.vector_store %arg21[%c0_17, %c2304], %28 {strides = array<i32>} : memref<16x3072xbf16, #tpu.memory_space<vmem>>, vector<16x256xbf16>,
    %30 = vector.extract_strided_slice %9 {offsets = [160, 0], sizes = [16, 256], strides = [1, 1]} : vector<192x256xbf16> to vector<16x256xbf16>
    %c0_18 = arith.constant 0 : index
    %c2560 = arith.constant 2560 : index
    %31 = vector.load %arg21[%c0_18, %c2560] : memref<16x3072xbf16, #tpu.memory_space<vmem>>, vector<16x256xbf16>
    tpu.vector_store %arg21[%c0_18, %c2560], %30 {strides = array<i32>} : memref<16x3072xbf16, #tpu.memory_space<vmem>>, vector<16x256xbf16>,
    %32 = vector.extract_strided_slice %9 {offsets = [176, 0], sizes = [16, 256], strides = [1, 1]} : vector<192x256xbf16> to vector<16x256xbf16>
    %c0_19 = arith.constant 0 : index
    %c2816 = arith.constant 2816 : index
    %33 = vector.load %arg21[%c0_19, %c2816] : memref<16x3072xbf16, #tpu.memory_space<vmem>>, vector<16x256xbf16>
    tpu.vector_store %arg21[%c0_19, %c2816], %32 {strides = array<i32>} : memref<16x3072xbf16, #tpu.memory_space<vmem>>, vector<16x256xbf16>,
    %c0_20 = arith.constant 0 : index
    %c0_21 = arith.constant 0 : index
    %34 = vector.load %arg21[%c0_20, %c0_21] : memref<16x3072xbf16, #tpu.memory_space<vmem>>, vector<16x3072xbf16>
    %c0_22 = arith.constant 0 : index
    %c0_23 = arith.constant 0 : index
    %35 = vector.load %arg5[%c0_22, %c0_23] : memref<3072x1024xbf16, #tpu.memory_space<vmem>>, vector<3072x1024xbf16>
    %cst_24 = arith.constant dense<0.000000e+00> : vector<16x1024xf32>
    %36 = tpu.matmul %34, %35, %cst_24 {dimension_numbers = #tpu.dot_dimension_numbers<[1], [0], [0], [1], [0, 0, 1, 1], [], []>} : vector<16x3072xbf16>, vector<3072x1024xbf16>, vector<16x1024xf32> -> vector<16x1024xf32>
    %c0_25 = arith.constant 0 : index
    %c0_26 = arith.constant 0 : index
    %37 = vector.load %arg2[%c0_25, %c0_26] : memref<16x128xbf16, #tpu.memory_space<vmem>>, vector<16x128xbf16>
    %c0_27 = arith.constant 0 : index
    %c0_28 = arith.constant 0 : index
    %38 = vector.load %arg6[%c0_27, %c0_28] : memref<128x1024xbf16, #tpu.memory_space<vmem>>, vector<128x1024xbf16>
    %cst_29 = arith.constant dense<0.000000e+00> : vector<16x1024xf32>
    %39 = tpu.matmul %37, %38, %cst_29 {dimension_numbers = #tpu.dot_dimension_numbers<[1], [0], [0], [1], [0, 0, 1, 1], [], []>} : vector<16x128xbf16>, vector<128x1024xbf16>, vector<16x1024xf32> -> vector<16x1024xf32>
    %40 = arith.addf %36, %39 : vector<16x1024xf32>
    %c0_30 = arith.constant 0 : index
    %c0_31 = arith.constant 0 : index
    %41 = vector.load %arg7[%c0_30, %c0_31] : memref<1x1024xf32, #tpu.memory_space<vmem>>, vector<1x1024xf32>
    %42 = vector.broadcast %41 : vector<1x1024xf32> to vector<16x1024xf32>
    %43 = arith.addf %40, %42 : vector<16x1024xf32>
    %cst_32 = arith.constant 0.000000e+00 : f32
    %44 = vector.broadcast %cst_32 : f32 to vector<16x1024xf32>
    %45 = arith.maximumf %43, %44 : vector<16x1024xf32>
    %c0_33 = arith.constant 0 : index
    %c0_34 = arith.constant 0 : index
    %46 = vector.load %arg8[%c0_33, %c0_34] : memref<1x1024xf32, #tpu.memory_space<vmem>>, vector<1x1024xf32>
    %47 = vector.broadcast %46 : vector<1x1024xf32> to vector<16x1024xf32>
    %48 = arith.mulf %45, %47 : vector<16x1024xf32>
    %c0_35 = arith.constant 0 : index
    %c0_36 = arith.constant 0 : index
    %49 = vector.load %arg9[%c0_35, %c0_36] : memref<1x1024xf32, #tpu.memory_space<vmem>>, vector<1x1024xf32>
    %50 = vector.broadcast %49 : vector<1x1024xf32> to vector<16x1024xf32>
    %51 = arith.addf %48, %50 : vector<16x1024xf32>
    %52 = arith.truncf %51 : vector<16x1024xf32> to vector<16x1024xbf16>
    %c0_37 = arith.constant 0 : index
    %c0_38 = arith.constant 0 : index
    %53 = vector.load %arg10[%c0_37, %c0_38] : memref<1024x512xbf16, #tpu.memory_space<vmem>>, vector<1024x512xbf16>
    %cst_39 = arith.constant dense<0.000000e+00> : vector<16x512xf32>
    %54 = tpu.matmul %52, %53, %cst_39 {dimension_numbers = #tpu.dot_dimension_numbers<[1], [0], [0], [1], [0, 0, 1, 1], [], []>} : vector<16x1024xbf16>, vector<1024x512xbf16>, vector<16x512xf32> -> vector<16x512xf32>
    %c0_40 = arith.constant 0 : index
    %c0_41 = arith.constant 0 : index
    %55 = vector.load %arg11[%c0_40, %c0_41] : memref<1x512xf32, #tpu.memory_space<vmem>>, vector<1x512xf32>
    %56 = vector.broadcast %55 : vector<1x512xf32> to vector<16x512xf32>
    %57 = arith.addf %54, %56 : vector<16x512xf32>
    %cst_42 = arith.constant 0.000000e+00 : f32
    %58 = vector.broadcast %cst_42 : f32 to vector<16x512xf32>
    %59 = arith.maximumf %57, %58 : vector<16x512xf32>
    %c0_43 = arith.constant 0 : index
    %c0_44 = arith.constant 0 : index
    %60 = vector.load %arg12[%c0_43, %c0_44] : memref<1x512xf32, #tpu.memory_space<vmem>>, vector<1x512xf32>
    %61 = vector.broadcast %60 : vector<1x512xf32> to vector<16x512xf32>
    %62 = arith.mulf %59, %61 : vector<16x512xf32>
    %c0_45 = arith.constant 0 : index
    %c0_46 = arith.constant 0 : index
    %63 = vector.load %arg13[%c0_45, %c0_46] : memref<1x512xf32, #tpu.memory_space<vmem>>, vector<1x512xf32>
    %64 = vector.broadcast %63 : vector<1x512xf32> to vector<16x512xf32>
    %65 = arith.addf %62, %64 : vector<16x512xf32>
    %66 = arith.truncf %65 : vector<16x512xf32> to vector<16x512xbf16>
    %c0_47 = arith.constant 0 : index
    %c0_48 = arith.constant 0 : index
    %67 = vector.load %arg14[%c0_47, %c0_48] : memref<512x128xbf16, #tpu.memory_space<vmem>>, vector<512x128xbf16>
    %cst_49 = arith.constant dense<0.000000e+00> : vector<16x128xf32>
    %68 = tpu.matmul %66, %67, %cst_49 {dimension_numbers = #tpu.dot_dimension_numbers<[1], [0], [0], [1], [0, 0, 1, 1], [], []>} : vector<16x512xbf16>, vector<512x128xbf16>, vector<16x128xf32> -> vector<16x128xf32>
    %c0_50 = arith.constant 0 : index
    %c0_51 = arith.constant 0 : index
    %69 = vector.load %arg15[%c0_50, %c0_51] : memref<1x128xf32, #tpu.memory_space<vmem>>, vector<1x128xf32>
    %70 = vector.broadcast %69 : vector<1x128xf32> to vector<16x128xf32>
    %71 = arith.addf %68, %70 : vector<16x128xf32>
    %cst_52 = arith.constant 0.000000e+00 : f32
    %72 = vector.broadcast %cst_52 : f32 to vector<16x128xf32>
    %73 = arith.maximumf %71, %72 : vector<16x128xf32>
    %c0_53 = arith.constant 0 : index
    %c0_54 = arith.constant 0 : index
    %74 = vector.load %arg16[%c0_53, %c0_54] : memref<1x128xf32, #tpu.memory_space<vmem>>, vector<1x128xf32>
    %75 = vector.broadcast %74 : vector<1x128xf32> to vector<16x128xf32>
    %76 = arith.mulf %73, %75 : vector<16x128xf32>
    %c0_55 = arith.constant 0 : index
    %c0_56 = arith.constant 0 : index
    %77 = vector.load %arg17[%c0_55, %c0_56] : memref<1x128xf32, #tpu.memory_space<vmem>>, vector<1x128xf32>
    %78 = vector.broadcast %77 : vector<1x128xf32> to vector<16x128xf32>
    %79 = arith.addf %76, %78 : vector<16x128xf32>
    %c0_57 = arith.constant 0 : index
    %c0_58 = arith.constant 0 : index
    %80 = vector.load %arg18[%c0_57, %c0_58] : memref<1x128xf32, #tpu.memory_space<vmem>>, vector<1x128xf32>
    %81 = vector.broadcast %80 : vector<1x128xf32> to vector<16x128xf32>
    %82 = arith.mulf %79, %81 : vector<16x128xf32>
    %cst_59 = arith.constant dense<0.000000e+00> : vector<16xf32>
    %83 = vector.multi_reduction <add>, %82, %cst_59 [1] : vector<16x128xf32> to vector<16xf32>
    %84 = vector.shape_cast %83 : vector<16xf32> to vector<16x1xf32>
    %c0_60 = arith.constant 0 : index
    %c0_61 = arith.constant 0 : index
    %85 = vector.load %arg19[%c0_60, %c0_61] : memref<1x1xf32, #tpu.memory_space<vmem>>, vector<1x1xf32>
    %86 = vector.broadcast %85 : vector<1x1xf32> to vector<16x1xf32>
    %87 = arith.addf %84, %86 : vector<16x1xf32>
    %88 = arith.negf %87 : vector<16x1xf32>
    %89 = math.exp %88 : vector<16x1xf32>
    %cst_62 = arith.constant 1.000000e+00 : f32
    %90 = vector.broadcast %cst_62 : f32 to vector<16x1xf32>
    %91 = arith.addf %90, %89 : vector<16x1xf32>
    %92 = arith.divf %90, %91 : vector<16x1xf32>
    %c0_63 = arith.constant 0 : index
    %c0_64 = arith.constant 0 : index
    %93 = vector.load %arg20[%c0_63, %c0_64] : memref<16x1xf32, #tpu.memory_space<vmem>>, vector<16x1xf32>
    tpu.vector_store %arg20[%c0_63, %c0_64], %92 {strides = array<i32>} : memref<16x1xf32, #tpu.memory_space<vmem>>, vector<16x1xf32>,
    return
  }
  func.func @transform_0(%arg0: i32) -> (i32, i32, i32) {
    %c0_i32 = arith.constant 0 : i32
    %c0_i32_0 = arith.constant 0 : i32
    %c0_i32_1 = arith.constant 0 : i32
    return %c0_i32, %arg0, %c0_i32_0 : i32, i32, i32
  }
  func.func @transform_1(%arg0: i32) -> (i32, i32) {
    %c0_i32 = arith.constant 0 : i32
    %c0_i32_0 = arith.constant 0 : i32
    return %arg0, %c0_i32 : i32, i32
  }
  func.func @transform_2(%arg0: i32) -> (i32, i32) {
    %c0_i32 = arith.constant 0 : i32
    %c0_i32_0 = arith.constant 0 : i32
    %c0_i32_1 = arith.constant 0 : i32
    return %c0_i32, %c0_i32_0 : i32, i32
  }
  func.func @transform_3(%arg0: i32) -> (i32, i32) {
    %c0_i32 = arith.constant 0 : i32
    %c0_i32_0 = arith.constant 0 : i32
    %c0_i32_1 = arith.constant 0 : i32
    return %c0_i32, %c0_i32_0 : i32, i32
  }
  func.func @transform_4(%arg0: i32) -> (i32, i32) {
    %c0_i32 = arith.constant 0 : i32
    %c0_i32_0 = arith.constant 0 : i32
    %c0_i32_1 = arith.constant 0 : i32
    return %c0_i32, %c0_i32_0 : i32, i32
  }
  func.func @transform_5(%arg0: i32) -> (i32, i32) {
    %c0_i32 = arith.constant 0 : i32
    %c0_i32_0 = arith.constant 0 : i32
    %c0_i32_1 = arith.constant 0 : i32
    return %c0_i32, %c0_i32_0 : i32, i32
  }
  func.func @transform_6(%arg0: i32) -> (i32, i32) {
    %c0_i32 = arith.constant 0 : i32
    %c0_i32_0 = arith.constant 0 : i32
    %c0_i32_1 = arith.constant 0 : i32
    return %c0_i32, %c0_i32_0 : i32, i32
  }
  func.func @transform_7(%arg0: i32) -> (i32, i32) {
    %c0_i32 = arith.constant 0 : i32
    %c0_i32_0 = arith.constant 0 : i32
    %c0_i32_1 = arith.constant 0 : i32
    return %c0_i32, %c0_i32_0 : i32, i32
  }
  func.func @transform_8(%arg0: i32) -> (i32, i32) {
    %c0_i32 = arith.constant 0 : i32
    %c0_i32_0 = arith.constant 0 : i32
    %c0_i32_1 = arith.constant 0 : i32
    return %c0_i32, %c0_i32_0 : i32, i32
  }
  func.func @transform_9(%arg0: i32) -> (i32, i32) {
    %c0_i32 = arith.constant 0 : i32
    %c0_i32_0 = arith.constant 0 : i32
    %c0_i32_1 = arith.constant 0 : i32
    return %c0_i32, %c0_i32_0 : i32, i32
  }
  func.func @transform_10(%arg0: i32) -> (i32, i32) {
    %c0_i32 = arith.constant 0 : i32
    %c0_i32_0 = arith.constant 0 : i32
    %c0_i32_1 = arith.constant 0 : i32
    return %c0_i32, %c0_i32_0 : i32, i32
  }
  func.func @transform_11(%arg0: i32) -> (i32, i32) {
    %c0_i32 = arith.constant 0 : i32
    %c0_i32_0 = arith.constant 0 : i32
    %c0_i32_1 = arith.constant 0 : i32
    return %c0_i32, %c0_i32_0 : i32, i32
  }
  func.func @transform_12(%arg0: i32) -> (i32, i32) {
    %c0_i32 = arith.constant 0 : i32
    %c0_i32_0 = arith.constant 0 : i32
    %c0_i32_1 = arith.constant 0 : i32
    return %c0_i32, %c0_i32_0 : i32, i32
  }
  func.func @transform_13(%arg0: i32) -> (i32, i32) {
    %c0_i32 = arith.constant 0 : i32
    %c0_i32_0 = arith.constant 0 : i32
    %c0_i32_1 = arith.constant 0 : i32
    return %c0_i32, %c0_i32_0 : i32, i32
  }
  func.func @transform_14(%arg0: i32) -> (i32, i32) {
    %c0_i32 = arith.constant 0 : i32
    %c0_i32_0 = arith.constant 0 : i32
    %c0_i32_1 = arith.constant 0 : i32
    return %c0_i32, %c0_i32_0 : i32, i32
  }
  func.func @transform_15(%arg0: i32) -> (i32, i32) {
    %c0_i32 = arith.constant 0 : i32
    %c0_i32_0 = arith.constant 0 : i32
    %c0_i32_1 = arith.constant 0 : i32
    return %c0_i32, %c0_i32_0 : i32, i32
  }
  func.func @transform_16(%arg0: i32) -> (i32, i32) {
    %c0_i32 = arith.constant 0 : i32
    %c0_i32_0 = arith.constant 0 : i32
    %c0_i32_1 = arith.constant 0 : i32
    return %c0_i32, %c0_i32_0 : i32, i32
  }
  func.func @transform_17(%arg0: i32) -> (i32, i32) {
    %c0_i32 = arith.constant 0 : i32
    %c0_i32_0 = arith.constant 0 : i32
    %c0_i32_1 = arith.constant 0 : i32
    return %c0_i32, %c0_i32_0 : i32, i32
  }
  func.func @transform_18(%arg0: i32) -> (i32, i32) {
    %c0_i32 = arith.constant 0 : i32
    %c0_i32_0 = arith.constant 0 : i32
    %c0_i32_1 = arith.constant 0 : i32
    return %c0_i32, %c0_i32_0 : i32, i32
  }
  func.func @transform_19(%arg0: i32) -> (i32, i32) {
    %c0_i32 = arith.constant 0 : i32
    %c0_i32_0 = arith.constant 0 : i32
    return %arg0, %c0_i32 : i32, i32
  }
}

</mosaic_0001>

<bundles_post_ra>
// kernel: _lambda_.1
= control target key start
LH: loop header
LB: loop body
LE: loop exit
PB: predicated region body
PF: predicated region fallthrough
CT: control target
= control target key end

     0   :  { %s25113_s0 = inlined_call_operand.vmem [shape: bf16[12,32,256], index: 0, kind: input, shape index: {}]   ;;  %s25114_s1 = inlined_call_operand.vmem [shape: bf16[32,128], index: 1, kind: input, shape index: {}]   ;;  %s25115_s2 = inlined_call_operand.vmem [shape: bf16[256,256], index: 2, kind: input, shape index: {}]   ;;  %s25116_s3 = inlined_call_operand.vmem [shape: f32[1,256], index: 3, kind: input, shape index: {}]   ;;  %s25117_s4 = inlined_call_operand.vmem [shape: bf16[3072,1024], index: 4, kind: input, shape index: {}]   ;;  %s25118_s5 = inlined_call_operand.vmem [shape: bf16[128,1024], index: 5, kind: input, shape index: {}]   ;;  %s25119_s6 = inlined_call_operand.vmem [shape: f32[1,1024], index: 6, kind: input, shape index: {}]   ;;  %s25120_s7 = inlined_call_operand.vmem [shape: f32[1,1024], index: 7, kind: input, shape index: {}]   ;;  %s25121_s8 = inlined_call_operand.vmem [shape: f32[1,1024], index: 8, kind: input, shape index: {}]   ;;  %s25122_s9 = inlined_call_operand.vmem [shape: bf16[1024,512], index: 9, kind: input, shape index: {}]   ;;  %s25123_s10 = inlined_call_operand.vmem [shape: f32[1,512], index: 10, kind: input, shape index: {}]   ;;  %s25124_s11 = inlined_call_operand.vmem [shape: f32[1,512], index: 11, kind: input, shape index: {}]   ;;  %s25125_s12 = inlined_call_operand.vmem [shape: f32[1,512], index: 12, kind: input, shape index: {}]   ;;  %s25126_s13 = inlined_call_operand.vmem [shape: bf16[512,128], index: 13, kind: input, shape index: {}]   ;;  %s25127_s14 = inlined_call_operand.vmem [shape: f32[1,128], index: 14, kind: input, shape index: {}]   ;;  %s25128_s15 = inlined_call_operand.vmem [shape: f32[1,128], index: 15, kind: input, shape index: {}]   ;;  %s25129_s16 = inlined_call_operand.vmem [shape: f32[1,128], index: 16, kind: input, shape index: {}]   ;;  %s25130_s17 = inlined_call_operand.vmem [shape: f32[1,128], index: 17, kind: input, shape index: {}]   ;;  %s25131_s18 = inlined_call_operand.<no memory space> [shape: f32[1,1], index: 18, kind: input, shape index: {}]   ;;  %s25132_s19 = inlined_call_operand.vmem [shape: f32[32,1], index: 19, kind: output, shape index: {}]  }
   0x1   :  { %25137 = sst [smem:[#allocation9_spill]] %s25113_s0  ;;  %v24_v0 = vstv %s25131_s18 }
   0x2   :  { %25138 = sst [smem:[#allocation10_spill]] %s25114_s1  ;;  %25 = vst [vmem:[#allocation3] sm:$0x1] %v24_v0 }
   0x3   :  { %25139 = sst [smem:[#allocation11_spill]] %s25115_s2 }
   0x4   :  { %25140 = sst [smem:[#allocation12_spill]] %s25116_s3 }
   0x5   :  { %s18777_s20 = smov 0   ;;  %s18779_s21 = smov 0  }
   0x6   :  { %s18781_s1 = smov 0  }
   0x7 LB: > { %25141 = sst [smem:[#allocation5_spill]] %s18667_s21  ;;  %s18794_s22 = sadd.s32 1, %s18671_s1   ;;  %s18671_s1 = sphi %s18781_s1, %s25154_s1   ;;  %s18667_s21 = sphi %s18779_s21, %s25153_s21   ;;  %s18663_s20 = sphi %s18777_s20, %s25152_s20  }
   0x8   : > { %s35_s2 = ssub.s32 %s18671_s1, %s18794_s22  ;;  %s38_s23 = sadd.s32 1, %s18667_s21 }
   0x9   : > { %p36_p0 = scmp.eq.s32.totalorder %s35_s2, 0  ;;  %p45_p1 = scmp.ne.s32.totalorder %s18667_s21, %s18663_s20 }
   0xa   : > { %p46_p2 = scmp.eq.s32.totalorder %s18671_s1, 0  ;;  %p15874_p4 = scmp.ge.s32.totalorder %s18671_s1, 2 }
   0xb   : > { %s18803_s24 = scalar_select %p36_p0, %s18667_s21, %s38_s23  }
   0xc   : > { %p47_p3 = por %p46_p2, %p45_p1  ;;  %531 = sbr.rel (%p15874_p4) target bundleno = 41 (0x29), region = 84 }
   0xd   : > { %25142 = sst [smem:[#allocation6_spill]] %s18803_s24 }
  0x13   : > { %534 = sbr.rel (!%p47_p3) target bundleno = 41 (0x29), region = 88  ;;  %s536_s25 = sand.u32 (%p47_p3), 1, %s18667_s21  }
  0x14   : > { %s17838_s3 = sshll.u32 (%p47_p3), %s18671_s1, 4  ;;  %s18107_s26 = smul.u32 (%p47_p3), 192, %s536_s25 }
  0x15   : > { %s25143_s29 = sld [smem:[#allocation9_spill]] (%p47_p3) }
  0x16   : > { %s18819_s30 = scalar_lea.vmem (%p47_p3), [#allocation4], %s18107_s26 }
  0x1b   : > { %s18811_s0 = scalar_lea.vmem %s25143_s29, %s17838_s3 }
  0x1c   : > { %v616_v1 = vld [vmem:[%s18811_s0] sm:$0xff]  ;;  %v618_v2 = vld [vmem:[%s18811_s0 + $0x8] sm:$0xff] }
  0x1d   : > { %v620_v3 = vld [vmem:[%s18811_s0 + $0x20] sm:$0xff]  ;;  %v622_v4 = vld [vmem:[%s18811_s0 + $0x28] sm:$0xff]  ;;  %617 = vst [vmem:[%s18819_s30] sm:$0xff] %v616_v1  ;;  %619 = vst [vmem:[%s18819_s30 + $0x8] sm:$0xff] %v618_v2 }
  0x1e   : > { %v624_v5 = vld [vmem:[%s18811_s0 + $0x40] sm:$0xff]  ;;  %v626_v6 = vld [vmem:[%s18811_s0 + $0x48] sm:$0xff]  ;;  %621 = vst [vmem:[%s18819_s30 + $0x10] sm:$0xff] %v620_v3  ;;  %623 = vst [vmem:[%s18819_s30 + $0x18] sm:$0xff] %v622_v4 }
  0x1f   : > { %625 = vst [vmem:[%s18819_s30 + $0x20] sm:$0xff] %v624_v5  ;;  %627 = vst [vmem:[%s18819_s30 + $0x28] sm:$0xff] %v626_v6  ;;  %v628_v7 = vld [vmem:[%s18811_s0 + $0x60] sm:$0xff]  ;;  %v630_v8 = vld [vmem:[%s18811_s0 + $0x68] sm:$0xff] }
  0x20   : > { %v632_v9 = vld [vmem:[%s18811_s0 + $0x80] sm:$0xff]  ;;  %629 = vst [vmem:[%s18819_s30 + $0x30] sm:$0xff] %v628_v7  ;;  %631 = vst [vmem:[%s18819_s30 + $0x38] sm:$0xff] %v630_v8  ;;  %v634_v10 = vld [vmem:[%s18811_s0 + $0x88] sm:$0xff] }
  0x21   : > { %633 = vst [vmem:[%s18819_s30 + $0x40] sm:$0xff] %v632_v9  ;;  %v636_v11 = vld [vmem:[%s18811_s0 + $0xa0] sm:$0xff]  ;;  %v638_v12 = vld [vmem:[%s18811_s0 + $0xa8] sm:$0xff]  ;;  %635 = vst [vmem:[%s18819_s30 + $0x48] sm:$0xff] %v634_v10 }
  0x22   : > { %637 = vst [vmem:[%s18819_s30 + $0x50] sm:$0xff] %v636_v11  ;;  %639 = vst [vmem:[%s18819_s30 + $0x58] sm:$0xff] %v638_v12  ;;  %v640_v13 = vld [vmem:[%s18811_s0 + $0xc0] sm:$0xff]  ;;  %v642_v14 = vld [vmem:[%s18811_s0 + $0xc8] sm:$0xff] }
  0x23   : > { %v644_v15 = vld [vmem:[%s18811_s0 + $0xe0] sm:$0xff]  ;;  %641 = vst [vmem:[%s18819_s30 + $0x60] sm:$0xff] %v640_v13  ;;  %643 = vst [vmem:[%s18819_s30 + $0x68] sm:$0xff] %v642_v14  ;;  %v646_v16 = vld [vmem:[%s18811_s0 + $0xe8] sm:$0xff] }
  0x24   : > { %645 = vst [vmem:[%s18819_s30 + $0x70] sm:$0xff] %v644_v15  ;;  %v648_v17 = vld [vmem:[%s18811_s0 + $0x100] sm:$0xff]  ;;  %v650_v18 = vld [vmem:[%s18811_s0 + $0x108] sm:$0xff]  ;;  %647 = vst [vmem:[%s18819_s30 + $0x78] sm:$0xff] %v646_v16 }
  0x25   : > { %649 = vst [vmem:[%s18819_s30 + $0x80] sm:$0xff] %v648_v17  ;;  %651 = vst [vmem:[%s18819_s30 + $0x88] sm:$0xff] %v650_v18  ;;  %v652_v19 = vld [vmem:[%s18811_s0 + $0x120] sm:$0xff]  ;;  %v654_v20 = vld [vmem:[%s18811_s0 + $0x128] sm:$0xff] }
  0x26   : > { %v656_v21 = vld [vmem:[%s18811_s0 + $0x140] sm:$0xff]  ;;  %653 = vst [vmem:[%s18819_s30 + $0x90] sm:$0xff] %v652_v19  ;;  %655 = vst [vmem:[%s18819_s30 + $0x98] sm:$0xff] %v654_v20  ;;  %v658_v22 = vld [vmem:[%s18811_s0 + $0x148] sm:$0xff] }
  0x27   : > { %657 = vst [vmem:[%s18819_s30 + $0xa0] sm:$0xff] %v656_v21  ;;  %v660_v23 = vld [vmem:[%s18811_s0 + $0x160] sm:$0xff]  ;;  %v662_v24 = vld [vmem:[%s18811_s0 + $0x168] sm:$0xff]  ;;  %659 = vst [vmem:[%s18819_s30 + $0xa8] sm:$0xff] %v658_v22 }
  0x28   : > { %661 = vst [vmem:[%s18819_s30 + $0xb0] sm:$0xff] %v660_v23  ;;  %663 = vst [vmem:[%s18819_s30 + $0xb8] sm:$0xff] %v662_v24 }
  0x29 PF: > { %p15878_p5 = scmp.ge.s32.totalorder %s18671_s1, 1  ;;  %p677_p6 = scmp.lt.s32.totalorder %s18671_s1, 3 }
  0x2b   : > { %p678_p7 = pnand %p15878_p5, %p677_p6 }
  0x2d   : > { %681 = sbr.rel (%p678_p7) target bundleno = 3302 (0xce6), region = 130 }
  0x34   : > { %s25144_s25 = sld [smem:[#allocation11_spill]]  ;;  %s684_s18 = sand.u32 1, %s18663_s20   ;;  %v18673_v37 = vmov 0   ;;  %v2918_v46 = vld [vmem:[%s25118_s5 + $0x8] sm:$0xff]  ;;  %v19010_v16 = vld [vmem:[%s25117_s4] sm:$0xff]  ;;  %vm15794_vm0 = vcmask 7168  }
  0x35   : > { %s18108_s23 = smul.u32 192, %s684_s18  ;;  %3382 = vmatprep.mubr.bf16.mxu1 %v18673_v37  ;;  %s25145_s20 = sadd.s32 4294967295, %s18671_s1   ;;  %v2922_v47 = vld [vmem:[%s25118_s5 + $0x28] sm:$0xff]  ;;  %v19015_v17 = vld [vmem:[%s25117_s4 + $0x20] sm:$0xff] }
  0x36   : > { %s15879_s29 = sshll.u32 %s25145_s20, 1  ;;  %v15943_v48 = vcombine.high %v2918_v46, %v2922_v47  ;;  %v15942_v49 = vcombine.low %v2918_v46, %v2922_v47  ;;  %v2926_v50 = vld [vmem:[%s25118_s5 + $0x48] sm:$0xff]  ;;  %s25146_s2 = sld [smem:[#allocation10_spill]]  ;;  %v16004_v20 = vcombine.low %v19010_v16, %v19015_v17 }
  0x37   : > { %s18906_s0 = scalar_lea.vmem [#allocation4], %s18108_s23  ;;  %p746_p8 = scmp.lt.s32.totalorder %s15879_s29, 3  ;;  %v2930_v51 = vld [vmem:[%s25118_s5 + $0x68] sm:$0xff] }
  0x38   : > { %v18184_v39 = vld [vmem:[%s18906_s0 + $0x4] ss:$8 sps:$4 sm:$0xff]   ;;  %3350 = vmatprep.subr.bf16.mxu1 %v15943_v48  ;;  %v15951_v54 = vcombine.high %v2926_v50, %v2930_v51  ;;  %v15950_v57 = vcombine.low %v2926_v50, %v2930_v51  ;;  %s25147_s1 = sld [smem:[#allocation12_spill]] }
  0x39   : > { %1138 = vmatprep.mubr.bf16.mxu0 %v18184_v39  ;;  %v2934_v52 = vld [vmem:[%s25118_s5 + $0x88] sm:$0xff]  ;;  %3351 = vmatpush1.bf16.msra.mxu1 %v15942_v49  ;;  %s25156_s29 = smov (!%p746_p8, %s15879_s29), 3  ;;  %v18185_v39 = vld [vmem:[%s18906_s0 + $0x14] ss:$8 sps:$4 sm:$0xff]  }
  0x3a   : > { %v18134_v25 = vld [vmem:[%s25144_s25 + $0x4] ss:$8 sps:$4 sm:$0xff]   ;;  %v18136_v26 = vld [vmem:[%s25144_s25] ss:$8 sps:$4 sm:$0xff]   ;;  %v18137_v27 = vld [vmem:[%s25144_s25 + $0x14] ss:$8 sps:$4 sm:$0xff]   ;;  %3352 = vmatprep.subr.bf16.mxu1 %v15951_v54 }
  0x3b   : > { %1106 = vmatprep.subr.bf16.mxu0 %v18134_v25  ;;  %v18139_v28 = vld [vmem:[%s25144_s25 + $0x10] ss:$8 sps:$4 sm:$0xff]   ;;  %v18140_v29 = vld [vmem:[%s25144_s25 + $0x24] ss:$8 sps:$4 sm:$0xff]   ;;  %v18142_v30 = vld [vmem:[%s25144_s25 + $0x20] ss:$8 sps:$4 sm:$0xff]  }
  0x3c   : > { %1107 = vmatpush1.bf16.msra.mxu0 %v18136_v26  ;;  %v18143_v31 = vld [vmem:[%s25144_s25 + $0x34] ss:$8 sps:$4 sm:$0xff]   ;;  %v18145_v32 = vld [vmem:[%s25144_s25 + $0x30] ss:$8 sps:$4 sm:$0xff]   ;;  %v18146_v33 = vld [vmem:[%s25144_s25 + $0x44] ss:$8 sps:$4 sm:$0xff]  }
  0x3d   : > { %1108 = vmatprep.subr.bf16.mxu0 %v18137_v27  ;;  %v18148_v34 = vld [vmem:[%s25144_s25 + $0x40] ss:$8 sps:$4 sm:$0xff]   ;;  %v18149_v35 = vld [vmem:[%s25144_s25 + $0x54] ss:$8 sps:$4 sm:$0xff]   ;;  %v18151_v36 = vld [vmem:[%s25144_s25 + $0x50] ss:$8 sps:$4 sm:$0xff]   ;;  %3353 = vmatpush1.bf16.msra.mxu1 %v15950_v57 }
  0x3e   : > { %v18152_v38 = vld [vmem:[%s25144_s25 + $0x64] ss:$8 sps:$4 sm:$0xff]   ;;  %v18154_v40 = vld [vmem:[%s25144_s25 + $0x60] ss:$8 sps:$4 sm:$0xff]   ;;  %v18155_v41 = vld [vmem:[%s25144_s25 + $0x74] ss:$8 sps:$4 sm:$0xff]  }
  0x3f   : > { %v18157_v42 = vld [vmem:[%s25144_s25 + $0x70] ss:$8 sps:$4 sm:$0xff]   ;;  %v18158_v43 = vld [vmem:[%s25144_s25 + $0x84] ss:$8 sps:$4 sm:$0xff]   ;;  %v18160_v44 = vld [vmem:[%s25144_s25 + $0x80] ss:$8 sps:$4 sm:$0xff]  }
  0x40   : > { %1109 = vmatpush1.bf16.msra.mxu0 %v18139_v28  ;;  %v18161_v45 = vld [vmem:[%s25144_s25 + $0x94] ss:$8 sps:$4 sm:$0xff]   ;;  %v18163_v53 = vld [vmem:[%s25144_s25 + $0x90] ss:$8 sps:$4 sm:$0xff]   ;;  %v2938_v55 = vld [vmem:[%s25118_s5 + $0xa8] sm:$0xff]  ;;  %s15880_s26 = sshll.u32 %s25156_s29, 2 }
  0x41   : > { %1110 = vmatprep.subr.bf16.mxu0 %v18140_v29  ;;  %v18164_v56 = vld [vmem:[%s25144_s25 + $0xa4] ss:$8 sps:$4 sm:$0xff]   ;;  %v15959_v58 = vcombine.high %v2934_v52, %v2938_v55  ;;  %v18166_v61 = vld [vmem:[%s25144_s25 + $0xa0] ss:$8 sps:$4 sm:$0xff]   ;;  %v18167_v62 = vld [vmem:[%s25144_s25 + $0xb4] ss:$8 sps:$4 sm:$0xff]   ;;  %v15958_v63 = vcombine.low %v2934_v52, %v2938_v55  ;;  %s18984_s21 = scalar_lea.vmem %s25146_s2, %s15880_s26 }
  0x42   : > { %v2942_v59 = vld [vmem:[%s25118_s5 + $0xc8] sm:$0xff]  ;;  %v18169_v3 = vld [vmem:[%s25144_s25 + $0xb0] ss:$8 sps:$4 sm:$0xff]   ;;  %v18173_v10 = vld [vmem:[%s25144_s25 + $0xd4] ss:$8 sps:$4 sm:$0xff]   ;;  %s15882_s2 = sshll.u32 %s25156_s29, 3 }
  0x43   : > { %v2946_v60 = vld [vmem:[%s25118_s5 + $0xe8] sm:$0xff]  ;;  %3354 = vmatprep.subr.bf16.mxu1 %v15959_v58  ;;  %v18175_v15 = vld [vmem:[%s25144_s25 + $0xd0] ss:$8 sps:$4 sm:$0xff]   ;;  %v18179_v25 = vld [vmem:[%s25144_s25 + $0xf4] ss:$8 sps:$4 sm:$0xff]   ;;  %s755_s27 = scalar_lea.vmem %s25132_s19, %s15882_s2 }
  0x44   : > { %1111 = vmatpush1.bf16.msra.mxu0 %v18142_v30  ;;  %v15967_v0 = vcombine.high %v2942_v59, %v2946_v60  ;;  %v2950_v1 = vld [vmem:[%s25118_s5 + $0x108] sm:$0xff]  ;;  %3355 = vmatpush1.bf16.msra.mxu1 %v15958_v63  ;;  %v15966_v5 = vcombine.low %v2942_v59, %v2946_v60  ;;  %v2917_v27 = vld [vmem:[%s25118_s5] sm:$0xff]  ;;  %v2919_v30 = vld [vmem:[%s25118_s5 + $0x10] sm:$0xff] }
  0x45   : > { %1112 = vmatprep.subr.bf16.mxu0 %v18143_v31  ;;  %v2954_v2 = vld [vmem:[%s25118_s5 + $0x128] sm:$0xff]  ;;  %v2921_v28 = vld [vmem:[%s25118_s5 + $0x20] sm:$0xff]  ;;  %v2923_v31 = vld [vmem:[%s25118_s5 + $0x30] sm:$0xff] }
  0x46   : > { %v18170_v4 = vld [vmem:[%s25144_s25 + $0xc4] ss:$8 sps:$4 sm:$0xff]   ;;  %3356 = vmatprep.subr.bf16.mxu1 %v15967_v0  ;;  %v15975_v6 = vcombine.high %v2950_v1, %v2954_v2  ;;  %v18172_v9 = vld [vmem:[%s25144_s25 + $0xc0] ss:$8 sps:$4 sm:$0xff]   ;;  %v15974_v11 = vcombine.low %v2950_v1, %v2954_v2  ;;  %v15944_v48 = vcombine.low %v2919_v30, %v2923_v31  ;;  %v2935_v52 = vld [vmem:[%s25118_s5 + $0x90] sm:$0xff] }
  0x47   : > { %v2958_v7 = vld [vmem:[%s25118_s5 + $0x148] sm:$0xff]  ;;  %v19070_v47 = vld [vmem:[%s18984_s21] sm:$0xff]   ;;  %v18187_v54 = vld [vmem:[%s18906_s0 + $0x10] ss:$8 sps:$4 sm:$0xff]  }
  0x48   : > { %1113 = vmatpush1.bf16.msra.mxu0 %v18145_v32  ;;  %v2962_v8 = vld [vmem:[%s25118_s5 + $0x168] sm:$0xff]  ;;  %3357 = vmatpush1.bf16.msra.mxu1 %v15966_v5  ;;  %v18181_v32 = vld [vmem:[%s25144_s25 + $0xf0] ss:$8 sps:$4 sm:$0xff]   ;;  %v2941_v51 = vld [vmem:[%s25118_s5 + $0xc0] sm:$0xff] }
  0x49   : > { %1114 = vmatprep.subr.bf16.mxu0 %v18146_v33  ;;  %3358 = vmatprep.subr.bf16.mxu1 %v15975_v6  ;;  %v15983_v12 = vcombine.high %v2958_v7, %v2962_v8  ;;  %v2966_v13 = vld [vmem:[%s25118_s5 + $0x188] sm:$0xff]  ;;  %v15982_v19 = vcombine.low %v2958_v7, %v2962_v8  ;;  %v2947_v63 = vld [vmem:[%s25118_s5 + $0xf0] sm:$0xff]  ;;  %v2953_v1 = vld [vmem:[%s25118_s5 + $0x120] sm:$0xff] }
  0x4a   : > { %v2970_v14 = vld [vmem:[%s25118_s5 + $0x1a8] sm:$0xff]  ;;  %v2957_v5 = vld [vmem:[%s25118_s5 + $0x140] sm:$0xff]  ;;  %v2951_v6 = vld [vmem:[%s25118_s5 + $0x110] sm:$0xff] }
  0x4b   : > { %v18176_v18 = vld [vmem:[%s25144_s25 + $0xe4] ss:$8 sps:$4 sm:$0xff]   ;;  %v15991_v21 = vcombine.high %v2966_v13, %v2970_v14  ;;  %v18178_v24 = vld [vmem:[%s25144_s25 + $0xe0] ss:$8 sps:$4 sm:$0xff]   ;;  %v15990_v26 = vcombine.low %v2966_v13, %v2970_v14  ;;  %v2955_v7 = vld [vmem:[%s25118_s5 + $0x130] sm:$0xff] }
  0x4c   : > { %1115 = vmatpush1.bf16.msra.mxu0 %v18148_v34  ;;  %3359 = vmatpush1.bf16.msra.mxu1 %v15974_v11  ;;  %v2974_v22 = vld [vmem:[%s25118_s5 + $0x1c8] sm:$0xff]  ;;  %v15941_v34 = vcombine.high %v2917_v27, %v2921_v28  ;;  %v18191_v11 = vld [vmem:[%s18906_s0 + $0x34] ss:$8 sps:$4 sm:$0xff]   ;;  %v15977_v13 = vcombine.high %v2951_v6, %v2955_v7 }
  0x4d   : > { %1116 = vmatprep.subr.bf16.mxu0 %v18149_v35  ;;  %3360 = vmatprep.subr.bf16.mxu1 %v15983_v12  ;;  %v2978_v23 = vld [vmem:[%s25118_s5 + $0x1e8] sm:$0xff]  ;;  %v2925_v35 = vld [vmem:[%s25118_s5 + $0x40] sm:$0xff] }
  0x4e   : > { %v15999_v29 = vcombine.high %v2974_v22, %v2978_v23  ;;  %v18182_v33 = vld [vmem:[%s18906_s0] ss:$8 sps:$4 sm:$0xff]   ;;  %v18188_v57 = vld [vmem:[%s18906_s0 + $0x24] ss:$8 sps:$4 sm:$0xff]  }
  0x4f   : > { %v18190_v8 = vld [vmem:[%s18906_s0 + $0x20] ss:$8 sps:$4 sm:$0xff]  }
  0x50   : > { %1117 = vmatpush1.bf16.msra.mxu0 %v18151_v36  ;;  %3361 = vmatpush1.bf16.msra.mxu1 %v15982_v19  ;;  %v2929_v36 = vld [vmem:[%s25118_s5 + $0x60] sm:$0xff]  ;;  %v2963_v19 = vld [vmem:[%s25118_s5 + $0x170] sm:$0xff] }
  0x51   : > { %1118 = vmatprep.subr.bf16.mxu0 %v18152_v38  ;;  %3362 = vmatprep.subr.bf16.mxu1 %v15991_v21  ;;  %v15998_v38 = vcombine.low %v2974_v22, %v2978_v23  ;;  %v15949_v46 = vcombine.high %v2925_v35, %v2929_v36  ;;  %v15948_v50 = vcombine.low %v2925_v35, %v2929_v36  ;;  %v2969_v22 = vld [vmem:[%s25118_s5 + $0x1a0] sm:$0xff] }
  0x52   : > { %v15976_v23 = vcombine.low %v2951_v6, %v2955_v7  ;;  %v2960_v6 = vld [vmem:[%s25118_s5 + $0x158] sm:$0xff] }
  0x53   : > { %v2964_v7 = vld [vmem:[%s25118_s5 + $0x178] sm:$0xff] }
  0x54   : > { %1119 = vmatpush1.bf16.msra.mxu0 %v18154_v40  ;;  %3363 = vmatpush1.bf16.msra.mxu1 %v15990_v26  ;;  %v15945_v40 = vcombine.high %v2919_v30, %v2923_v31  ;;  %v2973_v26 = vld [vmem:[%s25118_s5 + $0x1c0] sm:$0xff] }
  0x55   : > { %1120 = vmatprep.subr.bf16.mxu0 %v18155_v41  ;;  %3364 = vmatprep.subr.bf16.mxu1 %v15999_v29  ;;  %v15940_v41 = vcombine.low %v2917_v27, %v2921_v28  ;;  %v2967_v27 = vld [vmem:[%s25118_s5 + $0x190] sm:$0xff]  ;;  %v2977_v31 = vld [vmem:[%s25118_s5 + $0x1e0] sm:$0xff] }
  0x56   : > { %v2971_v28 = vld [vmem:[%s25118_s5 + $0x1b0] sm:$0xff] }
  0x57   : > { %v18193_v29 = vld [vmem:[%s18906_s0 + $0x30] ss:$8 sps:$4 sm:$0xff]   ;;  %v15993_v35 = vcombine.high %v2967_v27, %v2971_v28 }
  0x58   : > { %1121 = vmatpush1.bf16.msra.mxu0 %v18157_v42  ;;  %v2933_v42 = vld [vmem:[%s25118_s5 + $0x80] sm:$0xff]  ;;  %3365 = vmatpush1.bf16.msra.mxu1 %v15998_v38  ;;  %v2979_v38 = vld [vmem:[%s25118_s5 + $0x1f0] sm:$0xff] }
  0x59   : > { %1122 = vmatprep.subr.bf16.mxu0 %v18158_v43  ;;  %v2937_v43 = vld [vmem:[%s25118_s5 + $0xa0] sm:$0xff]  ;;  %3393 = vmatprep.subr.bf16.mxu1 %v15945_v40  ;;  %v15992_v40 = vcombine.low %v2967_v27, %v2971_v28  ;;  %v18211_v27 = vld [vmem:[%s18906_s0 + $0x90] ss:$8 sps:$4 sm:$0xff]  }
  0x5a   : > { %v15957_v55 = vcombine.high %v2933_v42, %v2937_v43  ;;  %v15956_v60 = vcombine.low %v2933_v42, %v2937_v43  ;;  %v2924_v42 = vld [vmem:[%s25118_s5 + $0x38] sm:$0xff]  ;;  %v18212_v28 = vld [vmem:[%s18906_s0 + $0xa4] ss:$8 sps:$4 sm:$0xff]  }
  0x5b   : > { %3383 = vmatmul.mubr.bf16.vlgmr.msra.gmra.mrb[0].mxu1 %v19070_v47 }
  0x5c   : > { %1123 = vmatpush1.bf16.msra.mxu0 %v18160_v44  ;;  %v2927_v44 = vld [vmem:[%s25118_s5 + $0x50] sm:$0xff]  ;;  %3394 = vmatpush1.bf16.msra.mxu1 %v15944_v48 }
  0x5d   : > { %1124 = vmatprep.subr.bf16.mxu0 %v18161_v45  ;;  %v2931_v45 = vld [vmem:[%s25118_s5 + $0x70] sm:$0xff]  ;;  %3425 = vmatprep.mubr.bf16.mxu1 %v18673_v37 }
  0x5e   : > { %v15953_v49 = vcombine.high %v2927_v44, %v2931_v45  ;;  %v15952_v58 = vcombine.low %v2927_v44, %v2931_v45  ;;  %v15996_v44 = vcombine.low %v2973_v26, %v2977_v31  ;;  %v18196_v45 = vld [vmem:[%s18906_s0 + $0x40] ss:$8 sps:$4 sm:$0xff]   ;;  %v18197_v48 = vld [vmem:[%s18906_s0 + $0x54] ss:$8 sps:$4 sm:$0xff]  }
  0x60   : > { %1125 = vmatpush1.bf16.msra.mxu0 %v18163_v53  ;;  %v2939_v53 = vld [vmem:[%s25118_s5 + $0xb0] sm:$0xff]  ;;  %3395 = vmatprep.subr.bf16.mxu1 %v15953_v49 }
  0x61   : > { %1126 = vmatprep.subr.bf16.mxu0 %v18164_v56  ;;  %v2945_v56 = vld [vmem:[%s25118_s5 + $0xe0] sm:$0xff]  ;;  %v15961_v59 = vcombine.high %v2935_v52, %v2939_v53  ;;  %3396 = vmatpush1.bf16.msra.mxu1 %v15952_v58  ;;  %v15960_v2 = vcombine.low %v2935_v52, %v2939_v53 }
  0x62   : > { %v15965_v0 = vcombine.high %v2941_v51, %v2945_v56  ;;  %v18200_v58 = vld [vmem:[%s18906_s0 + $0x64] ss:$8 sps:$4 sm:$0xff]  }
  0x63   : > { %3397 = vmatprep.subr.bf16.mxu1 %v15961_v59 }
  0x64   : > { %1127 = vmatpush1.bf16.msra.mxu0 %v18166_v61  ;;  %v2949_v61 = vld [vmem:[%s25118_s5 + $0x100] sm:$0xff] }
  0x65   : > { %1128 = vmatprep.subr.bf16.mxu0 %v18167_v62  ;;  %v2943_v62 = vld [vmem:[%s25118_s5 + $0xd0] sm:$0xff]  ;;  %3398 = vmatpush1.bf16.msra.mxu1 %v15960_v2  ;;  %v15972_v14 = vcombine.low %v2949_v61, %v2953_v1 }
  0x66   : > { %v15968_v12 = vcombine.low %v2943_v62, %v2947_v63 }
  0x68   : > { %1129 = vmatpush1.bf16.msra.mxu0 %v18169_v3  ;;  %v15969_v3 = vcombine.high %v2943_v62, %v2947_v63 }
  0x69   : > { %1130 = vmatprep.subr.bf16.mxu0 %v18170_v4  ;;  %v15964_v4 = vcombine.low %v2941_v51, %v2945_v56  ;;  %v2932_v51 = vld [vmem:[%s25118_s5 + $0x78] sm:$0xff] }
  0x6a   : > { %3399 = vmatprep.subr.bf16.mxu1 %v15969_v3  ;;  %v18202_v3 = vld [vmem:[%s18906_s0 + $0x60] ss:$8 sps:$4 sm:$0xff]  }
  0x6b   : > { %3400 = vmatpush1.bf16.msra.mxu1 %v15968_v12  ;;  %v15987_v12 = vcombine.high %v2960_v6, %v2964_v7 }
  0x6c   : > { %1131 = vmatpush1.bf16.msra.mxu0 %v18172_v9  ;;  %v15973_v9 = vcombine.high %v2949_v61, %v2953_v1  ;;  %3401 = vmatprep.subr.bf16.mxu1 %v15977_v13  ;;  %v2948_v61 = vld [vmem:[%s25118_s5 + $0xf8] sm:$0xff] }
  0x6d   : > { %1132 = vmatprep.subr.bf16.mxu0 %v18173_v10  ;;  %v2961_v10 = vld [vmem:[%s25118_s5 + $0x160] sm:$0xff]  ;;  %v2956_v1 = vld [vmem:[%s25118_s5 + $0x138] sm:$0xff] }
  0x6e   : > { %v15981_v21 = vcombine.high %v2957_v5, %v2961_v10  ;;  %v18205_v13 = vld [vmem:[%s18906_s0 + $0x70] ss:$8 sps:$4 sm:$0xff]  }
  0x6f   : > { %3402 = vmatpush1.bf16.msra.mxu1 %v15976_v23 }
  0x70   : > { %1133 = vmatpush1.bf16.msra.mxu0 %v18175_v15  ;;  %v2965_v15 = vld [vmem:[%s25118_s5 + $0x180] sm:$0xff] }
  0x71   : > { %1134 = vmatprep.subr.bf16.mxu0 %v18176_v18  ;;  %v2959_v18 = vld [vmem:[%s25118_s5 + $0x150] sm:$0xff]  ;;  %v15989_v30 = vcombine.high %v2965_v15, %v2969_v22  ;;  %v15988_v36 = vcombine.low %v2965_v15, %v2969_v22  ;;  %v15986_v15 = vcombine.low %v2960_v6, %v2964_v7  ;;  %v1419_v7 = vld [vmem:[%s25117_s4 + $0x140] sm:$0xff] }
  0x74   : > { %1135 = vmatpush1.bf16.msra.mxu0 %v18178_v24  ;;  %v15985_v24 = vcombine.high %v2959_v18, %v2963_v19 }
  0x75   : > { %1136 = vmatprep.subr.bf16.mxu0 %v18179_v25  ;;  %v15980_v25 = vcombine.low %v2957_v5, %v2961_v10  ;;  %v2968_v10 = vld [vmem:[%s25118_s5 + $0x198] sm:$0xff] }
  0x76   : > { %3403 = vmatprep.subr.bf16.mxu1 %v15985_v24  ;;  %v18208_v24 = vld [vmem:[%s18906_s0 + $0x80] ss:$8 sps:$4 sm:$0xff]  }
  0x78   : > { %1137 = vmatpush1.bf16.msra.mxu0 %v18181_v32  ;;  %v18194_v32 = vld [vmem:[%s18906_s0 + $0x44] ss:$8 sps:$4 sm:$0xff]  }
  0x79   : > { %3307 = vmatprep.subr.bf16.mxu0 %v15941_v34  ;;  %v2975_v34 = vld [vmem:[%s25118_s5 + $0x1d0] sm:$0xff] }
  0x7a   : > { %v16001_v43 = vcombine.high %v2975_v34, %v2979_v38  ;;  %v16000_v49 = vcombine.low %v2975_v34, %v2979_v38  ;;  %v2288_v38 = vld [vmem:[%s25117_s4 + $0x1c68] sm:$0xff] }
  0x7b   : > { %1139 = vmatmul.mubr.bf16.vlgmr.msra.gmra.mrb[0].mxu0 %v18182_v33  ;;  %v15984_v33 = vcombine.low %v2959_v18, %v2963_v19  ;;  %v2976_v18 = vld [vmem:[%s25118_s5 + $0x1d8] sm:$0xff] }
  0x7c   : > { %1148 = vmatprep.mubr.bf16.mxu0 %v18185_v39  ;;  %3308 = vmatpush1.bf16.msra.mxu0 %v15940_v41  ;;  %v15997_v39 = vcombine.high %v2973_v26, %v2977_v31  ;;  %v2920_v41 = vld [vmem:[%s25118_s5 + $0x18] sm:$0xff] }
  0x7d   : > { %3309 = vmatprep.subr.bf16.mxu0 %v15949_v46  ;;  %3404 = vmatpush1.bf16.msra.mxu1 %v15984_v33  ;;  %v16005_v46 = vcombine.high %v19010_v16, %v19015_v17  ;;  %v15947_v52 = vcombine.high %v2920_v41, %v2924_v42  ;;  %v15946_v53 = vcombine.low %v2920_v41, %v2924_v42  ;;  %v2980_v19 = vld [vmem:[%s25118_s5 + $0x1f8] sm:$0xff]  ;;  %v2280_v33 = vld [vmem:[%s25117_s4 + $0x1c28] sm:$0xff]  ;;  %v1387_v41 = vld [vmem:[%s25117_s4 + $0x40] sm:$0xff] }
  0x7e   : > { %3405 = vmatprep.subr.bf16.mxu1 %v15993_v35  ;;  %v16003_v23 = vcombine.high %v2976_v18, %v2980_v19  ;;  %v16002_v26 = vcombine.low %v2976_v18, %v2980_v19  ;;  %v18218_v31 = vld [vmem:[%s18906_s0 + $0xb0] ss:$8 sps:$4 sm:$0xff]   ;;  %v1391_v42 = vld [vmem:[%s25117_s4 + $0x60] sm:$0xff]  ;;  %v2312_v16 = vld [vmem:[%s25117_s4 + $0x1d28] sm:$0xff] }
  0x7f   : > { %v1431_v18 = vld [vmem:[%s25117_s4 + $0x1a0] sm:$0xff]  ;;  %v2332_v19 = vld [vmem:[%s25117_s4 + $0x1dc8] sm:$0xff] }
  0x80   : > { %3310 = vmatpush1.bf16.msra.mxu0 %v15948_v50  ;;  %v2928_v50 = vld [vmem:[%s25118_s5 + $0x58] sm:$0xff] }
  0x81   : > { %3311 = vmatprep.subr.bf16.mxu0 %v15957_v55  ;;  %3406 = vmatpush1.bf16.msra.mxu1 %v15992_v40  ;;  %v2940_v55 = vld [vmem:[%s25118_s5 + $0xb8] sm:$0xff]  ;;  %v15955_v56 = vcombine.high %v2928_v50, %v2932_v51  ;;  %v15954_v59 = vcombine.low %v2928_v50, %v2932_v51  ;;  %v16013_v50 = vcombine.high %v1387_v41, %v1391_v42  ;;  %v1395_v51 = vld [vmem:[%s25117_s4 + $0x80] sm:$0xff] }
  0x82   : > { %3407 = vmatprep.subr.bf16.mxu1 %v16001_v43  ;;  %v19236_v43 = vld [vmem:[%s25117_s4 + $0x400] sm:$0xff] }
  0x83   : > { %1149 = vmatmul.mubr.bf16.gmra.mrb[4].mxu0 %v18187_v54  ;;  %v2936_v54 = vld [vmem:[%s25118_s5 + $0x98] sm:$0xff] }
  0x84   : > { %1158 = vmatprep.mubr.bf16.mxu0 %v18188_v57  ;;  %3312 = vmatpush1.bf16.msra.mxu0 %v15956_v60  ;;  %v18199_v57 = vld [vmem:[%s18906_s0 + $0x50] ss:$8 sps:$4 sm:$0xff]   ;;  %v15963_v62 = vcombine.high %v2936_v54, %v2940_v55  ;;  %v15962_v63 = vcombine.low %v2936_v54, %v2940_v55  ;;  %v2304_v54 = vld [vmem:[%s25117_s4 + $0x1ce8] sm:$0xff]  ;;  %v16012_v55 = vcombine.low %v1387_v41, %v1391_v42 }
  0x85   : > { %3313 = vmatprep.subr.bf16.mxu0 %v15965_v0  ;;  %3408 = vmatpush1.bf16.msra.mxu1 %v16000_v49  ;;  %v2944_v60 = vld [vmem:[%s25118_s5 + $0xd8] sm:$0xff] }
  0x86   : > { %3436 = vmatprep.subr.bf16.mxu1 %v15947_v52  ;;  %v2952_v0 = vld [vmem:[%s25118_s5 + $0x118] sm:$0xff]  ;;  %v15971_v2 = vcombine.high %v2944_v60, %v2948_v61  ;;  %v15970_v5 = vcombine.low %v2944_v60, %v2948_v61  ;;  %v1399_v52 = vld [vmem:[%s25117_s4 + $0xa0] sm:$0xff]  ;;  %v2308_v60 = vld [vmem:[%s25117_s4 + $0x1d08] sm:$0xff] }
  0x87   : > { %v16020_v17 = vcombine.low %v1395_v51, %v1399_v52  ;;  %v16935_v61 = vcombine.high %v2308_v60, %v2312_v16 }
  0x88   : > { %3314 = vmatpush1.bf16.msra.mxu0 %v15964_v4  ;;  %3426 = vmatmul.mubr.bf16.vlgmr.msra.gmra.mrb[4].mxu1 %v19070_v47  ;;  %v18203_v4 = vld [vmem:[%s18906_s0 + $0x74] ss:$8 sps:$4 sm:$0xff]  }
  0x89   : > { %3315 = vmatprep.subr.bf16.mxu0 %v15973_v9  ;;  %3437 = vmatpush1.bf16.msra.mxu1 %v15946_v53  ;;  %v15978_v9 = vcombine.low %v2952_v0, %v2956_v1  ;;  %v2300_v53 = vld [vmem:[%s25117_s4 + $0x1cc8] sm:$0xff] }
  0x8a   : > { %3468 = vmatprep.mubr.bf16.mxu1 %v18673_v37  ;;  %3438 = vmatprep.subr.bf16.mxu1 %v15955_v56  ;;  %v16926_v56 = vcombine.low %v2300_v53, %v2304_v54 }
  0x8b   : > { %1159 = vmatmul.mubr.bf16.gmra.mrb[8].mxu0 %v18190_v8  ;;  %v15979_v8 = vcombine.high %v2952_v0, %v2956_v1  ;;  %v1415_v0 = vld [vmem:[%s25117_s4 + $0x120] sm:$0xff]  ;;  %v2316_v1 = vld [vmem:[%s25117_s4 + $0x1d48] sm:$0xff] }
  0x8c   : > { %1168 = vmatprep.mubr.bf16.mxu0 %v18191_v11  ;;  %3316 = vmatpush1.bf16.msra.mxu0 %v15972_v14  ;;  %v2972_v11 = vld [vmem:[%s25118_s5 + $0x1b8] sm:$0xff]  ;;  %v18206_v14 = vld [vmem:[%s18906_s0 + $0x84] ss:$8 sps:$4 sm:$0xff]  }
  0x8d   : > { %3317 = vmatprep.subr.bf16.mxu0 %v15981_v21  ;;  %3439 = vmatpush1.bf16.msra.mxu1 %v15954_v59  ;;  %v15995_v21 = vcombine.high %v2968_v10, %v2972_v11  ;;  %v15994_v22 = vcombine.low %v2968_v10, %v2972_v11  ;;  %v1403_v59 = vld [vmem:[%s25117_s4 + $0xc0] sm:$0xff]  ;;  %v2328_v10 = vld [vmem:[%s25117_s4 + $0x1da8] sm:$0xff] }
  0x8e   : > { %3440 = vmatprep.subr.bf16.mxu1 %v15963_v62 }
  0x90   : > { %3318 = vmatpush1.bf16.msra.mxu0 %v15980_v25  ;;  %v18209_v25 = vld [vmem:[%s18906_s0 + $0x94] ss:$8 sps:$4 sm:$0xff]  }
  0x91   : > { %3319 = vmatprep.subr.bf16.mxu0 %v15989_v30  ;;  %3441 = vmatpush1.bf16.msra.mxu1 %v15962_v63  ;;  %v18216_v30 = vld [vmem:[%s18906_s0 + $0xb4] ss:$8 sps:$4 sm:$0xff]  }
  0x92   : > { %3442 = vmatprep.subr.bf16.mxu1 %v15971_v2  ;;  %v1411_v63 = vld [vmem:[%s25117_s4 + $0x100] sm:$0xff]  ;;  %v2320_v2 = vld [vmem:[%s25117_s4 + $0x1d68] sm:$0xff] }
  0x93   : > { %1169 = vmatmul.mubr.bf16.gmra.mrb[12].mxu0 %v18193_v29  ;;  %v18214_v29 = vld [vmem:[%s18906_s0 + $0xa0] ss:$8 sps:$4 sm:$0xff]   ;;  %v16037_v6 = vcombine.high %v1411_v63, %v1415_v0  ;;  %v16036_v11 = vcombine.low %v1411_v63, %v1415_v0 }
  0x94   : > { %1178 = vmatprep.mubr.bf16.mxu0 %v18194_v32  ;;  %3320 = vmatpush1.bf16.msra.mxu0 %v15988_v36  ;;  %v2276_v32 = vld [vmem:[%s25117_s4 + $0x1c08] sm:$0xff] }
  0x95   : > { %3321 = vmatprep.subr.bf16.mxu0 %v15997_v39  ;;  %3443 = vmatpush1.bf16.msra.mxu1 %v15970_v5  ;;  %v16902_v34 = vcombine.low %v2276_v32, %v2280_v33  ;;  %v16903_v35 = vcombine.high %v2276_v32, %v2280_v33  ;;  %v2284_v36 = vld [vmem:[%s25117_s4 + $0x1c48] sm:$0xff]  ;;  %v16943_v5 = vcombine.high %v2316_v1, %v2320_v2 }
  0x96   : > { %3444 = vmatprep.subr.bf16.mxu1 %v15979_v8  ;;  %v16910_v39 = vcombine.low %v2284_v36, %v2288_v38  ;;  %v16911_v40 = vcombine.high %v2284_v36, %v2288_v38  ;;  %v1423_v8 = vld [vmem:[%s25117_s4 + $0x160] sm:$0xff]  ;;  %v2348_v36 = vld [vmem:[%s25117_s4 + $0x1e48] sm:$0xff] }
  0x97   : > { %v2352_v38 = vld [vmem:[%s25117_s4 + $0x1e68] sm:$0xff] }
  0x98   : > { %3322 = vmatpush1.bf16.msra.mxu0 %v15996_v44  ;;  %v19241_v44 = vld [vmem:[%s25117_s4 + $0x420] sm:$0xff]  ;;  %v16975_v41 = vcombine.high %v2348_v36, %v2352_v38 }
  0x99   : > { %11159 = vmatprep.subr.bf16.mxu0 %v16005_v46  ;;  %3445 = vmatpush1.bf16.msra.mxu1 %v15978_v9  ;;  %v16132_v46 = vcombine.low %v19236_v43, %v19241_v44  ;;  %v2324_v9 = vld [vmem:[%s25117_s4 + $0x1d88] sm:$0xff] }
  0x9a   : > { %3446 = vmatprep.subr.bf16.mxu1 %v15987_v12  ;;  %v16950_v12 = vcombine.low %v2324_v9, %v2328_v10 }
  0x9b   : > { %1179 = vmatmul.mubr.bf16.gmra.mrb[16].mxu0 %v18196_v45  ;;  %v2296_v45 = vld [vmem:[%s25117_s4 + $0x1ca8] sm:$0xff] }
  0x9c   : > { %1188 = vmatprep.mubr.bf16.mxu0 %v18197_v48 }
  0x9d   : > { %3447 = vmatpush1.bf16.msra.mxu1 %v15986_v15  ;;  %v1427_v15 = vld [vmem:[%s25117_s4 + $0x180] sm:$0xff] }
  0x9e   : > { %3448 = vmatprep.subr.bf16.mxu1 %v15995_v21  ;;  %v2336_v21 = vld [vmem:[%s25117_s4 + $0x1de8] sm:$0xff] }
  0xa1   : > { %3449 = vmatpush1.bf16.msra.mxu1 %v15994_v22  ;;  %v16044_v22 = vcombine.low %v1419_v7, %v1423_v8 }
  0xa2   : > { %3450 = vmatprep.subr.bf16.mxu1 %v16003_v23  ;;  %v16958_v23 = vcombine.low %v2332_v19, %v2336_v21 }
  0xa3   : > { %1189 = vmatmul.mubr.bf16.gmra.mrb[20].mxu0 %v18199_v57  ;;  %v16927_v57 = vcombine.high %v2300_v53, %v2304_v54  ;;  %v1459_v54 = vld [vmem:[%s25117_s4 + $0x280] sm:$0xff] }
  0xa4   : > { %1198 = vmatprep.mubr.bf16.mxu0 %v18200_v58  ;;  %v16021_v58 = vcombine.high %v1395_v51, %v1399_v52 }
  0xa5   : > { %3451 = vmatpush1.bf16.msra.mxu1 %v16002_v26  ;;  %v1435_v26 = vld [vmem:[%s25117_s4 + $0x1c0] sm:$0xff] }
  0xa6   : > { %11976 = vmatprep.subr.bf16.mxu1 %v16903_v35  ;;  %v1447_v35 = vld [vmem:[%s25117_s4 + $0x220] sm:$0xff] }
  0xa8   : > { %3469 = vmatmul.mubr.bf16.vlgmr.msra.gmra.mrb[8].mxu1 %v19070_v47 }
  0xa9   : > { %11977 = vmatpush1.bf16.msra.mxu1 %v16902_v34  ;;  %v1443_v34 = vld [vmem:[%s25117_s4 + $0x200] sm:$0xff] }
  0xaa   : > { %11978 = vmatprep.subr.bf16.mxu1 %v16911_v40  ;;  %v16974_v40 = vcombine.low %v2348_v36, %v2352_v38  ;;  %v16069_v42 = vcombine.high %v1443_v34, %v1447_v35 }
  0xab   : > { %1199 = vmatmul.mubr.bf16.gmra.mrb[24].mxu0 %v18202_v3 }
  0xac   : > { %1208 = vmatprep.mubr.bf16.mxu0 %v18203_v4  ;;  %v16942_v4 = vcombine.low %v2316_v1, %v2320_v2  ;;  %v1475_v2 = vld [vmem:[%s25117_s4 + $0x300] sm:$0xff] }
  0xad   : > { %11979 = vmatpush1.bf16.msra.mxu1 %v16910_v39 }
  0xb3   : > { %1209 = vmatmul.mubr.bf16.gmra.mrb[28].mxu0 %v18205_v13  ;;  %v16951_v13 = vcombine.high %v2324_v9, %v2328_v10  ;;  %v1483_v10 = vld [vmem:[%s25117_s4 + $0x340] sm:$0xff] }
  0xb4   : > { %1218 = vmatprep.mubr.bf16.mxu0 %v18206_v14  ;;  %v16045_v14 = vcombine.high %v1419_v7, %v1423_v8 }
  0xbb   : > { %1219 = vmatmul.mubr.bf16.gmra.mrb[32].mxu0 %v18208_v24  ;;  %v16959_v24 = vcombine.high %v2332_v19, %v2336_v21  ;;  %v1491_v21 = vld [vmem:[%s25117_s4 + $0x380] sm:$0xff] }
  0xbc   : > { %1228 = vmatprep.mubr.bf16.mxu0 %v18209_v25  ;;  %v16053_v25 = vcombine.high %v1427_v15, %v1431_v18 }
  0xc3   : > { %1229 = vmatmul.mubr.bf16.gmra.mrb[36].mxu0 %v18211_v27  ;;  %v1439_v27 = vld [vmem:[%s25117_s4 + $0x1e0] sm:$0xff] }
  0xc4   : > { %1238 = vmatprep.mubr.bf16.mxu0 %v18212_v28  ;;  %v2340_v28 = vld [vmem:[%s25117_s4 + $0x1e08] sm:$0xff]  ;;  %v16061_v33 = vcombine.high %v1435_v26, %v1439_v27  ;;  %v16060_v39 = vcombine.low %v1435_v26, %v1439_v27 }
  0xcb   : > { %1239 = vmatmul.mubr.bf16.gmra.mrb[40].mxu0 %v18214_v29  ;;  %v2344_v29 = vld [vmem:[%s25117_s4 + $0x1e28] sm:$0xff] }
  0xcc   : > { %1248 = vmatprep.mubr.bf16.mxu0 %v18216_v30  ;;  %v16052_v30 = vcombine.low %v1427_v15, %v1431_v18  ;;  %v16967_v32 = vcombine.high %v2340_v28, %v2344_v29 }
  0xd3   : > { %1249 = vmatmul.mubr.bf16.gmra.mrb[44].mxu0 %v18218_v31  ;;  %v16966_v31 = vcombine.low %v2340_v28, %v2344_v29  ;;  %v1499_v29 = vld [vmem:[%s25117_s4 + $0x3c0] sm:$0xff] }
  0xd4   : > { %3339 = vmatprep.mubr.bf16.mxu0 %v18673_v37  ;;  %v2292_v37 = vld [vmem:[%s25117_s4 + $0x1c88] sm:$0xff] }
  0xd5   : > { %v16918_v48 = vcombine.low %v2292_v37, %v2296_v45  ;;  %v16919_v49 = vcombine.high %v2292_v37, %v2296_v45  ;;  %v1451_v37 = vld [vmem:[%s25117_s4 + $0x240] sm:$0xff] }
  0xd6   : > { %v1455_v45 = vld [vmem:[%s25117_s4 + $0x260] sm:$0xff] }
  0xd7   : > { %11980 = vmatprep.subr.bf16.mxu1 %v16919_v49  ;;  %v2360_v49 = vld [vmem:[%s25117_s4 + $0x1ea8] sm:$0xff]  ;;  %v16077_v53 = vcombine.high %v1451_v37, %v1455_v45 }
  0xd8   : > { %11981 = vmatpush1.bf16.msra.mxu1 %v16918_v48  ;;  %v2356_v48 = vld [vmem:[%s25117_s4 + $0x1e88] sm:$0xff] }
  0xd9   : > { %11982 = vmatprep.subr.bf16.mxu1 %v16927_v57  ;;  %v16982_v51 = vcombine.low %v2356_v48, %v2360_v49  ;;  %v16983_v52 = vcombine.high %v2356_v48, %v2360_v49  ;;  %v2368_v57 = vld [vmem:[%s25117_s4 + $0x1ee8] sm:$0xff] }
  0xdb   : > { %3340 = vmatmul.mubr.bf16.vlgmr.msra.gmra.mrb[48].mxu0 %v19070_v47  ;;  %v1407_v47 = vld [vmem:[%s25117_s4 + $0xe0] sm:$0xff] }
  0xdc   : > { %11160 = vmatpush1.bf16.msra.mxu0 %v16004_v20  ;;  %11983 = vmatpush1.bf16.msra.mxu1 %v16926_v56  ;;  %v16934_v20 = vcombine.low %v2308_v60, %v2312_v16  ;;  %v16029_v62 = vcombine.high %v1403_v59, %v1407_v47  ;;  %v16028_v3 = vcombine.low %v1403_v59, %v1407_v47  ;;  %v2364_v56 = vld [vmem:[%s25117_s4 + $0x1ec8] sm:$0xff]  ;;  %v1467_v16 = vld [vmem:[%s25117_s4 + $0x2c0] sm:$0xff] }
  0xdd   : > { %11161 = vmatprep.subr.bf16.mxu0 %v16013_v50  ;;  %11984 = vmatprep.subr.bf16.mxu1 %v16935_v61  ;;  %v16068_v50 = vcombine.low %v1443_v34, %v1447_v35  ;;  %v16990_v59 = vcombine.low %v2364_v56, %v2368_v57  ;;  %v16991_v47 = vcombine.high %v2364_v56, %v2368_v57  ;;  %v2376_v61 = vld [vmem:[%s25117_s4 + $0x1f28] sm:$0xff] }
  0xe0   : > { %11162 = vmatpush1.bf16.msra.mxu0 %v16012_v55  ;;  %11985 = vmatpush1.bf16.msra.mxu1 %v16934_v20  ;;  %v1463_v55 = vld [vmem:[%s25117_s4 + $0x2a0] sm:$0xff]  ;;  %v2372_v20 = vld [vmem:[%s25117_s4 + $0x1f08] sm:$0xff] }
  0xe1   : > { %11163 = vmatprep.subr.bf16.mxu0 %v16021_v58  ;;  %11986 = vmatprep.subr.bf16.mxu1 %v16943_v5  ;;  %v16076_v58 = vcombine.low %v1451_v37, %v1455_v45  ;;  %v16085_v60 = vcombine.high %v1459_v54, %v1463_v55  ;;  %v16998_v63 = vcombine.low %v2372_v20, %v2376_v61  ;;  %v2384_v5 = vld [vmem:[%s25117_s4 + $0x1f68] sm:$0xff]  ;;  %v814_v37 = vld [vmem:[%s25147_s1] sm:$0x3] }
  0xe2   : > { %v16999_v0 = vcombine.high %v2372_v20, %v2376_v61 }
  0xe4   : > { %11164 = vmatpush1.bf16.msra.mxu0 %v16020_v17  ;;  %11987 = vmatpush1.bf16.msra.mxu1 %v16942_v4  ;;  %v1471_v17 = vld [vmem:[%s25117_s4 + $0x2e0] sm:$0xff]  ;;  %v2380_v4 = vld [vmem:[%s25117_s4 + $0x1f48] sm:$0xff] }
  0xe5   : > { %11165 = vmatprep.subr.bf16.mxu0 %v16029_v62  ;;  %11988 = vmatprep.subr.bf16.mxu1 %v16951_v13  ;;  %v16084_v62 = vcombine.low %v1459_v54, %v1463_v55  ;;  %v16093_v1 = vcombine.high %v1467_v16, %v1471_v17  ;;  %v17006_v7 = vcombine.low %v2380_v4, %v2384_v5  ;;  %v2392_v13 = vld [vmem:[%s25117_s4 + $0x1fa8] sm:$0xff] }
  0xe6   : > { %v17007_v8 = vcombine.high %v2380_v4, %v2384_v5  ;;  %v1523_v4 = vld [vmem:[%s25117_s4 + $0x480] sm:$0xff] }
  0xe7   : > { %v1527_v5 = vld [vmem:[%s25117_s4 + $0x4a0] sm:$0xff] }
  0xe8   : > { %11166 = vmatpush1.bf16.msra.mxu0 %v16028_v3  ;;  %11989 = vmatpush1.bf16.msra.mxu1 %v16950_v12  ;;  %v1479_v3 = vld [vmem:[%s25117_s4 + $0x320] sm:$0xff]  ;;  %v2388_v12 = vld [vmem:[%s25117_s4 + $0x1f88] sm:$0xff] }
  0xe9   : > { %11167 = vmatprep.subr.bf16.mxu0 %v16037_v6  ;;  %11990 = vmatprep.subr.bf16.mxu1 %v16959_v24  ;;  %v16092_v6 = vcombine.low %v1467_v16, %v1471_v17  ;;  %v16101_v9 = vcombine.high %v1475_v2, %v1479_v3  ;;  %v17014_v15 = vcombine.low %v2388_v12, %v2392_v13  ;;  %v2400_v24 = vld [vmem:[%s25117_s4 + $0x1fe8] sm:$0xff]  ;;  %v1515_v16 = vld [vmem:[%s25117_s4 + $0x440] sm:$0xff] }
  0xea   : > { %v17015_v18 = vcombine.high %v2388_v12, %v2392_v13  ;;  %v1519_v17 = vld [vmem:[%s25117_s4 + $0x460] sm:$0xff]  ;;  %v16149_v12 = vcombine.high %v1523_v4, %v1527_v5 }
  0xec   : > { %11168 = vmatpush1.bf16.msra.mxu0 %v16036_v11  ;;  %11991 = vmatpush1.bf16.msra.mxu1 %v16958_v23  ;;  %v1487_v11 = vld [vmem:[%s25117_s4 + $0x360] sm:$0xff]  ;;  %v2396_v23 = vld [vmem:[%s25117_s4 + $0x1fc8] sm:$0xff] }
  0xed   : > { %11169 = vmatprep.subr.bf16.mxu0 %v16045_v14  ;;  %11992 = vmatprep.subr.bf16.mxu1 %v16967_v32  ;;  %v16100_v14 = vcombine.low %v1475_v2, %v1479_v3  ;;  %v16109_v19 = vcombine.high %v1483_v10, %v1487_v11  ;;  %v17022_v26 = vcombine.low %v2396_v23, %v2400_v24  ;;  %v19425_v32 = vld [vmem:[%s25117_s4 + $0x2028] sm:$0xff] }
  0xee   : > { %v17023_v27 = vcombine.high %v2396_v23, %v2400_v24 }
  0xf0   : > { %11170 = vmatpush1.bf16.msra.mxu0 %v16044_v22  ;;  %11993 = vmatpush1.bf16.msra.mxu1 %v16966_v31  ;;  %v1495_v22 = vld [vmem:[%s25117_s4 + $0x3a0] sm:$0xff]  ;;  %v19420_v31 = vld [vmem:[%s25117_s4 + $0x2008] sm:$0xff] }
  0xf1   : > { %11171 = vmatprep.subr.bf16.mxu0 %v16053_v25  ;;  %11994 = vmatprep.subr.bf16.mxu1 %v16975_v41  ;;  %v16108_v25 = vcombine.low %v1483_v10, %v1487_v11  ;;  %v16117_v28 = vcombine.high %v1491_v21, %v1495_v22  ;;  %v17030_v34 = vcombine.low %v19420_v31, %v19425_v32 }
  0xf2   : > { %v17031_v35 = vcombine.high %v19420_v31, %v19425_v32  ;;  %v2428_v32 = vld [vmem:[%s25117_s4 + $0x20c8] sm:$0xff] }
  0xf4   : > { %11172 = vmatpush1.bf16.msra.mxu0 %v16052_v30  ;;  %11995 = vmatpush1.bf16.msra.mxu1 %v16974_v40  ;;  %v1503_v30 = vld [vmem:[%s25117_s4 + $0x3e0] sm:$0xff]  ;;  %v816_v40 = vlaneseq }
  0xf5   : > { %11173 = vmatprep.subr.bf16.mxu0 %v16061_v33  ;;  %11996 = vmatprep.subr.bf16.mxu1 %v16983_v52  ;;  %v16116_v33 = vcombine.low %v1491_v21, %v1495_v22  ;;  %v16125_v36 = vcombine.high %v1499_v29, %v1503_v30  ;;  %v16124_v38 = vcombine.low %v1499_v29, %v1503_v30 }
  0xf6   : > { %v19433_v41 = vshrl.u32 %v816_v40, 7 }
  0xf8   : > { %11174 = vmatpush1.bf16.msra.mxu0 %v16060_v39  ;;  %11997 = vmatpush1.bf16.msra.mxu1 %v16982_v51  ;;  %v16133_v39 = vcombine.high %v19236_v43, %v19241_v44  ;;  %v19442_v45 = vsub.s32 1, %v19433_v41  ;;  %v16148_v44 = vcombine.low %v1523_v4, %v1527_v5 }
  0xf9   : > { %11175 = vmatprep.subr.bf16.mxu0 %v16069_v42  ;;  %11998 = vmatprep.subr.bf16.mxu1 %v16991_v47  ;;  %v19436_v42 = vsub.s32 0, %v19433_v41 }
  0xfa   : > { %v19448_v49 = vrot.slane %v814_v37, %v19442_v45 }
  0xfb   : > { %v19445_v48 = vrot.slane %v814_v37, %v19436_v42 }
  0xfc   : > { %11176 = vmatpush1.bf16.msra.mxu0 %v16068_v50  ;;  %11999 = vmatpush1.bf16.msra.mxu1 %v16990_v59 }
  0xfd   : > { %11177 = vmatprep.subr.bf16.mxu0 %v16077_v53  ;;  %12000 = vmatprep.subr.bf16.mxu1 %v16999_v0 }
 0x100   : > { %11178 = vmatpush1.bf16.msra.mxu0 %v16076_v58  ;;  %12001 = vmatpush1.bf16.msra.mxu1 %v16998_v63 }
 0x101   : > { %11179 = vmatprep.subr.bf16.mxu0 %v16085_v60  ;;  %12002 = vmatprep.subr.bf16.mxu1 %v17007_v8 }
 0x104   : > { %11180 = vmatpush1.bf16.msra.mxu0 %v16084_v62  ;;  %12003 = vmatpush1.bf16.msra.mxu1 %v17006_v7 }
 0x105   : > { %11181 = vmatprep.subr.bf16.mxu0 %v16093_v1  ;;  %12004 = vmatprep.subr.bf16.mxu1 %v17015_v18  ;;  %v16141_v1 = vcombine.high %v1515_v16, %v1519_v17  ;;  %v1535_v18 = vld [vmem:[%s25117_s4 + $0x4e0] sm:$0xff] }
 0x108   : > { %11182 = vmatpush1.bf16.msra.mxu0 %v16092_v6  ;;  %12005 = vmatpush1.bf16.msra.mxu1 %v17014_v15  ;;  %v1531_v15 = vld [vmem:[%s25117_s4 + $0x4c0] sm:$0xff] }
 0x109   : > { %11183 = vmatprep.subr.bf16.mxu0 %v16101_v9  ;;  %12006 = vmatprep.subr.bf16.mxu1 %v17023_v27  ;;  %v16140_v9 = vcombine.low %v1515_v16, %v1519_v17  ;;  %v16157_v23 = vcombine.high %v1531_v15, %v1535_v18  ;;  %v1543_v27 = vld [vmem:[%s25117_s4 + $0x520] sm:$0xff] }
 0x10c   : > { %11184 = vmatpush1.bf16.msra.mxu0 %v16100_v14  ;;  %12007 = vmatpush1.bf16.msra.mxu1 %v17022_v26  ;;  %v1539_v26 = vld [vmem:[%s25117_s4 + $0x500] sm:$0xff] }
 0x10d   : > { %11185 = vmatprep.subr.bf16.mxu0 %v16109_v19  ;;  %12019 = vmatprep.subr.bf16.mxu1 %v17031_v35  ;;  %v16156_v35 = vcombine.low %v1531_v15, %v1535_v18 }
 0x110   : > { %11186 = vmatpush1.bf16.msra.mxu0 %v16108_v25 }
 0x111   : > { %11187 = vmatprep.subr.bf16.mxu0 %v16117_v28 }
 0x114   : > { %11188 = vmatpush1.bf16.msra.mxu0 %v16116_v33 }
 0x115   : > { %11189 = vmatprep.subr.bf16.mxu0 %v16125_v36 }
 0x118   : > { %11190 = vmatpush1.bf16.msra.mxu0 %v16124_v38 }
 0x119   : > { %11202 = vmatprep.subr.bf16.mxu0 %v16133_v39  ;;  %v16165_v39 = vcombine.high %v1539_v26, %v1543_v27 }
 0x12e   : > { %v19498_v28 = vpop.f32.mrb[0].mxu1 }
 0x12f   : > { %v19502_v40 = vpop.f32.mrb[1].mxu1 }
 0x14e   : > { %v1140_v50 = vpop.f32.mrb[0].mxu0 }
 0x14f   : > { %v1141_v51 = vadd.f32 %v1140_v50, %v19445_v48  ;;  %v1142_v52 = vpop.f32.mrb[1].mxu0 }
 0x150   : > { %v1143_v53 = vadd.f32 %v1142_v52, %v19448_v49  ;;  %v1144_v54 = vpop.f32.mrb[2].mxu0  ;;  %v1551_v52 = vld [vmem:[%s25117_s4 + $0x560] sm:$0xff] }
 0x151   : > { %v1145_v55 = vadd.f32 %v1144_v54, %v19445_v48  ;;  %v1146_v56 = vpop.f32.mrb[3].mxu0  ;;  %v1259_v58 = vmax.f32 %v1141_v51, 0.0  ;;  %v1547_v51 = vld [vmem:[%s25117_s4 + $0x540] sm:$0xff] }
 0x152   : > { %v1147_v57 = vadd.f32 %v1146_v56, %v19448_v49  ;;  %v1260_v47 = vmax.f32 %v1143_v53, 0.0  ;;  %v19510_v53 = vpop.f32.mrb[2].mxu1 }
 0x153   : > { %v1261_v59 = vmax.f32 %v1145_v55, 0.0  ;;  %v19514_v55 = vpop.f32.mrb[3].mxu1 }
 0x154   : > { %v1262_v60 = vmax.f32 %v1147_v57, 0.0 }
 0x155   : > { %v19460_v20 = vpack.c.bf16 %v1261_v59, %v1259_v58  ;;  %v16164_v58 = vcombine.low %v1539_v26, %v1543_v27 }
 0x156   : > { %v19462_v61 = vpack.c.bf16 %v1262_v60, %v1260_v47  ;;  %v1150_v62 = vpop.f32.mrb[4].mxu0  ;;  %v16173_v60 = vcombine.high %v1547_v51, %v1551_v52 }
 0x157   : > { %v1151_v63 = vadd.f32 %v1150_v62, %v19445_v48  ;;  %v1152_v0 = vpop.f32.mrb[5].mxu0  ;;  %v1555_v62 = vld [vmem:[%s25117_s4 + $0x580] sm:$0xff] }
 0x158   : > { %v1153_v2 = vadd.f32 %v1152_v0, %v19448_v49  ;;  %v1154_v3 = vpop.f32.mrb[6].mxu0  ;;  %11191 = vmatprep.mubr.bf16.mxu0 %v19462_v61 }
 0x159   : > { %v1155_v6 = vadd.f32 %v1154_v3, %v19445_v48  ;;  %v1156_v7 = vpop.f32.mrb[7].mxu0  ;;  %11192 = vmatmul.mubr.bf16.vlgmr.msra.gmra.mrb[48].mxu0 %v19460_v20  ;;  %v1263_v10 = vmax.f32 %v1151_v63, 0.0  ;;  %v1559_v63 = vld [vmem:[%s25117_s4 + $0x5a0] sm:$0xff]  ;;  %v16172_v3 = vcombine.low %v1547_v51, %v1551_v52 }
 0x15a   : > { %v1157_v8 = vadd.f32 %v1156_v7, %v19448_v49  ;;  %11203 = vmatpush1.bf16.msra.mxu0 %v16132_v46  ;;  %v1264_v13 = vmax.f32 %v1153_v2, 0.0 }
 0x15b   : > { %v1265_v11 = vmax.f32 %v1155_v6, 0.0  ;;  %11204 = vmatprep.subr.bf16.mxu0 %v16141_v1  ;;  %v16181_v6 = vcombine.high %v1555_v62, %v1559_v63 }
 0x15c   : > { %v1266_v14 = vmax.f32 %v1157_v8, 0.0 }
 0x15d   : > { %v19485_v19 = vpack.c.bf16 %v1265_v11, %v1263_v10  ;;  %v1567_v10 = vld [vmem:[%s25117_s4 + $0x5e0] sm:$0xff] }
 0x15e   : > { %v19487_v21 = vpack.c.bf16 %v1266_v14, %v1264_v13  ;;  %11205 = vmatpush1.bf16.msra.mxu0 %v16140_v9  ;;  %v1160_v43 = vpop.f32.mrb[8].mxu0  ;;  %v1563_v9 = vld [vmem:[%s25117_s4 + $0x5c0] sm:$0xff]  ;;  %v16180_v14 = vcombine.low %v1555_v62, %v1559_v63 }
 0x15f   : > { %v1161_v46 = vadd.f32 %v1160_v43, %v19445_v48  ;;  %v1162_v22 = vpop.f32.mrb[9].mxu0  ;;  %11206 = vmatprep.subr.bf16.mxu0 %v16149_v12  ;;  %v16189_v43 = vcombine.high %v1563_v9, %v1567_v10  ;;  %v16188_v27 = vcombine.low %v1563_v9, %v1567_v10 }
 0x160   : > { %v1163_v24 = vadd.f32 %v1162_v22, %v19448_v49  ;;  %v1164_v25 = vpop.f32.mrb[10].mxu0  ;;  %11234 = vmatprep.mubr.bf16.mxu0 %v19487_v21  ;;  %v1571_v22 = vld [vmem:[%s25117_s4 + $0x600] sm:$0xff] }
 0x161   : > { %v1165_v29 = vadd.f32 %v1164_v25, %v19445_v48  ;;  %v1166_v30 = vpop.f32.mrb[11].mxu0  ;;  %v1267_v36 = vmax.f32 %v1161_v46, 0.0 }
 0x162   : > { %v1167_v33 = vadd.f32 %v1166_v30, %v19448_v49  ;;  %11207 = vmatpush1.bf16.msra.mxu0 %v16148_v44  ;;  %v1268_v37 = vmax.f32 %v1163_v24, 0.0 }
 0x163   : > { %v1269_v38 = vmax.f32 %v1165_v29, 0.0  ;;  %11208 = vmatprep.subr.bf16.mxu0 %v16157_v23  ;;  %v1575_v23 = vld [vmem:[%s25117_s4 + $0x620] sm:$0xff] }
 0x164   : > { %v1270_v50 = vmax.f32 %v1167_v33, 0.0  ;;  %v16197_v33 = vcombine.high %v1571_v22, %v1575_v23  ;;  %v16196_v52 = vcombine.low %v1571_v22, %v1575_v23  ;;  %v1603_v22 = vld [vmem:[%s25117_s4 + $0x700] sm:$0xff] }
 0x165   : > { %v19512_v54 = vpack.c.bf16 %v1269_v38, %v1267_v36  ;;  %v1579_v38 = vld [vmem:[%s25117_s4 + $0x640] sm:$0xff] }
 0x166   : > { %v19516_v56 = vpack.c.bf16 %v1270_v50, %v1268_v37  ;;  %11209 = vmatpush1.bf16.msra.mxu0 %v16156_v35  ;;  %v1170_v57 = vpop.f32.mrb[12].mxu0  ;;  %v1607_v23 = vld [vmem:[%s25117_s4 + $0x720] sm:$0xff] }
 0x167   : > { %v1171_v59 = vadd.f32 %v1170_v57, %v19445_v48  ;;  %v1172_v47 = vpop.f32.mrb[13].mxu0  ;;  %11210 = vmatprep.subr.bf16.mxu0 %v16165_v39  ;;  %v1583_v39 = vld [vmem:[%s25117_s4 + $0x660] sm:$0xff] }
 0x168   : > { %v1173_v16 = vadd.f32 %v1172_v47, %v19448_v49  ;;  %v1174_v17 = vpop.f32.mrb[14].mxu0 }
 0x169   : > { %v1175_v0 = vadd.f32 %v1174_v17, %v19445_v48  ;;  %v1176_v1 = vpop.f32.mrb[15].mxu0  ;;  %v1271_v4 = vmax.f32 %v1171_v59, 0.0  ;;  %v16205_v59 = vcombine.high %v1579_v38, %v1583_v39  ;;  %v1591_v17 = vld [vmem:[%s25117_s4 + $0x6a0] sm:$0xff] }
 0x16a   : > { %v1177_v2 = vadd.f32 %v1176_v1, %v19448_v49  ;;  %11211 = vmatpush1.bf16.msra.mxu0 %v16164_v58  ;;  %v1272_v7 = vmax.f32 %v1173_v16, 0.0  ;;  %v1587_v16 = vld [vmem:[%s25117_s4 + $0x680] sm:$0xff]  ;;  %v16204_v1 = vcombine.low %v1579_v38, %v1583_v39 }
 0x16b   : > { %v1273_v5 = vmax.f32 %v1175_v0, 0.0  ;;  %11212 = vmatprep.subr.bf16.mxu0 %v16173_v60  ;;  %v1611_v38 = vld [vmem:[%s25117_s4 + $0x740] sm:$0xff] }
 0x16c   : > { %v1274_v8 = vmax.f32 %v1177_v2, 0.0  ;;  %v1615_v39 = vld [vmem:[%s25117_s4 + $0x760] sm:$0xff] }
 0x16d   : > { %v19534_v11 = vpack.c.bf16 %v1273_v5, %v1271_v4  ;;  %v16213_v4 = vcombine.high %v1587_v16, %v1591_v17 }
 0x16e   : > { %v19536_v12 = vpack.c.bf16 %v1274_v8, %v1272_v7  ;;  %11213 = vmatpush1.bf16.msra.mxu0 %v16172_v3  ;;  %v1180_v13 = vpop.f32.mrb[16].mxu0  ;;  %v1595_v7 = vld [vmem:[%s25117_s4 + $0x6c0] sm:$0xff] }
 0x16f   : > { %v1181_v15 = vadd.f32 %v1180_v13, %v19445_v48  ;;  %v1182_v18 = vpop.f32.mrb[17].mxu0  ;;  %11214 = vmatprep.subr.bf16.mxu0 %v16181_v6  ;;  %v1599_v8 = vld [vmem:[%s25117_s4 + $0x6e0] sm:$0xff] }
 0x170   : > { %v1183_v44 = vadd.f32 %v1182_v18, %v19448_v49  ;;  %v1184_v46 = vpop.f32.mrb[18].mxu0 }
 0x171   : > { %v1185_v24 = vadd.f32 %v1184_v46, %v19445_v48  ;;  %v1186_v25 = vpop.f32.mrb[19].mxu0  ;;  %v1275_v29 = vmax.f32 %v1181_v15, 0.0 }
 0x172   : > { %v1187_v26 = vadd.f32 %v1186_v25, %v19448_v49  ;;  %11215 = vmatpush1.bf16.msra.mxu0 %v16180_v14  ;;  %v1276_v35 = vmax.f32 %v1183_v44, 0.0  ;;  %v16212_v14 = vcombine.low %v1587_v16, %v1591_v17 }
 0x173   : > { %v1277_v30 = vmax.f32 %v1185_v24, 0.0  ;;  %11216 = vmatprep.subr.bf16.mxu0 %v16189_v43  ;;  %v16221_v43 = vcombine.high %v1595_v7, %v1599_v8 }
 0x174   : > { %v1278_v36 = vmax.f32 %v1187_v26, 0.0 }
 0x175   : > { %v19554_v37 = vpack.c.bf16 %v1277_v30, %v1275_v29 }
 0x176   : > { %v19556_v50 = vpack.c.bf16 %v1278_v36, %v1276_v35  ;;  %11217 = vmatpush1.bf16.msra.mxu0 %v16188_v27  ;;  %v1190_v51 = vpop.f32.mrb[20].mxu0  ;;  %v16220_v27 = vcombine.low %v1595_v7, %v1599_v8  ;;  %v1627_v7 = vld [vmem:[%s25117_s4 + $0x7c0] sm:$0xff] }
 0x177   : > { %v1191_v57 = vadd.f32 %v1190_v51, %v19445_v48  ;;  %v1192_v58 = vpop.f32.mrb[21].mxu0  ;;  %11218 = vmatprep.subr.bf16.mxu0 %v16197_v33  ;;  %v16229_v33 = vcombine.high %v1603_v22, %v1607_v23 }
 0x178   : > { %v1193_v47 = vadd.f32 %v1192_v58, %v19448_v49  ;;  %v1194_v60 = vpop.f32.mrb[22].mxu0  ;;  %v16228_v58 = vcombine.low %v1603_v22, %v1607_v23 }
 0x179   : > { %v1195_v62 = vadd.f32 %v1194_v60, %v19445_v48  ;;  %v1196_v63 = vpop.f32.mrb[23].mxu0  ;;  %v1279_v2 = vmax.f32 %v1191_v57, 0.0  ;;  %v16237_v60 = vcombine.high %v1611_v38, %v1615_v39 }
 0x17a   : > { %v1197_v0 = vadd.f32 %v1196_v63, %v19448_v49  ;;  %11219 = vmatpush1.bf16.msra.mxu0 %v16196_v52  ;;  %v1280_v5 = vmax.f32 %v1193_v47, 0.0  ;;  %v1623_v63 = vld [vmem:[%s25117_s4 + $0x7a0] sm:$0xff] }
 0x17b   : > { %v1281_v3 = vmax.f32 %v1195_v62, 0.0  ;;  %11220 = vmatprep.subr.bf16.mxu0 %v16205_v59  ;;  %v1619_v62 = vld [vmem:[%s25117_s4 + $0x780] sm:$0xff] }
 0x17c   : > { %v1282_v6 = vmax.f32 %v1197_v0, 0.0 }
 0x17d   : > { %v19574_v9 = vpack.c.bf16 %v1281_v3, %v1279_v2  ;;  %v16236_v3 = vcombine.low %v1611_v38, %v1615_v39 }
 0x17e   : > { %v19576_v10 = vpack.c.bf16 %v1282_v6, %v1280_v5  ;;  %11221 = vmatpush1.bf16.msra.mxu0 %v16204_v1  ;;  %v1200_v13 = vpop.f32.mrb[24].mxu0  ;;  %v16245_v6 = vcombine.high %v1619_v62, %v1623_v63 }
 0x17f   : > { %v1201_v15 = vadd.f32 %v1200_v13, %v19445_v48  ;;  %v1202_v18 = vpop.f32.mrb[25].mxu0  ;;  %11222 = vmatprep.subr.bf16.mxu0 %v16213_v4 }
 0x180   : > { %v1203_v44 = vadd.f32 %v1202_v18, %v19448_v49  ;;  %v1204_v46 = vpop.f32.mrb[26].mxu0  ;;  %v2416_v18 = vld [vmem:[%s25117_s4 + $0x2068] sm:$0xff] }
 0x181   : > { %v1205_v24 = vadd.f32 %v1204_v46, %v19445_v48  ;;  %v1206_v25 = vpop.f32.mrb[27].mxu0  ;;  %v1283_v29 = vmax.f32 %v1201_v15, 0.0  ;;  %v2412_v15 = vld [vmem:[%s25117_s4 + $0x2048] sm:$0xff]  ;;  %v16244_v46 = vcombine.low %v1619_v62, %v1623_v63  ;;  %v1643_v63 = vld [vmem:[%s25117_s4 + $0x840] sm:$0xff] }
 0x182   : > { %v1207_v26 = vadd.f32 %v1206_v25, %v19448_v49  ;;  %11223 = vmatpush1.bf16.msra.mxu0 %v16212_v14  ;;  %v1284_v35 = vmax.f32 %v1203_v44, 0.0  ;;  %v1631_v14 = vld [vmem:[%s25117_s4 + $0x7e0] sm:$0xff] }
 0x183   : > { %v1285_v30 = vmax.f32 %v1205_v24, 0.0  ;;  %11224 = vmatprep.subr.bf16.mxu0 %v16221_v43  ;;  %v16253_v23 = vcombine.high %v1627_v7, %v1631_v14  ;;  %v17039_v24 = vcombine.high %v2412_v15, %v2416_v18  ;;  %v1635_v25 = vld [vmem:[%s25117_s4 + $0x800] sm:$0xff] }
 0x184   : > { %v1286_v36 = vmax.f32 %v1207_v26, 0.0 }
 0x185   : > { %v19594_v51 = vpack.c.bf16 %v1285_v30, %v1283_v29  ;;  %v1639_v29 = vld [vmem:[%s25117_s4 + $0x820] sm:$0xff]  ;;  %v2420_v30 = vld [vmem:[%s25117_s4 + $0x2088] sm:$0xff] }
 0x186   : > { %v19596_v52 = vpack.c.bf16 %v1286_v36, %v1284_v35  ;;  %11225 = vmatpush1.bf16.msra.mxu0 %v16220_v27  ;;  %v1210_v57 = vpop.f32.mrb[28].mxu0 }
 0x187   : > { %v1211_v59 = vadd.f32 %v1210_v57, %v19445_v48  ;;  %v1212_v47 = vpop.f32.mrb[29].mxu0  ;;  %11226 = vmatprep.subr.bf16.mxu0 %v16229_v33  ;;  %v2424_v33 = vld [vmem:[%s25117_s4 + $0x20a8] sm:$0xff] }
 0x188   : > { %v1213_v16 = vadd.f32 %v1212_v47, %v19448_v49  ;;  %v1214_v17 = vpop.f32.mrb[30].mxu0 }
 0x189   : > { %v1215_v0 = vadd.f32 %v1214_v17, %v19445_v48  ;;  %v1216_v1 = vpop.f32.mrb[31].mxu0  ;;  %v1287_v4 = vmax.f32 %v1211_v59, 0.0  ;;  %v17038_v59 = vcombine.low %v2412_v15, %v2416_v18  ;;  %v17047_v17 = vcombine.high %v2420_v30, %v2424_v33  ;;  %v1655_v15 = vld [vmem:[%s25117_s4 + $0x8a0] sm:$0xff] }
 0x18a   : > { %v1217_v2 = vadd.f32 %v1216_v1, %v19448_v49  ;;  %11227 = vmatpush1.bf16.msra.mxu0 %v16228_v58  ;;  %v1288_v8 = vmax.f32 %v1213_v16, 0.0  ;;  %v16252_v58 = vcombine.low %v1627_v7, %v1631_v14  ;;  %v16261_v16 = vcombine.high %v1635_v25, %v1639_v29  ;;  %v1651_v14 = vld [vmem:[%s25117_s4 + $0x880] sm:$0xff] }
 0x18b   : > { %v1289_v5 = vmax.f32 %v1215_v0, 0.0  ;;  %11228 = vmatprep.subr.bf16.mxu0 %v16237_v60  ;;  %v1647_v0 = vld [vmem:[%s25117_s4 + $0x860] sm:$0xff] }
 0x18c   : > { %v1290_v13 = vmax.f32 %v1217_v2, 0.0  ;;  %v16260_v2 = vcombine.low %v1635_v25, %v1639_v29 }
 0x18d   : > { %v19620_v43 = vpack.c.bf16 %v1289_v5, %v1287_v4  ;;  %v17046_v5 = vcombine.low %v2420_v30, %v2424_v33 }
 0x18e   : > { %v19622_v44 = vpack.c.bf16 %v1290_v13, %v1288_v8  ;;  %11229 = vmatpush1.bf16.msra.mxu0 %v16236_v3  ;;  %v1220_v22 = vpop.f32.mrb[32].mxu0 }
 0x18f   : > { %11230 = vmatprep.subr.bf16.mxu0 %v16245_v6  ;;  %v1221_v26 = vadd.f32 %v1220_v22, %v19445_v48  ;;  %v1222_v27 = vpop.f32.mrb[33].mxu0  ;;  %v16269_v6 = vcombine.high %v1643_v63, %v1647_v0  ;;  %v2436_v22 = vld [vmem:[%s25117_s4 + $0x2108] sm:$0xff] }
 0x190   : > { %12008 = vmatprep.mubr.bf16.mxu1 %v19622_v44  ;;  %v1223_v35 = vadd.f32 %v1222_v27, %v19448_v49  ;;  %v1224_v36 = vpop.f32.mrb[34].mxu0  ;;  %v16268_v27 = vcombine.low %v1643_v63, %v1647_v0 }
 0x191   : > { %12009 = vmatmul.mubr.bf16.vlgmr.msra.gmra.mrb[12].mxu1 %v19620_v43  ;;  %v1291_v38 = vmax.f32 %v1221_v26, 0.0  ;;  %v1225_v39 = vadd.f32 %v1224_v36, %v19445_v48  ;;  %v1226_v57 = vpop.f32.mrb[35].mxu0 }
 0x192   : > { %11231 = vmatpush1.bf16.msra.mxu0 %v16244_v46  ;;  %12020 = vmatpush1.bf16.msra.mxu1 %v17030_v34  ;;  %v1292_v47 = vmax.f32 %v1223_v35, 0.0  ;;  %v1227_v60 = vadd.f32 %v1226_v57, %v19448_v49  ;;  %v2432_v34 = vld [vmem:[%s25117_s4 + $0x20e8] sm:$0xff]  ;;  %v16277_v35 = vcombine.high %v1651_v14, %v1655_v15  ;;  %v1663_v57 = vld [vmem:[%s25117_s4 + $0x8e0] sm:$0xff] }
 0x193   : > { %11232 = vmatprep.subr.bf16.mxu0 %v16253_v23  ;;  %12021 = vmatprep.subr.bf16.mxu1 %v17039_v24  ;;  %v1293_v62 = vmax.f32 %v1225_v39, 0.0  ;;  %v17055_v13 = vcombine.high %v2428_v32, %v2432_v34  ;;  %v2440_v23 = vld [vmem:[%s25117_s4 + $0x2128] sm:$0xff]  ;;  %v17054_v33 = vcombine.low %v2428_v32, %v2432_v34  ;;  %v1659_v39 = vld [vmem:[%s25117_s4 + $0x8c0] sm:$0xff] }
 0x194   : > { %v1294_v31 = vmax.f32 %v1227_v60, 0.0  ;;  %v16285_v63 = vcombine.high %v1659_v39, %v1663_v57  ;;  %v1671_v32 = vld [vmem:[%s25117_s4 + $0x920] sm:$0xff]  ;;  %v2452_v34 = vld [vmem:[%s25117_s4 + $0x2188] sm:$0xff] }
 0x195   : > { %v19657_v1 = vpack.c.bf16 %v1293_v62, %v1291_v38  ;;  %v17063_v38 = vcombine.high %v2436_v22, %v2440_v23  ;;  %v17062_v62 = vcombine.low %v2436_v22, %v2440_v23 }
 0x196   : > { %11233 = vmatpush1.bf16.msra.mxu0 %v16252_v58  ;;  %12022 = vmatpush1.bf16.msra.mxu1 %v17038_v59  ;;  %v19659_v3 = vpack.c.bf16 %v1294_v31, %v1292_v47  ;;  %v1230_v4 = vpop.f32.mrb[36].mxu0  ;;  %v2444_v59 = vld [vmem:[%s25117_s4 + $0x2148] sm:$0xff]  ;;  %v1667_v31 = vld [vmem:[%s25117_s4 + $0x900] sm:$0xff] }
 0x197   : > { %25148 = vst [vmem:[#allocation7_spill] sm:$0xff] %v19657_v1  ;;  %11245 = vmatprep.subr.bf16.mxu0 %v16261_v16  ;;  %12023 = vmatprep.subr.bf16.mxu1 %v17047_v17  ;;  %v1231_v7 = vadd.f32 %v1230_v4, %v19445_v48  ;;  %v1232_v8 = vpop.f32.mrb[37].mxu0  ;;  %v2448_v47 = vld [vmem:[%s25117_s4 + $0x2168] sm:$0xff]  ;;  %v16276_v16 = vcombine.low %v1651_v14, %v1655_v15 }
 0x198   : > { %12051 = vmatprep.mubr.bf16.mxu1 %v19659_v3  ;;  %v1233_v18 = vadd.f32 %v1232_v8, %v19448_v49  ;;  %v1234_v46 = vpop.f32.mrb[38].mxu0  ;;  %v17071_v0 = vcombine.high %v2444_v59, %v2448_v47  ;;  %v16284_v4 = vcombine.low %v1659_v39, %v1663_v57  ;;  %v1675_v8 = vld [vmem:[%s25117_s4 + $0x940] sm:$0xff]  ;;  %v2460_v14 = vld [vmem:[%s25117_s4 + $0x21c8] sm:$0xff] }
 0x199   : > { %11235 = vmatmul.mubr.bf16.vlgmr.msra.gmra.mrb[48].mxu0 %v19485_v19  ;;  %v1295_v24 = vmax.f32 %v1231_v7, 0.0  ;;  %v1235_v25 = vadd.f32 %v1234_v46, %v19445_v48  ;;  %v1236_v26 = vpop.f32.mrb[39].mxu0  ;;  %v2464_v15 = vld [vmem:[%s25117_s4 + $0x21e8] sm:$0xff] }
 0x19a   : > { %11246 = vmatpush1.bf16.msra.mxu0 %v16260_v2  ;;  %11277 = vmatprep.mubr.bf16.mxu0 %v19516_v56  ;;  %v1296_v29 = vmax.f32 %v1233_v18, 0.0  ;;  %v1237_v30 = vadd.f32 %v1236_v26, %v19448_v49  ;;  %v2456_v2 = vld [vmem:[%s25117_s4 + $0x21a8] sm:$0xff]  ;;  %v16292_v18 = vcombine.low %v1667_v31, %v1671_v32  ;;  %v17087_v23 = vcombine.high %v2460_v14, %v2464_v15 }
 0x19b   : > { %12024 = vmatpush1.bf16.msra.mxu1 %v17046_v5  ;;  %11247 = vmatprep.subr.bf16.mxu0 %v16269_v6  ;;  %v1297_v36 = vmax.f32 %v1235_v25, 0.0  ;;  %v17070_v5 = vcombine.low %v2444_v59, %v2448_v47  ;;  %v16293_v6 = vcombine.high %v1667_v31, %v1671_v32  ;;  %v17079_v7 = vcombine.high %v2452_v34, %v2456_v2  ;;  %v1687_v25 = vld [vmem:[%s25117_s4 + $0x9a0] sm:$0xff]  ;;  %v2468_v26 = vld [vmem:[%s25117_s4 + $0x2208] sm:$0xff] }
 0x19c   : > { %12025 = vmatprep.subr.bf16.mxu1 %v17055_v13  ;;  %v1298_v58 = vmax.f32 %v1237_v30, 0.0  ;;  %v1679_v13 = vld [vmem:[%s25117_s4 + $0x960] sm:$0xff]  ;;  %v17078_v46 = vcombine.low %v2452_v34, %v2456_v2  ;;  %v17086_v30 = vcombine.low %v2460_v14, %v2464_v15  ;;  %v2476_v39 = vld [vmem:[%s25117_s4 + $0x2248] sm:$0xff] }
 0x19d   : > { %v19692_v60 = vpack.c.bf16 %v1297_v36, %v1295_v24  ;;  %v16301_v22 = vcombine.high %v1675_v8, %v1679_v13  ;;  %v1683_v24 = vld [vmem:[%s25117_s4 + $0x980] sm:$0xff]  ;;  %v2480_v57 = vld [vmem:[%s25117_s4 + $0x2268] sm:$0xff] }
 0x19e   : > { %11248 = vmatpush1.bf16.msra.mxu0 %v16268_v27  ;;  %v19694_v17 = vpack.c.bf16 %v1298_v58, %v1296_v29  ;;  %v2472_v27 = vld [vmem:[%s25117_s4 + $0x2228] sm:$0xff]  ;;  %v16300_v29 = vcombine.low %v1675_v8, %v1679_v13  ;;  %v1691_v36 = vld [vmem:[%s25117_s4 + $0x9c0] sm:$0xff]  ;;  %v16308_v58 = vcombine.low %v1683_v24, %v1687_v25  ;;  %v17102_v34 = vcombine.low %v2476_v39, %v2480_v57 }
 0x19f   : > { %12026 = vmatpush1.bf16.msra.mxu1 %v17054_v33  ;;  %11249 = vmatprep.subr.bf16.mxu0 %v16277_v35  ;;  %v16309_v33 = vcombine.high %v1683_v24, %v1687_v25  ;;  %v17095_v35 = vcombine.high %v2468_v26, %v2472_v27  ;;  %v17094_v59 = vcombine.low %v2468_v26, %v2472_v27  ;;  %v2488_v31 = vld [vmem:[%s25117_s4 + $0x22a8] sm:$0xff] }
 0x1a0   : > { %25149 = vst [vmem:[#allocation8_spill] sm:$0xff] %v19694_v17  ;;  %12027 = vmatprep.subr.bf16.mxu1 %v17063_v38  ;;  %v1695_v38 = vld [vmem:[%s25117_s4 + $0x9e0] sm:$0xff]  ;;  %v2496_v8 = vld [vmem:[%s25117_s4 + $0x22e8] sm:$0xff] }
 0x1a1   : > { %v16317_v47 = vcombine.high %v1691_v36, %v1695_v38  ;;  %v16316_v32 = vcombine.low %v1691_v36, %v1695_v38  ;;  %v2504_v24 = vld [vmem:[%s25117_s4 + $0x2328] sm:$0xff] }
 0x1a2   : > { %11250 = vmatpush1.bf16.msra.mxu0 %v16276_v16  ;;  %v17103_v16 = vcombine.high %v2476_v39, %v2480_v57  ;;  %v2512_v36 = vld [vmem:[%s25117_s4 + $0x2368] sm:$0xff] }
 0x1a3   : > { %12028 = vmatpush1.bf16.msra.mxu1 %v17062_v62  ;;  %11251 = vmatprep.subr.bf16.mxu0 %v16285_v63  ;;  %v1699_v62 = vld [vmem:[%s25117_s4 + $0xa00] sm:$0xff] }
 0x1a4   : > { %12029 = vmatprep.subr.bf16.mxu1 %v17071_v0  ;;  %v1703_v63 = vld [vmem:[%s25117_s4 + $0xa20] sm:$0xff]  ;;  %v2484_v0 = vld [vmem:[%s25117_s4 + $0x2288] sm:$0xff] }
 0x1a5   : > { %v16325_v2 = vcombine.high %v1699_v62, %v1703_v63  ;;  %v16324_v13 = vcombine.low %v1699_v62, %v1703_v63  ;;  %v17110_v14 = vcombine.low %v2484_v0, %v2488_v31  ;;  %v2520_v62 = vld [vmem:[%s25117_s4 + $0x23a8] sm:$0xff] }
 0x1a6   : > { %11252 = vmatpush1.bf16.msra.mxu0 %v16284_v4  ;;  %v17111_v4 = vcombine.high %v2484_v0, %v2488_v31 }
 0x1a7   : > { %12030 = vmatpush1.bf16.msra.mxu1 %v17070_v5  ;;  %11253 = vmatprep.subr.bf16.mxu0 %v16293_v6  ;;  %v1707_v5 = vld [vmem:[%s25117_s4 + $0xa40] sm:$0xff] }
 0x1a8   : > { %12031 = vmatprep.subr.bf16.mxu1 %v17079_v7  ;;  %v1711_v6 = vld [vmem:[%s25117_s4 + $0xa60] sm:$0xff]  ;;  %v2492_v7 = vld [vmem:[%s25117_s4 + $0x22c8] sm:$0xff] }
 0x1a9   : > { %v16333_v15 = vcombine.high %v1707_v5, %v1711_v6  ;;  %v16332_v25 = vcombine.low %v1707_v5, %v1711_v6  ;;  %v17118_v26 = vcombine.low %v2492_v7, %v2496_v8 }
 0x1aa   : > { %11254 = vmatpush1.bf16.msra.mxu0 %v16292_v18  ;;  %v17119_v18 = vcombine.high %v2492_v7, %v2496_v8  ;;  %v2524_v7 = vld [vmem:[%s25117_s4 + $0x23c8] sm:$0xff] }
 0x1ab   : > { %12032 = vmatpush1.bf16.msra.mxu1 %v17078_v46  ;;  %11255 = vmatprep.subr.bf16.mxu0 %v16301_v22  ;;  %v1715_v46 = vld [vmem:[%s25117_s4 + $0xa80] sm:$0xff]  ;;  %v2528_v8 = vld [vmem:[%s25117_s4 + $0x23e8] sm:$0xff] }
 0x1ac   : > { %12033 = vmatprep.subr.bf16.mxu1 %v17087_v23  ;;  %v1719_v22 = vld [vmem:[%s25117_s4 + $0xaa0] sm:$0xff]  ;;  %v2500_v23 = vld [vmem:[%s25117_s4 + $0x2308] sm:$0xff] }
 0x1ad   : > { %v16341_v27 = vcombine.high %v1715_v46, %v1719_v22  ;;  %v16340_v38 = vcombine.low %v1715_v46, %v1719_v22  ;;  %v17126_v39 = vcombine.low %v2500_v23, %v2504_v24 }
 0x1ae   : > { %11256 = vmatpush1.bf16.msra.mxu0 %v16300_v29  ;;  %v17127_v29 = vcombine.high %v2500_v23, %v2504_v24 }
 0x1af   : > { %12034 = vmatpush1.bf16.msra.mxu1 %v17086_v30  ;;  %11257 = vmatprep.subr.bf16.mxu0 %v16309_v33  ;;  %v1723_v30 = vld [vmem:[%s25117_s4 + $0xac0] sm:$0xff] }
 0x1b0   : > { %12035 = vmatprep.subr.bf16.mxu1 %v17095_v35  ;;  %v1727_v33 = vld [vmem:[%s25117_s4 + $0xae0] sm:$0xff]  ;;  %v2508_v35 = vld [vmem:[%s25117_s4 + $0x2348] sm:$0xff] }
 0x1b1   : > { %v16349_v57 = vcombine.high %v1723_v30, %v1727_v33  ;;  %v16348_v63 = vcombine.low %v1723_v30, %v1727_v33  ;;  %v17134_v0 = vcombine.low %v2508_v35, %v2512_v36 }
 0x1b2   : > { %11258 = vmatpush1.bf16.msra.mxu0 %v16308_v58  ;;  %v17135_v58 = vcombine.high %v2508_v35, %v2512_v36  ;;  %v2532_v35 = vld [vmem:[%s25117_s4 + $0x2408] sm:$0xff] }
 0x1b3   : > { %12036 = vmatpush1.bf16.msra.mxu1 %v17094_v59  ;;  %11259 = vmatprep.subr.bf16.mxu0 %v16317_v47  ;;  %v1731_v59 = vld [vmem:[%s25117_s4 + $0xb00] sm:$0xff]  ;;  %v2536_v36 = vld [vmem:[%s25117_s4 + $0x2428] sm:$0xff] }
 0x1b4   : > { %12037 = vmatprep.subr.bf16.mxu1 %v17103_v16  ;;  %v1735_v47 = vld [vmem:[%s25117_s4 + $0xb20] sm:$0xff]  ;;  %v2516_v16 = vld [vmem:[%s25117_s4 + $0x2388] sm:$0xff] }
 0x1b5   : > { %v16357_v31 = vcombine.high %v1731_v59, %v1735_v47  ;;  %v17142_v22 = vcombine.low %v2516_v16, %v2520_v62 }
 0x1b6   : > { %11260 = vmatpush1.bf16.msra.mxu0 %v16316_v32  ;;  %v1240_v32 = vpop.f32.mrb[40].mxu0 }
 0x1b7   : > { %12038 = vmatpush1.bf16.msra.mxu1 %v17102_v34  ;;  %11261 = vmatprep.subr.bf16.mxu0 %v16325_v2  ;;  %v17143_v34 = vcombine.high %v2516_v16, %v2520_v62  ;;  %v1739_v2 = vld [vmem:[%s25117_s4 + $0xb40] sm:$0xff]  ;;  %v1241_v5 = vadd.f32 %v1240_v32, %v19445_v48  ;;  %v1242_v6 = vpop.f32.mrb[41].mxu0 }
 0x1b8   : > { %12039 = vmatprep.subr.bf16.mxu1 %v17111_v4  ;;  %v1743_v4 = vld [vmem:[%s25117_s4 + $0xb60] sm:$0xff] }
 0x1b9   : > { %v16365_v23 = vcombine.high %v1739_v2, %v1743_v4  ;;  %v1755_v16 = vld [vmem:[%s25117_s4 + $0xbc0] sm:$0xff] }
 0x1ba   : > { %11262 = vmatpush1.bf16.msra.mxu0 %v16324_v13  ;;  %v1243_v13 = vadd.f32 %v1242_v6, %v19448_v49  ;;  %v1759_v62 = vld [vmem:[%s25117_s4 + $0xbe0] sm:$0xff] }
 0x1bb   : > { %12040 = vmatpush1.bf16.msra.mxu1 %v17110_v14  ;;  %11263 = vmatprep.subr.bf16.mxu0 %v16333_v15  ;;  %v1244_v14 = vpop.f32.mrb[42].mxu0  ;;  %v16356_v15 = vcombine.low %v1731_v59, %v1735_v47  ;;  %v17159_v47 = vcombine.high %v2532_v35, %v2536_v36  ;;  %v1767_v6 = vld [vmem:[%s25117_s4 + $0xc20] sm:$0xff] }
 0x1bc   : > { %12041 = vmatprep.subr.bf16.mxu1 %v17119_v18  ;;  %v1299_v18 = vmax.f32 %v1241_v5, 0.0  ;;  %v1245_v46 = vadd.f32 %v1244_v14, %v19445_v48  ;;  %v1246_v24 = vpop.f32.mrb[43].mxu0  ;;  %v1763_v5 = vld [vmem:[%s25117_s4 + $0xc00] sm:$0xff] }
 0x1bd   : > { %v1247_v33 = vadd.f32 %v1246_v24, %v19448_v49  ;;  %v2560_v24 = vld [vmem:[%s25117_s4 + $0x24e8] sm:$0xff] }
 0x1be   : > { %11264 = vmatpush1.bf16.msra.mxu0 %v16332_v25  ;;  %v17151_v25 = vcombine.high %v2524_v7, %v2528_v8  ;;  %v1301_v30 = vmax.f32 %v1245_v46, 0.0  ;;  %v1771_v46 = vld [vmem:[%s25117_s4 + $0xc40] sm:$0xff] }
 0x1bf   : > { %12042 = vmatpush1.bf16.msra.mxu1 %v17118_v26  ;;  %11265 = vmatprep.subr.bf16.mxu0 %v16341_v27  ;;  %v1747_v26 = vld [vmem:[%s25117_s4 + $0xb80] sm:$0xff] }
 0x1c0   : > { %12043 = vmatprep.subr.bf16.mxu1 %v17127_v29  ;;  %v1751_v27 = vld [vmem:[%s25117_s4 + $0xba0] sm:$0xff]  ;;  %v1300_v29 = vmax.f32 %v1243_v13, 0.0  ;;  %v16380_v13 = vcombine.low %v1755_v16, %v1759_v62 }
 0x1c1   : > { %v16373_v59 = vcombine.high %v1747_v26, %v1751_v27  ;;  %v16372_v32 = vcombine.low %v1747_v26, %v1751_v27 }
 0x1c2   : > { %11266 = vmatpush1.bf16.msra.mxu0 %v16340_v38  ;;  %v16364_v38 = vcombine.low %v1739_v2, %v1743_v4  ;;  %v16381_v2 = vcombine.high %v1755_v16, %v1759_v62  ;;  %v1791_v16 = vld [vmem:[%s25117_s4 + $0xce0] sm:$0xff]  ;;  %v2572_v62 = vld [vmem:[%s25117_s4 + $0x2548] sm:$0xff] }
 0x1c3   : > { %12044 = vmatpush1.bf16.msra.mxu1 %v17126_v39  ;;  %11267 = vmatprep.subr.bf16.mxu0 %v16349_v57  ;;  %v19832_v39 = vpack.c.bf16 %v1301_v30, %v1299_v18  ;;  %v1302_v57 = vmax.f32 %v1247_v33, 0.0  ;;  %v1779_v30 = vld [vmem:[%s25117_s4 + $0xc80] sm:$0xff] }
 0x1c4   : > { %12045 = vmatprep.subr.bf16.mxu1 %v17135_v58  ;;  %v17150_v58 = vcombine.low %v2524_v7, %v2528_v8  ;;  %v2548_v7 = vld [vmem:[%s25117_s4 + $0x2488] sm:$0xff]  ;;  %v1783_v33 = vld [vmem:[%s25117_s4 + $0xca0] sm:$0xff] }
 0x1c5   : > { %v2552_v8 = vld [vmem:[%s25117_s4 + $0x24a8] sm:$0xff] }
 0x1c6   : > { %11268 = vmatpush1.bf16.msra.mxu0 %v16348_v63  ;;  %v19840_v63 = vpack.c.bf16 %v1302_v57, %v1300_v29  ;;  %v17175_v18 = vcombine.high %v2548_v7, %v2552_v8  ;;  %v17174_v26 = vcombine.low %v2548_v7, %v2552_v8  ;;  %v2584_v7 = vld [vmem:[%s25117_s4 + $0x25a8] sm:$0xff] }
 0x1c7   : > { %12046 = vmatpush1.bf16.msra.mxu1 %v17134_v0  ;;  %11269 = vmatprep.subr.bf16.mxu0 %v16357_v31  ;;  %v2540_v0 = vld [vmem:[%s25117_s4 + $0x2448] sm:$0xff] }
 0x1c8   : > { %12047 = vmatprep.subr.bf16.mxu1 %v17143_v34  ;;  %v2544_v31 = vld [vmem:[%s25117_s4 + $0x2468] sm:$0xff]  ;;  %v17158_v34 = vcombine.low %v2532_v35, %v2536_v36 }
 0x1c9   : > { %v17167_v4 = vcombine.high %v2540_v0, %v2544_v31  ;;  %v17166_v14 = vcombine.low %v2540_v0, %v2544_v31  ;;  %v2564_v35 = vld [vmem:[%s25117_s4 + $0x2508] sm:$0xff]  ;;  %v16404_v31 = vcombine.low %v1779_v30, %v1783_v33 }
 0x1ca   : > { %11270 = vmatpush1.bf16.msra.mxu0 %v16356_v15  ;;  %v16389_v15 = vcombine.high %v1763_v5, %v1767_v6  ;;  %v2568_v36 = vld [vmem:[%s25117_s4 + $0x2528] sm:$0xff] }
 0x1cb   : > { %12048 = vmatpush1.bf16.msra.mxu1 %v17142_v22  ;;  %11271 = vmatprep.subr.bf16.mxu0 %v16365_v23  ;;  %v1775_v22 = vld [vmem:[%s25117_s4 + $0xc60] sm:$0xff]  ;;  %v2556_v23 = vld [vmem:[%s25117_s4 + $0x24c8] sm:$0xff] }
 0x1cc   : > { %12049 = vmatprep.subr.bf16.mxu1 %v17151_v25  ;;  %v16388_v25 = vcombine.low %v1763_v5, %v1767_v6  ;;  %v16397_v27 = vcombine.high %v1771_v46, %v1775_v22  ;;  %v17183_v29 = vcombine.high %v2556_v23, %v2560_v24  ;;  %v17182_v57 = vcombine.low %v2556_v23, %v2560_v24  ;;  %v2576_v0 = vld [vmem:[%s25117_s4 + $0x2568] sm:$0xff]  ;;  %v1799_v5 = vld [vmem:[%s25117_s4 + $0xd20] sm:$0xff] }
 0x1cd   : > { %v2580_v6 = vld [vmem:[%s25117_s4 + $0x2588] sm:$0xff] }
 0x1ce   : > { %11272 = vmatpush1.bf16.msra.mxu0 %v16364_v38  ;;  %v16396_v38 = vcombine.low %v1771_v46, %v1775_v22  ;;  %v1807_v46 = vld [vmem:[%s25117_s4 + $0xd60] sm:$0xff]  ;;  %v2588_v22 = vld [vmem:[%s25117_s4 + $0x25c8] sm:$0xff] }
 0x1cf   : > { %12050 = vmatpush1.bf16.msra.mxu1 %v17150_v58  ;;  %11273 = vmatprep.subr.bf16.mxu0 %v16373_v59  ;;  %v16405_v58 = vcombine.high %v1779_v30, %v1783_v33  ;;  %v17191_v59 = vcombine.high %v2564_v35, %v2568_v36  ;;  %v2592_v23 = vld [vmem:[%s25117_s4 + $0x25e8] sm:$0xff]  ;;  %v1815_v30 = vld [vmem:[%s25117_s4 + $0xda0] sm:$0xff] }
 0x1d0   : > { %12062 = vmatprep.subr.bf16.mxu1 %v17159_v47  ;;  %v1787_v47 = vld [vmem:[%s25117_s4 + $0xcc0] sm:$0xff]  ;;  %v2596_v33 = vld [vmem:[%s25117_s4 + $0x2608] sm:$0xff] }
 0x1d1   : > { %v16412_v8 = vcombine.low %v1787_v47, %v1791_v16 }
 0x1d2   : > { %12052 = vmatmul.mubr.bf16.vlgmr.msra.gmra.mrb[12].mxu1 %v19657_v1  ;;  %11274 = vmatpush1.bf16.msra.mxu0 %v16372_v32  ;;  %v17190_v32 = vcombine.low %v2564_v35, %v2568_v36  ;;  %v2600_v35 = vld [vmem:[%s25117_s4 + $0x2628] sm:$0xff] }
 0x1d3   : > { %12063 = vmatpush1.bf16.msra.mxu1 %v17158_v34  ;;  %11275 = vmatprep.subr.bf16.mxu0 %v16381_v2  ;;  %v16413_v34 = vcombine.high %v1787_v47, %v1791_v16  ;;  %v17199_v2 = vcombine.high %v2572_v62, %v2576_v0  ;;  %v1823_v47 = vld [vmem:[%s25117_s4 + $0xde0] sm:$0xff]  ;;  %v2604_v16 = vld [vmem:[%s25117_s4 + $0x2648] sm:$0xff] }
 0x1d4   : > { %12064 = vmatprep.subr.bf16.mxu1 %v17167_v4  ;;  %12094 = vmatprep.mubr.bf16.mxu1 %v19694_v17  ;;  %v1795_v4 = vld [vmem:[%s25117_s4 + $0xd00] sm:$0xff] }
 0x1d5   : > { %v16420_v24 = vcombine.low %v1795_v4, %v1799_v5 }
 0x1d6   : > { %11276 = vmatpush1.bf16.msra.mxu0 %v16380_v13  ;;  %v17198_v13 = vcombine.low %v2572_v62, %v2576_v0  ;;  %v2608_v62 = vld [vmem:[%s25117_s4 + $0x2668] sm:$0xff] }
 0x1d7   : > { %12065 = vmatpush1.bf16.msra.mxu1 %v17166_v14  ;;  %11288 = vmatprep.subr.bf16.mxu0 %v16389_v15  ;;  %v16421_v14 = vcombine.high %v1795_v4, %v1799_v5  ;;  %v17207_v15 = vcombine.high %v2580_v6, %v2584_v7  ;;  %v1831_v4 = vld [vmem:[%s25117_s4 + $0xe20] sm:$0xff]  ;;  %v2612_v5 = vld [vmem:[%s25117_s4 + $0x2688] sm:$0xff] }
 0x1d8   : > { %12066 = vmatprep.subr.bf16.mxu1 %v17175_v18  ;;  %v1803_v18 = vld [vmem:[%s25117_s4 + $0xd40] sm:$0xff] }
 0x1d9   : > { %11278 = vmatmul.mubr.bf16.vlgmr.msra.gmra.mrb[48].mxu0 %v19512_v54  ;;  %v16428_v36 = vcombine.low %v1803_v18, %v1807_v46 }
 0x1da   : > { %11289 = vmatpush1.bf16.msra.mxu0 %v16388_v25  ;;  %11320 = vmatprep.mubr.bf16.mxu0 %v19536_v12  ;;  %v17206_v25 = vcombine.low %v2580_v6, %v2584_v7  ;;  %v2616_v6 = vld [vmem:[%s25117_s4 + $0x26a8] sm:$0xff] }
 0x1db   : > { %12067 = vmatpush1.bf16.msra.mxu1 %v17174_v26  ;;  %11290 = vmatprep.subr.bf16.mxu0 %v16397_v27  ;;  %v16429_v26 = vcombine.high %v1803_v18, %v1807_v46  ;;  %v17215_v27 = vcombine.high %v2588_v22, %v2592_v23  ;;  %v1839_v18 = vld [vmem:[%s25117_s4 + $0xe60] sm:$0xff]  ;;  %v2620_v46 = vld [vmem:[%s25117_s4 + $0x26c8] sm:$0xff] }
 0x1dc   : > { %12068 = vmatprep.subr.bf16.mxu1 %v17183_v29  ;;  %v1811_v29 = vld [vmem:[%s25117_s4 + $0xd80] sm:$0xff] }
 0x1dd   : > { %v16436_v0 = vcombine.low %v1811_v29, %v1815_v30 }
 0x1de   : > { %11291 = vmatpush1.bf16.msra.mxu0 %v16396_v38  ;;  %v17214_v38 = vcombine.low %v2588_v22, %v2592_v23  ;;  %v2624_v22 = vld [vmem:[%s25117_s4 + $0x26e8] sm:$0xff] }
 0x1df   : > { %12069 = vmatpush1.bf16.msra.mxu1 %v17182_v57  ;;  %11292 = vmatprep.subr.bf16.mxu0 %v16405_v58  ;;  %v16437_v57 = vcombine.high %v1811_v29, %v1815_v30  ;;  %v17223_v58 = vcombine.high %v2596_v33, %v2600_v35  ;;  %v1847_v29 = vld [vmem:[%s25117_s4 + $0xea0] sm:$0xff]  ;;  %v2628_v30 = vld [vmem:[%s25117_s4 + $0x2708] sm:$0xff] }
 0x1e0   : > { %12070 = vmatprep.subr.bf16.mxu1 %v17191_v59  ;;  %v1819_v59 = vld [vmem:[%s25117_s4 + $0xdc0] sm:$0xff] }
 0x1e1   : > { %v16444_v7 = vcombine.low %v1819_v59, %v1823_v47 }
 0x1e2   : > { %11293 = vmatpush1.bf16.msra.mxu0 %v16404_v31  ;;  %v17222_v31 = vcombine.low %v2596_v33, %v2600_v35  ;;  %v2632_v33 = vld [vmem:[%s25117_s4 + $0x2728] sm:$0xff] }
 0x1e3   : > { %12071 = vmatpush1.bf16.msra.mxu1 %v17190_v32  ;;  %11294 = vmatprep.subr.bf16.mxu0 %v16413_v34  ;;  %v16445_v32 = vcombine.high %v1819_v59, %v1823_v47  ;;  %v17231_v34 = vcombine.high %v2604_v16, %v2608_v62  ;;  %v1855_v59 = vld [vmem:[%s25117_s4 + $0xee0] sm:$0xff]  ;;  %v2636_v47 = vld [vmem:[%s25117_s4 + $0x2748] sm:$0xff] }
 0x1e4   : > { %12072 = vmatprep.subr.bf16.mxu1 %v17199_v2  ;;  %v1827_v2 = vld [vmem:[%s25117_s4 + $0xe00] sm:$0xff] }
 0x1e5   : > { %v16452_v23 = vcombine.low %v1827_v2, %v1831_v4 }
 0x1e6   : > { %11295 = vmatpush1.bf16.msra.mxu0 %v16412_v8  ;;  %v17230_v8 = vcombine.low %v2604_v16, %v2608_v62  ;;  %v2640_v16 = vld [vmem:[%s25117_s4 + $0x2768] sm:$0xff] }
 0x1e7   : > { %12073 = vmatpush1.bf16.msra.mxu1 %v17198_v13  ;;  %11296 = vmatprep.subr.bf16.mxu0 %v16421_v14  ;;  %v16453_v13 = vcombine.high %v1827_v2, %v1831_v4  ;;  %v17239_v14 = vcombine.high %v2612_v5, %v2616_v6  ;;  %v1863_v2 = vld [vmem:[%s25117_s4 + $0xf20] sm:$0xff]  ;;  %v2644_v4 = vld [vmem:[%s25117_s4 + $0x2788] sm:$0xff] }
 0x1e8   : > { %12074 = vmatprep.subr.bf16.mxu1 %v17207_v15  ;;  %v1835_v15 = vld [vmem:[%s25117_s4 + $0xe40] sm:$0xff] }
 0x1e9   : > { %v16460_v35 = vcombine.low %v1835_v15, %v1839_v18 }
 0x1ea   : > { %11297 = vmatpush1.bf16.msra.mxu0 %v16420_v24  ;;  %v17238_v24 = vcombine.low %v2612_v5, %v2616_v6  ;;  %v2648_v5 = vld [vmem:[%s25117_s4 + $0x27a8] sm:$0xff] }
 0x1eb   : > { %12075 = vmatpush1.bf16.msra.mxu1 %v17206_v25  ;;  %11298 = vmatprep.subr.bf16.mxu0 %v16429_v26  ;;  %v16461_v25 = vcombine.high %v1835_v15, %v1839_v18  ;;  %v17247_v26 = vcombine.high %v2620_v46, %v2624_v22  ;;  %v1867_v15 = vld [vmem:[%s25117_s4 + $0xf40] sm:$0xff] }
 0x1ec   : > { %12076 = vmatprep.subr.bf16.mxu1 %v17215_v27  ;;  %v1843_v27 = vld [vmem:[%s25117_s4 + $0xe80] sm:$0xff] }
 0x1ed   : > { %v16468_v62 = vcombine.low %v1843_v27, %v1847_v29  ;;  %v1871_v18 = vld [vmem:[%s25117_s4 + $0xf60] sm:$0xff] }
 0x1ee   : > { %11299 = vmatpush1.bf16.msra.mxu0 %v16428_v36  ;;  %v17246_v36 = vcombine.low %v2620_v46, %v2624_v22 }
 0x1ef   : > { %12077 = vmatpush1.bf16.msra.mxu1 %v17214_v38  ;;  %11300 = vmatprep.subr.bf16.mxu0 %v16437_v57  ;;  %v16469_v38 = vcombine.high %v1843_v27, %v1847_v29  ;;  %v17255_v57 = vcombine.high %v2628_v30, %v2632_v33 }
 0x1f0   : > { %12078 = vmatprep.subr.bf16.mxu1 %v17223_v58  ;;  %v1851_v58 = vld [vmem:[%s25117_s4 + $0xec0] sm:$0xff] }
 0x1f1   : > { %v16476_v6 = vcombine.low %v1851_v58, %v1855_v59 }
 0x1f2   : > { %11301 = vmatpush1.bf16.msra.mxu0 %v16436_v0  ;;  %v17254_v0 = vcombine.low %v2628_v30, %v2632_v33  ;;  %v17270_v33 = vcombine.low %v2644_v4, %v2648_v5 }
 0x1f3   : > { %12079 = vmatpush1.bf16.msra.mxu1 %v17222_v31  ;;  %11302 = vmatprep.subr.bf16.mxu0 %v16445_v32  ;;  %v16477_v31 = vcombine.high %v1851_v58, %v1855_v59  ;;  %v17263_v32 = vcombine.high %v2636_v47, %v2640_v16  ;;  %v1879_v58 = vld [vmem:[%s25117_s4 + $0xfa0] sm:$0xff] }
 0x1f4   : > { %12080 = vmatprep.subr.bf16.mxu1 %v17231_v34  ;;  %v1859_v34 = vld [vmem:[%s25117_s4 + $0xf00] sm:$0xff] }
 0x1f5   : > { %v16484_v27 = vcombine.low %v1859_v34, %v1863_v2 }
 0x1f6   : > { %11303 = vmatpush1.bf16.msra.mxu0 %v16444_v7  ;;  %v17262_v7 = vcombine.low %v2636_v47, %v2640_v16 }
 0x1f7   : > { %12081 = vmatpush1.bf16.msra.mxu1 %v17230_v8  ;;  %11304 = vmatprep.subr.bf16.mxu0 %v16453_v13  ;;  %v16485_v8 = vcombine.high %v1859_v34, %v1863_v2  ;;  %v1250_v13 = vpop.f32.mrb[44].mxu0 }
 0x1f8   : > { %12082 = vmatprep.subr.bf16.mxu1 %v17239_v14  ;;  %v17271_v14 = vcombine.high %v2644_v4, %v2648_v5  ;;  %v1251_v46 = vadd.f32 %v1250_v13, %v19445_v48  ;;  %v1252_v22 = vpop.f32.mrb[45].mxu0  ;;  %v1887_v5 = vld [vmem:[%s25117_s4 + $0xfe0] sm:$0xff] }
 0x1fa   : > { %11305 = vmatpush1.bf16.msra.mxu0 %v16452_v23  ;;  %v2652_v23 = vld [vmem:[%s25117_s4 + $0x27c8] sm:$0xff]  ;;  %v1303_v29 = vmax.f32 %v1251_v46, 0.0  ;;  %v1891_v46 = vld [vmem:[%s25117_s4 + $0x1000] sm:$0xff] }
 0x1fb   : > { %12083 = vmatpush1.bf16.msra.mxu1 %v17238_v24  ;;  %11306 = vmatprep.subr.bf16.mxu0 %v16461_v25  ;;  %v2656_v24 = vld [vmem:[%s25117_s4 + $0x27e8] sm:$0xff]  ;;  %v1253_v25 = vadd.f32 %v1252_v22, %v19448_v49  ;;  %v1895_v22 = vld [vmem:[%s25117_s4 + $0x1020] sm:$0xff] }
 0x1fc   : > { %12084 = vmatprep.subr.bf16.mxu1 %v17247_v26  ;;  %v1254_v26 = vpop.f32.mrb[46].mxu0  ;;  %v17278_v34 = vcombine.low %v2652_v23, %v2656_v24 }
 0x1fd   : > { %v1255_v30 = vadd.f32 %v1254_v26, %v19445_v48  ;;  %v1304_v59 = vmax.f32 %v1253_v25, 0.0  ;;  %v2660_v48 = vld [vmem:[%s25117_s4 + $0x2808] sm:$0xff] }
 0x1fe   : > { %11307 = vmatpush1.bf16.msra.mxu0 %v16460_v35  ;;  %v16493_v35 = vcombine.high %v1867_v15, %v1871_v18 }
 0x1ff   : > { %12085 = vmatpush1.bf16.msra.mxu1 %v17246_v36  ;;  %11308 = vmatprep.subr.bf16.mxu0 %v16469_v38  ;;  %v1256_v36 = vpop.f32.mrb[47].mxu0  ;;  %v17279_v38 = vcombine.high %v2652_v23, %v2656_v24  ;;  %v1305_v47 = vmax.f32 %v1255_v30, 0.0  ;;  %v2676_v23 = vld [vmem:[%s25117_s4 + $0x2888] sm:$0xff]  ;;  %v1899_v30 = vld [vmem:[%s25117_s4 + $0x1040] sm:$0xff] }
 0x200   : > { %12086 = vmatprep.subr.bf16.mxu1 %v17255_v57  ;;  %v1875_v57 = vld [vmem:[%s25117_s4 + $0xf80] sm:$0xff]  ;;  %v1257_v16 = vadd.f32 %v1256_v36, %v19448_v49  ;;  %v2680_v24 = vld [vmem:[%s25117_s4 + $0x28a8] sm:$0xff] }
 0x201   : > { %v16501_v2 = vcombine.high %v1875_v57, %v1879_v58  ;;  %v1883_v49 = vld [vmem:[%s25117_s4 + $0xfc0] sm:$0xff]  ;;  %v16500_v13 = vcombine.low %v1875_v57, %v1879_v58  ;;  %v2688_v36 = vld [vmem:[%s25117_s4 + $0x28e8] sm:$0xff]  ;;  %v17302_v57 = vcombine.low %v2676_v23, %v2680_v24 }
 0x202   : > { %11309 = vmatpush1.bf16.msra.mxu0 %v16468_v62  ;;  %v2664_v62 = vld [vmem:[%s25117_s4 + $0x2828] sm:$0xff]  ;;  %v16508_v25 = vcombine.low %v1883_v49, %v1887_v5 }
 0x203   : > { %12087 = vmatpush1.bf16.msra.mxu1 %v17254_v0  ;;  %11310 = vmatprep.subr.bf16.mxu0 %v16477_v31  ;;  %v16492_v0 = vcombine.low %v1867_v15, %v1871_v18  ;;  %v20036_v31 = vpack.c.bf16 %v1305_v47, %v1303_v29  ;;  %v17287_v4 = vcombine.high %v2660_v48, %v2664_v62  ;;  %v1907_v47 = vld [vmem:[%s25117_s4 + $0x1080] sm:$0xff] }
 0x204   : > { %12088 = vmatprep.subr.bf16.mxu1 %v17263_v32  ;;  %v1306_v32 = vmax.f32 %v1257_v16, 0.0  ;;  %v16509_v15 = vcombine.high %v1883_v49, %v1887_v5  ;;  %v17303_v29 = vcombine.high %v2676_v23, %v2680_v24  ;;  %v1911_v16 = vld [vmem:[%s25117_s4 + $0x10a0] sm:$0xff]  ;;  %v2700_v5 = vld [vmem:[%s25117_s4 + $0x2948] sm:$0xff] }
 0x205   : > { %v1919_v49 = vld [vmem:[%s25117_s4 + $0x10e0] sm:$0xff]  ;;  %v2712_v23 = vld [vmem:[%s25117_s4 + $0x29a8] sm:$0xff] }
 0x206   : > { %11311 = vmatpush1.bf16.msra.mxu0 %v16476_v6  ;;  %v20044_v6 = vpack.c.bf16 %v1306_v32, %v1304_v59 }
 0x207   : > { %12089 = vmatpush1.bf16.msra.mxu1 %v17262_v7  ;;  %11312 = vmatprep.subr.bf16.mxu0 %v16485_v8  ;;  %v2668_v7 = vld [vmem:[%s25117_s4 + $0x2848] sm:$0xff] }
 0x208   : > { %12090 = vmatprep.subr.bf16.mxu1 %v17271_v14  ;;  %v2672_v8 = vld [vmem:[%s25117_s4 + $0x2868] sm:$0xff]  ;;  %v17286_v14 = vcombine.low %v2660_v48, %v2664_v62 }
 0x209   : > { %v17295_v18 = vcombine.high %v2668_v7, %v2672_v8  ;;  %v17294_v26 = vcombine.low %v2668_v7, %v2672_v8  ;;  %v2692_v48 = vld [vmem:[%s25117_s4 + $0x2908] sm:$0xff]  ;;  %v16532_v8 = vcombine.low %v1907_v47, %v1911_v16 }
 0x20a   : > { %11313 = vmatpush1.bf16.msra.mxu0 %v16484_v27  ;;  %v16517_v27 = vcombine.high %v1891_v46, %v1895_v22  ;;  %v2696_v62 = vld [vmem:[%s25117_s4 + $0x2928] sm:$0xff] }
 0x20b   : > { %12091 = vmatpush1.bf16.msra.mxu1 %v17270_v33  ;;  %11314 = vmatprep.subr.bf16.mxu0 %v16493_v35  ;;  %v1903_v33 = vld [vmem:[%s25117_s4 + $0x1060] sm:$0xff]  ;;  %v2684_v35 = vld [vmem:[%s25117_s4 + $0x28c8] sm:$0xff] }
 0x20c   : > { %12092 = vmatprep.subr.bf16.mxu1 %v17279_v38  ;;  %v16516_v38 = vcombine.low %v1891_v46, %v1895_v22  ;;  %v16525_v58 = vcombine.high %v1899_v30, %v1903_v33  ;;  %v17311_v59 = vcombine.high %v2684_v35, %v2688_v36  ;;  %v17310_v32 = vcombine.low %v2684_v35, %v2688_v36  ;;  %v2704_v7 = vld [vmem:[%s25117_s4 + $0x2968] sm:$0xff]  ;;  %v1927_v46 = vld [vmem:[%s25117_s4 + $0x1120] sm:$0xff] }
 0x20d   : > { %v2708_v22 = vld [vmem:[%s25117_s4 + $0x2988] sm:$0xff] }
 0x20e   : > { %11315 = vmatpush1.bf16.msra.mxu0 %v16492_v0  ;;  %v16524_v0 = vcombine.low %v1899_v30, %v1903_v33  ;;  %v1935_v30 = vld [vmem:[%s25117_s4 + $0x1160] sm:$0xff]  ;;  %v2716_v33 = vld [vmem:[%s25117_s4 + $0x29c8] sm:$0xff] }
 0x20f   : > { %12093 = vmatpush1.bf16.msra.mxu1 %v17278_v34  ;;  %11316 = vmatprep.subr.bf16.mxu0 %v16501_v2  ;;  %v16533_v34 = vcombine.high %v1907_v47, %v1911_v16  ;;  %v17319_v2 = vcombine.high %v2692_v48, %v2696_v62  ;;  %v2720_v35 = vld [vmem:[%s25117_s4 + $0x29e8] sm:$0xff]  ;;  %v1943_v47 = vld [vmem:[%s25117_s4 + $0x11a0] sm:$0xff] }
 0x210   : > { %12105 = vmatprep.subr.bf16.mxu1 %v17287_v4  ;;  %v1915_v4 = vld [vmem:[%s25117_s4 + $0x10c0] sm:$0xff]  ;;  %v2724_v16 = vld [vmem:[%s25117_s4 + $0x2a08] sm:$0xff] }
 0x211   : > { %v16540_v24 = vcombine.low %v1915_v4, %v1919_v49 }
 0x212   : > { %12095 = vmatmul.mubr.bf16.vlgmr.msra.gmra.mrb[12].mxu1 %v19692_v60  ;;  %11317 = vmatpush1.bf16.msra.mxu0 %v16500_v13  ;;  %v17318_v13 = vcombine.low %v2692_v48, %v2696_v62  ;;  %v2728_v48 = vld [vmem:[%s25117_s4 + $0x2a28] sm:$0xff] }
 0x213   : > { %12106 = vmatpush1.bf16.msra.mxu1 %v17286_v14  ;;  %11318 = vmatprep.subr.bf16.mxu0 %v16509_v15  ;;  %v16541_v14 = vcombine.high %v1915_v4, %v1919_v49  ;;  %v17327_v15 = vcombine.high %v2700_v5, %v2704_v7  ;;  %v1951_v4 = vld [vmem:[%s25117_s4 + $0x11e0] sm:$0xff]  ;;  %v2732_v49 = vld [vmem:[%s25117_s4 + $0x2a48] sm:$0xff] }
 0x214   : > { %12107 = vmatprep.subr.bf16.mxu1 %v17295_v18  ;;  %12137 = vmatprep.mubr.bf16.mxu1 %v19840_v63  ;;  %v1923_v18 = vld [vmem:[%s25117_s4 + $0x1100] sm:$0xff] }
 0x215   : > { %v16548_v36 = vcombine.low %v1923_v18, %v1927_v46 }
 0x216   : > { %11319 = vmatpush1.bf16.msra.mxu0 %v16508_v25  ;;  %v17326_v25 = vcombine.low %v2700_v5, %v2704_v7  ;;  %v2736_v5 = vld [vmem:[%s25117_s4 + $0x2a68] sm:$0xff] }
 0x217   : > { %12108 = vmatpush1.bf16.msra.mxu1 %v17294_v26  ;;  %11331 = vmatprep.subr.bf16.mxu0 %v16517_v27  ;;  %v16549_v26 = vcombine.high %v1923_v18, %v1927_v46  ;;  %v17335_v27 = vcombine.high %v2708_v22, %v2712_v23  ;;  %v1959_v18 = vld [vmem:[%s25117_s4 + $0x1220] sm:$0xff]  ;;  %v2740_v46 = vld [vmem:[%s25117_s4 + $0x2a88] sm:$0xff] }
 0x218   : > { %12109 = vmatprep.subr.bf16.mxu1 %v17303_v29  ;;  %v1931_v29 = vld [vmem:[%s25117_s4 + $0x1140] sm:$0xff] }
 0x219   : > { %11321 = vmatmul.mubr.bf16.vlgmr.msra.gmra.mrb[48].mxu0 %v19534_v11  ;;  %v16556_v62 = vcombine.low %v1931_v29, %v1935_v30 }
 0x21a   : > { %11332 = vmatpush1.bf16.msra.mxu0 %v16516_v38  ;;  %11363 = vmatprep.mubr.bf16.mxu0 %v19556_v50  ;;  %v17334_v38 = vcombine.low %v2708_v22, %v2712_v23  ;;  %v2744_v22 = vld [vmem:[%s25117_s4 + $0x2aa8] sm:$0xff] }
 0x21b   : > { %12110 = vmatpush1.bf16.msra.mxu1 %v17302_v57  ;;  %11333 = vmatprep.subr.bf16.mxu0 %v16525_v58  ;;  %v16557_v57 = vcombine.high %v1931_v29, %v1935_v30  ;;  %v17343_v58 = vcombine.high %v2716_v33, %v2720_v35  ;;  %v1967_v29 = vld [vmem:[%s25117_s4 + $0x1260] sm:$0xff]  ;;  %v2748_v30 = vld [vmem:[%s25117_s4 + $0x2ac8] sm:$0xff] }
 0x21c   : > { %12111 = vmatprep.subr.bf16.mxu1 %v17311_v59  ;;  %v1939_v59 = vld [vmem:[%s25117_s4 + $0x1180] sm:$0xff] }
 0x21d   : > { %v16564_v7 = vcombine.low %v1939_v59, %v1943_v47 }
 0x21e   : > { %11334 = vmatpush1.bf16.msra.mxu0 %v16524_v0  ;;  %v17342_v0 = vcombine.low %v2716_v33, %v2720_v35  ;;  %v2752_v33 = vld [vmem:[%s25117_s4 + $0x2ae8] sm:$0xff] }
 0x21f   : > { %12112 = vmatpush1.bf16.msra.mxu1 %v17310_v32  ;;  %11335 = vmatprep.subr.bf16.mxu0 %v16533_v34  ;;  %v16565_v32 = vcombine.high %v1939_v59, %v1943_v47  ;;  %v17351_v34 = vcombine.high %v2724_v16, %v2728_v48  ;;  %v1975_v59 = vld [vmem:[%s25117_s4 + $0x12a0] sm:$0xff]  ;;  %v2756_v47 = vld [vmem:[%s25117_s4 + $0x2b08] sm:$0xff] }
 0x220   : > { %12113 = vmatprep.subr.bf16.mxu1 %v17319_v2  ;;  %v1947_v2 = vld [vmem:[%s25117_s4 + $0x11c0] sm:$0xff] }
 0x221   : > { %v16572_v23 = vcombine.low %v1947_v2, %v1951_v4 }
 0x222   : > { %11336 = vmatpush1.bf16.msra.mxu0 %v16532_v8  ;;  %v17350_v8 = vcombine.low %v2724_v16, %v2728_v48  ;;  %v2760_v16 = vld [vmem:[%s25117_s4 + $0x2b28] sm:$0xff] }
 0x223   : > { %12114 = vmatpush1.bf16.msra.mxu1 %v17318_v13  ;;  %11337 = vmatprep.subr.bf16.mxu0 %v16541_v14  ;;  %v16573_v13 = vcombine.high %v1947_v2, %v1951_v4  ;;  %v17359_v14 = vcombine.high %v2732_v49, %v2736_v5  ;;  %v1983_v2 = vld [vmem:[%s25117_s4 + $0x12e0] sm:$0xff]  ;;  %v2764_v4 = vld [vmem:[%s25117_s4 + $0x2b48] sm:$0xff] }
 0x224   : > { %12115 = vmatprep.subr.bf16.mxu1 %v17327_v15  ;;  %v1955_v15 = vld [vmem:[%s25117_s4 + $0x1200] sm:$0xff] }
 0x225   : > { %v16580_v35 = vcombine.low %v1955_v15, %v1959_v18 }
 0x226   : > { %11338 = vmatpush1.bf16.msra.mxu0 %v16540_v24  ;;  %v17358_v24 = vcombine.low %v2732_v49, %v2736_v5  ;;  %v2768_v49 = vld [vmem:[%s25117_s4 + $0x2b68] sm:$0xff] }
 0x227   : > { %12116 = vmatpush1.bf16.msra.mxu1 %v17326_v25  ;;  %11339 = vmatprep.subr.bf16.mxu0 %v16549_v26  ;;  %v16581_v25 = vcombine.high %v1955_v15, %v1959_v18  ;;  %v17367_v26 = vcombine.high %v2740_v46, %v2744_v22  ;;  %v1991_v15 = vld [vmem:[%s25117_s4 + $0x1320] sm:$0xff]  ;;  %v2772_v18 = vld [vmem:[%s25117_s4 + $0x2b88] sm:$0xff] }
 0x228   : > { %12117 = vmatprep.subr.bf16.mxu1 %v17335_v27  ;;  %v1963_v27 = vld [vmem:[%s25117_s4 + $0x1240] sm:$0xff] }
 0x229   : > { %v16588_v48 = vcombine.low %v1963_v27, %v1967_v29 }
 0x22a   : > { %11340 = vmatpush1.bf16.msra.mxu0 %v16548_v36  ;;  %v17366_v36 = vcombine.low %v2740_v46, %v2744_v22  ;;  %v2776_v46 = vld [vmem:[%s25117_s4 + $0x2ba8] sm:$0xff] }
 0x22b   : > { %12118 = vmatpush1.bf16.msra.mxu1 %v17334_v38  ;;  %11341 = vmatprep.subr.bf16.mxu0 %v16557_v57  ;;  %v16589_v38 = vcombine.high %v1963_v27, %v1967_v29  ;;  %v17375_v57 = vcombine.high %v2748_v30, %v2752_v33  ;;  %v1999_v27 = vld [vmem:[%s25117_s4 + $0x1360] sm:$0xff]  ;;  %v2780_v29 = vld [vmem:[%s25117_s4 + $0x2bc8] sm:$0xff] }
 0x22c   : > { %12119 = vmatprep.subr.bf16.mxu1 %v17343_v58  ;;  %v1971_v58 = vld [vmem:[%s25117_s4 + $0x1280] sm:$0xff] }
 0x22d   : > { %v16596_v5 = vcombine.low %v1971_v58, %v1975_v59 }
 0x22e   : > { %11342 = vmatpush1.bf16.msra.mxu0 %v16556_v62  ;;  %v17374_v62 = vcombine.low %v2748_v30, %v2752_v33  ;;  %v2784_v30 = vld [vmem:[%s25117_s4 + $0x2be8] sm:$0xff] }
 0x22f   : > { %12120 = vmatpush1.bf16.msra.mxu1 %v17342_v0  ;;  %11343 = vmatprep.subr.bf16.mxu0 %v16565_v32  ;;  %v16597_v0 = vcombine.high %v1971_v58, %v1975_v59  ;;  %v17383_v32 = vcombine.high %v2756_v47, %v2760_v16  ;;  %v2007_v58 = vld [vmem:[%s25117_s4 + $0x13a0] sm:$0xff]  ;;  %v2788_v59 = vld [vmem:[%s25117_s4 + $0x2c08] sm:$0xff] }
 0x230   : > { %12121 = vmatprep.subr.bf16.mxu1 %v17351_v34  ;;  %v1979_v34 = vld [vmem:[%s25117_s4 + $0x12c0] sm:$0xff] }
 0x231   : > { %v16604_v22 = vcombine.low %v1979_v34, %v1983_v2 }
 0x232   : > { %11344 = vmatpush1.bf16.msra.mxu0 %v16564_v7  ;;  %v17382_v7 = vcombine.low %v2756_v47, %v2760_v16  ;;  %v2792_v47 = vld [vmem:[%s25117_s4 + $0x2c28] sm:$0xff] }
 0x233   : > { %12122 = vmatpush1.bf16.msra.mxu1 %v17350_v8  ;;  %11345 = vmatprep.subr.bf16.mxu0 %v16573_v13  ;;  %v16605_v8 = vcombine.high %v1979_v34, %v1983_v2  ;;  %v17391_v13 = vcombine.high %v2764_v4, %v2768_v49  ;;  %v2015_v34 = vld [vmem:[%s25117_s4 + $0x13e0] sm:$0xff]  ;;  %v2796_v2 = vld [vmem:[%s25117_s4 + $0x2c48] sm:$0xff] }
 0x234   : > { %12123 = vmatprep.subr.bf16.mxu1 %v17359_v14  ;;  %v1987_v14 = vld [vmem:[%s25117_s4 + $0x1300] sm:$0xff] }
 0x235   : > { %v16612_v33 = vcombine.low %v1987_v14, %v1991_v15 }
 0x236   : > { %11346 = vmatpush1.bf16.msra.mxu0 %v16572_v23  ;;  %v17390_v23 = vcombine.low %v2764_v4, %v2768_v49  ;;  %v2800_v4 = vld [vmem:[%s25117_s4 + $0x2c68] sm:$0xff] }
 0x237   : > { %12124 = vmatpush1.bf16.msra.mxu1 %v17358_v24  ;;  %11347 = vmatprep.subr.bf16.mxu0 %v16581_v25  ;;  %v16613_v24 = vcombine.high %v1987_v14, %v1991_v15  ;;  %v17399_v25 = vcombine.high %v2772_v18, %v2776_v46  ;;  %v2023_v14 = vld [vmem:[%s25117_s4 + $0x1420] sm:$0xff]  ;;  %v2804_v15 = vld [vmem:[%s25117_s4 + $0x2c88] sm:$0xff] }
 0x238   : > { %12125 = vmatprep.subr.bf16.mxu1 %v17367_v26  ;;  %v1995_v26 = vld [vmem:[%s25117_s4 + $0x1340] sm:$0xff] }
 0x239   : > { %v16620_v16 = vcombine.low %v1995_v26, %v1999_v27 }
 0x23a   : > { %11348 = vmatpush1.bf16.msra.mxu0 %v16580_v35  ;;  %v17398_v35 = vcombine.low %v2772_v18, %v2776_v46  ;;  %v2808_v18 = vld [vmem:[%s25117_s4 + $0x2ca8] sm:$0xff] }
 0x23b   : > { %12126 = vmatpush1.bf16.msra.mxu1 %v17366_v36  ;;  %11349 = vmatprep.subr.bf16.mxu0 %v16589_v38  ;;  %v16621_v36 = vcombine.high %v1995_v26, %v1999_v27  ;;  %v17407_v38 = vcombine.high %v2780_v29, %v2784_v30  ;;  %v2031_v26 = vld [vmem:[%s25117_s4 + $0x1460] sm:$0xff]  ;;  %v2812_v27 = vld [vmem:[%s25117_s4 + $0x2cc8] sm:$0xff] }
 0x23c   : > { %12127 = vmatprep.subr.bf16.mxu1 %v17375_v57  ;;  %v2003_v57 = vld [vmem:[%s25117_s4 + $0x1380] sm:$0xff] }
 0x23d   : > { %v16628_v49 = vcombine.low %v2003_v57, %v2007_v58 }
 0x23e   : > { %11350 = vmatpush1.bf16.msra.mxu0 %v16588_v48  ;;  %v17406_v48 = vcombine.low %v2780_v29, %v2784_v30  ;;  %v2816_v29 = vld [vmem:[%s25117_s4 + $0x2ce8] sm:$0xff] }
 0x23f   : > { %12128 = vmatpush1.bf16.msra.mxu1 %v17374_v62  ;;  %11351 = vmatprep.subr.bf16.mxu0 %v16597_v0  ;;  %v16629_v62 = vcombine.high %v2003_v57, %v2007_v58  ;;  %v17415_v0 = vcombine.high %v2788_v59, %v2792_v47  ;;  %v2039_v57 = vld [vmem:[%s25117_s4 + $0x14a0] sm:$0xff]  ;;  %v2820_v58 = vld [vmem:[%s25117_s4 + $0x2d08] sm:$0xff] }
 0x240   : > { %12129 = vmatprep.subr.bf16.mxu1 %v17383_v32  ;;  %v2011_v32 = vld [vmem:[%s25117_s4 + $0x13c0] sm:$0xff] }
 0x241   : > { %v16636_v46 = vcombine.low %v2011_v32, %v2015_v34 }
 0x242   : > { %11352 = vmatpush1.bf16.msra.mxu0 %v16596_v5  ;;  %v17414_v5 = vcombine.low %v2788_v59, %v2792_v47  ;;  %v2824_v59 = vld [vmem:[%s25117_s4 + $0x2d28] sm:$0xff] }
 0x243   : > { %12130 = vmatpush1.bf16.msra.mxu1 %v17382_v7  ;;  %11353 = vmatprep.subr.bf16.mxu0 %v16605_v8  ;;  %v16637_v7 = vcombine.high %v2011_v32, %v2015_v34  ;;  %v17423_v8 = vcombine.high %v2796_v2, %v2800_v4  ;;  %v2047_v32 = vld [vmem:[%s25117_s4 + $0x14e0] sm:$0xff]  ;;  %v2828_v34 = vld [vmem:[%s25117_s4 + $0x2d48] sm:$0xff] }
 0x244   : > { %12131 = vmatprep.subr.bf16.mxu1 %v17391_v13  ;;  %v2019_v13 = vld [vmem:[%s25117_s4 + $0x1400] sm:$0xff] }
 0x245   : > { %v16644_v30 = vcombine.low %v2019_v13, %v2023_v14 }
 0x246   : > { %11354 = vmatpush1.bf16.msra.mxu0 %v16604_v22  ;;  %v17422_v22 = vcombine.low %v2796_v2, %v2800_v4  ;;  %v2832_v2 = vld [vmem:[%s25117_s4 + $0x2d68] sm:$0xff] }
 0x247   : > { %12132 = vmatpush1.bf16.msra.mxu1 %v17390_v23  ;;  %11355 = vmatprep.subr.bf16.mxu0 %v16613_v24  ;;  %v16645_v23 = vcombine.high %v2019_v13, %v2023_v14  ;;  %v17431_v24 = vcombine.high %v2804_v15, %v2808_v18  ;;  %v2055_v13 = vld [vmem:[%s25117_s4 + $0x1520] sm:$0xff]  ;;  %v2836_v14 = vld [vmem:[%s25117_s4 + $0x2d88] sm:$0xff] }
 0x248   : > { %12133 = vmatprep.subr.bf16.mxu1 %v17399_v25  ;;  %v2027_v25 = vld [vmem:[%s25117_s4 + $0x1440] sm:$0xff] }
 0x249   : > { %v16652_v47 = vcombine.low %v2027_v25, %v2031_v26 }
 0x24a   : > { %11356 = vmatpush1.bf16.msra.mxu0 %v16612_v33  ;;  %v17430_v33 = vcombine.low %v2804_v15, %v2808_v18  ;;  %v2840_v15 = vld [vmem:[%s25117_s4 + $0x2da8] sm:$0xff] }
 0x24b   : > { %12134 = vmatpush1.bf16.msra.mxu1 %v17398_v35  ;;  %11357 = vmatprep.subr.bf16.mxu0 %v16621_v36  ;;  %v16653_v35 = vcombine.high %v2027_v25, %v2031_v26  ;;  %v17439_v36 = vcombine.high %v2812_v27, %v2816_v29  ;;  %v2063_v25 = vld [vmem:[%s25117_s4 + $0x1560] sm:$0xff]  ;;  %v2844_v26 = vld [vmem:[%s25117_s4 + $0x2dc8] sm:$0xff] }
 0x24c   : > { %12135 = vmatprep.subr.bf16.mxu1 %v17407_v38  ;;  %v2035_v38 = vld [vmem:[%s25117_s4 + $0x1480] sm:$0xff] }
 0x24d   : > { %v16660_v4 = vcombine.low %v2035_v38, %v2039_v57 }
 0x24e   : > { %11358 = vmatpush1.bf16.msra.mxu0 %v16620_v16  ;;  %v17438_v16 = vcombine.low %v2812_v27, %v2816_v29  ;;  %v2848_v27 = vld [vmem:[%s25117_s4 + $0x2de8] sm:$0xff] }
 0x24f   : > { %12136 = vmatpush1.bf16.msra.mxu1 %v17406_v48  ;;  %11359 = vmatprep.subr.bf16.mxu0 %v16629_v62  ;;  %v16661_v48 = vcombine.high %v2035_v38, %v2039_v57  ;;  %v17447_v62 = vcombine.high %v2820_v58, %v2824_v59  ;;  %v2071_v38 = vld [vmem:[%s25117_s4 + $0x15a0] sm:$0xff]  ;;  %v2852_v57 = vld [vmem:[%s25117_s4 + $0x2e08] sm:$0xff] }
 0x250   : > { %12148 = vmatprep.subr.bf16.mxu1 %v17415_v0  ;;  %v2043_v0 = vld [vmem:[%s25117_s4 + $0x14c0] sm:$0xff] }
 0x251   : > { %v16668_v18 = vcombine.low %v2043_v0, %v2047_v32 }
 0x252   : > { %12138 = vmatmul.mubr.bf16.vlgmr.msra.gmra.mrb[12].mxu1 %v19832_v39  ;;  %11360 = vmatpush1.bf16.msra.mxu0 %v16628_v49  ;;  %v17446_v49 = vcombine.low %v2820_v58, %v2824_v59  ;;  %v2856_v58 = vld [vmem:[%s25117_s4 + $0x2e28] sm:$0xff] }
 0x253   : > { %12149 = vmatpush1.bf16.msra.mxu1 %v17414_v5  ;;  %11361 = vmatprep.subr.bf16.mxu0 %v16637_v7  ;;  %v16669_v5 = vcombine.high %v2043_v0, %v2047_v32  ;;  %v17455_v7 = vcombine.high %v2828_v34, %v2832_v2  ;;  %v2079_v0 = vld [vmem:[%s25117_s4 + $0x15e0] sm:$0xff]  ;;  %v2860_v32 = vld [vmem:[%s25117_s4 + $0x2e48] sm:$0xff] }
 0x254   : > { %12150 = vmatprep.subr.bf16.mxu1 %v17423_v8  ;;  %12180 = vmatprep.mubr.bf16.mxu1 %v20044_v6  ;;  %v2051_v8 = vld [vmem:[%s25117_s4 + $0x1500] sm:$0xff] }
 0x255   : > { %v16676_v29 = vcombine.low %v2051_v8, %v2055_v13 }
 0x256   : > { %11362 = vmatpush1.bf16.msra.mxu0 %v16636_v46  ;;  %v17454_v46 = vcombine.low %v2828_v34, %v2832_v2  ;;  %v2864_v34 = vld [vmem:[%s25117_s4 + $0x2e68] sm:$0xff] }
 0x257   : > { %12151 = vmatpush1.bf16.msra.mxu1 %v17422_v22  ;;  %11374 = vmatprep.subr.bf16.mxu0 %v16645_v23  ;;  %v16677_v22 = vcombine.high %v2051_v8, %v2055_v13  ;;  %v17463_v23 = vcombine.high %v2836_v14, %v2840_v15  ;;  %v2087_v8 = vld [vmem:[%s25117_s4 + $0x1620] sm:$0xff]  ;;  %v2868_v13 = vld [vmem:[%s25117_s4 + $0x2e88] sm:$0xff] }
 0x258   : > { %12152 = vmatprep.subr.bf16.mxu1 %v17431_v24  ;;  %v2059_v24 = vld [vmem:[%s25117_s4 + $0x1540] sm:$0xff] }
 0x259   : > { %11364 = vmatmul.mubr.bf16.vlgmr.msra.gmra.mrb[48].mxu0 %v19554_v37  ;;  %v16684_v59 = vcombine.low %v2059_v24, %v2063_v25 }
 0x25a   : > { %11375 = vmatpush1.bf16.msra.mxu0 %v16644_v30  ;;  %11406 = vmatprep.mubr.bf16.mxu0 %v19576_v10  ;;  %v17462_v30 = vcombine.low %v2836_v14, %v2840_v15  ;;  %v2872_v14 = vld [vmem:[%s25117_s4 + $0x2ea8] sm:$0xff] }
 0x25b   : > { %12153 = vmatpush1.bf16.msra.mxu1 %v17430_v33  ;;  %11376 = vmatprep.subr.bf16.mxu0 %v16653_v35  ;;  %v16685_v33 = vcombine.high %v2059_v24, %v2063_v25  ;;  %v17471_v35 = vcombine.high %v2844_v26, %v2848_v27  ;;  %v2095_v24 = vld [vmem:[%s25117_s4 + $0x1660] sm:$0xff]  ;;  %v2876_v25 = vld [vmem:[%s25117_s4 + $0x2ec8] sm:$0xff] }
 0x25c   : > { %12154 = vmatprep.subr.bf16.mxu1 %v17439_v36  ;;  %v2067_v36 = vld [vmem:[%s25117_s4 + $0x1580] sm:$0xff] }
 0x25d   : > { %v16692_v2 = vcombine.low %v2067_v36, %v2071_v38 }
 0x25e   : > { %11377 = vmatpush1.bf16.msra.mxu0 %v16652_v47  ;;  %v17470_v47 = vcombine.low %v2844_v26, %v2848_v27  ;;  %v2880_v26 = vld [vmem:[%s25117_s4 + $0x2ee8] sm:$0xff] }
 0x25f   : > { %12155 = vmatpush1.bf16.msra.mxu1 %v17438_v16  ;;  %11378 = vmatprep.subr.bf16.mxu0 %v16661_v48  ;;  %v16693_v16 = vcombine.high %v2067_v36, %v2071_v38  ;;  %v17479_v48 = vcombine.high %v2852_v57, %v2856_v58  ;;  %v2103_v36 = vld [vmem:[%s25117_s4 + $0x16a0] sm:$0xff]  ;;  %v2884_v38 = vld [vmem:[%s25117_s4 + $0x2f08] sm:$0xff] }
 0x260   : > { %12156 = vmatprep.subr.bf16.mxu1 %v17447_v62  ;;  %v2075_v62 = vld [vmem:[%s25117_s4 + $0x15c0] sm:$0xff] }
 0x261   : > { %v16700_v15 = vcombine.low %v2075_v62, %v2079_v0 }
 0x262   : > { %11379 = vmatpush1.bf16.msra.mxu0 %v16660_v4  ;;  %v17478_v4 = vcombine.low %v2852_v57, %v2856_v58  ;;  %v2888_v57 = vld [vmem:[%s25117_s4 + $0x2f28] sm:$0xff] }
 0x263   : > { %12157 = vmatpush1.bf16.msra.mxu1 %v17446_v49  ;;  %11380 = vmatprep.subr.bf16.mxu0 %v16669_v5  ;;  %v16701_v49 = vcombine.high %v2075_v62, %v2079_v0  ;;  %v17487_v5 = vcombine.high %v2860_v32, %v2864_v34  ;;  %v2111_v62 = vld [vmem:[%s25117_s4 + $0x16e0] sm:$0xff]  ;;  %v2892_v0 = vld [vmem:[%s25117_s4 + $0x2f48] sm:$0xff] }
 0x264   : > { %12158 = vmatprep.subr.bf16.mxu1 %v17455_v7  ;;  %v2083_v7 = vld [vmem:[%s25117_s4 + $0x1600] sm:$0xff] }
 0x265   : > { %v16708_v27 = vcombine.low %v2083_v7, %v2087_v8 }
 0x266   : > { %11381 = vmatpush1.bf16.msra.mxu0 %v16668_v18  ;;  %v17486_v18 = vcombine.low %v2860_v32, %v2864_v34  ;;  %v2896_v32 = vld [vmem:[%s25117_s4 + $0x2f68] sm:$0xff] }
 0x267   : > { %12159 = vmatpush1.bf16.msra.mxu1 %v17454_v46  ;;  %11382 = vmatprep.subr.bf16.mxu0 %v16677_v22  ;;  %v16709_v46 = vcombine.high %v2083_v7, %v2087_v8  ;;  %v17495_v22 = vcombine.high %v2868_v13, %v2872_v14  ;;  %v2119_v7 = vld [vmem:[%s25117_s4 + $0x1720] sm:$0xff]  ;;  %v2900_v8 = vld [vmem:[%s25117_s4 + $0x2f88] sm:$0xff] }
 0x268   : > { %12160 = vmatprep.subr.bf16.mxu1 %v17463_v23  ;;  %v2091_v23 = vld [vmem:[%s25117_s4 + $0x1640] sm:$0xff] }
 0x269   : > { %v16716_v58 = vcombine.low %v2091_v23, %v2095_v24 }
 0x26a   : > { %11383 = vmatpush1.bf16.msra.mxu0 %v16676_v29  ;;  %v17494_v29 = vcombine.low %v2868_v13, %v2872_v14  ;;  %v2904_v13 = vld [vmem:[%s25117_s4 + $0x2fa8] sm:$0xff] }
 0x26b   : > { %12161 = vmatpush1.bf16.msra.mxu1 %v17462_v30  ;;  %11384 = vmatprep.subr.bf16.mxu0 %v16685_v33  ;;  %v16717_v30 = vcombine.high %v2091_v23, %v2095_v24  ;;  %v17503_v33 = vcombine.high %v2876_v25, %v2880_v26  ;;  %v2127_v23 = vld [vmem:[%s25117_s4 + $0x1760] sm:$0xff]  ;;  %v2908_v24 = vld [vmem:[%s25117_s4 + $0x2fc8] sm:$0xff] }
 0x26c   : > { %12162 = vmatprep.subr.bf16.mxu1 %v17471_v35  ;;  %v2099_v35 = vld [vmem:[%s25117_s4 + $0x1680] sm:$0xff] }
 0x26d   : > { %v16724_v34 = vcombine.low %v2099_v35, %v2103_v36 }
 0x26e   : > { %11385 = vmatpush1.bf16.msra.mxu0 %v16684_v59  ;;  %v17502_v59 = vcombine.low %v2876_v25, %v2880_v26  ;;  %v2912_v25 = vld [vmem:[%s25117_s4 + $0x2fe8] sm:$0xff] }
 0x26f   : > { %12163 = vmatpush1.bf16.msra.mxu1 %v17470_v47  ;;  %11386 = vmatprep.subr.bf16.mxu0 %v16693_v16  ;;  %v16725_v47 = vcombine.high %v2099_v35, %v2103_v36  ;;  %v17511_v16 = vcombine.high %v2884_v38, %v2888_v57  ;;  %v2135_v35 = vld [vmem:[%s25117_s4 + $0x17a0] sm:$0xff]  ;;  %v1381_v36 = vld [vmem:[%s25117_s4 + $0x10] sm:$0xff] }
 0x270   : > { %12164 = vmatprep.subr.bf16.mxu1 %v17479_v48  ;;  %v2107_v48 = vld [vmem:[%s25117_s4 + $0x16c0] sm:$0xff] }
 0x271   : > { %v16732_v14 = vcombine.low %v2107_v48, %v2111_v62 }
 0x272   : > { %11387 = vmatpush1.bf16.msra.mxu0 %v16692_v2  ;;  %v17510_v2 = vcombine.low %v2884_v38, %v2888_v57  ;;  %v1385_v38 = vld [vmem:[%s25117_s4 + $0x30] sm:$0xff] }
 0x273   : > { %12165 = vmatpush1.bf16.msra.mxu1 %v17478_v4  ;;  %11388 = vmatprep.subr.bf16.mxu0 %v16701_v49  ;;  %v16733_v4 = vcombine.high %v2107_v48, %v2111_v62  ;;  %v17519_v49 = vcombine.high %v2892_v0, %v2896_v32  ;;  %v2143_v48 = vld [vmem:[%s25117_s4 + $0x17e0] sm:$0xff]  ;;  %v1389_v62 = vld [vmem:[%s25117_s4 + $0x50] sm:$0xff] }
 0x274   : > { %12166 = vmatprep.subr.bf16.mxu1 %v17487_v5  ;;  %v2115_v5 = vld [vmem:[%s25117_s4 + $0x1700] sm:$0xff] }
 0x275   : > { %v16740_v26 = vcombine.low %v2115_v5, %v2119_v7 }
 0x276   : > { %11389 = vmatpush1.bf16.msra.mxu0 %v16700_v15  ;;  %v17518_v15 = vcombine.low %v2892_v0, %v2896_v32  ;;  %v1393_v0 = vld [vmem:[%s25117_s4 + $0x70] sm:$0xff] }
 0x277   : > { %12167 = vmatpush1.bf16.msra.mxu1 %v17486_v18  ;;  %11390 = vmatprep.subr.bf16.mxu0 %v16709_v46  ;;  %v16741_v18 = vcombine.high %v2115_v5, %v2119_v7  ;;  %v17527_v46 = vcombine.high %v2900_v8, %v2904_v13  ;;  %v2151_v5 = vld [vmem:[%s25117_s4 + $0x1820] sm:$0xff]  ;;  %v1397_v7 = vld [vmem:[%s25117_s4 + $0x90] sm:$0xff] }
 0x278   : > { %12168 = vmatprep.subr.bf16.mxu1 %v17495_v22  ;;  %v2123_v22 = vld [vmem:[%s25117_s4 + $0x1740] sm:$0xff] }
 0x279   : > { %v16748_v57 = vcombine.low %v2123_v22, %v2127_v23 }
 0x27a   : > { %11391 = vmatpush1.bf16.msra.mxu0 %v16708_v27  ;;  %v17526_v27 = vcombine.low %v2900_v8, %v2904_v13  ;;  %v1401_v8 = vld [vmem:[%s25117_s4 + $0xb0] sm:$0xff] }
 0x27b   : > { %12169 = vmatpush1.bf16.msra.mxu1 %v17494_v29  ;;  %11392 = vmatprep.subr.bf16.mxu0 %v16717_v30  ;;  %v16749_v29 = vcombine.high %v2123_v22, %v2127_v23  ;;  %v17535_v30 = vcombine.high %v2908_v24, %v2912_v25  ;;  %v2159_v22 = vld [vmem:[%s25117_s4 + $0x1860] sm:$0xff]  ;;  %v1405_v23 = vld [vmem:[%s25117_s4 + $0xd0] sm:$0xff] }
 0x27c   : > { %12170 = vmatprep.subr.bf16.mxu1 %v17503_v33  ;;  %v2131_v33 = vld [vmem:[%s25117_s4 + $0x1780] sm:$0xff] }
 0x27d   : > { %v16756_v32 = vcombine.low %v2131_v33, %v2135_v35 }
 0x27e   : > { %11393 = vmatpush1.bf16.msra.mxu0 %v16716_v58  ;;  %v17534_v58 = vcombine.low %v2908_v24, %v2912_v25  ;;  %v1409_v24 = vld [vmem:[%s25117_s4 + $0xf0] sm:$0xff] }
 0x27f   : > { %12171 = vmatpush1.bf16.msra.mxu1 %v17502_v59  ;;  %11394 = vmatprep.subr.bf16.mxu0 %v16725_v47  ;;  %v16757_v59 = vcombine.high %v2131_v33, %v2135_v35  ;;  %v16009_v47 = vcombine.high %v1381_v36, %v1385_v38  ;;  %v2167_v33 = vld [vmem:[%s25117_s4 + $0x18a0] sm:$0xff]  ;;  %v1413_v35 = vld [vmem:[%s25117_s4 + $0x110] sm:$0xff] }
 0x280   : > { %12172 = vmatprep.subr.bf16.mxu1 %v17511_v16  ;;  %v2139_v16 = vld [vmem:[%s25117_s4 + $0x17c0] sm:$0xff] }
 0x281   : > { %v16764_v13 = vcombine.low %v2139_v16, %v2143_v48 }
 0x282   : > { %11395 = vmatpush1.bf16.msra.mxu0 %v16724_v34  ;;  %v16008_v34 = vcombine.low %v1381_v36, %v1385_v38  ;;  %v1417_v36 = vld [vmem:[%s25117_s4 + $0x130] sm:$0xff] }
 0x283   : > { %12173 = vmatpush1.bf16.msra.mxu1 %v17510_v2  ;;  %11396 = vmatprep.subr.bf16.mxu0 %v16733_v4  ;;  %v16765_v2 = vcombine.high %v2139_v16, %v2143_v48  ;;  %v16017_v4 = vcombine.high %v1389_v62, %v1393_v0  ;;  %v2175_v16 = vld [vmem:[%s25117_s4 + $0x18e0] sm:$0xff]  ;;  %v1421_v48 = vld [vmem:[%s25117_s4 + $0x150] sm:$0xff] }
 0x284   : > { %12174 = vmatprep.subr.bf16.mxu1 %v17519_v49  ;;  %v2147_v49 = vld [vmem:[%s25117_s4 + $0x1800] sm:$0xff] }
 0x285   : > { %v16772_v25 = vcombine.low %v2147_v49, %v2151_v5 }
 0x286   : > { %11397 = vmatpush1.bf16.msra.mxu0 %v16732_v14  ;;  %v16016_v14 = vcombine.low %v1389_v62, %v1393_v0  ;;  %v1425_v62 = vld [vmem:[%s25117_s4 + $0x170] sm:$0xff] }
 0x287   : > { %12175 = vmatpush1.bf16.msra.mxu1 %v17518_v15  ;;  %11398 = vmatprep.subr.bf16.mxu0 %v16741_v18  ;;  %v16773_v15 = vcombine.high %v2147_v49, %v2151_v5  ;;  %v16025_v18 = vcombine.high %v1397_v7, %v1401_v8  ;;  %v2183_v49 = vld [vmem:[%s25117_s4 + $0x1920] sm:$0xff]  ;;  %v1429_v5 = vld [vmem:[%s25117_s4 + $0x190] sm:$0xff] }
 0x288   : > { %12176 = vmatprep.subr.bf16.mxu1 %v17527_v46  ;;  %v2155_v46 = vld [vmem:[%s25117_s4 + $0x1840] sm:$0xff] }
 0x289   : > { %v16780_v38 = vcombine.low %v2155_v46, %v2159_v22 }
 0x28a   : > { %11399 = vmatpush1.bf16.msra.mxu0 %v16740_v26  ;;  %v16024_v26 = vcombine.low %v1397_v7, %v1401_v8  ;;  %v1433_v7 = vld [vmem:[%s25117_s4 + $0x1b0] sm:$0xff] }
 0x28b   : > { %12177 = vmatpush1.bf16.msra.mxu1 %v17526_v27  ;;  %11400 = vmatprep.subr.bf16.mxu0 %v16749_v29  ;;  %v16781_v27 = vcombine.high %v2155_v46, %v2159_v22  ;;  %v16033_v29 = vcombine.high %v1405_v23, %v1409_v24  ;;  %v2191_v46 = vld [vmem:[%s25117_s4 + $0x1960] sm:$0xff]  ;;  %v1437_v22 = vld [vmem:[%s25117_s4 + $0x1d0] sm:$0xff] }
 0x28c   : > { %12178 = vmatprep.subr.bf16.mxu1 %v17535_v30  ;;  %v2163_v30 = vld [vmem:[%s25117_s4 + $0x1880] sm:$0xff] }
 0x28d   : > { %v16788_v0 = vcombine.low %v2163_v30, %v2167_v33 }
 0x28e   : > { %11401 = vmatpush1.bf16.msra.mxu0 %v16748_v57  ;;  %v16032_v57 = vcombine.low %v1405_v23, %v1409_v24  ;;  %v1441_v23 = vld [vmem:[%s25117_s4 + $0x1f0] sm:$0xff] }
 0x28f   : > { %12179 = vmatpush1.bf16.msra.mxu1 %v17534_v58  ;;  %11402 = vmatprep.subr.bf16.mxu0 %v16757_v59  ;;  %v16789_v58 = vcombine.high %v2163_v30, %v2167_v33  ;;  %v16041_v59 = vcombine.high %v1413_v35, %v1417_v36  ;;  %v2199_v30 = vld [vmem:[%s25117_s4 + $0x19a0] sm:$0xff]  ;;  %v1445_v33 = vld [vmem:[%s25117_s4 + $0x210] sm:$0xff] }
 0x290   : > { %12191 = vmatprep.subr.bf16.mxu1 %v16009_v47  ;;  %v2171_v47 = vld [vmem:[%s25117_s4 + $0x18c0] sm:$0xff] }
 0x291   : > { %v16796_v8 = vcombine.low %v2171_v47, %v2175_v16 }
 0x292   : > { %12181 = vmatmul.mubr.bf16.vlgmr.msra.gmra.mrb[12].mxu1 %v20036_v31  ;;  %11403 = vmatpush1.bf16.msra.mxu0 %v16756_v32  ;;  %v16040_v32 = vcombine.low %v1413_v35, %v1417_v36  ;;  %v1449_v35 = vld [vmem:[%s25117_s4 + $0x230] sm:$0xff] }
 0x293   : > { %12192 = vmatpush1.bf16.msra.mxu1 %v16008_v34  ;;  %12223 = vmatprep.mubr.bf16.mxu1 %v19462_v61  ;;  %v16797_v34 = vcombine.high %v2171_v47, %v2175_v16  ;;  %v2207_v47 = vld [vmem:[%s25117_s4 + $0x19e0] sm:$0xff]  ;;  %v1453_v16 = vld [vmem:[%s25117_s4 + $0x250] sm:$0xff] }
 0x294   : > { %11404 = vmatprep.subr.bf16.mxu0 %v16765_v2  ;;  %12193 = vmatprep.subr.bf16.mxu1 %v16017_v4  ;;  %v16049_v2 = vcombine.high %v1421_v48, %v1425_v62  ;;  %v2179_v4 = vld [vmem:[%s25117_s4 + $0x1900] sm:$0xff] }
 0x295   : > { %v16804_v24 = vcombine.low %v2179_v4, %v2183_v49 }
 0x296   : > { %11405 = vmatpush1.bf16.msra.mxu0 %v16764_v13  ;;  %v16048_v13 = vcombine.low %v1421_v48, %v1425_v62  ;;  %v1457_v48 = vld [vmem:[%s25117_s4 + $0x270] sm:$0xff] }
 0x297   : > { %12194 = vmatpush1.bf16.msra.mxu1 %v16016_v14  ;;  %11417 = vmatprep.subr.bf16.mxu0 %v16773_v15  ;;  %v16805_v14 = vcombine.high %v2179_v4, %v2183_v49  ;;  %v16057_v15 = vcombine.high %v1429_v5, %v1433_v7  ;;  %v2215_v4 = vld [vmem:[%s25117_s4 + $0x1a20] sm:$0xff]  ;;  %v1461_v49 = vld [vmem:[%s25117_s4 + $0x290] sm:$0xff] }
 0x298   : > { %12195 = vmatprep.subr.bf16.mxu1 %v16025_v18  ;;  %v2187_v18 = vld [vmem:[%s25117_s4 + $0x1940] sm:$0xff] }
 0x299   : > { %11407 = vmatmul.mubr.bf16.vlgmr.msra.gmra.mrb[48].mxu0 %v19574_v9  ;;  %v16812_v36 = vcombine.low %v2187_v18, %v2191_v46 }
 0x29a   : > { %11418 = vmatpush1.bf16.msra.mxu0 %v16772_v25  ;;  %11449 = vmatprep.mubr.bf16.mxu0 %v19596_v52  ;;  %v16056_v25 = vcombine.low %v1429_v5, %v1433_v7  ;;  %v1465_v5 = vld [vmem:[%s25117_s4 + $0x2b0] sm:$0xff] }
 0x29b   : > { %12196 = vmatpush1.bf16.msra.mxu1 %v16024_v26  ;;  %11419 = vmatprep.subr.bf16.mxu0 %v16781_v27  ;;  %v16813_v26 = vcombine.high %v2187_v18, %v2191_v46  ;;  %v16065_v27 = vcombine.high %v1437_v22, %v1441_v23  ;;  %v2223_v18 = vld [vmem:[%s25117_s4 + $0x1a60] sm:$0xff]  ;;  %v1469_v46 = vld [vmem:[%s25117_s4 + $0x2d0] sm:$0xff] }
 0x29c   : > { %12197 = vmatprep.subr.bf16.mxu1 %v16033_v29  ;;  %v2195_v29 = vld [vmem:[%s25117_s4 + $0x1980] sm:$0xff] }
 0x29d   : > { %v16820_v62 = vcombine.low %v2195_v29, %v2199_v30 }
 0x29e   : > { %11420 = vmatpush1.bf16.msra.mxu0 %v16780_v38  ;;  %v16064_v38 = vcombine.low %v1437_v22, %v1441_v23  ;;  %v1473_v22 = vld [vmem:[%s25117_s4 + $0x2f0] sm:$0xff] }
 0x29f   : > { %12198 = vmatpush1.bf16.msra.mxu1 %v16032_v57  ;;  %11421 = vmatprep.subr.bf16.mxu0 %v16789_v58  ;;  %v16821_v57 = vcombine.high %v2195_v29, %v2199_v30  ;;  %v16073_v58 = vcombine.high %v1445_v33, %v1449_v35  ;;  %v2231_v29 = vld [vmem:[%s25117_s4 + $0x1aa0] sm:$0xff]  ;;  %v1477_v30 = vld [vmem:[%s25117_s4 + $0x310] sm:$0xff] }
 0x2a0   : > { %12199 = vmatprep.subr.bf16.mxu1 %v16041_v59  ;;  %v2203_v59 = vld [vmem:[%s25117_s4 + $0x19c0] sm:$0xff] }
 0x2a1   : > { %v16828_v7 = vcombine.low %v2203_v59, %v2207_v47 }
 0x2a2   : > { %11422 = vmatpush1.bf16.msra.mxu0 %v16788_v0  ;;  %v16072_v0 = vcombine.low %v1445_v33, %v1449_v35  ;;  %v1481_v33 = vld [vmem:[%s25117_s4 + $0x330] sm:$0xff] }
 0x2a3   : > { %12200 = vmatpush1.bf16.msra.mxu1 %v16040_v32  ;;  %11423 = vmatprep.subr.bf16.mxu0 %v16797_v34  ;;  %v16829_v32 = vcombine.high %v2203_v59, %v2207_v47  ;;  %v16081_v34 = vcombine.high %v1453_v16, %v1457_v48  ;;  %v2239_v59 = vld [vmem:[%s25117_s4 + $0x1ae0] sm:$0xff]  ;;  %v1485_v47 = vld [vmem:[%s25117_s4 + $0x350] sm:$0xff] }
 0x2a4   : > { %12201 = vmatprep.subr.bf16.mxu1 %v16049_v2  ;;  %v2211_v2 = vld [vmem:[%s25117_s4 + $0x1a00] sm:$0xff] }
 0x2a5   : > { %v16836_v23 = vcombine.low %v2211_v2, %v2215_v4 }
 0x2a6   : > { %11424 = vmatpush1.bf16.msra.mxu0 %v16796_v8  ;;  %v16080_v8 = vcombine.low %v1453_v16, %v1457_v48  ;;  %v1489_v16 = vld [vmem:[%s25117_s4 + $0x370] sm:$0xff] }
 0x2a7   : > { %12202 = vmatpush1.bf16.msra.mxu1 %v16048_v13  ;;  %11425 = vmatprep.subr.bf16.mxu0 %v16805_v14  ;;  %v16837_v13 = vcombine.high %v2211_v2, %v2215_v4  ;;  %v16089_v14 = vcombine.high %v1461_v49, %v1465_v5  ;;  %v2247_v2 = vld [vmem:[%s25117_s4 + $0x1b20] sm:$0xff]  ;;  %v1493_v4 = vld [vmem:[%s25117_s4 + $0x390] sm:$0xff] }
 0x2a8   : > { %12203 = vmatprep.subr.bf16.mxu1 %v16057_v15  ;;  %v2219_v15 = vld [vmem:[%s25117_s4 + $0x1a40] sm:$0xff] }
 0x2a9   : > { %v16844_v35 = vcombine.low %v2219_v15, %v2223_v18 }
 0x2aa   : > { %11426 = vmatpush1.bf16.msra.mxu0 %v16804_v24  ;;  %v16088_v24 = vcombine.low %v1461_v49, %v1465_v5  ;;  %v1497_v49 = vld [vmem:[%s25117_s4 + $0x3b0] sm:$0xff] }
 0x2ab   : > { %12204 = vmatpush1.bf16.msra.mxu1 %v16056_v25  ;;  %11427 = vmatprep.subr.bf16.mxu0 %v16813_v26  ;;  %v16845_v25 = vcombine.high %v2219_v15, %v2223_v18  ;;  %v16097_v26 = vcombine.high %v1469_v46, %v1473_v22  ;;  %v2255_v15 = vld [vmem:[%s25117_s4 + $0x1b60] sm:$0xff]  ;;  %v1501_v18 = vld [vmem:[%s25117_s4 + $0x3d0] sm:$0xff] }
 0x2ac   : > { %12205 = vmatprep.subr.bf16.mxu1 %v16065_v27  ;;  %v2227_v27 = vld [vmem:[%s25117_s4 + $0x1a80] sm:$0xff] }
 0x2ad   : > { %v16852_v48 = vcombine.low %v2227_v27, %v2231_v29 }
 0x2ae   : > { %11428 = vmatpush1.bf16.msra.mxu0 %v16812_v36  ;;  %v16096_v36 = vcombine.low %v1469_v46, %v1473_v22  ;;  %v1505_v46 = vld [vmem:[%s25117_s4 + $0x3f0] sm:$0xff] }
 0x2af   : > { %12206 = vmatpush1.bf16.msra.mxu1 %v16064_v38  ;;  %11429 = vmatprep.subr.bf16.mxu0 %v16821_v57  ;;  %v16853_v38 = vcombine.high %v2227_v27, %v2231_v29  ;;  %v16105_v57 = vcombine.high %v1477_v30, %v1481_v33  ;;  %v2263_v27 = vld [vmem:[%s25117_s4 + $0x1ba0] sm:$0xff]  ;;  %v1509_v29 = vld [vmem:[%s25117_s4 + $0x410] sm:$0xff] }
 0x2b0   : > { %12207 = vmatprep.subr.bf16.mxu1 %v16073_v58  ;;  %v2235_v58 = vld [vmem:[%s25117_s4 + $0x1ac0] sm:$0xff] }
 0x2b1   : > { %v16860_v5 = vcombine.low %v2235_v58, %v2239_v59 }
 0x2b2   : > { %11430 = vmatpush1.bf16.msra.mxu0 %v16820_v62  ;;  %v16104_v62 = vcombine.low %v1477_v30, %v1481_v33  ;;  %v1513_v30 = vld [vmem:[%s25117_s4 + $0x430] sm:$0xff] }
 0x2b3   : > { %12208 = vmatpush1.bf16.msra.mxu1 %v16072_v0  ;;  %11431 = vmatprep.subr.bf16.mxu0 %v16829_v32  ;;  %v16861_v0 = vcombine.high %v2235_v58, %v2239_v59  ;;  %v16113_v32 = vcombine.high %v1485_v47, %v1489_v16  ;;  %v2271_v58 = vld [vmem:[%s25117_s4 + $0x1be0] sm:$0xff]  ;;  %v1517_v59 = vld [vmem:[%s25117_s4 + $0x450] sm:$0xff] }
 0x2b4   : > { %12209 = vmatprep.subr.bf16.mxu1 %v16081_v34  ;;  %v2243_v34 = vld [vmem:[%s25117_s4 + $0x1b00] sm:$0xff] }
 0x2b5   : > { %v16868_v22 = vcombine.low %v2243_v34, %v2247_v2 }
 0x2b6   : > { %11432 = vmatpush1.bf16.msra.mxu0 %v16828_v7  ;;  %v16112_v7 = vcombine.low %v1485_v47, %v1489_v16  ;;  %v1521_v47 = vld [vmem:[%s25117_s4 + $0x470] sm:$0xff] }
 0x2b7   : > { %12210 = vmatpush1.bf16.msra.mxu1 %v16080_v8  ;;  %11433 = vmatprep.subr.bf16.mxu0 %v16837_v13  ;;  %v16869_v8 = vcombine.high %v2243_v34, %v2247_v2  ;;  %v16121_v13 = vcombine.high %v1493_v4, %v1497_v49  ;;  %v2279_v34 = vld [vmem:[%s25117_s4 + $0x1c20] sm:$0xff]  ;;  %v1525_v2 = vld [vmem:[%s25117_s4 + $0x490] sm:$0xff] }
 0x2b8   : > { %12211 = vmatprep.subr.bf16.mxu1 %v16089_v14  ;;  %v2251_v14 = vld [vmem:[%s25117_s4 + $0x1b40] sm:$0xff] }
 0x2b9   : > { %v16876_v33 = vcombine.low %v2251_v14, %v2255_v15 }
 0x2ba   : > { %11434 = vmatpush1.bf16.msra.mxu0 %v16836_v23  ;;  %v16120_v23 = vcombine.low %v1493_v4, %v1497_v49  ;;  %v1529_v4 = vld [vmem:[%s25117_s4 + $0x4b0] sm:$0xff] }
 0x2bb   : > { %12212 = vmatpush1.bf16.msra.mxu1 %v16088_v24  ;;  %11435 = vmatprep.subr.bf16.mxu0 %v16845_v25  ;;  %v16877_v24 = vcombine.high %v2251_v14, %v2255_v15  ;;  %v16129_v25 = vcombine.high %v1501_v18, %v1505_v46  ;;  %v2287_v14 = vld [vmem:[%s25117_s4 + $0x1c60] sm:$0xff]  ;;  %v1533_v15 = vld [vmem:[%s25117_s4 + $0x4d0] sm:$0xff] }
 0x2bc   : > { %12213 = vmatprep.subr.bf16.mxu1 %v16097_v26  ;;  %v2259_v26 = vld [vmem:[%s25117_s4 + $0x1b80] sm:$0xff] }
 0x2bd   : > { %v16884_v16 = vcombine.low %v2259_v26, %v2263_v27 }
 0x2be   : > { %11436 = vmatpush1.bf16.msra.mxu0 %v16844_v35  ;;  %v16128_v35 = vcombine.low %v1501_v18, %v1505_v46  ;;  %v1537_v18 = vld [vmem:[%s25117_s4 + $0x4f0] sm:$0xff] }
 0x2bf   : > { %12214 = vmatpush1.bf16.msra.mxu1 %v16096_v36  ;;  %11437 = vmatprep.subr.bf16.mxu0 %v16853_v38  ;;  %v16885_v36 = vcombine.high %v2259_v26, %v2263_v27  ;;  %v16137_v38 = vcombine.high %v1509_v29, %v1513_v30  ;;  %v2295_v26 = vld [vmem:[%s25117_s4 + $0x1ca0] sm:$0xff]  ;;  %v1541_v27 = vld [vmem:[%s25117_s4 + $0x510] sm:$0xff] }
 0x2c0   : > { %12215 = vmatprep.subr.bf16.mxu1 %v16105_v57  ;;  %v2267_v57 = vld [vmem:[%s25117_s4 + $0x1bc0] sm:$0xff] }
 0x2c1   : > { %v16892_v49 = vcombine.low %v2267_v57, %v2271_v58 }
 0x2c2   : > { %11438 = vmatpush1.bf16.msra.mxu0 %v16852_v48  ;;  %v16136_v48 = vcombine.low %v1509_v29, %v1513_v30  ;;  %v1545_v29 = vld [vmem:[%s25117_s4 + $0x530] sm:$0xff] }
 0x2c3   : > { %12216 = vmatpush1.bf16.msra.mxu1 %v16104_v62  ;;  %11439 = vmatprep.subr.bf16.mxu0 %v16861_v0  ;;  %v16893_v62 = vcombine.high %v2267_v57, %v2271_v58  ;;  %v16145_v0 = vcombine.high %v1517_v59, %v1521_v47  ;;  %v2303_v57 = vld [vmem:[%s25117_s4 + $0x1ce0] sm:$0xff]  ;;  %v1549_v58 = vld [vmem:[%s25117_s4 + $0x550] sm:$0xff] }
 0x2c4   : > { %12217 = vmatprep.subr.bf16.mxu1 %v16113_v32  ;;  %v2275_v32 = vld [vmem:[%s25117_s4 + $0x1c00] sm:$0xff] }
 0x2c5   : > { %v16900_v46 = vcombine.low %v2275_v32, %v2279_v34 }
 0x2c6   : > { %11440 = vmatpush1.bf16.msra.mxu0 %v16860_v5  ;;  %v16144_v5 = vcombine.low %v1517_v59, %v1521_v47  ;;  %v1553_v59 = vld [vmem:[%s25117_s4 + $0x570] sm:$0xff] }
 0x2c7   : > { %12218 = vmatpush1.bf16.msra.mxu1 %v16112_v7  ;;  %11441 = vmatprep.subr.bf16.mxu0 %v16869_v8  ;;  %v16901_v7 = vcombine.high %v2275_v32, %v2279_v34  ;;  %v16153_v8 = vcombine.high %v1525_v2, %v1529_v4  ;;  %v2311_v32 = vld [vmem:[%s25117_s4 + $0x1d20] sm:$0xff]  ;;  %v1557_v34 = vld [vmem:[%s25117_s4 + $0x590] sm:$0xff] }
 0x2c8   : > { %12219 = vmatprep.subr.bf16.mxu1 %v16121_v13  ;;  %v2283_v13 = vld [vmem:[%s25117_s4 + $0x1c40] sm:$0xff] }
 0x2c9   : > { %v16908_v30 = vcombine.low %v2283_v13, %v2287_v14 }
 0x2ca   : > { %11442 = vmatpush1.bf16.msra.mxu0 %v16868_v22  ;;  %v16152_v22 = vcombine.low %v1525_v2, %v1529_v4  ;;  %v1561_v2 = vld [vmem:[%s25117_s4 + $0x5b0] sm:$0xff] }
 0x2cb   : > { %12220 = vmatpush1.bf16.msra.mxu1 %v16120_v23  ;;  %11443 = vmatprep.subr.bf16.mxu0 %v16877_v24  ;;  %v16909_v23 = vcombine.high %v2283_v13, %v2287_v14  ;;  %v16161_v24 = vcombine.high %v1533_v15, %v1537_v18  ;;  %v2319_v13 = vld [vmem:[%s25117_s4 + $0x1d60] sm:$0xff]  ;;  %v1565_v14 = vld [vmem:[%s25117_s4 + $0x5d0] sm:$0xff] }
 0x2cc   : > { %12221 = vmatprep.subr.bf16.mxu1 %v16129_v25  ;;  %v2291_v25 = vld [vmem:[%s25117_s4 + $0x1c80] sm:$0xff] }
 0x2cd   : > { %v16916_v47 = vcombine.low %v2291_v25, %v2295_v26 }
 0x2ce   : > { %11444 = vmatpush1.bf16.msra.mxu0 %v16876_v33  ;;  %v16160_v33 = vcombine.low %v1533_v15, %v1537_v18  ;;  %v1569_v15 = vld [vmem:[%s25117_s4 + $0x5f0] sm:$0xff] }
 0x2cf   : > { %12222 = vmatpush1.bf16.msra.mxu1 %v16128_v35  ;;  %11445 = vmatprep.subr.bf16.mxu0 %v16885_v36  ;;  %v16917_v35 = vcombine.high %v2291_v25, %v2295_v26  ;;  %v16169_v36 = vcombine.high %v1541_v27, %v1545_v29  ;;  %v2327_v25 = vld [vmem:[%s25117_s4 + $0x1da0] sm:$0xff]  ;;  %v1573_v26 = vld [vmem:[%s25117_s4 + $0x610] sm:$0xff] }
 0x2d0   : > { %12234 = vmatprep.subr.bf16.mxu1 %v16137_v38  ;;  %v2299_v38 = vld [vmem:[%s25117_s4 + $0x1cc0] sm:$0xff] }
 0x2d1   : > { %v16924_v4 = vcombine.low %v2299_v38, %v2303_v57 }
 0x2d2   : > { %12224 = vmatmul.mubr.bf16.vlgmr.msra.gmra.mrb[4].mxu1 %v19460_v20  ;;  %11446 = vmatpush1.bf16.msra.mxu0 %v16884_v16  ;;  %v16168_v16 = vcombine.low %v1541_v27, %v1545_v29  ;;  %v1577_v27 = vld [vmem:[%s25117_s4 + $0x630] sm:$0xff] }
 0x2d3   : > { %12235 = vmatpush1.bf16.msra.mxu1 %v16136_v48  ;;  %12266 = vmatprep.mubr.bf16.mxu1 %v19487_v21  ;;  %v16925_v48 = vcombine.high %v2299_v38, %v2303_v57  ;;  %v2335_v38 = vld [vmem:[%s25117_s4 + $0x1de0] sm:$0xff]  ;;  %v1581_v57 = vld [vmem:[%s25117_s4 + $0x650] sm:$0xff] }
 0x2d4   : > { %11447 = vmatprep.subr.bf16.mxu0 %v16893_v62  ;;  %12236 = vmatprep.subr.bf16.mxu1 %v16145_v0  ;;  %v16177_v62 = vcombine.high %v1549_v58, %v1553_v59  ;;  %v2307_v0 = vld [vmem:[%s25117_s4 + $0x1d00] sm:$0xff] }
 0x2d5   : > { %v16932_v18 = vcombine.low %v2307_v0, %v2311_v32 }
 0x2d6   : > { %11448 = vmatpush1.bf16.msra.mxu0 %v16892_v49  ;;  %v16176_v49 = vcombine.low %v1549_v58, %v1553_v59  ;;  %v1585_v58 = vld [vmem:[%s25117_s4 + $0x670] sm:$0xff] }
 0x2d7   : > { %12237 = vmatpush1.bf16.msra.mxu1 %v16144_v5  ;;  %11460 = vmatprep.subr.bf16.mxu0 %v16901_v7  ;;  %v16933_v5 = vcombine.high %v2307_v0, %v2311_v32  ;;  %v16185_v7 = vcombine.high %v1557_v34, %v1561_v2  ;;  %v2343_v0 = vld [vmem:[%s25117_s4 + $0x1e20] sm:$0xff]  ;;  %v1589_v32 = vld [vmem:[%s25117_s4 + $0x690] sm:$0xff] }
 0x2d8   : > { %12238 = vmatprep.subr.bf16.mxu1 %v16153_v8  ;;  %v2315_v8 = vld [vmem:[%s25117_s4 + $0x1d40] sm:$0xff] }
 0x2d9   : > { %11450 = vmatmul.mubr.bf16.vlgmr.msra.gmra.mrb[48].mxu0 %v19594_v51  ;;  %v16940_v29 = vcombine.low %v2315_v8, %v2319_v13 }
 0x2da   : > { %11461 = vmatpush1.bf16.msra.mxu0 %v16900_v46  ;;  %11492 = vmatprep.mubr.bf16.mxu0 %v19622_v44  ;;  %v16184_v46 = vcombine.low %v1557_v34, %v1561_v2  ;;  %v1593_v34 = vld [vmem:[%s25117_s4 + $0x6b0] sm:$0xff] }
 0x2db   : > { %12239 = vmatpush1.bf16.msra.mxu1 %v16152_v22  ;;  %11462 = vmatprep.subr.bf16.mxu0 %v16909_v23  ;;  %v16941_v22 = vcombine.high %v2315_v8, %v2319_v13  ;;  %v16193_v23 = vcombine.high %v1565_v14, %v1569_v15  ;;  %v2351_v8 = vld [vmem:[%s25117_s4 + $0x1e60] sm:$0xff]  ;;  %v1597_v13 = vld [vmem:[%s25117_s4 + $0x6d0] sm:$0xff] }
 0x2dc   : > { %12240 = vmatprep.subr.bf16.mxu1 %v16161_v24  ;;  %v2323_v24 = vld [vmem:[%s25117_s4 + $0x1d80] sm:$0xff] }
 0x2dd   : > { %v16948_v59 = vcombine.low %v2323_v24, %v2327_v25 }
 0x2de   : > { %11463 = vmatpush1.bf16.msra.mxu0 %v16908_v30  ;;  %v16192_v30 = vcombine.low %v1565_v14, %v1569_v15  ;;  %v1601_v14 = vld [vmem:[%s25117_s4 + $0x6f0] sm:$0xff] }
 0x2df   : > { %12241 = vmatpush1.bf16.msra.mxu1 %v16160_v33  ;;  %11464 = vmatprep.subr.bf16.mxu0 %v16917_v35  ;;  %v16949_v33 = vcombine.high %v2323_v24, %v2327_v25  ;;  %v16201_v35 = vcombine.high %v1573_v26, %v1577_v27  ;;  %v2359_v24 = vld [vmem:[%s25117_s4 + $0x1ea0] sm:$0xff]  ;;  %v1605_v25 = vld [vmem:[%s25117_s4 + $0x710] sm:$0xff] }
 0x2e0   : > { %12242 = vmatprep.subr.bf16.mxu1 %v16169_v36  ;;  %v2331_v36 = vld [vmem:[%s25117_s4 + $0x1dc0] sm:$0xff] }
 0x2e1   : > { %v16956_v2 = vcombine.low %v2331_v36, %v2335_v38 }
 0x2e2   : > { %11465 = vmatpush1.bf16.msra.mxu0 %v16916_v47  ;;  %v16200_v47 = vcombine.low %v1573_v26, %v1577_v27  ;;  %v1609_v26 = vld [vmem:[%s25117_s4 + $0x730] sm:$0xff] }
 0x2e3   : > { %12243 = vmatpush1.bf16.msra.mxu1 %v16168_v16  ;;  %11466 = vmatprep.subr.bf16.mxu0 %v16925_v48  ;;  %v16957_v16 = vcombine.high %v2331_v36, %v2335_v38  ;;  %v16209_v48 = vcombine.high %v1581_v57, %v1585_v58  ;;  %v2367_v36 = vld [vmem:[%s25117_s4 + $0x1ee0] sm:$0xff]  ;;  %v1613_v38 = vld [vmem:[%s25117_s4 + $0x750] sm:$0xff] }
 0x2e4   : > { %12244 = vmatprep.subr.bf16.mxu1 %v16177_v62  ;;  %v2339_v62 = vld [vmem:[%s25117_s4 + $0x1e00] sm:$0xff] }
 0x2e5   : > { %v16964_v15 = vcombine.low %v2339_v62, %v2343_v0 }
 0x2e6   : > { %11467 = vmatpush1.bf16.msra.mxu0 %v16924_v4  ;;  %v16208_v4 = vcombine.low %v1581_v57, %v1585_v58  ;;  %v1617_v57 = vld [vmem:[%s25117_s4 + $0x770] sm:$0xff] }
 0x2e7   : > { %12245 = vmatpush1.bf16.msra.mxu1 %v16176_v49  ;;  %11468 = vmatprep.subr.bf16.mxu0 %v16933_v5  ;;  %v16965_v49 = vcombine.high %v2339_v62, %v2343_v0  ;;  %v16217_v5 = vcombine.high %v1589_v32, %v1593_v34  ;;  %v2375_v62 = vld [vmem:[%s25117_s4 + $0x1f20] sm:$0xff]  ;;  %v1621_v0 = vld [vmem:[%s25117_s4 + $0x790] sm:$0xff] }
 0x2e8   : > { %12246 = vmatprep.subr.bf16.mxu1 %v16185_v7  ;;  %v2347_v7 = vld [vmem:[%s25117_s4 + $0x1e40] sm:$0xff] }
 0x2e9   : > { %v16972_v27 = vcombine.low %v2347_v7, %v2351_v8 }
 0x2ea   : > { %11469 = vmatpush1.bf16.msra.mxu0 %v16932_v18  ;;  %v16216_v18 = vcombine.low %v1589_v32, %v1593_v34  ;;  %v1625_v32 = vld [vmem:[%s25117_s4 + $0x7b0] sm:$0xff] }
 0x2eb   : > { %12247 = vmatpush1.bf16.msra.mxu1 %v16184_v46  ;;  %11470 = vmatprep.subr.bf16.mxu0 %v16941_v22  ;;  %v16973_v46 = vcombine.high %v2347_v7, %v2351_v8  ;;  %v16225_v22 = vcombine.high %v1597_v13, %v1601_v14  ;;  %v2383_v7 = vld [vmem:[%s25117_s4 + $0x1f60] sm:$0xff]  ;;  %v1629_v8 = vld [vmem:[%s25117_s4 + $0x7d0] sm:$0xff] }
 0x2ec   : > { %12248 = vmatprep.subr.bf16.mxu1 %v16193_v23  ;;  %v2355_v23 = vld [vmem:[%s25117_s4 + $0x1e80] sm:$0xff] }
 0x2ed   : > { %v16980_v58 = vcombine.low %v2355_v23, %v2359_v24 }
 0x2ee   : > { %11471 = vmatpush1.bf16.msra.mxu0 %v16940_v29  ;;  %v16224_v29 = vcombine.low %v1597_v13, %v1601_v14  ;;  %v1633_v13 = vld [vmem:[%s25117_s4 + $0x7f0] sm:$0xff] }
 0x2ef   : > { %12249 = vmatpush1.bf16.msra.mxu1 %v16192_v30  ;;  %11472 = vmatprep.subr.bf16.mxu0 %v16949_v33  ;;  %v16981_v30 = vcombine.high %v2355_v23, %v2359_v24  ;;  %v16233_v33 = vcombine.high %v1605_v25, %v1609_v26  ;;  %v2391_v23 = vld [vmem:[%s25117_s4 + $0x1fa0] sm:$0xff]  ;;  %v1637_v24 = vld [vmem:[%s25117_s4 + $0x810] sm:$0xff] }
 0x2f0   : > { %12250 = vmatprep.subr.bf16.mxu1 %v16201_v35  ;;  %v2363_v35 = vld [vmem:[%s25117_s4 + $0x1ec0] sm:$0xff] }
 0x2f1   : > { %v16988_v34 = vcombine.low %v2363_v35, %v2367_v36 }
 0x2f2   : > { %11473 = vmatpush1.bf16.msra.mxu0 %v16948_v59  ;;  %v16232_v59 = vcombine.low %v1605_v25, %v1609_v26  ;;  %v1641_v25 = vld [vmem:[%s25117_s4 + $0x830] sm:$0xff] }
 0x2f3   : > { %12251 = vmatpush1.bf16.msra.mxu1 %v16200_v47  ;;  %11474 = vmatprep.subr.bf16.mxu0 %v16957_v16  ;;  %v16989_v47 = vcombine.high %v2363_v35, %v2367_v36  ;;  %v16241_v16 = vcombine.high %v1613_v38, %v1617_v57  ;;  %v2399_v35 = vld [vmem:[%s25117_s4 + $0x1fe0] sm:$0xff]  ;;  %v1645_v36 = vld [vmem:[%s25117_s4 + $0x850] sm:$0xff] }
 0x2f4   : > { %12252 = vmatprep.subr.bf16.mxu1 %v16209_v48  ;;  %v2371_v48 = vld [vmem:[%s25117_s4 + $0x1f00] sm:$0xff] }
 0x2f5   : > { %v16996_v14 = vcombine.low %v2371_v48, %v2375_v62 }
 0x2f6   : > { %11475 = vmatpush1.bf16.msra.mxu0 %v16956_v2  ;;  %v16240_v2 = vcombine.low %v1613_v38, %v1617_v57  ;;  %v1649_v38 = vld [vmem:[%s25117_s4 + $0x870] sm:$0xff] }
 0x2f7   : > { %12253 = vmatpush1.bf16.msra.mxu1 %v16208_v4  ;;  %11476 = vmatprep.subr.bf16.mxu0 %v16965_v49  ;;  %v16997_v4 = vcombine.high %v2371_v48, %v2375_v62  ;;  %v16249_v49 = vcombine.high %v1621_v0, %v1625_v32  ;;  %v2407_v48 = vld [vmem:[%s25117_s4 + $0x2020] sm:$0xff]  ;;  %v1653_v62 = vld [vmem:[%s25117_s4 + $0x890] sm:$0xff] }
 0x2f8   : > { %12254 = vmatprep.subr.bf16.mxu1 %v16217_v5  ;;  %v2379_v5 = vld [vmem:[%s25117_s4 + $0x1f40] sm:$0xff] }
 0x2f9   : > { %v17004_v26 = vcombine.low %v2379_v5, %v2383_v7 }
 0x2fa   : > { %11477 = vmatpush1.bf16.msra.mxu0 %v16964_v15  ;;  %v16248_v15 = vcombine.low %v1621_v0, %v1625_v32  ;;  %v1657_v0 = vld [vmem:[%s25117_s4 + $0x8b0] sm:$0xff] }
 0x2fb   : > { %12255 = vmatpush1.bf16.msra.mxu1 %v16216_v18  ;;  %11478 = vmatprep.subr.bf16.mxu0 %v16973_v46  ;;  %v17005_v18 = vcombine.high %v2379_v5, %v2383_v7  ;;  %v16257_v46 = vcombine.high %v1629_v8, %v1633_v13  ;;  %v2415_v5 = vld [vmem:[%s25117_s4 + $0x2060] sm:$0xff]  ;;  %v1661_v7 = vld [vmem:[%s25117_s4 + $0x8d0] sm:$0xff] }
 0x2fc   : > { %12256 = vmatprep.subr.bf16.mxu1 %v16225_v22  ;;  %v2387_v22 = vld [vmem:[%s25117_s4 + $0x1f80] sm:$0xff] }
 0x2fd   : > { %v17012_v57 = vcombine.low %v2387_v22, %v2391_v23 }
 0x2fe   : > { %11479 = vmatpush1.bf16.msra.mxu0 %v16972_v27  ;;  %v16256_v27 = vcombine.low %v1629_v8, %v1633_v13  ;;  %v1665_v8 = vld [vmem:[%s25117_s4 + $0x8f0] sm:$0xff] }
 0x2ff   : > { %12257 = vmatpush1.bf16.msra.mxu1 %v16224_v29  ;;  %11480 = vmatprep.subr.bf16.mxu0 %v16981_v30  ;;  %v17013_v29 = vcombine.high %v2387_v22, %v2391_v23  ;;  %v16265_v30 = vcombine.high %v1637_v24, %v1641_v25  ;;  %v2423_v22 = vld [vmem:[%s25117_s4 + $0x20a0] sm:$0xff]  ;;  %v1669_v23 = vld [vmem:[%s25117_s4 + $0x910] sm:$0xff] }
 0x300   : > { %12258 = vmatprep.subr.bf16.mxu1 %v16233_v33  ;;  %v2395_v33 = vld [vmem:[%s25117_s4 + $0x1fc0] sm:$0xff] }
 0x301   : > { %v17020_v32 = vcombine.low %v2395_v33, %v2399_v35 }
 0x302   : > { %11481 = vmatpush1.bf16.msra.mxu0 %v16980_v58  ;;  %v16264_v58 = vcombine.low %v1637_v24, %v1641_v25  ;;  %v1673_v24 = vld [vmem:[%s25117_s4 + $0x930] sm:$0xff] }
 0x303   : > { %12259 = vmatpush1.bf16.msra.mxu1 %v16232_v59  ;;  %11482 = vmatprep.subr.bf16.mxu0 %v16989_v47  ;;  %v17021_v59 = vcombine.high %v2395_v33, %v2399_v35  ;;  %v16273_v47 = vcombine.high %v1645_v36, %v1649_v38  ;;  %v2431_v33 = vld [vmem:[%s25117_s4 + $0x20e0] sm:$0xff]  ;;  %v1677_v35 = vld [vmem:[%s25117_s4 + $0x950] sm:$0xff] }
 0x304   : > { %12260 = vmatprep.subr.bf16.mxu1 %v16241_v16  ;;  %v2403_v16 = vld [vmem:[%s25117_s4 + $0x2000] sm:$0xff] }
 0x305   : > { %v17028_v13 = vcombine.low %v2403_v16, %v2407_v48 }
 0x306   : > { %11483 = vmatpush1.bf16.msra.mxu0 %v16988_v34  ;;  %v16272_v34 = vcombine.low %v1645_v36, %v1649_v38  ;;  %v1681_v36 = vld [vmem:[%s25117_s4 + $0x970] sm:$0xff] }
 0x307   : > { %12261 = vmatpush1.bf16.msra.mxu1 %v16240_v2  ;;  %11484 = vmatprep.subr.bf16.mxu0 %v16997_v4  ;;  %v17029_v2 = vcombine.high %v2403_v16, %v2407_v48  ;;  %v16281_v4 = vcombine.high %v1653_v62, %v1657_v0  ;;  %v2439_v16 = vld [vmem:[%s25117_s4 + $0x2120] sm:$0xff]  ;;  %v1685_v48 = vld [vmem:[%s25117_s4 + $0x990] sm:$0xff] }
 0x308   : > { %12262 = vmatprep.subr.bf16.mxu1 %v16249_v49  ;;  %v2411_v49 = vld [vmem:[%s25117_s4 + $0x2040] sm:$0xff] }
 0x309   : > { %v17036_v25 = vcombine.low %v2411_v49, %v2415_v5 }
 0x30a   : > { %11485 = vmatpush1.bf16.msra.mxu0 %v16996_v14  ;;  %v16280_v14 = vcombine.low %v1653_v62, %v1657_v0  ;;  %v1689_v62 = vld [vmem:[%s25117_s4 + $0x9b0] sm:$0xff] }
 0x30b   : > { %12263 = vmatpush1.bf16.msra.mxu1 %v16248_v15  ;;  %11486 = vmatprep.subr.bf16.mxu0 %v17005_v18  ;;  %v17037_v15 = vcombine.high %v2411_v49, %v2415_v5  ;;  %v16289_v18 = vcombine.high %v1661_v7, %v1665_v8  ;;  %v2447_v49 = vld [vmem:[%s25117_s4 + $0x2160] sm:$0xff]  ;;  %v1693_v5 = vld [vmem:[%s25117_s4 + $0x9d0] sm:$0xff] }
 0x30c   : > { %12264 = vmatprep.subr.bf16.mxu1 %v16257_v46  ;;  %v2419_v46 = vld [vmem:[%s25117_s4 + $0x2080] sm:$0xff] }
 0x30d   : > { %v17044_v38 = vcombine.low %v2419_v46, %v2423_v22 }
 0x30e   : > { %11487 = vmatpush1.bf16.msra.mxu0 %v17004_v26  ;;  %v16288_v26 = vcombine.low %v1661_v7, %v1665_v8  ;;  %v1697_v7 = vld [vmem:[%s25117_s4 + $0x9f0] sm:$0xff] }
 0x30f   : > { %12265 = vmatpush1.bf16.msra.mxu1 %v16256_v27  ;;  %11488 = vmatprep.subr.bf16.mxu0 %v17013_v29  ;;  %v17045_v27 = vcombine.high %v2419_v46, %v2423_v22  ;;  %v16297_v29 = vcombine.high %v1669_v23, %v1673_v24  ;;  %v2455_v46 = vld [vmem:[%s25117_s4 + $0x21a0] sm:$0xff]  ;;  %v1701_v22 = vld [vmem:[%s25117_s4 + $0xa10] sm:$0xff] }
 0x310   : > { %12277 = vmatprep.subr.bf16.mxu1 %v16265_v30  ;;  %v2427_v30 = vld [vmem:[%s25117_s4 + $0x20c0] sm:$0xff] }
 0x311   : > { %v17052_v0 = vcombine.low %v2427_v30, %v2431_v33 }
 0x312   : > { %12267 = vmatmul.mubr.bf16.vlgmr.msra.gmra.mrb[4].mxu1 %v19485_v19  ;;  %11489 = vmatpush1.bf16.msra.mxu0 %v17012_v57  ;;  %v16296_v57 = vcombine.low %v1669_v23, %v1673_v24  ;;  %v1705_v23 = vld [vmem:[%s25117_s4 + $0xa30] sm:$0xff] }
 0x313   : > { %12278 = vmatpush1.bf16.msra.mxu1 %v16264_v58  ;;  %12309 = vmatprep.mubr.bf16.mxu1 %v19516_v56  ;;  %v17053_v58 = vcombine.high %v2427_v30, %v2431_v33  ;;  %v2463_v30 = vld [vmem:[%s25117_s4 + $0x21e0] sm:$0xff]  ;;  %v1709_v33 = vld [vmem:[%s25117_s4 + $0xa50] sm:$0xff] }
 0x314   : > { %11490 = vmatprep.subr.bf16.mxu0 %v17021_v59  ;;  %12279 = vmatprep.subr.bf16.mxu1 %v16273_v47  ;;  %v16305_v59 = vcombine.high %v1677_v35, %v1681_v36  ;;  %v2435_v47 = vld [vmem:[%s25117_s4 + $0x2100] sm:$0xff] }
 0x315   : > { %v17060_v8 = vcombine.low %v2435_v47, %v2439_v16 }
 0x316   : > { %11491 = vmatpush1.bf16.msra.mxu0 %v17020_v32  ;;  %v16304_v32 = vcombine.low %v1677_v35, %v1681_v36  ;;  %v1713_v35 = vld [vmem:[%s25117_s4 + $0xa70] sm:$0xff] }
 0x317   : > { %12280 = vmatpush1.bf16.msra.mxu1 %v16272_v34  ;;  %11503 = vmatprep.subr.bf16.mxu0 %v17029_v2  ;;  %v17061_v34 = vcombine.high %v2435_v47, %v2439_v16  ;;  %v16313_v2 = vcombine.high %v1685_v48, %v1689_v62  ;;  %v2471_v47 = vld [vmem:[%s25117_s4 + $0x2220] sm:$0xff]  ;;  %v1717_v16 = vld [vmem:[%s25117_s4 + $0xa90] sm:$0xff] }
 0x318   : > { %12281 = vmatprep.subr.bf16.mxu1 %v16281_v4  ;;  %v2443_v4 = vld [vmem:[%s25117_s4 + $0x2140] sm:$0xff] }
 0x319   : > { %11493 = vmatmul.mubr.bf16.vlgmr.msra.gmra.mrb[48].mxu0 %v19620_v43  ;;  %v17068_v24 = vcombine.low %v2443_v4, %v2447_v49 }
 0x31a   : > { %11504 = vmatpush1.bf16.msra.mxu0 %v17028_v13  ;;  %11535 = vmatprep.mubr.bf16.mxu0 %v19659_v3  ;;  %v16312_v13 = vcombine.low %v1685_v48, %v1689_v62  ;;  %v1721_v48 = vld [vmem:[%s25117_s4 + $0xab0] sm:$0xff] }
 0x31b   : > { %12282 = vmatpush1.bf16.msra.mxu1 %v16280_v14  ;;  %11505 = vmatprep.subr.bf16.mxu0 %v17037_v15  ;;  %v17069_v14 = vcombine.high %v2443_v4, %v2447_v49  ;;  %v16321_v15 = vcombine.high %v1693_v5, %v1697_v7  ;;  %v2479_v4 = vld [vmem:[%s25117_s4 + $0x2260] sm:$0xff]  ;;  %v1725_v49 = vld [vmem:[%s25117_s4 + $0xad0] sm:$0xff] }
 0x31c   : > { %12283 = vmatprep.subr.bf16.mxu1 %v16289_v18  ;;  %v2451_v18 = vld [vmem:[%s25117_s4 + $0x2180] sm:$0xff] }
 0x31d   : > { %v17076_v36 = vcombine.low %v2451_v18, %v2455_v46 }
 0x31e   : > { %11506 = vmatpush1.bf16.msra.mxu0 %v17036_v25  ;;  %v16320_v25 = vcombine.low %v1693_v5, %v1697_v7  ;;  %v1729_v5 = vld [vmem:[%s25117_s4 + $0xaf0] sm:$0xff] }
 0x31f   : > { %12284 = vmatpush1.bf16.msra.mxu1 %v16288_v26  ;;  %11507 = vmatprep.subr.bf16.mxu0 %v17045_v27  ;;  %v17077_v26 = vcombine.high %v2451_v18, %v2455_v46  ;;  %v16329_v27 = vcombine.high %v1701_v22, %v1705_v23  ;;  %v2487_v18 = vld [vmem:[%s25117_s4 + $0x22a0] sm:$0xff]  ;;  %v1733_v46 = vld [vmem:[%s25117_s4 + $0xb10] sm:$0xff] }
 0x320   : > { %12285 = vmatprep.subr.bf16.mxu1 %v16297_v29  ;;  %v2459_v29 = vld [vmem:[%s25117_s4 + $0x21c0] sm:$0xff] }
 0x321   : > { %v17084_v62 = vcombine.low %v2459_v29, %v2463_v30 }
 0x322   : > { %11508 = vmatpush1.bf16.msra.mxu0 %v17044_v38  ;;  %v16328_v38 = vcombine.low %v1701_v22, %v1705_v23  ;;  %v1737_v22 = vld [vmem:[%s25117_s4 + $0xb30] sm:$0xff] }
 0x323   : > { %12286 = vmatpush1.bf16.msra.mxu1 %v16296_v57  ;;  %11509 = vmatprep.subr.bf16.mxu0 %v17053_v58  ;;  %v17085_v57 = vcombine.high %v2459_v29, %v2463_v30  ;;  %v16337_v58 = vcombine.high %v1709_v33, %v1713_v35  ;;  %v2495_v29 = vld [vmem:[%s25117_s4 + $0x22e0] sm:$0xff]  ;;  %v1741_v30 = vld [vmem:[%s25117_s4 + $0xb50] sm:$0xff] }
 0x324   : > { %12287 = vmatprep.subr.bf16.mxu1 %v16305_v59  ;;  %v2467_v59 = vld [vmem:[%s25117_s4 + $0x2200] sm:$0xff] }
 0x325   : > { %v17092_v7 = vcombine.low %v2467_v59, %v2471_v47 }
 0x326   : > { %11510 = vmatpush1.bf16.msra.mxu0 %v17052_v0  ;;  %v16336_v0 = vcombine.low %v1709_v33, %v1713_v35  ;;  %v1745_v33 = vld [vmem:[%s25117_s4 + $0xb70] sm:$0xff] }
 0x327   : > { %12288 = vmatpush1.bf16.msra.mxu1 %v16304_v32  ;;  %11511 = vmatprep.subr.bf16.mxu0 %v17061_v34  ;;  %v17093_v32 = vcombine.high %v2467_v59, %v2471_v47  ;;  %v16345_v34 = vcombine.high %v1717_v16, %v1721_v48  ;;  %v2503_v59 = vld [vmem:[%s25117_s4 + $0x2320] sm:$0xff]  ;;  %v1749_v47 = vld [vmem:[%s25117_s4 + $0xb90] sm:$0xff] }
 0x328   : > { %12289 = vmatprep.subr.bf16.mxu1 %v16313_v2  ;;  %v2475_v2 = vld [vmem:[%s25117_s4 + $0x2240] sm:$0xff] }
 0x329   : > { %v17100_v23 = vcombine.low %v2475_v2, %v2479_v4 }
 0x32a   : > { %11512 = vmatpush1.bf16.msra.mxu0 %v17060_v8  ;;  %v16344_v8 = vcombine.low %v1717_v16, %v1721_v48  ;;  %v1753_v16 = vld [vmem:[%s25117_s4 + $0xbb0] sm:$0xff] }
 0x32b   : > { %12290 = vmatpush1.bf16.msra.mxu1 %v16312_v13  ;;  %11513 = vmatprep.subr.bf16.mxu0 %v17069_v14  ;;  %v17101_v13 = vcombine.high %v2475_v2, %v2479_v4  ;;  %v16353_v14 = vcombine.high %v1725_v49, %v1729_v5  ;;  %v2511_v2 = vld [vmem:[%s25117_s4 + $0x2360] sm:$0xff]  ;;  %v1757_v4 = vld [vmem:[%s25117_s4 + $0xbd0] sm:$0xff] }
 0x32c   : > { %12291 = vmatprep.subr.bf16.mxu1 %v16321_v15  ;;  %v2483_v15 = vld [vmem:[%s25117_s4 + $0x2280] sm:$0xff] }
 0x32d   : > { %v17108_v35 = vcombine.low %v2483_v15, %v2487_v18 }
 0x32e   : > { %11514 = vmatpush1.bf16.msra.mxu0 %v17068_v24  ;;  %v16352_v24 = vcombine.low %v1725_v49, %v1729_v5  ;;  %v1761_v49 = vld [vmem:[%s25117_s4 + $0xbf0] sm:$0xff] }
 0x32f   : > { %12292 = vmatpush1.bf16.msra.mxu1 %v16320_v25  ;;  %11515 = vmatprep.subr.bf16.mxu0 %v17077_v26  ;;  %v17109_v25 = vcombine.high %v2483_v15, %v2487_v18  ;;  %v16361_v26 = vcombine.high %v1733_v46, %v1737_v22  ;;  %v2519_v15 = vld [vmem:[%s25117_s4 + $0x23a0] sm:$0xff]  ;;  %v1765_v18 = vld [vmem:[%s25117_s4 + $0xc10] sm:$0xff] }
 0x330   : > { %12293 = vmatprep.subr.bf16.mxu1 %v16329_v27  ;;  %v2491_v27 = vld [vmem:[%s25117_s4 + $0x22c0] sm:$0xff] }
 0x331   : > { %v17116_v48 = vcombine.low %v2491_v27, %v2495_v29 }
 0x332   : > { %11516 = vmatpush1.bf16.msra.mxu0 %v17076_v36  ;;  %v16360_v36 = vcombine.low %v1733_v46, %v1737_v22  ;;  %v1769_v46 = vld [vmem:[%s25117_s4 + $0xc30] sm:$0xff] }
 0x333   : > { %12294 = vmatpush1.bf16.msra.mxu1 %v16328_v38  ;;  %11517 = vmatprep.subr.bf16.mxu0 %v17085_v57  ;;  %v17117_v38 = vcombine.high %v2491_v27, %v2495_v29  ;;  %v16369_v57 = vcombine.high %v1741_v30, %v1745_v33  ;;  %v2527_v27 = vld [vmem:[%s25117_s4 + $0x23e0] sm:$0xff]  ;;  %v1773_v29 = vld [vmem:[%s25117_s4 + $0xc50] sm:$0xff] }
 0x334   : > { %12295 = vmatprep.subr.bf16.mxu1 %v16337_v58  ;;  %v2499_v58 = vld [vmem:[%s25117_s4 + $0x2300] sm:$0xff] }
 0x335   : > { %v17124_v5 = vcombine.low %v2499_v58, %v2503_v59 }
 0x336   : > { %11518 = vmatpush1.bf16.msra.mxu0 %v17084_v62  ;;  %v16368_v62 = vcombine.low %v1741_v30, %v1745_v33  ;;  %v1777_v30 = vld [vmem:[%s25117_s4 + $0xc70] sm:$0xff] }
 0x337   : > { %12296 = vmatpush1.bf16.msra.mxu1 %v16336_v0  ;;  %11519 = vmatprep.subr.bf16.mxu0 %v17093_v32  ;;  %v17125_v0 = vcombine.high %v2499_v58, %v2503_v59  ;;  %v16377_v32 = vcombine.high %v1749_v47, %v1753_v16  ;;  %v2535_v58 = vld [vmem:[%s25117_s4 + $0x2420] sm:$0xff]  ;;  %v1781_v59 = vld [vmem:[%s25117_s4 + $0xc90] sm:$0xff] }
 0x338   : > { %12297 = vmatprep.subr.bf16.mxu1 %v16345_v34  ;;  %v2507_v34 = vld [vmem:[%s25117_s4 + $0x2340] sm:$0xff] }
 0x339   : > { %v17132_v22 = vcombine.low %v2507_v34, %v2511_v2 }
 0x33a   : > { %11520 = vmatpush1.bf16.msra.mxu0 %v17092_v7  ;;  %v16376_v7 = vcombine.low %v1749_v47, %v1753_v16  ;;  %v1785_v47 = vld [vmem:[%s25117_s4 + $0xcb0] sm:$0xff] }
 0x33b   : > { %12298 = vmatpush1.bf16.msra.mxu1 %v16344_v8  ;;  %11521 = vmatprep.subr.bf16.mxu0 %v17101_v13  ;;  %v17133_v8 = vcombine.high %v2507_v34, %v2511_v2  ;;  %v16385_v13 = vcombine.high %v1757_v4, %v1761_v49  ;;  %v2543_v34 = vld [vmem:[%s25117_s4 + $0x2460] sm:$0xff]  ;;  %v1789_v2 = vld [vmem:[%s25117_s4 + $0xcd0] sm:$0xff] }
 0x33c   : > { %12299 = vmatprep.subr.bf16.mxu1 %v16353_v14  ;;  %v2515_v14 = vld [vmem:[%s25117_s4 + $0x2380] sm:$0xff] }
 0x33d   : > { %v17140_v33 = vcombine.low %v2515_v14, %v2519_v15 }
 0x33e   : > { %11522 = vmatpush1.bf16.msra.mxu0 %v17100_v23  ;;  %v16384_v23 = vcombine.low %v1757_v4, %v1761_v49  ;;  %v1793_v4 = vld [vmem:[%s25117_s4 + $0xcf0] sm:$0xff] }
 0x33f   : > { %12300 = vmatpush1.bf16.msra.mxu1 %v16352_v24  ;;  %11523 = vmatprep.subr.bf16.mxu0 %v17109_v25  ;;  %v17141_v24 = vcombine.high %v2515_v14, %v2519_v15  ;;  %v16393_v25 = vcombine.high %v1765_v18, %v1769_v46  ;;  %v2551_v14 = vld [vmem:[%s25117_s4 + $0x24a0] sm:$0xff]  ;;  %v1797_v15 = vld [vmem:[%s25117_s4 + $0xd10] sm:$0xff] }
 0x340   : > { %12301 = vmatprep.subr.bf16.mxu1 %v16361_v26  ;;  %v2523_v26 = vld [vmem:[%s25117_s4 + $0x23c0] sm:$0xff] }
 0x341   : > { %v17148_v16 = vcombine.low %v2523_v26, %v2527_v27 }
 0x342   : > { %11524 = vmatpush1.bf16.msra.mxu0 %v17108_v35  ;;  %v16392_v35 = vcombine.low %v1765_v18, %v1769_v46  ;;  %v1801_v18 = vld [vmem:[%s25117_s4 + $0xd30] sm:$0xff] }
 0x343   : > { %12302 = vmatpush1.bf16.msra.mxu1 %v16360_v36  ;;  %11525 = vmatprep.subr.bf16.mxu0 %v17117_v38  ;;  %v17149_v36 = vcombine.high %v2523_v26, %v2527_v27  ;;  %v16401_v38 = vcombine.high %v1773_v29, %v1777_v30  ;;  %v2559_v26 = vld [vmem:[%s25117_s4 + $0x24e0] sm:$0xff]  ;;  %v1805_v27 = vld [vmem:[%s25117_s4 + $0xd50] sm:$0xff] }
 0x344   : > { %12303 = vmatprep.subr.bf16.mxu1 %v16369_v57  ;;  %v2531_v57 = vld [vmem:[%s25117_s4 + $0x2400] sm:$0xff] }
 0x345   : > { %v17156_v49 = vcombine.low %v2531_v57, %v2535_v58 }
 0x346   : > { %11526 = vmatpush1.bf16.msra.mxu0 %v17116_v48  ;;  %v16400_v48 = vcombine.low %v1773_v29, %v1777_v30  ;;  %v1809_v29 = vld [vmem:[%s25117_s4 + $0xd70] sm:$0xff] }
 0x347   : > { %12304 = vmatpush1.bf16.msra.mxu1 %v16368_v62  ;;  %11527 = vmatprep.subr.bf16.mxu0 %v17125_v0  ;;  %v17157_v62 = vcombine.high %v2531_v57, %v2535_v58  ;;  %v16409_v0 = vcombine.high %v1781_v59, %v1785_v47  ;;  %v2567_v57 = vld [vmem:[%s25117_s4 + $0x2520] sm:$0xff]  ;;  %v1813_v58 = vld [vmem:[%s25117_s4 + $0xd90] sm:$0xff] }
 0x348   : > { %12305 = vmatprep.subr.bf16.mxu1 %v16377_v32  ;;  %v2539_v32 = vld [vmem:[%s25117_s4 + $0x2440] sm:$0xff] }
 0x349   : > { %v17164_v46 = vcombine.low %v2539_v32, %v2543_v34 }
 0x34a   : > { %11528 = vmatpush1.bf16.msra.mxu0 %v17124_v5  ;;  %v16408_v5 = vcombine.low %v1781_v59, %v1785_v47  ;;  %v1817_v59 = vld [vmem:[%s25117_s4 + $0xdb0] sm:$0xff] }
 0x34b   : > { %12306 = vmatpush1.bf16.msra.mxu1 %v16376_v7  ;;  %11529 = vmatprep.subr.bf16.mxu0 %v17133_v8  ;;  %v17165_v7 = vcombine.high %v2539_v32, %v2543_v34  ;;  %v16417_v8 = vcombine.high %v1789_v2, %v1793_v4  ;;  %v2575_v32 = vld [vmem:[%s25117_s4 + $0x2560] sm:$0xff] }
 0x34c   : > { %12307 = vmatprep.subr.bf16.mxu1 %v16385_v13  ;;  %v2547_v13 = vld [vmem:[%s25117_s4 + $0x2480] sm:$0xff] }
 0x34d   : > { %v17172_v30 = vcombine.low %v2547_v13, %v2551_v14 }
 0x34e   : > { %11530 = vmatpush1.bf16.msra.mxu0 %v17132_v22  ;;  %v16416_v22 = vcombine.low %v1789_v2, %v1793_v4  ;;  %v1821_v2 = vld [vmem:[%s25117_s4 + $0xdd0] sm:$0xff] }
 0x34f   : > { %12308 = vmatpush1.bf16.msra.mxu1 %v16384_v23  ;;  %11531 = vmatprep.subr.bf16.mxu0 %v17141_v24  ;;  %v17173_v23 = vcombine.high %v2547_v13, %v2551_v14  ;;  %v16425_v24 = vcombine.high %v1797_v15, %v1801_v18  ;;  %v1825_v4 = vld [vmem:[%s25117_s4 + $0xdf0] sm:$0xff] }
 0x350   : > { %12320 = vmatprep.subr.bf16.mxu1 %v16393_v25  ;;  %v2555_v25 = vld [vmem:[%s25117_s4 + $0x24c0] sm:$0xff] }
 0x351   : > { %v17180_v47 = vcombine.low %v2555_v25, %v2559_v26 }
 0x352   : > { %12310 = vmatmul.mubr.bf16.vlgmr.msra.gmra.mrb[4].mxu1 %v19512_v54  ;;  %11532 = vmatpush1.bf16.msra.mxu0 %v17140_v33  ;;  %v16424_v33 = vcombine.low %v1797_v15, %v1801_v18  ;;  %v16449_v15 = vcombine.high %v1821_v2, %v1825_v4  ;;  %v2579_v18 = vld [vmem:[%s25117_s4 + $0x2580] sm:$0xff] }
 0x353   : > { %12321 = vmatpush1.bf16.msra.mxu1 %v16392_v35  ;;  %12352 = vmatprep.mubr.bf16.mxu1 %v19536_v12  ;;  %v17181_v35 = vcombine.high %v2555_v25, %v2559_v26  ;;  %v16448_v25 = vcombine.low %v1821_v2, %v1825_v4  ;;  %v2603_v4 = vld [vmem:[%s25117_s4 + $0x2640] sm:$0xff] }
 0x354   : > { %11533 = vmatprep.subr.bf16.mxu0 %v17149_v36  ;;  %12322 = vmatprep.subr.bf16.mxu1 %v16401_v38  ;;  %v16433_v36 = vcombine.high %v1805_v27, %v1809_v29  ;;  %v2563_v38 = vld [vmem:[%s25117_s4 + $0x2500] sm:$0xff] }
 0x356   : > { %11534 = vmatpush1.bf16.msra.mxu0 %v17148_v16  ;;  %v16432_v16 = vcombine.low %v1805_v27, %v1809_v29  ;;  %v2587_v29 = vld [vmem:[%s25117_s4 + $0x25c0] sm:$0xff] }
 0x357   : > { %12323 = vmatpush1.bf16.msra.mxu1 %v16400_v48  ;;  %11546 = vmatprep.subr.bf16.mxu0 %v17157_v62  ;;  %v17189_v48 = vcombine.high %v2563_v38, %v2567_v57  ;;  %v16441_v62 = vcombine.high %v1813_v58, %v1817_v59 }
 0x358   : > { %12324 = vmatprep.subr.bf16.mxu1 %v16409_v0  ;;  %v2571_v0 = vld [vmem:[%s25117_s4 + $0x2540] sm:$0xff] }
 0x359   : > { %11536 = vmatmul.mubr.bf16.vlgmr.msra.gmra.mrb[48].mxu0 %v19657_v1  ;;  %v17197_v13 = vcombine.high %v2571_v0, %v2575_v32 }
 0x35a   : > { %11547 = vmatpush1.bf16.msra.mxu0 %v17156_v49  ;;  %11578 = vmatprep.mubr.bf16.mxu0 %v19694_v17 }
 0x35b   : > { %12325 = vmatpush1.bf16.msra.mxu1 %v16408_v5  ;;  %11548 = vmatprep.subr.bf16.mxu0 %v17165_v7  ;;  %v17188_v5 = vcombine.low %v2563_v38, %v2567_v57 }
 0x35c   : > { %12326 = vmatprep.subr.bf16.mxu1 %v16417_v8  ;;  %v16440_v8 = vcombine.low %v1813_v58, %v1817_v59  ;;  %v2595_v59 = vld [vmem:[%s25117_s4 + $0x2600] sm:$0xff] }
 0x35e   : > { %11549 = vmatpush1.bf16.msra.mxu0 %v17164_v46  ;;  %v2583_v46 = vld [vmem:[%s25117_s4 + $0x25a0] sm:$0xff] }
 0x35f   : > { %12327 = vmatpush1.bf16.msra.mxu1 %v16416_v22  ;;  %11550 = vmatprep.subr.bf16.mxu0 %v17173_v23  ;;  %v1829_v22 = vld [vmem:[%s25117_s4 + $0xe10] sm:$0xff]  ;;  %v17205_v26 = vcombine.high %v2579_v18, %v2583_v46 }
 0x360   : > { %12328 = vmatprep.subr.bf16.mxu1 %v16425_v24  ;;  %v1833_v23 = vld [vmem:[%s25117_s4 + $0xe30] sm:$0xff]  ;;  %v17196_v24 = vcombine.low %v2571_v0, %v2575_v32 }
 0x361   : > { %v16457_v27 = vcombine.high %v1829_v22, %v1833_v23  ;;  %v16456_v38 = vcombine.low %v1829_v22, %v1833_v23  ;;  %v2611_v23 = vld [vmem:[%s25117_s4 + $0x2680] sm:$0xff] }
 0x362   : > { %11551 = vmatpush1.bf16.msra.mxu0 %v17172_v30  ;;  %v2591_v30 = vld [vmem:[%s25117_s4 + $0x25e0] sm:$0xff] }
 0x363   : > { %12329 = vmatpush1.bf16.msra.mxu1 %v16424_v33  ;;  %11552 = vmatprep.subr.bf16.mxu0 %v17181_v35  ;;  %v1837_v33 = vld [vmem:[%s25117_s4 + $0xe50] sm:$0xff]  ;;  %v17213_v57 = vcombine.high %v2587_v29, %v2591_v30 }
 0x364   : > { %12330 = vmatprep.subr.bf16.mxu1 %v16433_v36  ;;  %v1841_v35 = vld [vmem:[%s25117_s4 + $0xe70] sm:$0xff]  ;;  %v17204_v36 = vcombine.low %v2579_v18, %v2583_v46 }
 0x365   : > { %v21102_v34 = vpop.f32.mrb[12].mxu1  ;;  %v16465_v58 = vcombine.high %v1837_v33, %v1841_v35  ;;  %v16464_v0 = vcombine.low %v1837_v33, %v1841_v35  ;;  %v2619_v35 = vld [vmem:[%s25117_s4 + $0x26c0] sm:$0xff] }
 0x366   : > { %v21110_v49 = vpop.f32.mrb[13].mxu1  ;;  %11553 = vmatpush1.bf16.msra.mxu0 %v17180_v47  ;;  %v2599_v47 = vld [vmem:[%s25117_s4 + $0x2620] sm:$0xff] }
 0x367   : > { %v21112_v7 = vpop.f32.mrb[14].mxu1  ;;  %12331 = vmatpush1.bf16.msra.mxu1 %v16432_v16  ;;  %11554 = vmatprep.subr.bf16.mxu0 %v17189_v48  ;;  %v1845_v16 = vld [vmem:[%s25117_s4 + $0xe90] sm:$0xff]  ;;  %v17221_v32 = vcombine.high %v2595_v59, %v2599_v47 }
 0x368   : > { %v21114_v14 = vpop.f32.mrb[15].mxu1  ;;  %12332 = vmatprep.subr.bf16.mxu1 %v16441_v62  ;;  %v1849_v48 = vld [vmem:[%s25117_s4 + $0xeb0] sm:$0xff]  ;;  %v17212_v62 = vcombine.low %v2587_v29, %v2591_v30 }
 0x369   : > { %v16473_v2 = vcombine.high %v1845_v16, %v1849_v48  ;;  %v16472_v18 = vcombine.low %v1845_v16, %v1849_v48  ;;  %v2627_v48 = vld [vmem:[%s25117_s4 + $0x2700] sm:$0xff] }
 0x36a   : > { %11555 = vmatpush1.bf16.msra.mxu0 %v17188_v5  ;;  %v2607_v5 = vld [vmem:[%s25117_s4 + $0x2660] sm:$0xff] }
 0x36b   : > { %12333 = vmatpush1.bf16.msra.mxu1 %v16440_v8  ;;  %11556 = vmatprep.subr.bf16.mxu0 %v17197_v13  ;;  %v1853_v8 = vld [vmem:[%s25117_s4 + $0xed0] sm:$0xff]  ;;  %v17229_v46 = vcombine.high %v2603_v4, %v2607_v5 }
 0x36c   : > { %12334 = vmatprep.subr.bf16.mxu1 %v16449_v15  ;;  %v1857_v13 = vld [vmem:[%s25117_s4 + $0xef0] sm:$0xff]  ;;  %v17220_v15 = vcombine.low %v2595_v59, %v2599_v47 }
 0x36d   : > { %v16481_v22 = vcombine.high %v1853_v8, %v1857_v13  ;;  %v16480_v29 = vcombine.low %v1853_v8, %v1857_v13  ;;  %v2635_v13 = vld [vmem:[%s25117_s4 + $0x2740] sm:$0xff] }
 0x36e   : > { %11557 = vmatpush1.bf16.msra.mxu0 %v17196_v24  ;;  %v2615_v24 = vld [vmem:[%s25117_s4 + $0x26a0] sm:$0xff] }
 0x36f   : > { %12335 = vmatpush1.bf16.msra.mxu1 %v16448_v25  ;;  %11558 = vmatprep.subr.bf16.mxu0 %v17205_v26  ;;  %v1861_v25 = vld [vmem:[%s25117_s4 + $0xf10] sm:$0xff]  ;;  %v17237_v30 = vcombine.high %v2611_v23, %v2615_v24 }
 0x370   : > { %12336 = vmatprep.subr.bf16.mxu1 %v16457_v27  ;;  %v1865_v26 = vld [vmem:[%s25117_s4 + $0xf30] sm:$0xff]  ;;  %v17228_v27 = vcombine.low %v2603_v4, %v2607_v5 }
 0x371   : > { %v16489_v33 = vcombine.high %v1861_v25, %v1865_v26  ;;  %v16488_v59 = vcombine.low %v1861_v25, %v1865_v26  ;;  %v2643_v26 = vld [vmem:[%s25117_s4 + $0x2780] sm:$0xff] }
 0x372   : > { %11559 = vmatpush1.bf16.msra.mxu0 %v17204_v36  ;;  %v2623_v36 = vld [vmem:[%s25117_s4 + $0x26e0] sm:$0xff] }
 0x373   : > { %12337 = vmatpush1.bf16.msra.mxu1 %v16456_v38  ;;  %11560 = vmatprep.subr.bf16.mxu0 %v17213_v57  ;;  %v1869_v38 = vld [vmem:[%s25117_s4 + $0xf50] sm:$0xff]  ;;  %v17245_v47 = vcombine.high %v2619_v35, %v2623_v36 }
 0x374   : > { %12338 = vmatprep.subr.bf16.mxu1 %v16465_v58  ;;  %v1873_v57 = vld [vmem:[%s25117_s4 + $0xf70] sm:$0xff]  ;;  %v17236_v58 = vcombine.low %v2611_v23, %v2615_v24 }
 0x375   : > { %v16497_v16 = vcombine.high %v1869_v38, %v1873_v57  ;;  %v16496_v4 = vcombine.low %v1869_v38, %v1873_v57  ;;  %v2651_v57 = vld [vmem:[%s25117_s4 + $0x27c0] sm:$0xff] }
 0x376   : > { %11561 = vmatpush1.bf16.msra.mxu0 %v17212_v62  ;;  %v2631_v62 = vld [vmem:[%s25117_s4 + $0x2720] sm:$0xff] }
 0x377   : > { %12339 = vmatpush1.bf16.msra.mxu1 %v16464_v0  ;;  %11562 = vmatprep.subr.bf16.mxu0 %v17221_v32  ;;  %v1877_v0 = vld [vmem:[%s25117_s4 + $0xf90] sm:$0xff]  ;;  %v17253_v5 = vcombine.high %v2627_v48, %v2631_v62 }
 0x378   : > { %12340 = vmatprep.subr.bf16.mxu1 %v16473_v2  ;;  %v1881_v32 = vld [vmem:[%s25117_s4 + $0xfb0] sm:$0xff]  ;;  %v17244_v2 = vcombine.low %v2619_v35, %v2623_v36 }
 0x379   : > { %v16505_v8 = vcombine.high %v1877_v0, %v1881_v32  ;;  %v16504_v23 = vcombine.low %v1877_v0, %v1881_v32  ;;  %v2659_v32 = vld [vmem:[%s25117_s4 + $0x2800] sm:$0xff] }
 0x37a   : > { %11563 = vmatpush1.bf16.msra.mxu0 %v17220_v15  ;;  %v2639_v15 = vld [vmem:[%s25117_s4 + $0x2760] sm:$0xff] }
 0x37b   : > { %12341 = vmatpush1.bf16.msra.mxu1 %v16472_v18  ;;  %11564 = vmatprep.subr.bf16.mxu0 %v17229_v46  ;;  %v1885_v18 = vld [vmem:[%s25117_s4 + $0xfd0] sm:$0xff]  ;;  %v17261_v24 = vcombine.high %v2635_v13, %v2639_v15 }
 0x37c   : > { %12342 = vmatprep.subr.bf16.mxu1 %v16481_v22  ;;  %v1889_v46 = vld [vmem:[%s25117_s4 + $0xff0] sm:$0xff]  ;;  %v17252_v22 = vcombine.low %v2627_v48, %v2631_v62 }
 0x37d   : > { %v16513_v25 = vcombine.high %v1885_v18, %v1889_v46  ;;  %v16512_v35 = vcombine.low %v1885_v18, %v1889_v46  ;;  %v2667_v46 = vld [vmem:[%s25117_s4 + $0x2840] sm:$0xff] }
 0x37e   : > { %11565 = vmatpush1.bf16.msra.mxu0 %v17228_v27  ;;  %v2647_v27 = vld [vmem:[%s25117_s4 + $0x27a0] sm:$0xff] }
 0x37f   : > { %12343 = vmatpush1.bf16.msra.mxu1 %v16480_v29  ;;  %11566 = vmatprep.subr.bf16.mxu0 %v17237_v30  ;;  %v1893_v29 = vld [vmem:[%s25117_s4 + $0x1010] sm:$0xff]  ;;  %v17269_v36 = vcombine.high %v2643_v26, %v2647_v27 }
 0x380   : > { %12344 = vmatprep.subr.bf16.mxu1 %v16489_v33  ;;  %v1897_v30 = vld [vmem:[%s25117_s4 + $0x1030] sm:$0xff]  ;;  %v17260_v33 = vcombine.low %v2635_v13, %v2639_v15 }
 0x381   : > { %v16521_v38 = vcombine.high %v1893_v29, %v1897_v30  ;;  %v16520_v48 = vcombine.low %v1893_v29, %v1897_v30  ;;  %v2675_v30 = vld [vmem:[%s25117_s4 + $0x2880] sm:$0xff] }
 0x382   : > { %11567 = vmatpush1.bf16.msra.mxu0 %v17236_v58  ;;  %v2655_v58 = vld [vmem:[%s25117_s4 + $0x27e0] sm:$0xff] }
 0x383   : > { %12345 = vmatpush1.bf16.msra.mxu1 %v16488_v59  ;;  %11568 = vmatprep.subr.bf16.mxu0 %v17245_v47  ;;  %v1901_v59 = vld [vmem:[%s25117_s4 + $0x1050] sm:$0xff]  ;;  %v17277_v62 = vcombine.high %v2651_v57, %v2655_v58 }
 0x384   : > { %12346 = vmatprep.subr.bf16.mxu1 %v16497_v16  ;;  %v1905_v47 = vld [vmem:[%s25117_s4 + $0x1070] sm:$0xff]  ;;  %v17268_v16 = vcombine.low %v2643_v26, %v2647_v27 }
 0x385   : > { %v16529_v0 = vcombine.high %v1901_v59, %v1905_v47  ;;  %v16528_v13 = vcombine.low %v1901_v59, %v1905_v47  ;;  %v2683_v47 = vld [vmem:[%s25117_s4 + $0x28c0] sm:$0xff] }
 0x386   : > { %11569 = vmatpush1.bf16.msra.mxu0 %v17244_v2  ;;  %v2663_v2 = vld [vmem:[%s25117_s4 + $0x2820] sm:$0xff] }
 0x387   : > { %12347 = vmatpush1.bf16.msra.mxu1 %v16496_v4  ;;  %11570 = vmatprep.subr.bf16.mxu0 %v17253_v5  ;;  %v1909_v4 = vld [vmem:[%s25117_s4 + $0x1090] sm:$0xff]  ;;  %v17285_v15 = vcombine.high %v2659_v32, %v2663_v2 }
 0x388   : > { %12348 = vmatprep.subr.bf16.mxu1 %v16505_v8  ;;  %v1913_v5 = vld [vmem:[%s25117_s4 + $0x10b0] sm:$0xff]  ;;  %v17276_v8 = vcombine.low %v2651_v57, %v2655_v58 }
 0x389   : > { %v16537_v18 = vcombine.high %v1909_v4, %v1913_v5  ;;  %v16536_v26 = vcombine.low %v1909_v4, %v1913_v5  ;;  %v2691_v5 = vld [vmem:[%s25117_s4 + $0x2900] sm:$0xff] }
 0x38a   : > { %11571 = vmatpush1.bf16.msra.mxu0 %v17252_v22  ;;  %v2671_v22 = vld [vmem:[%s25117_s4 + $0x2860] sm:$0xff] }
 0x38b   : > { %12349 = vmatpush1.bf16.msra.mxu1 %v16504_v23  ;;  %11572 = vmatprep.subr.bf16.mxu0 %v17261_v24  ;;  %v1917_v23 = vld [vmem:[%s25117_s4 + $0x10d0] sm:$0xff]  ;;  %v17293_v27 = vcombine.high %v2667_v46, %v2671_v22 }
 0x38c   : > { %12350 = vmatprep.subr.bf16.mxu1 %v16513_v25  ;;  %v1921_v24 = vld [vmem:[%s25117_s4 + $0x10f0] sm:$0xff]  ;;  %v17284_v25 = vcombine.low %v2659_v32, %v2663_v2 }
 0x38d   : > { %v16545_v29 = vcombine.high %v1917_v23, %v1921_v24  ;;  %v16544_v57 = vcombine.low %v1917_v23, %v1921_v24  ;;  %v2699_v24 = vld [vmem:[%s25117_s4 + $0x2940] sm:$0xff] }
 0x38e   : > { %11573 = vmatpush1.bf16.msra.mxu0 %v17260_v33  ;;  %v2679_v33 = vld [vmem:[%s25117_s4 + $0x28a0] sm:$0xff] }
 0x38f   : > { %12351 = vmatpush1.bf16.msra.mxu1 %v16512_v35  ;;  %11574 = vmatprep.subr.bf16.mxu0 %v17269_v36  ;;  %v1925_v35 = vld [vmem:[%s25117_s4 + $0x1110] sm:$0xff]  ;;  %v17301_v58 = vcombine.high %v2675_v30, %v2679_v33 }
 0x390   : > { %12363 = vmatprep.subr.bf16.mxu1 %v16521_v38  ;;  %v1929_v36 = vld [vmem:[%s25117_s4 + $0x1130] sm:$0xff]  ;;  %v17292_v38 = vcombine.low %v2667_v46, %v2671_v22 }
 0x391   : > { %v16553_v59 = vcombine.high %v1925_v35, %v1929_v36  ;;  %v16552_v32 = vcombine.low %v1925_v35, %v1929_v36  ;;  %v2707_v36 = vld [vmem:[%s25117_s4 + $0x2980] sm:$0xff] }
 0x392   : > { %12353 = vmatmul.mubr.bf16.vlgmr.msra.gmra.mrb[4].mxu1 %v19534_v11  ;;  %11575 = vmatpush1.bf16.msra.mxu0 %v17268_v16  ;;  %v2687_v16 = vld [vmem:[%s25117_s4 + $0x28e0] sm:$0xff] }
 0x393   : > { %12364 = vmatpush1.bf16.msra.mxu1 %v16520_v48  ;;  %12395 = vmatprep.mubr.bf16.mxu1 %v19556_v50  ;;  %v1933_v48 = vld [vmem:[%s25117_s4 + $0x1150] sm:$0xff]  ;;  %v17309_v2 = vcombine.high %v2683_v47, %v2687_v16 }
 0x394   : > { %11576 = vmatprep.subr.bf16.mxu0 %v17277_v62  ;;  %12365 = vmatprep.subr.bf16.mxu1 %v16529_v0  ;;  %v1937_v62 = vld [vmem:[%s25117_s4 + $0x1170] sm:$0xff]  ;;  %v17300_v0 = vcombine.low %v2675_v30, %v2679_v33 }
 0x395   : > { %v16561_v4 = vcombine.high %v1933_v48, %v1937_v62  ;;  %v16560_v46 = vcombine.low %v1933_v48, %v1937_v62  ;;  %v2715_v62 = vld [vmem:[%s25117_s4 + $0x29c0] sm:$0xff] }
 0x396   : > { %11577 = vmatpush1.bf16.msra.mxu0 %v17276_v8  ;;  %v2695_v8 = vld [vmem:[%s25117_s4 + $0x2920] sm:$0xff] }
 0x397   : > { %12366 = vmatpush1.bf16.msra.mxu1 %v16528_v13  ;;  %11589 = vmatprep.subr.bf16.mxu0 %v17285_v15  ;;  %v1941_v13 = vld [vmem:[%s25117_s4 + $0x1190] sm:$0xff]  ;;  %v17317_v22 = vcombine.high %v2691_v5, %v2695_v8 }
 0x398   : > { %12367 = vmatprep.subr.bf16.mxu1 %v16537_v18  ;;  %v1945_v15 = vld [vmem:[%s25117_s4 + $0x11b0] sm:$0xff]  ;;  %v17308_v18 = vcombine.low %v2683_v47, %v2687_v16 }
 0x399   : > { %11579 = vmatmul.mubr.bf16.vlgmr.msra.gmra.mrb[48].mxu0 %v19692_v60  ;;  %v16569_v23 = vcombine.high %v1941_v13, %v1945_v15  ;;  %v16568_v30 = vcombine.low %v1941_v13, %v1945_v15  ;;  %v2723_v15 = vld [vmem:[%s25117_s4 + $0x2a00] sm:$0xff] }
 0x39a   : > { %11590 = vmatpush1.bf16.msra.mxu0 %v17284_v25  ;;  %11621 = vmatprep.mubr.bf16.mxu0 %v19840_v63  ;;  %v2703_v25 = vld [vmem:[%s25117_s4 + $0x2960] sm:$0xff] }
 0x39b   : > { %12368 = vmatpush1.bf16.msra.mxu1 %v16536_v26  ;;  %11591 = vmatprep.subr.bf16.mxu0 %v17293_v27  ;;  %v1949_v26 = vld [vmem:[%s25117_s4 + $0x11d0] sm:$0xff]  ;;  %v17325_v33 = vcombine.high %v2699_v24, %v2703_v25 }
 0x39c   : > { %12369 = vmatprep.subr.bf16.mxu1 %v16545_v29  ;;  %v1953_v27 = vld [vmem:[%s25117_s4 + $0x11f0] sm:$0xff]  ;;  %v17316_v29 = vcombine.low %v2691_v5, %v2695_v8 }
 0x39d   : > { %v16577_v35 = vcombine.high %v1949_v26, %v1953_v27  ;;  %v16576_v47 = vcombine.low %v1949_v26, %v1953_v27  ;;  %v2731_v27 = vld [vmem:[%s25117_s4 + $0x2a40] sm:$0xff] }
 0x39e   : > { %11592 = vmatpush1.bf16.msra.mxu0 %v17292_v38  ;;  %v2711_v38 = vld [vmem:[%s25117_s4 + $0x29a0] sm:$0xff] }
 0x39f   : > { %12370 = vmatpush1.bf16.msra.mxu1 %v16544_v57  ;;  %11593 = vmatprep.subr.bf16.mxu0 %v17301_v58  ;;  %v1957_v57 = vld [vmem:[%s25117_s4 + $0x1210] sm:$0xff]  ;;  %v17333_v16 = vcombine.high %v2707_v36, %v2711_v38 }
 0x3a0   : > { %12371 = vmatprep.subr.bf16.mxu1 %v16553_v59  ;;  %v1961_v58 = vld [vmem:[%s25117_s4 + $0x1230] sm:$0xff]  ;;  %v17324_v59 = vcombine.low %v2699_v24, %v2703_v25 }
 0x3a1   : > { %v16585_v48 = vcombine.high %v1957_v57, %v1961_v58  ;;  %v16584_v5 = vcombine.low %v1957_v57, %v1961_v58  ;;  %v2739_v58 = vld [vmem:[%s25117_s4 + $0x2a80] sm:$0xff] }
 0x3a2   : > { %11594 = vmatpush1.bf16.msra.mxu0 %v17300_v0  ;;  %v2719_v0 = vld [vmem:[%s25117_s4 + $0x29e0] sm:$0xff] }
 0x3a3   : > { %12372 = vmatpush1.bf16.msra.mxu1 %v16552_v32  ;;  %11595 = vmatprep.subr.bf16.mxu0 %v17309_v2  ;;  %v1965_v32 = vld [vmem:[%s25117_s4 + $0x1250] sm:$0xff]  ;;  %v17341_v8 = vcombine.high %v2715_v62, %v2719_v0 }
 0x3a4   : > { %12373 = vmatprep.subr.bf16.mxu1 %v16561_v4  ;;  %v1969_v2 = vld [vmem:[%s25117_s4 + $0x1270] sm:$0xff]  ;;  %v17332_v4 = vcombine.low %v2707_v36, %v2711_v38 }
 0x3a5   : > { %v16593_v13 = vcombine.high %v1965_v32, %v1969_v2  ;;  %v16592_v24 = vcombine.low %v1965_v32, %v1969_v2  ;;  %v2747_v2 = vld [vmem:[%s25117_s4 + $0x2ac0] sm:$0xff] }
 0x3a6   : > { %11596 = vmatpush1.bf16.msra.mxu0 %v17308_v18  ;;  %v2727_v18 = vld [vmem:[%s25117_s4 + $0x2a20] sm:$0xff] }
 0x3a7   : > { %12374 = vmatpush1.bf16.msra.mxu1 %v16560_v46  ;;  %11597 = vmatprep.subr.bf16.mxu0 %v17317_v22  ;;  %v1973_v46 = vld [vmem:[%s25117_s4 + $0x1290] sm:$0xff]  ;;  %v17349_v25 = vcombine.high %v2723_v15, %v2727_v18 }
 0x3a8   : > { %12375 = vmatprep.subr.bf16.mxu1 %v16569_v23  ;;  %v1977_v22 = vld [vmem:[%s25117_s4 + $0x12b0] sm:$0xff]  ;;  %v17340_v23 = vcombine.low %v2715_v62, %v2719_v0 }
 0x3a9   : > { %v16601_v26 = vcombine.high %v1973_v46, %v1977_v22  ;;  %v16600_v36 = vcombine.low %v1973_v46, %v1977_v22  ;;  %v2755_v22 = vld [vmem:[%s25117_s4 + $0x2b00] sm:$0xff] }
 0x3aa   : > { %11598 = vmatpush1.bf16.msra.mxu0 %v17316_v29  ;;  %v2735_v29 = vld [vmem:[%s25117_s4 + $0x2a60] sm:$0xff] }
 0x3ab   : > { %12376 = vmatpush1.bf16.msra.mxu1 %v16568_v30  ;;  %11599 = vmatprep.subr.bf16.mxu0 %v17325_v33  ;;  %v1981_v30 = vld [vmem:[%s25117_s4 + $0x12d0] sm:$0xff]  ;;  %v17357_v38 = vcombine.high %v2731_v27, %v2735_v29 }
 0x3ac   : > { %12377 = vmatprep.subr.bf16.mxu1 %v16577_v35  ;;  %v1985_v33 = vld [vmem:[%s25117_s4 + $0x12f0] sm:$0xff]  ;;  %v17348_v35 = vcombine.low %v2723_v15, %v2727_v18 }
 0x3ad   : > { %v16609_v57 = vcombine.high %v1981_v30, %v1985_v33  ;;  %v16608_v62 = vcombine.low %v1981_v30, %v1985_v33  ;;  %v2763_v33 = vld [vmem:[%s25117_s4 + $0x2b40] sm:$0xff] }
 0x3ae   : > { %11600 = vmatpush1.bf16.msra.mxu0 %v17324_v59  ;;  %v2743_v59 = vld [vmem:[%s25117_s4 + $0x2aa0] sm:$0xff] }
 0x3af   : > { %12378 = vmatpush1.bf16.msra.mxu1 %v16576_v47  ;;  %11601 = vmatprep.subr.bf16.mxu0 %v17333_v16  ;;  %v1989_v47 = vld [vmem:[%s25117_s4 + $0x1310] sm:$0xff]  ;;  %v17365_v0 = vcombine.high %v2739_v58, %v2743_v59 }
 0x3b0   : > { %12379 = vmatprep.subr.bf16.mxu1 %v16585_v48  ;;  %v1993_v16 = vld [vmem:[%s25117_s4 + $0x1330] sm:$0xff]  ;;  %v17356_v48 = vcombine.low %v2731_v27, %v2735_v29 }
 0x3b1   : > { %v16617_v32 = vcombine.high %v1989_v47, %v1993_v16  ;;  %v16616_v15 = vcombine.low %v1989_v47, %v1993_v16  ;;  %v2771_v16 = vld [vmem:[%s25117_s4 + $0x2b80] sm:$0xff] }
 0x3b2   : > { %11602 = vmatpush1.bf16.msra.mxu0 %v17332_v4  ;;  %v2751_v4 = vld [vmem:[%s25117_s4 + $0x2ae0] sm:$0xff] }
 0x3b3   : > { %12380 = vmatpush1.bf16.msra.mxu1 %v16584_v5  ;;  %11603 = vmatprep.subr.bf16.mxu0 %v17341_v8  ;;  %v1997_v5 = vld [vmem:[%s25117_s4 + $0x1350] sm:$0xff]  ;;  %v17373_v18 = vcombine.high %v2747_v2, %v2751_v4 }
 0x3b4   : > { %12381 = vmatprep.subr.bf16.mxu1 %v16593_v13  ;;  %v2001_v8 = vld [vmem:[%s25117_s4 + $0x1370] sm:$0xff]  ;;  %v17364_v13 = vcombine.low %v2739_v58, %v2743_v59 }
 0x3b5   : > { %v16625_v46 = vcombine.high %v1997_v5, %v2001_v8  ;;  %v16624_v27 = vcombine.low %v1997_v5, %v2001_v8  ;;  %v2779_v8 = vld [vmem:[%s25117_s4 + $0x2bc0] sm:$0xff] }
 0x3b6   : > { %11604 = vmatpush1.bf16.msra.mxu0 %v17340_v23  ;;  %v2759_v23 = vld [vmem:[%s25117_s4 + $0x2b20] sm:$0xff] }
 0x3b7   : > { %12382 = vmatpush1.bf16.msra.mxu1 %v16592_v24  ;;  %11605 = vmatprep.subr.bf16.mxu0 %v17349_v25  ;;  %v2005_v24 = vld [vmem:[%s25117_s4 + $0x1390] sm:$0xff]  ;;  %v17381_v29 = vcombine.high %v2755_v22, %v2759_v23 }
 0x3b8   : > { %12383 = vmatprep.subr.bf16.mxu1 %v16601_v26  ;;  %v2009_v25 = vld [vmem:[%s25117_s4 + $0x13b0] sm:$0xff]  ;;  %v17372_v26 = vcombine.low %v2747_v2, %v2751_v4 }
 0x3b9   : > { %v16633_v30 = vcombine.high %v2005_v24, %v2009_v25  ;;  %v16632_v58 = vcombine.low %v2005_v24, %v2009_v25  ;;  %v2787_v25 = vld [vmem:[%s25117_s4 + $0x2c00] sm:$0xff] }
 0x3ba   : > { %11606 = vmatpush1.bf16.msra.mxu0 %v17348_v35  ;;  %v2767_v35 = vld [vmem:[%s25117_s4 + $0x2b60] sm:$0xff] }
 0x3bb   : > { %12384 = vmatpush1.bf16.msra.mxu1 %v16600_v36  ;;  %11607 = vmatprep.subr.bf16.mxu0 %v17357_v38  ;;  %v2013_v36 = vld [vmem:[%s25117_s4 + $0x13d0] sm:$0xff]  ;;  %v17389_v59 = vcombine.high %v2763_v33, %v2767_v35 }
 0x3bc   : > { %12385 = vmatprep.subr.bf16.mxu1 %v16609_v57  ;;  %v2017_v38 = vld [vmem:[%s25117_s4 + $0x13f0] sm:$0xff]  ;;  %v17380_v57 = vcombine.low %v2755_v22, %v2759_v23 }
 0x3bd   : > { %v16641_v47 = vcombine.high %v2013_v36, %v2017_v38  ;;  %v16640_v2 = vcombine.low %v2013_v36, %v2017_v38  ;;  %v2795_v38 = vld [vmem:[%s25117_s4 + $0x2c40] sm:$0xff] }
 0x3be   : > { %11608 = vmatpush1.bf16.msra.mxu0 %v17356_v48  ;;  %v2775_v48 = vld [vmem:[%s25117_s4 + $0x2ba0] sm:$0xff] }
 0x3bf   : > { %12386 = vmatpush1.bf16.msra.mxu1 %v16608_v62  ;;  %11609 = vmatprep.subr.bf16.mxu0 %v17365_v0  ;;  %v2021_v62 = vld [vmem:[%s25117_s4 + $0x1410] sm:$0xff]  ;;  %v17397_v4 = vcombine.high %v2771_v16, %v2775_v48 }
 0x3c0   : > { %12387 = vmatprep.subr.bf16.mxu1 %v16617_v32  ;;  %v2025_v0 = vld [vmem:[%s25117_s4 + $0x1430] sm:$0xff]  ;;  %v17388_v32 = vcombine.low %v2763_v33, %v2767_v35 }
 0x3c1   : > { %v16649_v5 = vcombine.high %v2021_v62, %v2025_v0  ;;  %v16648_v22 = vcombine.low %v2021_v62, %v2025_v0  ;;  %v2803_v0 = vld [vmem:[%s25117_s4 + $0x2c80] sm:$0xff] }
 0x3c2   : > { %11610 = vmatpush1.bf16.msra.mxu0 %v17364_v13  ;;  %v2783_v13 = vld [vmem:[%s25117_s4 + $0x2be0] sm:$0xff] }
 0x3c3   : > { %12388 = vmatpush1.bf16.msra.mxu1 %v16616_v15  ;;  %11611 = vmatprep.subr.bf16.mxu0 %v17373_v18  ;;  %v2029_v15 = vld [vmem:[%s25117_s4 + $0x1450] sm:$0xff]  ;;  %v17405_v23 = vcombine.high %v2779_v8, %v2783_v13 }
 0x3c4   : > { %12389 = vmatprep.subr.bf16.mxu1 %v16625_v46  ;;  %v2033_v18 = vld [vmem:[%s25117_s4 + $0x1470] sm:$0xff]  ;;  %v17396_v46 = vcombine.low %v2771_v16, %v2775_v48 }
 0x3c5   : > { %v16657_v24 = vcombine.high %v2029_v15, %v2033_v18  ;;  %v16656_v33 = vcombine.low %v2029_v15, %v2033_v18  ;;  %v2811_v18 = vld [vmem:[%s25117_s4 + $0x2cc0] sm:$0xff] }
 0x3c6   : > { %11612 = vmatpush1.bf16.msra.mxu0 %v17372_v26  ;;  %v2791_v26 = vld [vmem:[%s25117_s4 + $0x2c20] sm:$0xff] }
 0x3c7   : > { %12390 = vmatpush1.bf16.msra.mxu1 %v16624_v27  ;;  %11613 = vmatprep.subr.bf16.mxu0 %v17381_v29  ;;  %v2037_v27 = vld [vmem:[%s25117_s4 + $0x1490] sm:$0xff]  ;;  %v17413_v35 = vcombine.high %v2787_v25, %v2791_v26 }
 0x3c8   : > { %12391 = vmatprep.subr.bf16.mxu1 %v16633_v30  ;;  %v2041_v29 = vld [vmem:[%s25117_s4 + $0x14b0] sm:$0xff]  ;;  %v17404_v30 = vcombine.low %v2779_v8, %v2783_v13 }
 0x3c9   : > { %v16665_v36 = vcombine.high %v2037_v27, %v2041_v29  ;;  %v16664_v16 = vcombine.low %v2037_v27, %v2041_v29  ;;  %v2819_v29 = vld [vmem:[%s25117_s4 + $0x2d00] sm:$0xff] }
 0x3ca   : > { %11614 = vmatpush1.bf16.msra.mxu0 %v17380_v57  ;;  %v2799_v57 = vld [vmem:[%s25117_s4 + $0x2c60] sm:$0xff] }
 0x3cb   : > { %12392 = vmatpush1.bf16.msra.mxu1 %v16632_v58  ;;  %11615 = vmatprep.subr.bf16.mxu0 %v17389_v59  ;;  %v2045_v58 = vld [vmem:[%s25117_s4 + $0x14d0] sm:$0xff]  ;;  %v17421_v48 = vcombine.high %v2795_v38, %v2799_v57 }
 0x3cc   : > { %12393 = vmatprep.subr.bf16.mxu1 %v16641_v47  ;;  %v2049_v59 = vld [vmem:[%s25117_s4 + $0x14f0] sm:$0xff]  ;;  %v17412_v47 = vcombine.low %v2787_v25, %v2791_v26 }
 0x3cd   : > { %v16673_v62 = vcombine.high %v2045_v58, %v2049_v59  ;;  %v16672_v8 = vcombine.low %v2045_v58, %v2049_v59  ;;  %v2827_v59 = vld [vmem:[%s25117_s4 + $0x2d40] sm:$0xff] }
 0x3ce   : > { %11616 = vmatpush1.bf16.msra.mxu0 %v17388_v32  ;;  %v2807_v32 = vld [vmem:[%s25117_s4 + $0x2ca0] sm:$0xff] }
 0x3cf   : > { %12394 = vmatpush1.bf16.msra.mxu1 %v16640_v2  ;;  %11617 = vmatprep.subr.bf16.mxu0 %v17397_v4  ;;  %v2053_v2 = vld [vmem:[%s25117_s4 + $0x1510] sm:$0xff]  ;;  %v17429_v13 = vcombine.high %v2803_v0, %v2807_v32 }
 0x3d0   : > { %12406 = vmatprep.subr.bf16.mxu1 %v16649_v5  ;;  %v2057_v4 = vld [vmem:[%s25117_s4 + $0x1530] sm:$0xff]  ;;  %v17420_v5 = vcombine.low %v2795_v38, %v2799_v57 }
 0x3d1   : > { %v16681_v15 = vcombine.high %v2053_v2, %v2057_v4  ;;  %v16680_v25 = vcombine.low %v2053_v2, %v2057_v4  ;;  %v2835_v4 = vld [vmem:[%s25117_s4 + $0x2d80] sm:$0xff] }
 0x3d2   : > { %12396 = vmatmul.mubr.bf16.vlgmr.msra.gmra.mrb[4].mxu1 %v19554_v37  ;;  %11618 = vmatpush1.bf16.msra.mxu0 %v17396_v46  ;;  %v2815_v46 = vld [vmem:[%s25117_s4 + $0x2ce0] sm:$0xff] }
 0x3d3   : > { %12407 = vmatpush1.bf16.msra.mxu1 %v16648_v22  ;;  %12438 = vmatprep.mubr.bf16.mxu1 %v19576_v10  ;;  %v2061_v22 = vld [vmem:[%s25117_s4 + $0x1550] sm:$0xff]  ;;  %v17437_v26 = vcombine.high %v2811_v18, %v2815_v46 }
 0x3d4   : > { %11619 = vmatprep.subr.bf16.mxu0 %v17405_v23  ;;  %12408 = vmatprep.subr.bf16.mxu1 %v16657_v24  ;;  %v2065_v23 = vld [vmem:[%s25117_s4 + $0x1570] sm:$0xff]  ;;  %v17428_v24 = vcombine.low %v2803_v0, %v2807_v32 }
 0x3d5   : > { %v16689_v27 = vcombine.high %v2061_v22, %v2065_v23  ;;  %v16688_v38 = vcombine.low %v2061_v22, %v2065_v23  ;;  %v2843_v23 = vld [vmem:[%s25117_s4 + $0x2dc0] sm:$0xff] }
 0x3d6   : > { %11620 = vmatpush1.bf16.msra.mxu0 %v17404_v30  ;;  %v2823_v30 = vld [vmem:[%s25117_s4 + $0x2d20] sm:$0xff] }
 0x3d7   : > { %12409 = vmatpush1.bf16.msra.mxu1 %v16656_v33  ;;  %11632 = vmatprep.subr.bf16.mxu0 %v17413_v35  ;;  %v2069_v33 = vld [vmem:[%s25117_s4 + $0x1590] sm:$0xff]  ;;  %v17445_v57 = vcombine.high %v2819_v29, %v2823_v30 }
 0x3d8   : > { %12410 = vmatprep.subr.bf16.mxu1 %v16665_v36  ;;  %v2073_v35 = vld [vmem:[%s25117_s4 + $0x15b0] sm:$0xff]  ;;  %v17436_v36 = vcombine.low %v2811_v18, %v2815_v46 }
 0x3d9   : > { %11622 = vmatmul.mubr.bf16.vlgmr.msra.gmra.mrb[48].mxu0 %v19832_v39  ;;  %v16697_v58 = vcombine.high %v2069_v33, %v2073_v35  ;;  %v16696_v0 = vcombine.low %v2069_v33, %v2073_v35  ;;  %v2851_v35 = vld [vmem:[%s25117_s4 + $0x2e00] sm:$0xff] }
 0x3da   : > { %11633 = vmatpush1.bf16.msra.mxu0 %v17412_v47  ;;  %11664 = vmatprep.mubr.bf16.mxu0 %v20044_v6  ;;  %v2831_v47 = vld [vmem:[%s25117_s4 + $0x2d60] sm:$0xff] }
 0x3db   : > { %12411 = vmatpush1.bf16.msra.mxu1 %v16664_v16  ;;  %11634 = vmatprep.subr.bf16.mxu0 %v17421_v48  ;;  %v2077_v16 = vld [vmem:[%s25117_s4 + $0x15d0] sm:$0xff]  ;;  %v17453_v32 = vcombine.high %v2827_v59, %v2831_v47 }
 0x3dc   : > { %12412 = vmatprep.subr.bf16.mxu1 %v16673_v62  ;;  %v2081_v48 = vld [vmem:[%s25117_s4 + $0x15f0] sm:$0xff]  ;;  %v17444_v62 = vcombine.low %v2819_v29, %v2823_v30 }
 0x3dd   : > { %v16705_v2 = vcombine.high %v2077_v16, %v2081_v48  ;;  %v16704_v18 = vcombine.low %v2077_v16, %v2081_v48  ;;  %v2859_v48 = vld [vmem:[%s25117_s4 + $0x2e40] sm:$0xff] }
 0x3de   : > { %11635 = vmatpush1.bf16.msra.mxu0 %v17420_v5  ;;  %v2839_v5 = vld [vmem:[%s25117_s4 + $0x2da0] sm:$0xff] }
 0x3df   : > { %12413 = vmatpush1.bf16.msra.mxu1 %v16672_v8  ;;  %11636 = vmatprep.subr.bf16.mxu0 %v17429_v13  ;;  %v2085_v8 = vld [vmem:[%s25117_s4 + $0x1610] sm:$0xff]  ;;  %v17461_v46 = vcombine.high %v2835_v4, %v2839_v5 }
 0x3e0   : > { %12414 = vmatprep.subr.bf16.mxu1 %v16681_v15  ;;  %v2089_v13 = vld [vmem:[%s25117_s4 + $0x1630] sm:$0xff]  ;;  %v17452_v15 = vcombine.low %v2827_v59, %v2831_v47 }
 0x3e1   : > { %v16713_v22 = vcombine.high %v2085_v8, %v2089_v13  ;;  %v16712_v29 = vcombine.low %v2085_v8, %v2089_v13  ;;  %v2867_v13 = vld [vmem:[%s25117_s4 + $0x2e80] sm:$0xff] }
 0x3e2   : > { %11637 = vmatpush1.bf16.msra.mxu0 %v17428_v24  ;;  %v2847_v24 = vld [vmem:[%s25117_s4 + $0x2de0] sm:$0xff] }
 0x3e3   : > { %12415 = vmatpush1.bf16.msra.mxu1 %v16680_v25  ;;  %11638 = vmatprep.subr.bf16.mxu0 %v17437_v26  ;;  %v2093_v25 = vld [vmem:[%s25117_s4 + $0x1650] sm:$0xff]  ;;  %v17469_v30 = vcombine.high %v2843_v23, %v2847_v24 }
 0x3e4   : > { %12416 = vmatprep.subr.bf16.mxu1 %v16689_v27  ;;  %v2097_v26 = vld [vmem:[%s25117_s4 + $0x1670] sm:$0xff]  ;;  %v17460_v27 = vcombine.low %v2835_v4, %v2839_v5 }
 0x3e5   : > { %v16721_v33 = vcombine.high %v2093_v25, %v2097_v26  ;;  %v16720_v59 = vcombine.low %v2093_v25, %v2097_v26  ;;  %v2875_v26 = vld [vmem:[%s25117_s4 + $0x2ec0] sm:$0xff] }
 0x3e6   : > { %11639 = vmatpush1.bf16.msra.mxu0 %v17436_v36  ;;  %v2855_v36 = vld [vmem:[%s25117_s4 + $0x2e20] sm:$0xff] }
 0x3e7   : > { %12417 = vmatpush1.bf16.msra.mxu1 %v16688_v38  ;;  %11640 = vmatprep.subr.bf16.mxu0 %v17445_v57  ;;  %v2101_v38 = vld [vmem:[%s25117_s4 + $0x1690] sm:$0xff]  ;;  %v17477_v47 = vcombine.high %v2851_v35, %v2855_v36 }
 0x3e8   : > { %12418 = vmatprep.subr.bf16.mxu1 %v16697_v58  ;;  %v2105_v57 = vld [vmem:[%s25117_s4 + $0x16b0] sm:$0xff]  ;;  %v17468_v58 = vcombine.low %v2843_v23, %v2847_v24 }
 0x3e9   : > { %v16729_v16 = vcombine.high %v2101_v38, %v2105_v57  ;;  %v16728_v4 = vcombine.low %v2101_v38, %v2105_v57  ;;  %v2883_v57 = vld [vmem:[%s25117_s4 + $0x2f00] sm:$0xff] }
 0x3ea   : > { %11641 = vmatpush1.bf16.msra.mxu0 %v17444_v62  ;;  %v2863_v62 = vld [vmem:[%s25117_s4 + $0x2e60] sm:$0xff] }
 0x3eb   : > { %12419 = vmatpush1.bf16.msra.mxu1 %v16696_v0  ;;  %11642 = vmatprep.subr.bf16.mxu0 %v17453_v32  ;;  %v2109_v0 = vld [vmem:[%s25117_s4 + $0x16d0] sm:$0xff]  ;;  %v17485_v5 = vcombine.high %v2859_v48, %v2863_v62 }
 0x3ec   : > { %12420 = vmatprep.subr.bf16.mxu1 %v16705_v2  ;;  %v2113_v32 = vld [vmem:[%s25117_s4 + $0x16f0] sm:$0xff]  ;;  %v17476_v2 = vcombine.low %v2851_v35, %v2855_v36 }
 0x3ed   : > { %v16737_v8 = vcombine.high %v2109_v0, %v2113_v32  ;;  %v16736_v23 = vcombine.low %v2109_v0, %v2113_v32  ;;  %v2891_v32 = vld [vmem:[%s25117_s4 + $0x2f40] sm:$0xff] }
 0x3ee   : > { %11643 = vmatpush1.bf16.msra.mxu0 %v17452_v15  ;;  %v2871_v15 = vld [vmem:[%s25117_s4 + $0x2ea0] sm:$0xff] }
 0x3ef   : > { %12421 = vmatpush1.bf16.msra.mxu1 %v16704_v18  ;;  %11644 = vmatprep.subr.bf16.mxu0 %v17461_v46  ;;  %v2117_v18 = vld [vmem:[%s25117_s4 + $0x1710] sm:$0xff]  ;;  %v17493_v24 = vcombine.high %v2867_v13, %v2871_v15 }
 0x3f0   : > { %12422 = vmatprep.subr.bf16.mxu1 %v16713_v22  ;;  %v2121_v46 = vld [vmem:[%s25117_s4 + $0x1730] sm:$0xff]  ;;  %v17484_v22 = vcombine.low %v2859_v48, %v2863_v62 }
 0x3f1   : > { %v16745_v25 = vcombine.high %v2117_v18, %v2121_v46  ;;  %v16744_v35 = vcombine.low %v2117_v18, %v2121_v46  ;;  %v2899_v46 = vld [vmem:[%s25117_s4 + $0x2f80] sm:$0xff] }
 0x3f2   : > { %11645 = vmatpush1.bf16.msra.mxu0 %v17460_v27  ;;  %v2879_v27 = vld [vmem:[%s25117_s4 + $0x2ee0] sm:$0xff] }
 0x3f3   : > { %12423 = vmatpush1.bf16.msra.mxu1 %v16712_v29  ;;  %11646 = vmatprep.subr.bf16.mxu0 %v17469_v30  ;;  %v2125_v29 = vld [vmem:[%s25117_s4 + $0x1750] sm:$0xff]  ;;  %v17501_v36 = vcombine.high %v2875_v26, %v2879_v27 }
 0x3f4   : > { %12424 = vmatprep.subr.bf16.mxu1 %v16721_v33  ;;  %v2129_v30 = vld [vmem:[%s25117_s4 + $0x1770] sm:$0xff]  ;;  %v17492_v33 = vcombine.low %v2867_v13, %v2871_v15 }
 0x3f5   : > { %v16753_v38 = vcombine.high %v2125_v29, %v2129_v30  ;;  %v16752_v48 = vcombine.low %v2125_v29, %v2129_v30  ;;  %v2907_v30 = vld [vmem:[%s25117_s4 + $0x2fc0] sm:$0xff] }
 0x3f6   : > { %11647 = vmatpush1.bf16.msra.mxu0 %v17468_v58  ;;  %v2887_v58 = vld [vmem:[%s25117_s4 + $0x2f20] sm:$0xff] }
 0x3f7   : > { %12425 = vmatpush1.bf16.msra.mxu1 %v16720_v59  ;;  %11648 = vmatprep.subr.bf16.mxu0 %v17477_v47  ;;  %v2133_v59 = vld [vmem:[%s25117_s4 + $0x1790] sm:$0xff]  ;;  %v17509_v62 = vcombine.high %v2883_v57, %v2887_v58 }
 0x3f8   : > { %12426 = vmatprep.subr.bf16.mxu1 %v16729_v16  ;;  %v2137_v47 = vld [vmem:[%s25117_s4 + $0x17b0] sm:$0xff]  ;;  %v17500_v16 = vcombine.low %v2875_v26, %v2879_v27 }
 0x3f9   : > { %v16761_v0 = vcombine.high %v2133_v59, %v2137_v47  ;;  %v16760_v13 = vcombine.low %v2133_v59, %v2137_v47  ;;  %v1380_v47 = vld [vmem:[%s25117_s4 + $0x8] sm:$0xff] }
 0x3fa   : > { %11649 = vmatpush1.bf16.msra.mxu0 %v17476_v2  ;;  %v2895_v2 = vld [vmem:[%s25117_s4 + $0x2f60] sm:$0xff] }
 0x3fb   : > { %12427 = vmatpush1.bf16.msra.mxu1 %v16728_v4  ;;  %11650 = vmatprep.subr.bf16.mxu0 %v17485_v5  ;;  %v2141_v4 = vld [vmem:[%s25117_s4 + $0x17d0] sm:$0xff]  ;;  %v17517_v15 = vcombine.high %v2891_v32, %v2895_v2 }
 0x3fc   : > { %12428 = vmatprep.subr.bf16.mxu1 %v16737_v8  ;;  %v2145_v5 = vld [vmem:[%s25117_s4 + $0x17f0] sm:$0xff]  ;;  %v17508_v8 = vcombine.low %v2883_v57, %v2887_v58 }
 0x3fd   : > { %v16769_v18 = vcombine.high %v2141_v4, %v2145_v5  ;;  %v16768_v26 = vcombine.low %v2141_v4, %v2145_v5  ;;  %v1388_v5 = vld [vmem:[%s25117_s4 + $0x48] sm:$0xff] }
 0x3fe   : > { %11651 = vmatpush1.bf16.msra.mxu0 %v17484_v22  ;;  %v2903_v22 = vld [vmem:[%s25117_s4 + $0x2fa0] sm:$0xff] }
 0x3ff   : > { %12429 = vmatpush1.bf16.msra.mxu1 %v16736_v23  ;;  %11652 = vmatprep.subr.bf16.mxu0 %v17493_v24  ;;  %v2149_v23 = vld [vmem:[%s25117_s4 + $0x1810] sm:$0xff]  ;;  %v17525_v27 = vcombine.high %v2899_v46, %v2903_v22 }
 0x400   : > { %12430 = vmatprep.subr.bf16.mxu1 %v16745_v25  ;;  %v2153_v24 = vld [vmem:[%s25117_s4 + $0x1830] sm:$0xff]  ;;  %v17516_v25 = vcombine.low %v2891_v32, %v2895_v2 }
 0x401   : > { %v16777_v29 = vcombine.high %v2149_v23, %v2153_v24  ;;  %v16776_v57 = vcombine.low %v2149_v23, %v2153_v24  ;;  %v1396_v24 = vld [vmem:[%s25117_s4 + $0x88] sm:$0xff] }
 0x402   : > { %11653 = vmatpush1.bf16.msra.mxu0 %v17492_v33  ;;  %v2911_v33 = vld [vmem:[%s25117_s4 + $0x2fe0] sm:$0xff] }
 0x403   : > { %12431 = vmatpush1.bf16.msra.mxu1 %v16744_v35  ;;  %11654 = vmatprep.subr.bf16.mxu0 %v17501_v36  ;;  %v2157_v35 = vld [vmem:[%s25117_s4 + $0x1850] sm:$0xff]  ;;  %v17533_v58 = vcombine.high %v2907_v30, %v2911_v33 }
 0x404   : > { %12432 = vmatprep.subr.bf16.mxu1 %v16753_v38  ;;  %v2161_v36 = vld [vmem:[%s25117_s4 + $0x1870] sm:$0xff]  ;;  %v17524_v38 = vcombine.low %v2899_v46, %v2903_v22 }
 0x405   : > { %v16785_v59 = vcombine.high %v2157_v35, %v2161_v36  ;;  %v16784_v32 = vcombine.low %v2157_v35, %v2161_v36  ;;  %v1404_v36 = vld [vmem:[%s25117_s4 + $0xc8] sm:$0xff] }
 0x406   : > { %11655 = vmatpush1.bf16.msra.mxu0 %v17500_v16  ;;  %v1384_v16 = vld [vmem:[%s25117_s4 + $0x28] sm:$0xff] }
 0x407   : > { %12433 = vmatpush1.bf16.msra.mxu1 %v16752_v48  ;;  %11656 = vmatprep.subr.bf16.mxu0 %v17509_v62  ;;  %v2165_v48 = vld [vmem:[%s25117_s4 + $0x1890] sm:$0xff]  ;;  %v16007_v2 = vcombine.high %v1380_v47, %v1384_v16 }
 0x408   : > { %12434 = vmatprep.subr.bf16.mxu1 %v16761_v0  ;;  %v2169_v62 = vld [vmem:[%s25117_s4 + $0x18b0] sm:$0xff]  ;;  %v17532_v0 = vcombine.low %v2907_v30, %v2911_v33 }
 0x409   : > { %v16793_v4 = vcombine.high %v2165_v48, %v2169_v62  ;;  %v16792_v46 = vcombine.low %v2165_v48, %v2169_v62  ;;  %v1412_v62 = vld [vmem:[%s25117_s4 + $0x108] sm:$0xff] }
 0x40a   : > { %11657 = vmatpush1.bf16.msra.mxu0 %v17508_v8  ;;  %v1392_v8 = vld [vmem:[%s25117_s4 + $0x68] sm:$0xff] }
 0x40b   : > { %12435 = vmatpush1.bf16.msra.mxu1 %v16760_v13  ;;  %11658 = vmatprep.subr.bf16.mxu0 %v17517_v15  ;;  %v2173_v13 = vld [vmem:[%s25117_s4 + $0x18d0] sm:$0xff]  ;;  %v16015_v22 = vcombine.high %v1388_v5, %v1392_v8 }
 0x40c   : > { %12436 = vmatprep.subr.bf16.mxu1 %v16769_v18  ;;  %v2177_v15 = vld [vmem:[%s25117_s4 + $0x18f0] sm:$0xff]  ;;  %v16006_v18 = vcombine.low %v1380_v47, %v1384_v16 }
 0x40d   : > { %v16801_v23 = vcombine.high %v2173_v13, %v2177_v15  ;;  %v16800_v30 = vcombine.low %v2173_v13, %v2177_v15  ;;  %v1420_v15 = vld [vmem:[%s25117_s4 + $0x148] sm:$0xff] }
 0x40e   : > { %11659 = vmatpush1.bf16.msra.mxu0 %v17516_v25  ;;  %v1400_v25 = vld [vmem:[%s25117_s4 + $0xa8] sm:$0xff] }
 0x40f   : > { %12437 = vmatpush1.bf16.msra.mxu1 %v16768_v26  ;;  %11660 = vmatprep.subr.bf16.mxu0 %v17525_v27  ;;  %v2181_v26 = vld [vmem:[%s25117_s4 + $0x1910] sm:$0xff]  ;;  %v16023_v33 = vcombine.high %v1396_v24, %v1400_v25 }
 0x410   : > { %12449 = vmatprep.subr.bf16.mxu1 %v16777_v29  ;;  %v2185_v27 = vld [vmem:[%s25117_s4 + $0x1930] sm:$0xff]  ;;  %v16014_v29 = vcombine.low %v1388_v5, %v1392_v8 }
 0x411   : > { %v16809_v35 = vcombine.high %v2181_v26, %v2185_v27  ;;  %v16808_v47 = vcombine.low %v2181_v26, %v2185_v27  ;;  %v1428_v27 = vld [vmem:[%s25117_s4 + $0x188] sm:$0xff] }
 0x412   : > { %12439 = vmatmul.mubr.bf16.vlgmr.msra.gmra.mrb[4].mxu1 %v19574_v9  ;;  %11661 = vmatpush1.bf16.msra.mxu0 %v17524_v38  ;;  %v1408_v38 = vld [vmem:[%s25117_s4 + $0xe8] sm:$0xff] }
 0x413   : > { %12450 = vmatpush1.bf16.msra.mxu1 %v16776_v57  ;;  %12481 = vmatprep.mubr.bf16.mxu1 %v19596_v52  ;;  %v2189_v57 = vld [vmem:[%s25117_s4 + $0x1950] sm:$0xff]  ;;  %v16031_v16 = vcombine.high %v1404_v36, %v1408_v38 }
 0x414   : > { %11662 = vmatprep.subr.bf16.mxu0 %v17533_v58  ;;  %12451 = vmatprep.subr.bf16.mxu1 %v16785_v59  ;;  %v2193_v58 = vld [vmem:[%s25117_s4 + $0x1970] sm:$0xff]  ;;  %v16022_v59 = vcombine.low %v1396_v24, %v1400_v25 }
 0x415   : > { %v16817_v48 = vcombine.high %v2189_v57, %v2193_v58  ;;  %v16816_v5 = vcombine.low %v2189_v57, %v2193_v58  ;;  %v1436_v58 = vld [vmem:[%s25117_s4 + $0x1c8] sm:$0xff] }
 0x416   : > { %11663 = vmatpush1.bf16.msra.mxu0 %v17532_v0  ;;  %v1416_v0 = vld [vmem:[%s25117_s4 + $0x128] sm:$0xff] }
 0x417   : > { %12452 = vmatpush1.bf16.msra.mxu1 %v16784_v32  ;;  %11675 = vmatprep.subr.bf16.mxu0 %v16007_v2  ;;  %v2197_v32 = vld [vmem:[%s25117_s4 + $0x1990] sm:$0xff]  ;;  %v16039_v8 = vcombine.high %v1412_v62, %v1416_v0 }
 0x418   : > { %12453 = vmatprep.subr.bf16.mxu1 %v16793_v4  ;;  %v2201_v2 = vld [vmem:[%s25117_s4 + $0x19b0] sm:$0xff]  ;;  %v16030_v4 = vcombine.low %v1404_v36, %v1408_v38 }
 0x419   : > { %11665 = vmatmul.mubr.bf16.vlgmr.msra.gmra.mrb[48].mxu0 %v20036_v31  ;;  %v16825_v13 = vcombine.high %v2197_v32, %v2201_v2  ;;  %v16824_v24 = vcombine.low %v2197_v32, %v2201_v2  ;;  %v1444_v2 = vld [vmem:[%s25117_s4 + $0x208] sm:$0xff] }
 0x41a   : > { %11676 = vmatpush1.bf16.msra.mxu0 %v16006_v18  ;;  %11707 = vmatprep.mubr.bf16.mxu0 %v19462_v61  ;;  %v1424_v18 = vld [vmem:[%s25117_s4 + $0x168] sm:$0xff] }
 0x41b   : > { %12454 = vmatpush1.bf16.msra.mxu1 %v16792_v46  ;;  %11677 = vmatprep.subr.bf16.mxu0 %v16015_v22  ;;  %v2205_v46 = vld [vmem:[%s25117_s4 + $0x19d0] sm:$0xff]  ;;  %v16047_v25 = vcombine.high %v1420_v15, %v1424_v18 }
 0x41c   : > { %12455 = vmatprep.subr.bf16.mxu1 %v16801_v23  ;;  %v2209_v22 = vld [vmem:[%s25117_s4 + $0x19f0] sm:$0xff]  ;;  %v16038_v23 = vcombine.low %v1412_v62, %v1416_v0 }
 0x41d   : > { %v16833_v26 = vcombine.high %v2205_v46, %v2209_v22  ;;  %v16832_v36 = vcombine.low %v2205_v46, %v2209_v22  ;;  %v1452_v22 = vld [vmem:[%s25117_s4 + $0x248] sm:$0xff] }
 0x41e   : > { %11678 = vmatpush1.bf16.msra.mxu0 %v16014_v29  ;;  %v1432_v29 = vld [vmem:[%s25117_s4 + $0x1a8] sm:$0xff] }
 0x41f   : > { %12456 = vmatpush1.bf16.msra.mxu1 %v16800_v30  ;;  %11679 = vmatprep.subr.bf16.mxu0 %v16023_v33  ;;  %v2213_v30 = vld [vmem:[%s25117_s4 + $0x1a10] sm:$0xff]  ;;  %v16055_v38 = vcombine.high %v1428_v27, %v1432_v29 }
 0x420   : > { %12457 = vmatprep.subr.bf16.mxu1 %v16809_v35  ;;  %v2217_v33 = vld [vmem:[%s25117_s4 + $0x1a30] sm:$0xff]  ;;  %v16046_v35 = vcombine.low %v1420_v15, %v1424_v18 }
 0x421   : > { %v16841_v57 = vcombine.high %v2213_v30, %v2217_v33  ;;  %v16840_v62 = vcombine.low %v2213_v30, %v2217_v33  ;;  %v1460_v33 = vld [vmem:[%s25117_s4 + $0x288] sm:$0xff] }
 0x422   : > { %11680 = vmatpush1.bf16.msra.mxu0 %v16022_v59  ;;  %v1440_v59 = vld [vmem:[%s25117_s4 + $0x1e8] sm:$0xff] }
 0x423   : > { %12458 = vmatpush1.bf16.msra.mxu1 %v16808_v47  ;;  %11681 = vmatprep.subr.bf16.mxu0 %v16031_v16  ;;  %v2221_v47 = vld [vmem:[%s25117_s4 + $0x1a50] sm:$0xff]  ;;  %v16063_v0 = vcombine.high %v1436_v58, %v1440_v59 }
 0x424   : > { %12459 = vmatprep.subr.bf16.mxu1 %v16817_v48  ;;  %v2225_v16 = vld [vmem:[%s25117_s4 + $0x1a70] sm:$0xff]  ;;  %v16054_v48 = vcombine.low %v1428_v27, %v1432_v29 }
 0x425   : > { %v16849_v32 = vcombine.high %v2221_v47, %v2225_v16  ;;  %v16848_v15 = vcombine.low %v2221_v47, %v2225_v16  ;;  %v1468_v16 = vld [vmem:[%s25117_s4 + $0x2c8] sm:$0xff] }
 0x426   : > { %11682 = vmatpush1.bf16.msra.mxu0 %v16030_v4  ;;  %v1448_v4 = vld [vmem:[%s25117_s4 + $0x228] sm:$0xff] }
 0x427   : > { %12460 = vmatpush1.bf16.msra.mxu1 %v16816_v5  ;;  %11683 = vmatprep.subr.bf16.mxu0 %v16039_v8  ;;  %v2229_v5 = vld [vmem:[%s25117_s4 + $0x1a90] sm:$0xff]  ;;  %v16071_v18 = vcombine.high %v1444_v2, %v1448_v4 }
 0x428   : > { %12461 = vmatprep.subr.bf16.mxu1 %v16825_v13  ;;  %v2233_v8 = vld [vmem:[%s25117_s4 + $0x1ab0] sm:$0xff]  ;;  %v16062_v13 = vcombine.low %v1436_v58, %v1440_v59 }
 0x429   : > { %v16857_v46 = vcombine.high %v2229_v5, %v2233_v8  ;;  %v16856_v27 = vcombine.low %v2229_v5, %v2233_v8  ;;  %v1476_v8 = vld [vmem:[%s25117_s4 + $0x308] sm:$0xff] }
 0x42a   : > { %11684 = vmatpush1.bf16.msra.mxu0 %v16038_v23  ;;  %v1456_v23 = vld [vmem:[%s25117_s4 + $0x268] sm:$0xff] }
 0x42b   : > { %12462 = vmatpush1.bf16.msra.mxu1 %v16824_v24  ;;  %11685 = vmatprep.subr.bf16.mxu0 %v16047_v25  ;;  %v2237_v24 = vld [vmem:[%s25117_s4 + $0x1ad0] sm:$0xff]  ;;  %v16079_v29 = vcombine.high %v1452_v22, %v1456_v23 }
 0x42c   : > { %12463 = vmatprep.subr.bf16.mxu1 %v16833_v26  ;;  %v2241_v25 = vld [vmem:[%s25117_s4 + $0x1af0] sm:$0xff]  ;;  %v16070_v26 = vcombine.low %v1444_v2, %v1448_v4 }
 0x42d   : > { %v16865_v30 = vcombine.high %v2237_v24, %v2241_v25  ;;  %v16864_v58 = vcombine.low %v2237_v24, %v2241_v25  ;;  %v1484_v25 = vld [vmem:[%s25117_s4 + $0x348] sm:$0xff] }
 0x42e   : > { %11686 = vmatpush1.bf16.msra.mxu0 %v16046_v35  ;;  %v1464_v35 = vld [vmem:[%s25117_s4 + $0x2a8] sm:$0xff] }
 0x42f   : > { %12464 = vmatpush1.bf16.msra.mxu1 %v16832_v36  ;;  %11687 = vmatprep.subr.bf16.mxu0 %v16055_v38  ;;  %v2245_v36 = vld [vmem:[%s25117_s4 + $0x1b10] sm:$0xff]  ;;  %v16087_v59 = vcombine.high %v1460_v33, %v1464_v35 }
 0x430   : > { %12465 = vmatprep.subr.bf16.mxu1 %v16841_v57  ;;  %v2249_v38 = vld [vmem:[%s25117_s4 + $0x1b30] sm:$0xff]  ;;  %v16078_v57 = vcombine.low %v1452_v22, %v1456_v23 }
 0x431   : > { %v16873_v47 = vcombine.high %v2245_v36, %v2249_v38  ;;  %v16872_v2 = vcombine.low %v2245_v36, %v2249_v38  ;;  %v1492_v38 = vld [vmem:[%s25117_s4 + $0x388] sm:$0xff] }
 0x432   : > { %11688 = vmatpush1.bf16.msra.mxu0 %v16054_v48  ;;  %v1472_v48 = vld [vmem:[%s25117_s4 + $0x2e8] sm:$0xff] }
 0x433   : > { %12466 = vmatpush1.bf16.msra.mxu1 %v16840_v62  ;;  %11689 = vmatprep.subr.bf16.mxu0 %v16063_v0  ;;  %v2253_v62 = vld [vmem:[%s25117_s4 + $0x1b50] sm:$0xff]  ;;  %v16095_v4 = vcombine.high %v1468_v16, %v1472_v48 }
 0x434   : > { %12467 = vmatprep.subr.bf16.mxu1 %v16849_v32  ;;  %v2257_v0 = vld [vmem:[%s25117_s4 + $0x1b70] sm:$0xff]  ;;  %v16086_v32 = vcombine.low %v1460_v33, %v1464_v35 }
 0x435   : > { %v16881_v5 = vcombine.high %v2253_v62, %v2257_v0  ;;  %v16880_v22 = vcombine.low %v2253_v62, %v2257_v0  ;;  %v1500_v0 = vld [vmem:[%s25117_s4 + $0x3c8] sm:$0xff] }
 0x436   : > { %11690 = vmatpush1.bf16.msra.mxu0 %v16062_v13  ;;  %v1480_v13 = vld [vmem:[%s25117_s4 + $0x328] sm:$0xff] }
 0x437   : > { %12468 = vmatpush1.bf16.msra.mxu1 %v16848_v15  ;;  %11691 = vmatprep.subr.bf16.mxu0 %v16071_v18  ;;  %v2261_v15 = vld [vmem:[%s25117_s4 + $0x1b90] sm:$0xff]  ;;  %v16103_v23 = vcombine.high %v1476_v8, %v1480_v13 }
 0x438   : > { %12469 = vmatprep.subr.bf16.mxu1 %v16857_v46  ;;  %v2265_v18 = vld [vmem:[%s25117_s4 + $0x1bb0] sm:$0xff]  ;;  %v16094_v46 = vcombine.low %v1468_v16, %v1472_v48 }
 0x439   : > { %v16889_v24 = vcombine.high %v2261_v15, %v2265_v18  ;;  %v16888_v33 = vcombine.low %v2261_v15, %v2265_v18  ;;  %v1508_v18 = vld [vmem:[%s25117_s4 + $0x408] sm:$0xff] }
 0x43a   : > { %11692 = vmatpush1.bf16.msra.mxu0 %v16070_v26  ;;  %v1488_v26 = vld [vmem:[%s25117_s4 + $0x368] sm:$0xff] }
 0x43b   : > { %12470 = vmatpush1.bf16.msra.mxu1 %v16856_v27  ;;  %11693 = vmatprep.subr.bf16.mxu0 %v16079_v29  ;;  %v2269_v27 = vld [vmem:[%s25117_s4 + $0x1bd0] sm:$0xff]  ;;  %v16111_v35 = vcombine.high %v1484_v25, %v1488_v26 }
 0x43c   : > { %12471 = vmatprep.subr.bf16.mxu1 %v16865_v30  ;;  %v2273_v29 = vld [vmem:[%s25117_s4 + $0x1bf0] sm:$0xff]  ;;  %v16102_v30 = vcombine.low %v1476_v8, %v1480_v13 }
 0x43d   : > { %v16897_v36 = vcombine.high %v2269_v27, %v2273_v29  ;;  %v16896_v16 = vcombine.low %v2269_v27, %v2273_v29  ;;  %v1516_v29 = vld [vmem:[%s25117_s4 + $0x448] sm:$0xff] }
 0x43e   : > { %11694 = vmatpush1.bf16.msra.mxu0 %v16078_v57  ;;  %v1496_v57 = vld [vmem:[%s25117_s4 + $0x3a8] sm:$0xff] }
 0x43f   : > { %12472 = vmatpush1.bf16.msra.mxu1 %v16864_v58  ;;  %11695 = vmatprep.subr.bf16.mxu0 %v16087_v59  ;;  %v2277_v58 = vld [vmem:[%s25117_s4 + $0x1c10] sm:$0xff]  ;;  %v16119_v48 = vcombine.high %v1492_v38, %v1496_v57 }
 0x440   : > { %12473 = vmatprep.subr.bf16.mxu1 %v16873_v47  ;;  %v2281_v59 = vld [vmem:[%s25117_s4 + $0x1c30] sm:$0xff]  ;;  %v16110_v47 = vcombine.low %v1484_v25, %v1488_v26 }
 0x441   : > { %v16905_v62 = vcombine.high %v2277_v58, %v2281_v59  ;;  %v16904_v8 = vcombine.low %v2277_v58, %v2281_v59  ;;  %v1524_v59 = vld [vmem:[%s25117_s4 + $0x488] sm:$0xff] }
 0x442   : > { %11696 = vmatpush1.bf16.msra.mxu0 %v16086_v32  ;;  %v1504_v32 = vld [vmem:[%s25117_s4 + $0x3e8] sm:$0xff] }
 0x443   : > { %12474 = vmatpush1.bf16.msra.mxu1 %v16872_v2  ;;  %11697 = vmatprep.subr.bf16.mxu0 %v16095_v4  ;;  %v2285_v2 = vld [vmem:[%s25117_s4 + $0x1c50] sm:$0xff]  ;;  %v16127_v13 = vcombine.high %v1500_v0, %v1504_v32 }
 0x444   : > { %12475 = vmatprep.subr.bf16.mxu1 %v16881_v5  ;;  %v2289_v4 = vld [vmem:[%s25117_s4 + $0x1c70] sm:$0xff]  ;;  %v16118_v5 = vcombine.low %v1492_v38, %v1496_v57 }
 0x445   : > { %v16913_v15 = vcombine.high %v2285_v2, %v2289_v4  ;;  %v16912_v25 = vcombine.low %v2285_v2, %v2289_v4  ;;  %v1532_v4 = vld [vmem:[%s25117_s4 + $0x4c8] sm:$0xff] }
 0x446   : > { %11698 = vmatpush1.bf16.msra.mxu0 %v16094_v46  ;;  %v1512_v46 = vld [vmem:[%s25117_s4 + $0x428] sm:$0xff] }
 0x447   : > { %12476 = vmatpush1.bf16.msra.mxu1 %v16880_v22  ;;  %11699 = vmatprep.subr.bf16.mxu0 %v16103_v23  ;;  %v2293_v22 = vld [vmem:[%s25117_s4 + $0x1c90] sm:$0xff]  ;;  %v16135_v26 = vcombine.high %v1508_v18, %v1512_v46 }
 0x448   : > { %12477 = vmatprep.subr.bf16.mxu1 %v16889_v24  ;;  %v2297_v23 = vld [vmem:[%s25117_s4 + $0x1cb0] sm:$0xff]  ;;  %v16126_v24 = vcombine.low %v1500_v0, %v1504_v32 }
 0x449   : > { %v16921_v27 = vcombine.high %v2293_v22, %v2297_v23  ;;  %v16920_v38 = vcombine.low %v2293_v22, %v2297_v23  ;;  %v1540_v23 = vld [vmem:[%s25117_s4 + $0x508] sm:$0xff] }
 0x44a   : > { %11700 = vmatpush1.bf16.msra.mxu0 %v16102_v30  ;;  %v1520_v30 = vld [vmem:[%s25117_s4 + $0x468] sm:$0xff] }
 0x44b   : > { %12478 = vmatpush1.bf16.msra.mxu1 %v16888_v33  ;;  %11701 = vmatprep.subr.bf16.mxu0 %v16111_v35  ;;  %v2301_v33 = vld [vmem:[%s25117_s4 + $0x1cd0] sm:$0xff]  ;;  %v16143_v57 = vcombine.high %v1516_v29, %v1520_v30 }
 0x44c   : > { %12479 = vmatprep.subr.bf16.mxu1 %v16897_v36  ;;  %v2305_v35 = vld [vmem:[%s25117_s4 + $0x1cf0] sm:$0xff]  ;;  %v16134_v36 = vcombine.low %v1508_v18, %v1512_v46 }
 0x44d   : > { %v16929_v58 = vcombine.high %v2301_v33, %v2305_v35  ;;  %v16928_v0 = vcombine.low %v2301_v33, %v2305_v35  ;;  %v1548_v35 = vld [vmem:[%s25117_s4 + $0x548] sm:$0xff] }
 0x44e   : > { %11702 = vmatpush1.bf16.msra.mxu0 %v16110_v47  ;;  %v1528_v47 = vld [vmem:[%s25117_s4 + $0x4a8] sm:$0xff] }
 0x44f   : > { %12480 = vmatpush1.bf16.msra.mxu1 %v16896_v16  ;;  %11703 = vmatprep.subr.bf16.mxu0 %v16119_v48  ;;  %v2309_v16 = vld [vmem:[%s25117_s4 + $0x1d10] sm:$0xff]  ;;  %v16151_v32 = vcombine.high %v1524_v59, %v1528_v47 }
 0x450   : > { %12492 = vmatprep.subr.bf16.mxu1 %v16905_v62  ;;  %v2313_v48 = vld [vmem:[%s25117_s4 + $0x1d30] sm:$0xff]  ;;  %v16142_v62 = vcombine.low %v1516_v29, %v1520_v30 }
 0x451   : > { %v16937_v2 = vcombine.high %v2309_v16, %v2313_v48  ;;  %v16936_v18 = vcombine.low %v2309_v16, %v2313_v48  ;;  %v1556_v48 = vld [vmem:[%s25117_s4 + $0x588] sm:$0xff] }
 0x452   : > { %12482 = vmatmul.mubr.bf16.vlgmr.msra.gmra.mrb[4].mxu1 %v19594_v51  ;;  %11704 = vmatpush1.bf16.msra.mxu0 %v16118_v5  ;;  %v1536_v5 = vld [vmem:[%s25117_s4 + $0x4e8] sm:$0xff] }
 0x453   : > { %12493 = vmatpush1.bf16.msra.mxu1 %v16904_v8  ;;  %12524 = vmatprep.mubr.bf16.mxu1 %v19622_v44  ;;  %v2317_v8 = vld [vmem:[%s25117_s4 + $0x1d50] sm:$0xff]  ;;  %v16159_v46 = vcombine.high %v1532_v4, %v1536_v5 }
 0x454   : > { %11705 = vmatprep.subr.bf16.mxu0 %v16127_v13  ;;  %12494 = vmatprep.subr.bf16.mxu1 %v16913_v15  ;;  %v2321_v13 = vld [vmem:[%s25117_s4 + $0x1d70] sm:$0xff]  ;;  %v16150_v15 = vcombine.low %v1524_v59, %v1528_v47 }
 0x455   : > { %v16945_v22 = vcombine.high %v2317_v8, %v2321_v13  ;;  %v16944_v29 = vcombine.low %v2317_v8, %v2321_v13  ;;  %v1564_v13 = vld [vmem:[%s25117_s4 + $0x5c8] sm:$0xff] }
 0x456   : > { %11706 = vmatpush1.bf16.msra.mxu0 %v16126_v24  ;;  %v1544_v24 = vld [vmem:[%s25117_s4 + $0x528] sm:$0xff] }
 0x457   : > { %12495 = vmatpush1.bf16.msra.mxu1 %v16912_v25  ;;  %11718 = vmatprep.subr.bf16.mxu0 %v16135_v26  ;;  %v2325_v25 = vld [vmem:[%s25117_s4 + $0x1d90] sm:$0xff]  ;;  %v16167_v30 = vcombine.high %v1540_v23, %v1544_v24 }
 0x458   : > { %12496 = vmatprep.subr.bf16.mxu1 %v16921_v27  ;;  %v2329_v26 = vld [vmem:[%s25117_s4 + $0x1db0] sm:$0xff]  ;;  %v16158_v27 = vcombine.low %v1532_v4, %v1536_v5 }
 0x459   : > { %11708 = vmatmul.mubr.bf16.vlgmr.msra.gmra.mrb[52].mxu0 %v19460_v20  ;;  %v16953_v33 = vcombine.high %v2325_v25, %v2329_v26  ;;  %v16952_v59 = vcombine.low %v2325_v25, %v2329_v26  ;;  %v1572_v26 = vld [vmem:[%s25117_s4 + $0x608] sm:$0xff] }
 0x45a   : > { %11719 = vmatpush1.bf16.msra.mxu0 %v16134_v36  ;;  %11750 = vmatprep.mubr.bf16.mxu0 %v19487_v21  ;;  %v1552_v36 = vld [vmem:[%s25117_s4 + $0x568] sm:$0xff] }
 0x45b   : > { %12497 = vmatpush1.bf16.msra.mxu1 %v16920_v38  ;;  %11720 = vmatprep.subr.bf16.mxu0 %v16143_v57  ;;  %v2333_v38 = vld [vmem:[%s25117_s4 + $0x1dd0] sm:$0xff]  ;;  %v16175_v47 = vcombine.high %v1548_v35, %v1552_v36 }
 0x45c   : > { %12498 = vmatprep.subr.bf16.mxu1 %v16929_v58  ;;  %v2337_v57 = vld [vmem:[%s25117_s4 + $0x1df0] sm:$0xff]  ;;  %v16166_v58 = vcombine.low %v1540_v23, %v1544_v24 }
 0x45d   : > { %v16961_v16 = vcombine.high %v2333_v38, %v2337_v57  ;;  %v16960_v4 = vcombine.low %v2333_v38, %v2337_v57  ;;  %v1580_v57 = vld [vmem:[%s25117_s4 + $0x648] sm:$0xff] }
 0x45e   : > { %11721 = vmatpush1.bf16.msra.mxu0 %v16142_v62  ;;  %v1560_v62 = vld [vmem:[%s25117_s4 + $0x5a8] sm:$0xff] }
 0x45f   : > { %12499 = vmatpush1.bf16.msra.mxu1 %v16928_v0  ;;  %11722 = vmatprep.subr.bf16.mxu0 %v16151_v32  ;;  %v2341_v0 = vld [vmem:[%s25117_s4 + $0x1e10] sm:$0xff]  ;;  %v16183_v5 = vcombine.high %v1556_v48, %v1560_v62 }
 0x460   : > { %12500 = vmatprep.subr.bf16.mxu1 %v16937_v2  ;;  %v2345_v32 = vld [vmem:[%s25117_s4 + $0x1e30] sm:$0xff]  ;;  %v16174_v2 = vcombine.low %v1548_v35, %v1552_v36 }
 0x461   : > { %v16969_v8 = vcombine.high %v2341_v0, %v2345_v32  ;;  %v16968_v23 = vcombine.low %v2341_v0, %v2345_v32  ;;  %v1588_v32 = vld [vmem:[%s25117_s4 + $0x688] sm:$0xff] }
 0x462   : > { %11723 = vmatpush1.bf16.msra.mxu0 %v16150_v15  ;;  %v1568_v15 = vld [vmem:[%s25117_s4 + $0x5e8] sm:$0xff] }
 0x463   : > { %12501 = vmatpush1.bf16.msra.mxu1 %v16936_v18  ;;  %11724 = vmatprep.subr.bf16.mxu0 %v16159_v46  ;;  %v2349_v18 = vld [vmem:[%s25117_s4 + $0x1e50] sm:$0xff]  ;;  %v16191_v24 = vcombine.high %v1564_v13, %v1568_v15 }
 0x464   : > { %12502 = vmatprep.subr.bf16.mxu1 %v16945_v22  ;;  %v2353_v46 = vld [vmem:[%s25117_s4 + $0x1e70] sm:$0xff]  ;;  %v16182_v22 = vcombine.low %v1556_v48, %v1560_v62 }
 0x465   : > { %v16977_v25 = vcombine.high %v2349_v18, %v2353_v46  ;;  %v16976_v35 = vcombine.low %v2349_v18, %v2353_v46  ;;  %v1596_v46 = vld [vmem:[%s25117_s4 + $0x6c8] sm:$0xff] }
 0x466   : > { %11725 = vmatpush1.bf16.msra.mxu0 %v16158_v27  ;;  %v1576_v27 = vld [vmem:[%s25117_s4 + $0x628] sm:$0xff] }
 0x467   : > { %12503 = vmatpush1.bf16.msra.mxu1 %v16944_v29  ;;  %11726 = vmatprep.subr.bf16.mxu0 %v16167_v30  ;;  %v2357_v29 = vld [vmem:[%s25117_s4 + $0x1e90] sm:$0xff]  ;;  %v16199_v36 = vcombine.high %v1572_v26, %v1576_v27 }
 0x468   : > { %12504 = vmatprep.subr.bf16.mxu1 %v16953_v33  ;;  %v2361_v30 = vld [vmem:[%s25117_s4 + $0x1eb0] sm:$0xff]  ;;  %v16190_v33 = vcombine.low %v1564_v13, %v1568_v15 }
 0x469   : > { %v16985_v38 = vcombine.high %v2357_v29, %v2361_v30  ;;  %v16984_v48 = vcombine.low %v2357_v29, %v2361_v30  ;;  %v1604_v30 = vld [vmem:[%s25117_s4 + $0x708] sm:$0xff] }
 0x46a   : > { %11727 = vmatpush1.bf16.msra.mxu0 %v16166_v58  ;;  %v1584_v58 = vld [vmem:[%s25117_s4 + $0x668] sm:$0xff] }
 0x46b   : > { %12505 = vmatpush1.bf16.msra.mxu1 %v16952_v59  ;;  %11728 = vmatprep.subr.bf16.mxu0 %v16175_v47  ;;  %v2365_v59 = vld [vmem:[%s25117_s4 + $0x1ed0] sm:$0xff]  ;;  %v16207_v62 = vcombine.high %v1580_v57, %v1584_v58 }
 0x46c   : > { %12506 = vmatprep.subr.bf16.mxu1 %v16961_v16  ;;  %v2369_v47 = vld [vmem:[%s25117_s4 + $0x1ef0] sm:$0xff]  ;;  %v16198_v16 = vcombine.low %v1572_v26, %v1576_v27 }
 0x46d   : > { %v16993_v0 = vcombine.high %v2365_v59, %v2369_v47  ;;  %v16992_v13 = vcombine.low %v2365_v59, %v2369_v47  ;;  %v1612_v47 = vld [vmem:[%s25117_s4 + $0x748] sm:$0xff] }
 0x46e   : > { %11729 = vmatpush1.bf16.msra.mxu0 %v16174_v2  ;;  %v1592_v2 = vld [vmem:[%s25117_s4 + $0x6a8] sm:$0xff] }
 0x46f   : > { %12507 = vmatpush1.bf16.msra.mxu1 %v16960_v4  ;;  %11730 = vmatprep.subr.bf16.mxu0 %v16183_v5  ;;  %v2373_v4 = vld [vmem:[%s25117_s4 + $0x1f10] sm:$0xff]  ;;  %v16215_v15 = vcombine.high %v1588_v32, %v1592_v2 }
 0x470   : > { %12508 = vmatprep.subr.bf16.mxu1 %v16969_v8  ;;  %v2377_v5 = vld [vmem:[%s25117_s4 + $0x1f30] sm:$0xff]  ;;  %v16206_v8 = vcombine.low %v1580_v57, %v1584_v58 }
 0x471   : > { %v17001_v18 = vcombine.high %v2373_v4, %v2377_v5  ;;  %v17000_v26 = vcombine.low %v2373_v4, %v2377_v5  ;;  %v1620_v5 = vld [vmem:[%s25117_s4 + $0x788] sm:$0xff] }
 0x472   : > { %11731 = vmatpush1.bf16.msra.mxu0 %v16182_v22  ;;  %v1600_v22 = vld [vmem:[%s25117_s4 + $0x6e8] sm:$0xff] }
 0x473   : > { %12509 = vmatpush1.bf16.msra.mxu1 %v16968_v23  ;;  %11732 = vmatprep.subr.bf16.mxu0 %v16191_v24  ;;  %v2381_v23 = vld [vmem:[%s25117_s4 + $0x1f50] sm:$0xff]  ;;  %v16223_v27 = vcombine.high %v1596_v46, %v1600_v22 }
 0x474   : > { %12510 = vmatprep.subr.bf16.mxu1 %v16977_v25  ;;  %v2385_v24 = vld [vmem:[%s25117_s4 + $0x1f70] sm:$0xff]  ;;  %v16214_v25 = vcombine.low %v1588_v32, %v1592_v2 }
 0x475   : > { %v17009_v29 = vcombine.high %v2381_v23, %v2385_v24  ;;  %v17008_v57 = vcombine.low %v2381_v23, %v2385_v24  ;;  %v1628_v24 = vld [vmem:[%s25117_s4 + $0x7c8] sm:$0xff] }
 0x476   : > { %11733 = vmatpush1.bf16.msra.mxu0 %v16190_v33  ;;  %v1608_v33 = vld [vmem:[%s25117_s4 + $0x728] sm:$0xff] }
 0x477   : > { %12511 = vmatpush1.bf16.msra.mxu1 %v16976_v35  ;;  %11734 = vmatprep.subr.bf16.mxu0 %v16199_v36  ;;  %v2389_v35 = vld [vmem:[%s25117_s4 + $0x1f90] sm:$0xff]  ;;  %v16231_v58 = vcombine.high %v1604_v30, %v1608_v33 }
 0x478   : > { %12512 = vmatprep.subr.bf16.mxu1 %v16985_v38  ;;  %v2393_v36 = vld [vmem:[%s25117_s4 + $0x1fb0] sm:$0xff]  ;;  %v16222_v38 = vcombine.low %v1596_v46, %v1600_v22 }
 0x479   : > { %v17017_v59 = vcombine.high %v2389_v35, %v2393_v36  ;;  %v17016_v32 = vcombine.low %v2389_v35, %v2393_v36  ;;  %v1636_v36 = vld [vmem:[%s25117_s4 + $0x808] sm:$0xff] }
 0x47a   : > { %11735 = vmatpush1.bf16.msra.mxu0 %v16198_v16  ;;  %v1616_v16 = vld [vmem:[%s25117_s4 + $0x768] sm:$0xff] }
 0x47b   : > { %12513 = vmatpush1.bf16.msra.mxu1 %v16984_v48  ;;  %11736 = vmatprep.subr.bf16.mxu0 %v16207_v62  ;;  %v2397_v48 = vld [vmem:[%s25117_s4 + $0x1fd0] sm:$0xff]  ;;  %v16239_v2 = vcombine.high %v1612_v47, %v1616_v16 }
 0x47c   : > { %12514 = vmatprep.subr.bf16.mxu1 %v16993_v0  ;;  %v2401_v62 = vld [vmem:[%s25117_s4 + $0x1ff0] sm:$0xff]  ;;  %v16230_v0 = vcombine.low %v1604_v30, %v1608_v33 }
 0x47d   : > { %v17025_v4 = vcombine.high %v2397_v48, %v2401_v62  ;;  %v17024_v46 = vcombine.low %v2397_v48, %v2401_v62  ;;  %v1644_v62 = vld [vmem:[%s25117_s4 + $0x848] sm:$0xff] }
 0x47e   : > { %11737 = vmatpush1.bf16.msra.mxu0 %v16206_v8  ;;  %v1624_v8 = vld [vmem:[%s25117_s4 + $0x7a8] sm:$0xff] }
 0x47f   : > { %12515 = vmatpush1.bf16.msra.mxu1 %v16992_v13  ;;  %11738 = vmatprep.subr.bf16.mxu0 %v16215_v15  ;;  %v2405_v13 = vld [vmem:[%s25117_s4 + $0x2010] sm:$0xff]  ;;  %v16247_v22 = vcombine.high %v1620_v5, %v1624_v8 }
 0x480   : > { %12516 = vmatprep.subr.bf16.mxu1 %v17001_v18  ;;  %v2409_v15 = vld [vmem:[%s25117_s4 + $0x2030] sm:$0xff]  ;;  %v16238_v18 = vcombine.low %v1612_v47, %v1616_v16 }
 0x481   : > { %v17033_v23 = vcombine.high %v2405_v13, %v2409_v15  ;;  %v17032_v30 = vcombine.low %v2405_v13, %v2409_v15  ;;  %v1652_v15 = vld [vmem:[%s25117_s4 + $0x888] sm:$0xff] }
 0x482   : > { %11739 = vmatpush1.bf16.msra.mxu0 %v16214_v25  ;;  %v1632_v25 = vld [vmem:[%s25117_s4 + $0x7e8] sm:$0xff] }
 0x483   : > { %12517 = vmatpush1.bf16.msra.mxu1 %v17000_v26  ;;  %11740 = vmatprep.subr.bf16.mxu0 %v16223_v27  ;;  %v2413_v26 = vld [vmem:[%s25117_s4 + $0x2050] sm:$0xff]  ;;  %v16255_v33 = vcombine.high %v1628_v24, %v1632_v25 }
 0x484   : > { %12518 = vmatprep.subr.bf16.mxu1 %v17009_v29  ;;  %v2417_v27 = vld [vmem:[%s25117_s4 + $0x2070] sm:$0xff]  ;;  %v16246_v29 = vcombine.low %v1620_v5, %v1624_v8 }
 0x485   : > { %v17041_v35 = vcombine.high %v2413_v26, %v2417_v27  ;;  %v17040_v47 = vcombine.low %v2413_v26, %v2417_v27  ;;  %v1660_v27 = vld [vmem:[%s25117_s4 + $0x8c8] sm:$0xff] }
 0x486   : > { %11741 = vmatpush1.bf16.msra.mxu0 %v16222_v38  ;;  %v1640_v38 = vld [vmem:[%s25117_s4 + $0x828] sm:$0xff] }
 0x487   : > { %12519 = vmatpush1.bf16.msra.mxu1 %v17008_v57  ;;  %11742 = vmatprep.subr.bf16.mxu0 %v16231_v58  ;;  %v2421_v57 = vld [vmem:[%s25117_s4 + $0x2090] sm:$0xff]  ;;  %v16263_v16 = vcombine.high %v1636_v36, %v1640_v38 }
 0x488   : > { %12520 = vmatprep.subr.bf16.mxu1 %v17017_v59  ;;  %v2425_v58 = vld [vmem:[%s25117_s4 + $0x20b0] sm:$0xff]  ;;  %v16254_v59 = vcombine.low %v1628_v24, %v1632_v25 }
 0x489   : > { %v17049_v48 = vcombine.high %v2421_v57, %v2425_v58  ;;  %v17048_v5 = vcombine.low %v2421_v57, %v2425_v58  ;;  %v1668_v58 = vld [vmem:[%s25117_s4 + $0x908] sm:$0xff] }
 0x48a   : > { %11743 = vmatpush1.bf16.msra.mxu0 %v16230_v0  ;;  %v1648_v0 = vld [vmem:[%s25117_s4 + $0x868] sm:$0xff] }
 0x48b   : > { %12521 = vmatpush1.bf16.msra.mxu1 %v17016_v32  ;;  %11744 = vmatprep.subr.bf16.mxu0 %v16239_v2  ;;  %v2429_v32 = vld [vmem:[%s25117_s4 + $0x20d0] sm:$0xff]  ;;  %v16271_v8 = vcombine.high %v1644_v62, %v1648_v0 }
 0x48c   : > { %12522 = vmatprep.subr.bf16.mxu1 %v17025_v4  ;;  %v2433_v2 = vld [vmem:[%s25117_s4 + $0x20f0] sm:$0xff]  ;;  %v16262_v4 = vcombine.low %v1636_v36, %v1640_v38 }
 0x48d   : > { %v17057_v13 = vcombine.high %v2429_v32, %v2433_v2  ;;  %v17056_v24 = vcombine.low %v2429_v32, %v2433_v2  ;;  %v1676_v2 = vld [vmem:[%s25117_s4 + $0x948] sm:$0xff] }
 0x48e   : > { %11745 = vmatpush1.bf16.msra.mxu0 %v16238_v18  ;;  %v1656_v18 = vld [vmem:[%s25117_s4 + $0x8a8] sm:$0xff] }
 0x48f   : > { %12523 = vmatpush1.bf16.msra.mxu1 %v17024_v46  ;;  %11746 = vmatprep.subr.bf16.mxu0 %v16247_v22  ;;  %v2437_v46 = vld [vmem:[%s25117_s4 + $0x2110] sm:$0xff]  ;;  %v16279_v25 = vcombine.high %v1652_v15, %v1656_v18 }
 0x490   : > { %12535 = vmatprep.subr.bf16.mxu1 %v17033_v23  ;;  %v2441_v22 = vld [vmem:[%s25117_s4 + $0x2130] sm:$0xff]  ;;  %v16270_v23 = vcombine.low %v1644_v62, %v1648_v0 }
 0x491   : > { %v17065_v26 = vcombine.high %v2437_v46, %v2441_v22  ;;  %v17064_v36 = vcombine.low %v2437_v46, %v2441_v22  ;;  %v1684_v22 = vld [vmem:[%s25117_s4 + $0x988] sm:$0xff] }
 0x492   : > { %12525 = vmatmul.mubr.bf16.vlgmr.msra.gmra.mrb[4].mxu1 %v19620_v43  ;;  %11747 = vmatpush1.bf16.msra.mxu0 %v16246_v29  ;;  %v1664_v29 = vld [vmem:[%s25117_s4 + $0x8e8] sm:$0xff] }
 0x493   : > { %12536 = vmatpush1.bf16.msra.mxu1 %v17032_v30  ;;  %12567 = vmatprep.mubr.bf16.mxu1 %v19659_v3  ;;  %v2445_v30 = vld [vmem:[%s25117_s4 + $0x2150] sm:$0xff]  ;;  %v16287_v38 = vcombine.high %v1660_v27, %v1664_v29 }
 0x494   : > { %11748 = vmatprep.subr.bf16.mxu0 %v16255_v33  ;;  %12537 = vmatprep.subr.bf16.mxu1 %v17041_v35  ;;  %v2449_v33 = vld [vmem:[%s25117_s4 + $0x2170] sm:$0xff]  ;;  %v16278_v35 = vcombine.low %v1652_v15, %v1656_v18 }
 0x495   : > { %v17073_v57 = vcombine.high %v2445_v30, %v2449_v33  ;;  %v17072_v62 = vcombine.low %v2445_v30, %v2449_v33  ;;  %v1692_v33 = vld [vmem:[%s25117_s4 + $0x9c8] sm:$0xff] }
 0x496   : > { %11749 = vmatpush1.bf16.msra.mxu0 %v16254_v59  ;;  %v1672_v59 = vld [vmem:[%s25117_s4 + $0x928] sm:$0xff] }
 0x497   : > { %12538 = vmatpush1.bf16.msra.mxu1 %v17040_v47  ;;  %11761 = vmatprep.subr.bf16.mxu0 %v16263_v16  ;;  %v2453_v47 = vld [vmem:[%s25117_s4 + $0x2190] sm:$0xff]  ;;  %v16295_v0 = vcombine.high %v1668_v58, %v1672_v59 }
 0x498   : > { %12539 = vmatprep.subr.bf16.mxu1 %v17049_v48  ;;  %v2457_v16 = vld [vmem:[%s25117_s4 + $0x21b0] sm:$0xff]  ;;  %v16286_v48 = vcombine.low %v1660_v27, %v1664_v29 }
 0x499   : > { %11751 = vmatmul.mubr.bf16.vlgmr.msra.gmra.mrb[52].mxu0 %v19485_v19  ;;  %v17081_v32 = vcombine.high %v2453_v47, %v2457_v16  ;;  %v17080_v15 = vcombine.low %v2453_v47, %v2457_v16  ;;  %v1700_v16 = vld [vmem:[%s25117_s4 + $0xa08] sm:$0xff] }
 0x49a   : > { %11762 = vmatpush1.bf16.msra.mxu0 %v16262_v4  ;;  %11793 = vmatprep.mubr.bf16.mxu0 %v19516_v56  ;;  %v1680_v4 = vld [vmem:[%s25117_s4 + $0x968] sm:$0xff] }
 0x49b   : > { %12540 = vmatpush1.bf16.msra.mxu1 %v17048_v5  ;;  %11763 = vmatprep.subr.bf16.mxu0 %v16271_v8  ;;  %v2461_v5 = vld [vmem:[%s25117_s4 + $0x21d0] sm:$0xff]  ;;  %v16303_v18 = vcombine.high %v1676_v2, %v1680_v4 }
 0x49c   : > { %12541 = vmatprep.subr.bf16.mxu1 %v17057_v13  ;;  %v2465_v8 = vld [vmem:[%s25117_s4 + $0x21f0] sm:$0xff]  ;;  %v16294_v13 = vcombine.low %v1668_v58, %v1672_v59 }
 0x49d   : > { %v17089_v46 = vcombine.high %v2461_v5, %v2465_v8  ;;  %v17088_v27 = vcombine.low %v2461_v5, %v2465_v8  ;;  %v1708_v8 = vld [vmem:[%s25117_s4 + $0xa48] sm:$0xff] }
 0x49e   : > { %11764 = vmatpush1.bf16.msra.mxu0 %v16270_v23  ;;  %v1688_v23 = vld [vmem:[%s25117_s4 + $0x9a8] sm:$0xff] }
 0x49f   : > { %12542 = vmatpush1.bf16.msra.mxu1 %v17056_v24  ;;  %11765 = vmatprep.subr.bf16.mxu0 %v16279_v25  ;;  %v2469_v24 = vld [vmem:[%s25117_s4 + $0x2210] sm:$0xff]  ;;  %v16311_v29 = vcombine.high %v1684_v22, %v1688_v23 }
 0x4a0   : > { %12543 = vmatprep.subr.bf16.mxu1 %v17065_v26  ;;  %v2473_v25 = vld [vmem:[%s25117_s4 + $0x2230] sm:$0xff]  ;;  %v16302_v26 = vcombine.low %v1676_v2, %v1680_v4 }
 0x4a1   : > { %v17097_v30 = vcombine.high %v2469_v24, %v2473_v25  ;;  %v17096_v58 = vcombine.low %v2469_v24, %v2473_v25  ;;  %v1716_v25 = vld [vmem:[%s25117_s4 + $0xa88] sm:$0xff] }
 0x4a2   : > { %11766 = vmatpush1.bf16.msra.mxu0 %v16278_v35  ;;  %v1696_v35 = vld [vmem:[%s25117_s4 + $0x9e8] sm:$0xff] }
 0x4a3   : > { %12544 = vmatpush1.bf16.msra.mxu1 %v17064_v36  ;;  %11767 = vmatprep.subr.bf16.mxu0 %v16287_v38  ;;  %v2477_v36 = vld [vmem:[%s25117_s4 + $0x2250] sm:$0xff]  ;;  %v16319_v59 = vcombine.high %v1692_v33, %v1696_v35 }
 0x4a4   : > { %12545 = vmatprep.subr.bf16.mxu1 %v17073_v57  ;;  %v2481_v38 = vld [vmem:[%s25117_s4 + $0x2270] sm:$0xff]  ;;  %v16310_v57 = vcombine.low %v1684_v22, %v1688_v23 }
 0x4a5   : > { %v17105_v47 = vcombine.high %v2477_v36, %v2481_v38  ;;  %v17104_v2 = vcombine.low %v2477_v36, %v2481_v38  ;;  %v1724_v38 = vld [vmem:[%s25117_s4 + $0xac8] sm:$0xff] }
 0x4a6   : > { %11768 = vmatpush1.bf16.msra.mxu0 %v16286_v48  ;;  %v1704_v48 = vld [vmem:[%s25117_s4 + $0xa28] sm:$0xff] }
 0x4a7   : > { %12546 = vmatpush1.bf16.msra.mxu1 %v17072_v62  ;;  %11769 = vmatprep.subr.bf16.mxu0 %v16295_v0  ;;  %v2485_v62 = vld [vmem:[%s25117_s4 + $0x2290] sm:$0xff]  ;;  %v16327_v4 = vcombine.high %v1700_v16, %v1704_v48 }
 0x4a8   : > { %12547 = vmatprep.subr.bf16.mxu1 %v17081_v32  ;;  %v2489_v0 = vld [vmem:[%s25117_s4 + $0x22b0] sm:$0xff]  ;;  %v16318_v32 = vcombine.low %v1692_v33, %v1696_v35 }
 0x4a9   : > { %v17113_v5 = vcombine.high %v2485_v62, %v2489_v0  ;;  %v17112_v22 = vcombine.low %v2485_v62, %v2489_v0  ;;  %v1732_v0 = vld [vmem:[%s25117_s4 + $0xb08] sm:$0xff] }
 0x4aa   : > { %11770 = vmatpush1.bf16.msra.mxu0 %v16294_v13  ;;  %v1712_v13 = vld [vmem:[%s25117_s4 + $0xa68] sm:$0xff] }
 0x4ab   : > { %12548 = vmatpush1.bf16.msra.mxu1 %v17080_v15  ;;  %11771 = vmatprep.subr.bf16.mxu0 %v16303_v18  ;;  %v2493_v15 = vld [vmem:[%s25117_s4 + $0x22d0] sm:$0xff]  ;;  %v16335_v23 = vcombine.high %v1708_v8, %v1712_v13 }
 0x4ac   : > { %12549 = vmatprep.subr.bf16.mxu1 %v17089_v46  ;;  %v2497_v18 = vld [vmem:[%s25117_s4 + $0x22f0] sm:$0xff]  ;;  %v16326_v46 = vcombine.low %v1700_v16, %v1704_v48 }
 0x4ad   : > { %v17121_v24 = vcombine.high %v2493_v15, %v2497_v18  ;;  %v17120_v33 = vcombine.low %v2493_v15, %v2497_v18  ;;  %v1740_v18 = vld [vmem:[%s25117_s4 + $0xb48] sm:$0xff] }
 0x4ae   : > { %11772 = vmatpush1.bf16.msra.mxu0 %v16302_v26  ;;  %v1720_v26 = vld [vmem:[%s25117_s4 + $0xaa8] sm:$0xff] }
 0x4af   : > { %12550 = vmatpush1.bf16.msra.mxu1 %v17088_v27  ;;  %11773 = vmatprep.subr.bf16.mxu0 %v16311_v29  ;;  %v2501_v27 = vld [vmem:[%s25117_s4 + $0x2310] sm:$0xff]  ;;  %v16343_v35 = vcombine.high %v1716_v25, %v1720_v26 }
 0x4b0   : > { %12551 = vmatprep.subr.bf16.mxu1 %v17097_v30  ;;  %v2505_v29 = vld [vmem:[%s25117_s4 + $0x2330] sm:$0xff]  ;;  %v16334_v30 = vcombine.low %v1708_v8, %v1712_v13 }
 0x4b1   : > { %v17129_v36 = vcombine.high %v2501_v27, %v2505_v29  ;;  %v17128_v16 = vcombine.low %v2501_v27, %v2505_v29  ;;  %v1748_v29 = vld [vmem:[%s25117_s4 + $0xb88] sm:$0xff] }
 0x4b2   : > { %11774 = vmatpush1.bf16.msra.mxu0 %v16310_v57  ;;  %v1728_v57 = vld [vmem:[%s25117_s4 + $0xae8] sm:$0xff] }
 0x4b3   : > { %12552 = vmatpush1.bf16.msra.mxu1 %v17096_v58  ;;  %11775 = vmatprep.subr.bf16.mxu0 %v16319_v59  ;;  %v2509_v58 = vld [vmem:[%s25117_s4 + $0x2350] sm:$0xff]  ;;  %v16351_v48 = vcombine.high %v1724_v38, %v1728_v57 }
 0x4b4   : > { %12553 = vmatprep.subr.bf16.mxu1 %v17105_v47  ;;  %v2513_v59 = vld [vmem:[%s25117_s4 + $0x2370] sm:$0xff]  ;;  %v16342_v47 = vcombine.low %v1716_v25, %v1720_v26 }
 0x4b5   : > { %v17137_v62 = vcombine.high %v2509_v58, %v2513_v59  ;;  %v17136_v8 = vcombine.low %v2509_v58, %v2513_v59  ;;  %v1756_v59 = vld [vmem:[%s25117_s4 + $0xbc8] sm:$0xff] }
 0x4b6   : > { %11776 = vmatpush1.bf16.msra.mxu0 %v16318_v32  ;;  %v1736_v32 = vld [vmem:[%s25117_s4 + $0xb28] sm:$0xff] }
 0x4b7   : > { %12554 = vmatpush1.bf16.msra.mxu1 %v17104_v2  ;;  %11777 = vmatprep.subr.bf16.mxu0 %v16327_v4  ;;  %v2517_v2 = vld [vmem:[%s25117_s4 + $0x2390] sm:$0xff]  ;;  %v16359_v13 = vcombine.high %v1732_v0, %v1736_v32 }
 0x4b8   : > { %12555 = vmatprep.subr.bf16.mxu1 %v17113_v5  ;;  %v2521_v4 = vld [vmem:[%s25117_s4 + $0x23b0] sm:$0xff]  ;;  %v16350_v5 = vcombine.low %v1724_v38, %v1728_v57 }
 0x4b9   : > { %v17145_v15 = vcombine.high %v2517_v2, %v2521_v4  ;;  %v17144_v25 = vcombine.low %v2517_v2, %v2521_v4  ;;  %v1764_v4 = vld [vmem:[%s25117_s4 + $0xc08] sm:$0xff] }
 0x4ba   : > { %11778 = vmatpush1.bf16.msra.mxu0 %v16326_v46  ;;  %v1744_v46 = vld [vmem:[%s25117_s4 + $0xb68] sm:$0xff] }
 0x4bb   : > { %12556 = vmatpush1.bf16.msra.mxu1 %v17112_v22  ;;  %11779 = vmatprep.subr.bf16.mxu0 %v16335_v23  ;;  %v2525_v22 = vld [vmem:[%s25117_s4 + $0x23d0] sm:$0xff]  ;;  %v16367_v26 = vcombine.high %v1740_v18, %v1744_v46 }
 0x4bc   : > { %12557 = vmatprep.subr.bf16.mxu1 %v17121_v24  ;;  %v2529_v23 = vld [vmem:[%s25117_s4 + $0x23f0] sm:$0xff]  ;;  %v16358_v24 = vcombine.low %v1732_v0, %v1736_v32 }
 0x4bd   : > { %v17153_v27 = vcombine.high %v2525_v22, %v2529_v23  ;;  %v17152_v38 = vcombine.low %v2525_v22, %v2529_v23  ;;  %v1772_v23 = vld [vmem:[%s25117_s4 + $0xc48] sm:$0xff] }
 0x4be   : > { %11780 = vmatpush1.bf16.msra.mxu0 %v16334_v30  ;;  %v1752_v30 = vld [vmem:[%s25117_s4 + $0xba8] sm:$0xff] }
 0x4bf   : > { %12558 = vmatpush1.bf16.msra.mxu1 %v17120_v33  ;;  %11781 = vmatprep.subr.bf16.mxu0 %v16343_v35  ;;  %v2533_v33 = vld [vmem:[%s25117_s4 + $0x2410] sm:$0xff]  ;;  %v16375_v57 = vcombine.high %v1748_v29, %v1752_v30 }
 0x4c0   : > { %12559 = vmatprep.subr.bf16.mxu1 %v17129_v36  ;;  %v2537_v35 = vld [vmem:[%s25117_s4 + $0x2430] sm:$0xff]  ;;  %v16366_v36 = vcombine.low %v1740_v18, %v1744_v46 }
 0x4c1   : > { %v17161_v58 = vcombine.high %v2533_v33, %v2537_v35  ;;  %v17160_v0 = vcombine.low %v2533_v33, %v2537_v35  ;;  %v1780_v35 = vld [vmem:[%s25117_s4 + $0xc88] sm:$0xff] }
 0x4c2   : > { %11782 = vmatpush1.bf16.msra.mxu0 %v16342_v47  ;;  %v1760_v47 = vld [vmem:[%s25117_s4 + $0xbe8] sm:$0xff] }
 0x4c3   : > { %12560 = vmatpush1.bf16.msra.mxu1 %v17128_v16  ;;  %11783 = vmatprep.subr.bf16.mxu0 %v16351_v48  ;;  %v2541_v16 = vld [vmem:[%s25117_s4 + $0x2450] sm:$0xff]  ;;  %v16383_v32 = vcombine.high %v1756_v59, %v1760_v47 }
 0x4c4   : > { %12561 = vmatprep.subr.bf16.mxu1 %v17137_v62  ;;  %v2545_v48 = vld [vmem:[%s25117_s4 + $0x2470] sm:$0xff]  ;;  %v16374_v62 = vcombine.low %v1748_v29, %v1752_v30 }
 0x4c5   : > { %v17169_v2 = vcombine.high %v2541_v16, %v2545_v48  ;;  %v17168_v18 = vcombine.low %v2541_v16, %v2545_v48  ;;  %v1788_v48 = vld [vmem:[%s25117_s4 + $0xcc8] sm:$0xff] }
 0x4c6   : > { %11784 = vmatpush1.bf16.msra.mxu0 %v16350_v5  ;;  %v1768_v5 = vld [vmem:[%s25117_s4 + $0xc28] sm:$0xff] }
 0x4c7   : > { %12562 = vmatpush1.bf16.msra.mxu1 %v17136_v8  ;;  %11785 = vmatprep.subr.bf16.mxu0 %v16359_v13  ;;  %v2549_v8 = vld [vmem:[%s25117_s4 + $0x2490] sm:$0xff]  ;;  %v16391_v46 = vcombine.high %v1764_v4, %v1768_v5 }
 0x4c8   : > { %12563 = vmatprep.subr.bf16.mxu1 %v17145_v15  ;;  %v2553_v13 = vld [vmem:[%s25117_s4 + $0x24b0] sm:$0xff]  ;;  %v16382_v15 = vcombine.low %v1756_v59, %v1760_v47 }
 0x4c9   : > { %v17177_v22 = vcombine.high %v2549_v8, %v2553_v13  ;;  %v17176_v29 = vcombine.low %v2549_v8, %v2553_v13  ;;  %v1796_v13 = vld [vmem:[%s25117_s4 + $0xd08] sm:$0xff] }
 0x4ca   : > { %11786 = vmatpush1.bf16.msra.mxu0 %v16358_v24  ;;  %v1776_v24 = vld [vmem:[%s25117_s4 + $0xc68] sm:$0xff] }
 0x4cb   : > { %12564 = vmatpush1.bf16.msra.mxu1 %v17144_v25  ;;  %11787 = vmatprep.subr.bf16.mxu0 %v16367_v26  ;;  %v2557_v25 = vld [vmem:[%s25117_s4 + $0x24d0] sm:$0xff]  ;;  %v16399_v30 = vcombine.high %v1772_v23, %v1776_v24 }
 0x4cc   : > { %12565 = vmatprep.subr.bf16.mxu1 %v17153_v27  ;;  %v2561_v26 = vld [vmem:[%s25117_s4 + $0x24f0] sm:$0xff]  ;;  %v16390_v27 = vcombine.low %v1764_v4, %v1768_v5 }
 0x4cd   : > { %v17185_v33 = vcombine.high %v2557_v25, %v2561_v26  ;;  %v17184_v59 = vcombine.low %v2557_v25, %v2561_v26  ;;  %v1804_v26 = vld [vmem:[%s25117_s4 + $0xd48] sm:$0xff] }
 0x4ce   : > { %11788 = vmatpush1.bf16.msra.mxu0 %v16366_v36  ;;  %v1784_v36 = vld [vmem:[%s25117_s4 + $0xca8] sm:$0xff] }
 0x4cf   : > { %12566 = vmatpush1.bf16.msra.mxu1 %v17152_v38  ;;  %11789 = vmatprep.subr.bf16.mxu0 %v16375_v57  ;;  %v2565_v38 = vld [vmem:[%s25117_s4 + $0x2510] sm:$0xff]  ;;  %v16407_v47 = vcombine.high %v1780_v35, %v1784_v36 }
 0x4d0   : > { %12578 = vmatprep.subr.bf16.mxu1 %v17161_v58  ;;  %v2569_v57 = vld [vmem:[%s25117_s4 + $0x2530] sm:$0xff]  ;;  %v16398_v58 = vcombine.low %v1772_v23, %v1776_v24 }
 0x4d1   : > { %v17193_v16 = vcombine.high %v2565_v38, %v2569_v57  ;;  %v17192_v4 = vcombine.low %v2565_v38, %v2569_v57 }
 0x4d2   : > { %12568 = vmatmul.mubr.bf16.vlgmr.msra.gmra.mrb[4].mxu1 %v19657_v1  ;;  %11790 = vmatpush1.bf16.msra.mxu0 %v16374_v62  ;;  %v1792_v62 = vld [vmem:[%s25117_s4 + $0xce8] sm:$0xff] }
 0x4d3   : > { %12579 = vmatpush1.bf16.msra.mxu1 %v17160_v0  ;;  %12610 = vmatprep.mubr.bf16.mxu1 %v19694_v17  ;;  %v2573_v0 = vld [vmem:[%s25117_s4 + $0x2550] sm:$0xff]  ;;  %v16415_v5 = vcombine.high %v1788_v48, %v1792_v62 }
 0x4d4   : > { %11791 = vmatprep.subr.bf16.mxu0 %v16383_v32  ;;  %12580 = vmatprep.subr.bf16.mxu1 %v17169_v2  ;;  %v2577_v32 = vld [vmem:[%s25117_s4 + $0x2570] sm:$0xff]  ;;  %v16406_v2 = vcombine.low %v1780_v35, %v1784_v36  ;;  %v13223_v35 = vld [vmem:[%s25119_s6] sm:$0xff] }
 0x4d5   : > { %v17201_v8 = vcombine.high %v2573_v0, %v2577_v32  ;;  %v17200_v23 = vcombine.low %v2573_v0, %v2577_v32  ;;  %v13232_v0 = vrot.slane %v13223_v35, %v19442_v45 }
 0x4d6   : > { %11792 = vmatpush1.bf16.msra.mxu0 %v16382_v15  ;;  %v1800_v15 = vld [vmem:[%s25117_s4 + $0xd28] sm:$0xff] }
 0x4d7   : > { %12581 = vmatpush1.bf16.msra.mxu1 %v17168_v18  ;;  %11804 = vmatprep.subr.bf16.mxu0 %v16391_v46  ;;  %v2581_v18 = vld [vmem:[%s25117_s4 + $0x2590] sm:$0xff]  ;;  %v16423_v24 = vcombine.high %v1796_v13, %v1800_v15 }
 0x4d8   : > { %12582 = vmatprep.subr.bf16.mxu1 %v17177_v22  ;;  %v2585_v46 = vld [vmem:[%s25117_s4 + $0x25b0] sm:$0xff]  ;;  %v16414_v22 = vcombine.low %v1788_v48, %v1792_v62  ;;  %v13297_v62 = vld [vmem:[%s25120_s7] sm:$0xff] }
 0x4d9   : > { %11794 = vmatmul.mubr.bf16.vlgmr.msra.gmra.mrb[52].mxu0 %v19512_v54  ;;  %v17209_v25 = vcombine.high %v2581_v18, %v2585_v46  ;;  %v17208_v36 = vcombine.low %v2581_v18, %v2585_v46  ;;  %v2601_v48 = vld [vmem:[%s25117_s4 + $0x2630] sm:$0xff]  ;;  %v13302_v46 = vrot.slane %v13297_v62, %v19436_v42 }
 0x4da   : > { %11805 = vmatpush1.bf16.msra.mxu0 %v16390_v27  ;;  %11836 = vmatprep.mubr.bf16.mxu0 %v19536_v12  ;;  %v1808_v27 = vld [vmem:[%s25117_s4 + $0xd68] sm:$0xff] }
 0x4db   : > { %12583 = vmatpush1.bf16.msra.mxu1 %v17176_v29  ;;  %11806 = vmatprep.subr.bf16.mxu0 %v16399_v30  ;;  %v2589_v29 = vld [vmem:[%s25117_s4 + $0x25d0] sm:$0xff]  ;;  %v16431_v38 = vcombine.high %v1804_v26, %v1808_v27  ;;  %v16430_v32 = vcombine.low %v1804_v26, %v1808_v27  ;;  %v13306_v27 = vrot.slane %v13297_v62, %v19442_v45  ;;  %v1832_v62 = vld [vmem:[%s25117_s4 + $0xe28] sm:$0xff] }
 0x4dc   : > { %12584 = vmatprep.subr.bf16.mxu1 %v17185_v33  ;;  %v2593_v30 = vld [vmem:[%s25117_s4 + $0x25f0] sm:$0xff]  ;;  %v16422_v33 = vcombine.low %v1796_v13, %v1800_v15  ;;  %v1820_v13 = vld [vmem:[%s25117_s4 + $0xdc8] sm:$0xff] }
 0x4dd   : > { %v17217_v57 = vcombine.high %v2589_v29, %v2593_v30  ;;  %v1824_v15 = vld [vmem:[%s25117_s4 + $0xde8] sm:$0xff] }
 0x4de   : > { %11807 = vmatpush1.bf16.msra.mxu0 %v16398_v58  ;;  %v1812_v58 = vld [vmem:[%s25117_s4 + $0xd88] sm:$0xff] }
 0x4df   : > { %12585 = vmatpush1.bf16.msra.mxu1 %v17184_v59  ;;  %11808 = vmatprep.subr.bf16.mxu0 %v16407_v47  ;;  %v1816_v59 = vld [vmem:[%s25117_s4 + $0xda8] sm:$0xff]  ;;  %v13228_v47 = vrot.slane %v13223_v35, %v19436_v42 }
 0x4e0   : > { %12586 = vmatprep.subr.bf16.mxu1 %v17193_v16  ;;  %v2597_v16 = vld [vmem:[%s25117_s4 + $0x2610] sm:$0xff] }
 0x4e2   : > { %11809 = vmatpush1.bf16.msra.mxu0 %v16406_v2  ;;  %v17216_v2 = vcombine.low %v2589_v29, %v2593_v30  ;;  %v16438_v30 = vcombine.low %v1812_v58, %v1816_v59 }
 0x4e3   : > { %12587 = vmatpush1.bf16.msra.mxu1 %v17192_v4  ;;  %11810 = vmatprep.subr.bf16.mxu0 %v16415_v5  ;;  %v16439_v4 = vcombine.high %v1812_v58, %v1816_v59 }
 0x4e4   : > { %12588 = vmatprep.subr.bf16.mxu1 %v17201_v8  ;;  %v17225_v8 = vcombine.high %v2597_v16, %v2601_v48 }
 0x4e6   : > { %11811 = vmatpush1.bf16.msra.mxu0 %v16414_v22 }
 0x4e7   : > { %12589 = vmatpush1.bf16.msra.mxu1 %v17200_v23  ;;  %11812 = vmatprep.subr.bf16.mxu0 %v16423_v24  ;;  %v2605_v23 = vld [vmem:[%s25117_s4 + $0x2650] sm:$0xff] }
 0x4e8   : > { %12590 = vmatprep.subr.bf16.mxu1 %v17209_v25  ;;  %v2609_v24 = vld [vmem:[%s25117_s4 + $0x2670] sm:$0xff]  ;;  %v13355_v25 = vld [vmem:[%s25121_s8] sm:$0xff] }
 0x4e9   : > { %v17233_v1 = vcombine.high %v2605_v23, %v2609_v24  ;;  %v13360_v59 = vrot.slane %v13355_v25, %v19436_v42 }
 0x4ea   : > { %11813 = vmatpush1.bf16.msra.mxu0 %v16422_v33 }
 0x4eb   : > { %12591 = vmatpush1.bf16.msra.mxu1 %v17208_v36  ;;  %11814 = vmatprep.subr.bf16.mxu0 %v16431_v38  ;;  %v17224_v38 = vcombine.low %v2597_v16, %v2601_v48  ;;  %v2613_v16 = vld [vmem:[%s25117_s4 + $0x2690] sm:$0xff] }
 0x4ec   : > { %v11666_v5 = vpop.f32.mrb[48].mxu0  ;;  %12592 = vmatprep.subr.bf16.mxu1 %v17217_v57  ;;  %v16447_v57 = vcombine.high %v1820_v13, %v1824_v15  ;;  %v2617_v48 = vld [vmem:[%s25117_s4 + $0x26b0] sm:$0xff] }
 0x4ed   : > { %v13265_v18 = vadd.f32 %v13228_v47, %v11666_v5  ;;  %v11668_v22 = vpop.f32.mrb[49].mxu0 }
 0x4ee   : > { %v13266_v26 = vadd.f32 %v13232_v0, %v11668_v22  ;;  %v11670_v29 = vpop.f32.mrb[50].mxu0  ;;  %11815 = vmatpush1.bf16.msra.mxu0 %v16430_v32  ;;  %v1828_v22 = vld [vmem:[%s25117_s4 + $0xe08] sm:$0xff]  ;;  %v13364_v32 = vrot.slane %v13355_v25, %v19442_v45 }
 0x4ef   : > { %v13281_v33 = vmax.f32 %v13265_v18, 0.0  ;;  %v13273_v35 = vadd.f32 %v13228_v47, %v11670_v29  ;;  %12593 = vmatpush1.bf16.msra.mxu1 %v17216_v2  ;;  %v11672_v36 = vpop.f32.mrb[51].mxu0  ;;  %11816 = vmatprep.subr.bf16.mxu0 %v16439_v4  ;;  %v16446_v4 = vcombine.low %v1820_v13, %v1824_v15  ;;  %v17232_v18 = vcombine.low %v2605_v23, %v2609_v24  ;;  %v2621_v13 = vld [vmem:[%s25117_s4 + $0x26d0] sm:$0xff] }
 0x4f0   : > { %v13282_v5 = vmax.f32 %v13266_v26, 0.0  ;;  %v13274_v17 = vadd.f32 %v13232_v0, %v11672_v36  ;;  %12594 = vmatprep.subr.bf16.mxu1 %v17225_v8  ;;  %v16455_v26 = vcombine.high %v1828_v22, %v1832_v62  ;;  %v1840_v36 = vld [vmem:[%s25117_s4 + $0xe68] sm:$0xff]  ;;  %v2625_v15 = vld [vmem:[%s25117_s4 + $0x26f0] sm:$0xff]  ;;  %v16454_v23 = vcombine.low %v1828_v22, %v1832_v62 }
 0x4f1   : > { %v13339_v58 = vmul.f32 %v13302_v46, %v13281_v33  ;;  %v13289_v47 = vmax.f32 %v13273_v35, 0.0  ;;  %v17241_v33 = vcombine.high %v2613_v16, %v2617_v48  ;;  %v1836_v35 = vld [vmem:[%s25117_s4 + $0xe48] sm:$0xff]  ;;  %v2629_v22 = vld [vmem:[%s25117_s4 + $0x2710] sm:$0xff] }
 0x4f2   : > { %v13340_v0 = vmul.f32 %v13306_v27, %v13282_v5  ;;  %v13290_v2 = vmax.f32 %v13274_v17, 0.0  ;;  %11817 = vmatpush1.bf16.msra.mxu0 %v16438_v30  ;;  %v16463_v30 = vcombine.high %v1836_v35, %v1840_v36  ;;  %v1848_v5 = vld [vmem:[%s25117_s4 + $0xea8] sm:$0xff]  ;;  %v2633_v62 = vld [vmem:[%s25117_s4 + $0x2730] sm:$0xff] }
 0x4f3   : > { %v13347_v8 = vmul.f32 %v13302_v46, %v13289_v47  ;;  %12595 = vmatpush1.bf16.msra.mxu1 %v17224_v38  ;;  %11818 = vmatprep.subr.bf16.mxu0 %v16447_v57  ;;  %v13397_v25 = vadd.f32 %v13360_v59, %v13339_v58  ;;  %v17249_v38 = vcombine.high %v2621_v13, %v2625_v15  ;;  %v1844_v57 = vld [vmem:[%s25117_s4 + $0xe88] sm:$0xff] }
 0x4f4   : > { %v13348_v29 = vmul.f32 %v13306_v27, %v13290_v2  ;;  %12596 = vmatprep.subr.bf16.mxu1 %v17233_v1  ;;  %v13398_v1 = vadd.f32 %v13364_v32, %v13340_v0  ;;  %v17240_v27 = vcombine.low %v2613_v16, %v2617_v48  ;;  %v17248_v47 = vcombine.low %v2621_v13, %v2625_v15  ;;  %v1852_v0 = vld [vmem:[%s25117_s4 + $0xec8] sm:$0xff]  ;;  %v2637_v2 = vld [vmem:[%s25117_s4 + $0x2750] sm:$0xff] }
 0x4f5   : > { %v13405_v17 = vadd.f32 %v13360_v59, %v13347_v8  ;;  %v16462_v59 = vcombine.low %v1836_v35, %v1840_v36  ;;  %v16471_v16 = vcombine.high %v1844_v57, %v1848_v5  ;;  %v17257_v48 = vcombine.high %v2629_v22, %v2633_v62  ;;  %v1864_v35 = vld [vmem:[%s25117_s4 + $0xf28] sm:$0xff]  ;;  %v2645_v36 = vld [vmem:[%s25117_s4 + $0x2790] sm:$0xff] }
 0x4f6   : > { %v13406_v46 = vadd.f32 %v13364_v32, %v13348_v29  ;;  %11819 = vmatpush1.bf16.msra.mxu0 %v16446_v4  ;;  %v1856_v32 = vld [vmem:[%s25117_s4 + $0xee8] sm:$0xff]  ;;  %v2641_v4 = vld [vmem:[%s25117_s4 + $0x2770] sm:$0xff]  ;;  %v16470_v8 = vcombine.low %v1844_v57, %v1848_v5 }
 0x4f7   : > { %v22355_v24 = vpack.c.bf16 %v13405_v17, %v13397_v25  ;;  %12597 = vmatpush1.bf16.msra.mxu1 %v17232_v18  ;;  %11820 = vmatprep.subr.bf16.mxu0 %v16455_v26  ;;  %v17256_v18 = vcombine.low %v2629_v22, %v2633_v62  ;;  %v16479_v26 = vcombine.high %v1852_v0, %v1856_v32  ;;  %v2649_v25 = vld [vmem:[%s25117_s4 + $0x27b0] sm:$0xff]  ;;  %v1876_v62 = vld [vmem:[%s25117_s4 + $0xf88] sm:$0xff] }
 0x4f8   : > { %12598 = vmatprep.subr.bf16.mxu1 %v17241_v33  ;;  %v22363_v58 = vpack.c.bf16 %v13406_v46, %v13398_v1  ;;  %v17265_v29 = vcombine.high %v2637_v2, %v2641_v4  ;;  %v1860_v33 = vld [vmem:[%s25117_s4 + $0xf08] sm:$0xff]  ;;  %v16478_v17 = vcombine.low %v1852_v0, %v1856_v32  ;;  %v17264_v13 = vcombine.low %v2637_v2, %v2641_v4 }
 0x4f9   : > { %v16487_v15 = vcombine.high %v1860_v33, %v1864_v35  ;;  %v17273_v1 = vcombine.high %v2645_v36, %v2649_v25  ;;  %v1868_v46 = vld [vmem:[%s25117_s4 + $0xf48] sm:$0xff]  ;;  %v17272_v57 = vcombine.low %v2645_v36, %v2649_v25 }
 0x4fa   : > { %11821 = vmatpush1.bf16.msra.mxu0 %v16454_v23  ;;  %v1872_v23 = vld [vmem:[%s25117_s4 + $0xf68] sm:$0xff] }
 0x4fb   : > { %12599 = vmatpush1.bf16.msra.mxu1 %v17240_v27  ;;  %11822 = vmatprep.subr.bf16.mxu0 %v16463_v30  ;;  %v2653_v27 = vld [vmem:[%s25117_s4 + $0x27d0] sm:$0xff]  ;;  %v16495_v5 = vcombine.high %v1868_v46, %v1872_v23  ;;  %v1884_v4 = vld [vmem:[%s25117_s4 + $0xfc8] sm:$0xff] }
 0x4fc   : > { %12600 = vmatprep.subr.bf16.mxu1 %v17249_v38  ;;  %v2657_v30 = vld [vmem:[%s25117_s4 + $0x27f0] sm:$0xff]  ;;  %v16486_v38 = vcombine.low %v1860_v33, %v1864_v35  ;;  %v1892_v25 = vld [vmem:[%s25117_s4 + $0x1008] sm:$0xff] }
 0x4fd   : > { %v17281_v22 = vcombine.high %v2653_v27, %v2657_v30  ;;  %v17280_v0 = vcombine.low %v2653_v27, %v2657_v30  ;;  %v1900_v30 = vld [vmem:[%s25117_s4 + $0x1048] sm:$0xff] }
 0x4fe   : > { %11823 = vmatpush1.bf16.msra.mxu0 %v16462_v59  ;;  %v1880_v59 = vld [vmem:[%s25117_s4 + $0xfa8] sm:$0xff] }
 0x4ff   : > { %12601 = vmatpush1.bf16.msra.mxu1 %v17248_v47  ;;  %11824 = vmatprep.subr.bf16.mxu0 %v16471_v16  ;;  %v2661_v47 = vld [vmem:[%s25117_s4 + $0x2810] sm:$0xff]  ;;  %v16503_v32 = vcombine.high %v1876_v62, %v1880_v59 }
 0x500   : > { %12602 = vmatprep.subr.bf16.mxu1 %v17257_v48  ;;  %v2665_v16 = vld [vmem:[%s25117_s4 + $0x2830] sm:$0xff]  ;;  %v16494_v48 = vcombine.low %v1868_v46, %v1872_v23 }
 0x501   : > { %v17289_v2 = vcombine.high %v2661_v47, %v2665_v16  ;;  %v17288_v33 = vcombine.low %v2661_v47, %v2665_v16  ;;  %v1908_v16 = vld [vmem:[%s25117_s4 + $0x1088] sm:$0xff] }
 0x502   : > { %11825 = vmatpush1.bf16.msra.mxu0 %v16470_v8  ;;  %v1888_v8 = vld [vmem:[%s25117_s4 + $0xfe8] sm:$0xff] }
 0x503   : > { %12603 = vmatpush1.bf16.msra.mxu1 %v17256_v18  ;;  %11826 = vmatprep.subr.bf16.mxu0 %v16479_v26  ;;  %v2669_v18 = vld [vmem:[%s25117_s4 + $0x2850] sm:$0xff]  ;;  %v16511_v35 = vcombine.high %v1884_v4, %v1888_v8 }
 0x504   : > { %12604 = vmatprep.subr.bf16.mxu1 %v17265_v29  ;;  %v2673_v26 = vld [vmem:[%s25117_s4 + $0x2870] sm:$0xff]  ;;  %v16502_v29 = vcombine.low %v1876_v62, %v1880_v59 }
 0x505   : > { %v17297_v36 = vcombine.high %v2669_v18, %v2673_v26  ;;  %v17296_v46 = vcombine.low %v2669_v18, %v2673_v26  ;;  %v1916_v26 = vld [vmem:[%s25117_s4 + $0x10c8] sm:$0xff] }
 0x506   : > { %11827 = vmatpush1.bf16.msra.mxu0 %v16478_v17  ;;  %v1896_v17 = vld [vmem:[%s25117_s4 + $0x1028] sm:$0xff] }
 0x507   : > { %12605 = vmatpush1.bf16.msra.mxu1 %v17264_v13  ;;  %11828 = vmatprep.subr.bf16.mxu0 %v16487_v15  ;;  %v2677_v13 = vld [vmem:[%s25117_s4 + $0x2890] sm:$0xff]  ;;  %v16519_v23 = vcombine.high %v1892_v25, %v1896_v17 }
 0x508   : > { %12606 = vmatprep.subr.bf16.mxu1 %v17273_v1  ;;  %v2681_v15 = vld [vmem:[%s25117_s4 + $0x28b0] sm:$0xff]  ;;  %v16510_v1 = vcombine.low %v1884_v4, %v1888_v8 }
 0x509   : > { %v17305_v27 = vcombine.high %v2677_v13, %v2681_v15  ;;  %v17304_v62 = vcombine.low %v2677_v13, %v2681_v15  ;;  %v1924_v15 = vld [vmem:[%s25117_s4 + $0x1108] sm:$0xff] }
 0x50a   : > { %11829 = vmatpush1.bf16.msra.mxu0 %v16486_v38  ;;  %v1904_v38 = vld [vmem:[%s25117_s4 + $0x1068] sm:$0xff] }
 0x50b   : > { %12607 = vmatpush1.bf16.msra.mxu1 %v17272_v57  ;;  %11830 = vmatprep.subr.bf16.mxu0 %v16495_v5  ;;  %v2685_v57 = vld [vmem:[%s25117_s4 + $0x28d0] sm:$0xff]  ;;  %v16527_v59 = vcombine.high %v1900_v30, %v1904_v38 }
 0x50c   : > { %12608 = vmatprep.subr.bf16.mxu1 %v17281_v22  ;;  %v2689_v5 = vld [vmem:[%s25117_s4 + $0x28f0] sm:$0xff]  ;;  %v16518_v22 = vcombine.low %v1892_v25, %v1896_v17 }
 0x50d   : > { %v17313_v47 = vcombine.high %v2685_v57, %v2689_v5  ;;  %v17312_v4 = vcombine.low %v2685_v57, %v2689_v5  ;;  %v1932_v5 = vld [vmem:[%s25117_s4 + $0x1148] sm:$0xff] }
 0x50e   : > { %11831 = vmatpush1.bf16.msra.mxu0 %v16494_v48  ;;  %v1912_v48 = vld [vmem:[%s25117_s4 + $0x10a8] sm:$0xff] }
 0x50f   : > { %12609 = vmatpush1.bf16.msra.mxu1 %v17280_v0  ;;  %11832 = vmatprep.subr.bf16.mxu0 %v16503_v32  ;;  %v2693_v0 = vld [vmem:[%s25117_s4 + $0x2910] sm:$0xff]  ;;  %v16535_v8 = vcombine.high %v1908_v16, %v1912_v48 }
 0x510   : > { %12621 = vmatprep.subr.bf16.mxu1 %v17289_v2  ;;  %v2697_v32 = vld [vmem:[%s25117_s4 + $0x2930] sm:$0xff]  ;;  %v16526_v2 = vcombine.low %v1900_v30, %v1904_v38 }
 0x511   : > { %v17321_v18 = vcombine.high %v2693_v0, %v2697_v32  ;;  %v17320_v25 = vcombine.low %v2693_v0, %v2697_v32  ;;  %v1940_v32 = vld [vmem:[%s25117_s4 + $0x1188] sm:$0xff] }
 0x512   : > { %12611 = vmatmul.mubr.bf16.vlgmr.msra.gmra.mrb[4].mxu1 %v19692_v60  ;;  %11833 = vmatpush1.bf16.msra.mxu0 %v16502_v29  ;;  %v1920_v29 = vld [vmem:[%s25117_s4 + $0x10e8] sm:$0xff] }
 0x513   : > { %12622 = vmatpush1.bf16.msra.mxu1 %v17288_v33  ;;  %12653 = vmatprep.mubr.bf16.mxu1 %v19840_v63  ;;  %v2701_v33 = vld [vmem:[%s25117_s4 + $0x2950] sm:$0xff]  ;;  %v16543_v17 = vcombine.high %v1916_v26, %v1920_v29 }
 0x514   : > { %11834 = vmatprep.subr.bf16.mxu0 %v16511_v35  ;;  %12623 = vmatprep.subr.bf16.mxu1 %v17297_v36  ;;  %v2705_v35 = vld [vmem:[%s25117_s4 + $0x2970] sm:$0xff]  ;;  %v16534_v36 = vcombine.low %v1908_v16, %v1912_v48 }
 0x515   : > { %v17329_v13 = vcombine.high %v2701_v33, %v2705_v35  ;;  %v17328_v30 = vcombine.low %v2701_v33, %v2705_v35  ;;  %v1948_v35 = vld [vmem:[%s25117_s4 + $0x11c8] sm:$0xff] }
 0x516   : > { %11835 = vmatpush1.bf16.msra.mxu0 %v16510_v1  ;;  %v1928_v1 = vld [vmem:[%s25117_s4 + $0x1128] sm:$0xff] }
 0x517   : > { %12624 = vmatpush1.bf16.msra.mxu1 %v17296_v46  ;;  %11847 = vmatprep.subr.bf16.mxu0 %v16519_v23  ;;  %v2709_v46 = vld [vmem:[%s25117_s4 + $0x2990] sm:$0xff]  ;;  %v16551_v38 = vcombine.high %v1924_v15, %v1928_v1 }
 0x518   : > { %12625 = vmatprep.subr.bf16.mxu1 %v17305_v27  ;;  %v2713_v23 = vld [vmem:[%s25117_s4 + $0x29b0] sm:$0xff]  ;;  %v16542_v27 = vcombine.low %v1916_v26, %v1920_v29 }
 0x519   : > { %11837 = vmatmul.mubr.bf16.vlgmr.msra.gmra.mrb[52].mxu0 %v19534_v11  ;;  %v17337_v57 = vcombine.high %v2709_v46, %v2713_v23  ;;  %v17336_v16 = vcombine.low %v2709_v46, %v2713_v23  ;;  %v1956_v23 = vld [vmem:[%s25117_s4 + $0x1208] sm:$0xff] }
 0x51a   : > { %11848 = vmatpush1.bf16.msra.mxu0 %v16518_v22  ;;  %11879 = vmatprep.mubr.bf16.mxu0 %v19556_v50  ;;  %v1936_v22 = vld [vmem:[%s25117_s4 + $0x1168] sm:$0xff] }
 0x51b   : > { %12626 = vmatpush1.bf16.msra.mxu1 %v17304_v62  ;;  %11849 = vmatprep.subr.bf16.mxu0 %v16527_v59  ;;  %v2717_v62 = vld [vmem:[%s25117_s4 + $0x29d0] sm:$0xff]  ;;  %v16559_v48 = vcombine.high %v1932_v5, %v1936_v22 }
 0x51c   : > { %12627 = vmatprep.subr.bf16.mxu1 %v17313_v47  ;;  %v2721_v59 = vld [vmem:[%s25117_s4 + $0x29f0] sm:$0xff]  ;;  %v16550_v47 = vcombine.low %v1924_v15, %v1928_v1 }
 0x51d   : > { %v17345_v0 = vcombine.high %v2717_v62, %v2721_v59  ;;  %v17344_v26 = vcombine.low %v2717_v62, %v2721_v59  ;;  %v1964_v59 = vld [vmem:[%s25117_s4 + $0x1248] sm:$0xff] }
 0x51e   : > { %11850 = vmatpush1.bf16.msra.mxu0 %v16526_v2  ;;  %v1944_v2 = vld [vmem:[%s25117_s4 + $0x11a8] sm:$0xff] }
 0x51f   : > { %12628 = vmatpush1.bf16.msra.mxu1 %v17312_v4  ;;  %11851 = vmatprep.subr.bf16.mxu0 %v16535_v8  ;;  %v2725_v4 = vld [vmem:[%s25117_s4 + $0x2a10] sm:$0xff]  ;;  %v16567_v29 = vcombine.high %v1940_v32, %v1944_v2 }
 0x520   : > { %12629 = vmatprep.subr.bf16.mxu1 %v17321_v18  ;;  %v2729_v8 = vld [vmem:[%s25117_s4 + $0x2a30] sm:$0xff]  ;;  %v16558_v18 = vcombine.low %v1932_v5, %v1936_v22 }
 0x521   : > { %v17353_v33 = vcombine.high %v2725_v4, %v2729_v8  ;;  %v17352_v15 = vcombine.low %v2725_v4, %v2729_v8  ;;  %v1972_v8 = vld [vmem:[%s25117_s4 + $0x1288] sm:$0xff] }
 0x522   : > { %11852 = vmatpush1.bf16.msra.mxu0 %v16534_v36  ;;  %v1952_v36 = vld [vmem:[%s25117_s4 + $0x11e8] sm:$0xff] }
 0x523   : > { %12630 = vmatpush1.bf16.msra.mxu1 %v17320_v25  ;;  %11853 = vmatprep.subr.bf16.mxu0 %v16543_v17  ;;  %v2733_v25 = vld [vmem:[%s25117_s4 + $0x2a50] sm:$0xff]  ;;  %v16575_v1 = vcombine.high %v1948_v35, %v1952_v36 }
 0x524   : > { %12631 = vmatprep.subr.bf16.mxu1 %v17329_v13  ;;  %v2737_v17 = vld [vmem:[%s25117_s4 + $0x2a70] sm:$0xff]  ;;  %v16566_v13 = vcombine.low %v1940_v32, %v1944_v2 }
 0x525   : > { %v17361_v46 = vcombine.high %v2733_v25, %v2737_v17  ;;  %v17360_v5 = vcombine.low %v2733_v25, %v2737_v17  ;;  %v1980_v17 = vld [vmem:[%s25117_s4 + $0x12c8] sm:$0xff] }
 0x526   : > { %11854 = vmatpush1.bf16.msra.mxu0 %v16542_v27  ;;  %v1960_v27 = vld [vmem:[%s25117_s4 + $0x1228] sm:$0xff] }
 0x527   : > { %12632 = vmatpush1.bf16.msra.mxu1 %v17328_v30  ;;  %11855 = vmatprep.subr.bf16.mxu0 %v16551_v38  ;;  %v2741_v30 = vld [vmem:[%s25117_s4 + $0x2a90] sm:$0xff]  ;;  %v16583_v22 = vcombine.high %v1956_v23, %v1960_v27 }
 0x528   : > { %12633 = vmatprep.subr.bf16.mxu1 %v17337_v57  ;;  %v2745_v38 = vld [vmem:[%s25117_s4 + $0x2ab0] sm:$0xff]  ;;  %v16574_v57 = vcombine.low %v1948_v35, %v1952_v36 }
 0x529   : > { %v17369_v62 = vcombine.high %v2741_v30, %v2745_v38  ;;  %v17368_v32 = vcombine.low %v2741_v30, %v2745_v38  ;;  %v1988_v38 = vld [vmem:[%s25117_s4 + $0x1308] sm:$0xff] }
 0x52a   : > { %11856 = vmatpush1.bf16.msra.mxu0 %v16550_v47  ;;  %v1968_v47 = vld [vmem:[%s25117_s4 + $0x1268] sm:$0xff] }
 0x52b   : > { %12634 = vmatpush1.bf16.msra.mxu1 %v17336_v16  ;;  %11857 = vmatprep.subr.bf16.mxu0 %v16559_v48  ;;  %v2749_v16 = vld [vmem:[%s25117_s4 + $0x2ad0] sm:$0xff]  ;;  %v16591_v2 = vcombine.high %v1964_v59, %v1968_v47 }
 0x52c   : > { %12635 = vmatprep.subr.bf16.mxu1 %v17345_v0  ;;  %v2753_v48 = vld [vmem:[%s25117_s4 + $0x2af0] sm:$0xff]  ;;  %v16582_v0 = vcombine.low %v1956_v23, %v1960_v27 }
 0x52d   : > { %v17377_v4 = vcombine.high %v2749_v16, %v2753_v48  ;;  %v17376_v35 = vcombine.low %v2749_v16, %v2753_v48  ;;  %v1996_v48 = vld [vmem:[%s25117_s4 + $0x1348] sm:$0xff] }
 0x52e   : > { %11858 = vmatpush1.bf16.msra.mxu0 %v16558_v18  ;;  %v1976_v18 = vld [vmem:[%s25117_s4 + $0x12a8] sm:$0xff] }
 0x52f   : > { %12636 = vmatpush1.bf16.msra.mxu1 %v17344_v26  ;;  %11859 = vmatprep.subr.bf16.mxu0 %v16567_v29  ;;  %v2757_v26 = vld [vmem:[%s25117_s4 + $0x2b10] sm:$0xff]  ;;  %v16599_v36 = vcombine.high %v1972_v8, %v1976_v18 }
 0x530   : > { %12637 = vmatprep.subr.bf16.mxu1 %v17353_v33  ;;  %v2761_v29 = vld [vmem:[%s25117_s4 + $0x2b30] sm:$0xff]  ;;  %v16590_v33 = vcombine.low %v1964_v59, %v1968_v47 }
 0x531   : > { %v17385_v25 = vcombine.high %v2757_v26, %v2761_v29  ;;  %v17384_v23 = vcombine.low %v2757_v26, %v2761_v29  ;;  %v2004_v29 = vld [vmem:[%s25117_s4 + $0x1388] sm:$0xff] }
 0x532   : > { %11860 = vmatpush1.bf16.msra.mxu0 %v16566_v13  ;;  %v1984_v13 = vld [vmem:[%s25117_s4 + $0x12e8] sm:$0xff] }
 0x533   : > { %12638 = vmatpush1.bf16.msra.mxu1 %v17352_v15  ;;  %11861 = vmatprep.subr.bf16.mxu0 %v16575_v1  ;;  %v2765_v15 = vld [vmem:[%s25117_s4 + $0x2b50] sm:$0xff]  ;;  %v16607_v27 = vcombine.high %v1980_v17, %v1984_v13 }
 0x534   : > { %12639 = vmatprep.subr.bf16.mxu1 %v17361_v46  ;;  %v2769_v1 = vld [vmem:[%s25117_s4 + $0x2b70] sm:$0xff]  ;;  %v16598_v46 = vcombine.low %v1972_v8, %v1976_v18 }
 0x535   : > { %v17393_v30 = vcombine.high %v2765_v15, %v2769_v1  ;;  %v17392_v59 = vcombine.low %v2765_v15, %v2769_v1  ;;  %v2012_v1 = vld [vmem:[%s25117_s4 + $0x13c8] sm:$0xff] }
 0x536   : > { %11862 = vmatpush1.bf16.msra.mxu0 %v16574_v57  ;;  %v1992_v57 = vld [vmem:[%s25117_s4 + $0x1328] sm:$0xff] }
 0x537   : > { %12640 = vmatpush1.bf16.msra.mxu1 %v17360_v5  ;;  %11863 = vmatprep.subr.bf16.mxu0 %v16583_v22  ;;  %v2773_v5 = vld [vmem:[%s25117_s4 + $0x2b90] sm:$0xff]  ;;  %v16615_v47 = vcombine.high %v1988_v38, %v1992_v57 }
 0x538   : > { %12641 = vmatprep.subr.bf16.mxu1 %v17369_v62  ;;  %v2777_v22 = vld [vmem:[%s25117_s4 + $0x2bb0] sm:$0xff]  ;;  %v16606_v62 = vcombine.low %v1980_v17, %v1984_v13 }
 0x539   : > { %v17401_v16 = vcombine.high %v2773_v5, %v2777_v22  ;;  %v17400_v8 = vcombine.low %v2773_v5, %v2777_v22  ;;  %v2020_v22 = vld [vmem:[%s25117_s4 + $0x1408] sm:$0xff] }
 0x53a   : > { %11864 = vmatpush1.bf16.msra.mxu0 %v16582_v0  ;;  %v2000_v0 = vld [vmem:[%s25117_s4 + $0x1368] sm:$0xff] }
 0x53b   : > { %12642 = vmatpush1.bf16.msra.mxu1 %v17368_v32  ;;  %11865 = vmatprep.subr.bf16.mxu0 %v16591_v2  ;;  %v2781_v32 = vld [vmem:[%s25117_s4 + $0x2bd0] sm:$0xff]  ;;  %v16623_v18 = vcombine.high %v1996_v48, %v2000_v0 }
 0x53c   : > { %12643 = vmatprep.subr.bf16.mxu1 %v17377_v4  ;;  %v2785_v2 = vld [vmem:[%s25117_s4 + $0x2bf0] sm:$0xff]  ;;  %v16614_v4 = vcombine.low %v1988_v38, %v1992_v57 }
 0x53d   : > { %v17409_v26 = vcombine.high %v2781_v32, %v2785_v2  ;;  %v17408_v17 = vcombine.low %v2781_v32, %v2785_v2  ;;  %v2028_v2 = vld [vmem:[%s25117_s4 + $0x1448] sm:$0xff] }
 0x53e   : > { %11866 = vmatpush1.bf16.msra.mxu0 %v16590_v33  ;;  %v2008_v33 = vld [vmem:[%s25117_s4 + $0x13a8] sm:$0xff] }
 0x53f   : > { %12644 = vmatpush1.bf16.msra.mxu1 %v17376_v35  ;;  %11867 = vmatprep.subr.bf16.mxu0 %v16599_v36  ;;  %v2789_v35 = vld [vmem:[%s25117_s4 + $0x2c10] sm:$0xff]  ;;  %v16631_v13 = vcombine.high %v2004_v29, %v2008_v33 }
 0x540   : > { %12645 = vmatprep.subr.bf16.mxu1 %v17385_v25  ;;  %v2793_v36 = vld [vmem:[%s25117_s4 + $0x2c30] sm:$0xff]  ;;  %v16622_v25 = vcombine.low %v1996_v48, %v2000_v0 }
 0x541   : > { %v17417_v15 = vcombine.high %v2789_v35, %v2793_v36  ;;  %v17416_v38 = vcombine.low %v2789_v35, %v2793_v36  ;;  %v2036_v36 = vld [vmem:[%s25117_s4 + $0x1488] sm:$0xff] }
 0x542   : > { %11868 = vmatpush1.bf16.msra.mxu0 %v16598_v46  ;;  %v2016_v46 = vld [vmem:[%s25117_s4 + $0x13e8] sm:$0xff] }
 0x543   : > { %12646 = vmatpush1.bf16.msra.mxu1 %v17384_v23  ;;  %11869 = vmatprep.subr.bf16.mxu0 %v16607_v27  ;;  %v2797_v23 = vld [vmem:[%s25117_s4 + $0x2c50] sm:$0xff]  ;;  %v16639_v57 = vcombine.high %v2012_v1, %v2016_v46 }
 0x544   : > { %12647 = vmatprep.subr.bf16.mxu1 %v17393_v30  ;;  %v2801_v27 = vld [vmem:[%s25117_s4 + $0x2c70] sm:$0xff]  ;;  %v16630_v30 = vcombine.low %v2004_v29, %v2008_v33 }
 0x545   : > { %v17425_v5 = vcombine.high %v2797_v23, %v2801_v27  ;;  %v17424_v48 = vcombine.low %v2797_v23, %v2801_v27  ;;  %v2044_v27 = vld [vmem:[%s25117_s4 + $0x14c8] sm:$0xff] }
 0x546   : > { %11870 = vmatpush1.bf16.msra.mxu0 %v16606_v62  ;;  %v2024_v62 = vld [vmem:[%s25117_s4 + $0x1428] sm:$0xff] }
 0x547   : > { %12648 = vmatpush1.bf16.msra.mxu1 %v17392_v59  ;;  %11871 = vmatprep.subr.bf16.mxu0 %v16615_v47  ;;  %v2805_v59 = vld [vmem:[%s25117_s4 + $0x2c90] sm:$0xff]  ;;  %v16647_v0 = vcombine.high %v2020_v22, %v2024_v62 }
 0x548   : > { %12649 = vmatprep.subr.bf16.mxu1 %v17401_v16  ;;  %v2809_v47 = vld [vmem:[%s25117_s4 + $0x2cb0] sm:$0xff]  ;;  %v16638_v16 = vcombine.low %v2012_v1, %v2016_v46 }
 0x549   : > { %v17433_v32 = vcombine.high %v2805_v59, %v2809_v47  ;;  %v17432_v29 = vcombine.low %v2805_v59, %v2809_v47  ;;  %v2052_v47 = vld [vmem:[%s25117_s4 + $0x1508] sm:$0xff] }
 0x54a   : > { %11872 = vmatpush1.bf16.msra.mxu0 %v16614_v4  ;;  %v2032_v4 = vld [vmem:[%s25117_s4 + $0x1468] sm:$0xff] }
 0x54b   : > { %12650 = vmatpush1.bf16.msra.mxu1 %v17400_v8  ;;  %11873 = vmatprep.subr.bf16.mxu0 %v16623_v18  ;;  %v2813_v8 = vld [vmem:[%s25117_s4 + $0x2cd0] sm:$0xff]  ;;  %v16655_v33 = vcombine.high %v2028_v2, %v2032_v4 }
 0x54c   : > { %12651 = vmatprep.subr.bf16.mxu1 %v17409_v26  ;;  %v2817_v18 = vld [vmem:[%s25117_s4 + $0x2cf0] sm:$0xff]  ;;  %v16646_v26 = vcombine.low %v2020_v22, %v2024_v62 }
 0x54d   : > { %v17441_v35 = vcombine.high %v2813_v8, %v2817_v18  ;;  %v17440_v1 = vcombine.low %v2813_v8, %v2817_v18  ;;  %v2060_v18 = vld [vmem:[%s25117_s4 + $0x1548] sm:$0xff] }
 0x54e   : > { %11874 = vmatpush1.bf16.msra.mxu0 %v16622_v25  ;;  %v2040_v25 = vld [vmem:[%s25117_s4 + $0x14a8] sm:$0xff] }
 0x54f   : > { %12652 = vmatpush1.bf16.msra.mxu1 %v17408_v17  ;;  %11875 = vmatprep.subr.bf16.mxu0 %v16631_v13  ;;  %v2821_v17 = vld [vmem:[%s25117_s4 + $0x2d10] sm:$0xff]  ;;  %v16663_v46 = vcombine.high %v2036_v36, %v2040_v25 }
 0x550   : > { %12664 = vmatprep.subr.bf16.mxu1 %v17417_v15  ;;  %v2825_v13 = vld [vmem:[%s25117_s4 + $0x2d30] sm:$0xff]  ;;  %v16654_v15 = vcombine.low %v2028_v2, %v2032_v4 }
 0x551   : > { %v17449_v23 = vcombine.high %v2821_v17, %v2825_v13  ;;  %v17448_v22 = vcombine.low %v2821_v17, %v2825_v13  ;;  %v2068_v13 = vld [vmem:[%s25117_s4 + $0x1588] sm:$0xff] }
 0x552   : > { %12654 = vmatmul.mubr.bf16.vlgmr.msra.gmra.mrb[4].mxu1 %v19832_v39  ;;  %11876 = vmatpush1.bf16.msra.mxu0 %v16630_v30  ;;  %v2048_v30 = vld [vmem:[%s25117_s4 + $0x14e8] sm:$0xff] }
 0x553   : > { %12665 = vmatpush1.bf16.msra.mxu1 %v17416_v38  ;;  %12696 = vmatprep.mubr.bf16.mxu1 %v20044_v6  ;;  %v2829_v38 = vld [vmem:[%s25117_s4 + $0x2d50] sm:$0xff]  ;;  %v16671_v62 = vcombine.high %v2044_v27, %v2048_v30 }
 0x554   : > { %11877 = vmatprep.subr.bf16.mxu0 %v16639_v57  ;;  %12666 = vmatprep.subr.bf16.mxu1 %v17425_v5  ;;  %v2833_v57 = vld [vmem:[%s25117_s4 + $0x2d70] sm:$0xff]  ;;  %v16662_v5 = vcombine.low %v2036_v36, %v2040_v25 }
 0x555   : > { %v17457_v59 = vcombine.high %v2829_v38, %v2833_v57  ;;  %v17456_v2 = vcombine.low %v2829_v38, %v2833_v57  ;;  %v2076_v57 = vld [vmem:[%s25117_s4 + $0x15c8] sm:$0xff] }
 0x556   : > { %11878 = vmatpush1.bf16.msra.mxu0 %v16638_v16  ;;  %v2056_v16 = vld [vmem:[%s25117_s4 + $0x1528] sm:$0xff] }
 0x557   : > { %12667 = vmatpush1.bf16.msra.mxu1 %v17424_v48  ;;  %11890 = vmatprep.subr.bf16.mxu0 %v16647_v0  ;;  %v2837_v48 = vld [vmem:[%s25117_s4 + $0x2d90] sm:$0xff]  ;;  %v16679_v4 = vcombine.high %v2052_v47, %v2056_v16 }
 0x558   : > { %12668 = vmatprep.subr.bf16.mxu1 %v17433_v32  ;;  %v2841_v0 = vld [vmem:[%s25117_s4 + $0x2db0] sm:$0xff]  ;;  %v16670_v32 = vcombine.low %v2044_v27, %v2048_v30 }
 0x559   : > { %11880 = vmatmul.mubr.bf16.vlgmr.msra.gmra.mrb[52].mxu0 %v19554_v37  ;;  %v17465_v8 = vcombine.high %v2837_v48, %v2841_v0  ;;  %v17464_v36 = vcombine.low %v2837_v48, %v2841_v0  ;;  %v2084_v0 = vld [vmem:[%s25117_s4 + $0x1608] sm:$0xff] }
 0x55a   : > { %11891 = vmatpush1.bf16.msra.mxu0 %v16646_v26  ;;  %11922 = vmatprep.mubr.bf16.mxu0 %v19576_v10  ;;  %v2064_v26 = vld [vmem:[%s25117_s4 + $0x1568] sm:$0xff] }
 0x55b   : > { %12669 = vmatpush1.bf16.msra.mxu1 %v17432_v29  ;;  %11892 = vmatprep.subr.bf16.mxu0 %v16655_v33  ;;  %v2845_v29 = vld [vmem:[%s25117_s4 + $0x2dd0] sm:$0xff]  ;;  %v16687_v25 = vcombine.high %v2060_v18, %v2064_v26 }
 0x55c   : > { %12670 = vmatprep.subr.bf16.mxu1 %v17441_v35  ;;  %v2849_v33 = vld [vmem:[%s25117_s4 + $0x2df0] sm:$0xff]  ;;  %v16678_v35 = vcombine.low %v2052_v47, %v2056_v16 }
 0x55d   : > { %v17473_v17 = vcombine.high %v2845_v29, %v2849_v33  ;;  %v17472_v27 = vcombine.low %v2845_v29, %v2849_v33  ;;  %v2092_v33 = vld [vmem:[%s25117_s4 + $0x1648] sm:$0xff] }
 0x55e   : > { %11893 = vmatpush1.bf16.msra.mxu0 %v16654_v15  ;;  %v2072_v15 = vld [vmem:[%s25117_s4 + $0x15a8] sm:$0xff] }
 0x55f   : > { %12671 = vmatpush1.bf16.msra.mxu1 %v17440_v1  ;;  %11894 = vmatprep.subr.bf16.mxu0 %v16663_v46  ;;  %v2853_v1 = vld [vmem:[%s25117_s4 + $0x2e10] sm:$0xff]  ;;  %v16695_v30 = vcombine.high %v2068_v13, %v2072_v15 }
 0x560   : > { %12672 = vmatprep.subr.bf16.mxu1 %v17449_v23  ;;  %v2857_v46 = vld [vmem:[%s25117_s4 + $0x2e30] sm:$0xff]  ;;  %v16686_v23 = vcombine.low %v2060_v18, %v2064_v26 }
 0x561   : > { %v17481_v38 = vcombine.high %v2853_v1, %v2857_v46  ;;  %v17480_v47 = vcombine.low %v2853_v1, %v2857_v46  ;;  %v2100_v46 = vld [vmem:[%s25117_s4 + $0x1688] sm:$0xff] }
 0x562   : > { %11895 = vmatpush1.bf16.msra.mxu0 %v16662_v5  ;;  %v2080_v5 = vld [vmem:[%s25117_s4 + $0x15e8] sm:$0xff] }
 0x563   : > { %12673 = vmatpush1.bf16.msra.mxu1 %v17448_v22  ;;  %11896 = vmatprep.subr.bf16.mxu0 %v16671_v62  ;;  %v2861_v22 = vld [vmem:[%s25117_s4 + $0x2e50] sm:$0xff]  ;;  %v16703_v16 = vcombine.high %v2076_v57, %v2080_v5 }
 0x564   : > { %12674 = vmatprep.subr.bf16.mxu1 %v17457_v59  ;;  %v2865_v62 = vld [vmem:[%s25117_s4 + $0x2e70] sm:$0xff]  ;;  %v16694_v59 = vcombine.low %v2068_v13, %v2072_v15 }
 0x565   : > { %v17489_v48 = vcombine.high %v2861_v22, %v2865_v62  ;;  %v17488_v18 = vcombine.low %v2861_v22, %v2865_v62  ;;  %v2108_v62 = vld [vmem:[%s25117_s4 + $0x16c8] sm:$0xff] }
 0x566   : > { %11897 = vmatpush1.bf16.msra.mxu0 %v16670_v32  ;;  %v2088_v32 = vld [vmem:[%s25117_s4 + $0x1628] sm:$0xff] }
 0x567   : > { %12675 = vmatpush1.bf16.msra.mxu1 %v17456_v2  ;;  %11898 = vmatprep.subr.bf16.mxu0 %v16679_v4  ;;  %v2869_v2 = vld [vmem:[%s25117_s4 + $0x2e90] sm:$0xff]  ;;  %v16711_v26 = vcombine.high %v2084_v0, %v2088_v32 }
 0x568   : > { %12676 = vmatprep.subr.bf16.mxu1 %v17465_v8  ;;  %v2873_v4 = vld [vmem:[%s25117_s4 + $0x2eb0] sm:$0xff]  ;;  %v16702_v8 = vcombine.low %v2076_v57, %v2080_v5 }
 0x569   : > { %v17497_v29 = vcombine.high %v2869_v2, %v2873_v4  ;;  %v17496_v13 = vcombine.low %v2869_v2, %v2873_v4  ;;  %v2116_v4 = vld [vmem:[%s25117_s4 + $0x1708] sm:$0xff] }
 0x56a   : > { %11899 = vmatpush1.bf16.msra.mxu0 %v16678_v35  ;;  %v2096_v35 = vld [vmem:[%s25117_s4 + $0x1668] sm:$0xff] }
 0x56b   : > { %12677 = vmatpush1.bf16.msra.mxu1 %v17464_v36  ;;  %11900 = vmatprep.subr.bf16.mxu0 %v16687_v25  ;;  %v2877_v36 = vld [vmem:[%s25117_s4 + $0x2ed0] sm:$0xff]  ;;  %v16719_v15 = vcombine.high %v2092_v33, %v2096_v35 }
 0x56c   : > { %12678 = vmatprep.subr.bf16.mxu1 %v17473_v17  ;;  %v2881_v25 = vld [vmem:[%s25117_s4 + $0x2ef0] sm:$0xff]  ;;  %v16710_v17 = vcombine.low %v2084_v0, %v2088_v32 }
 0x56d   : > { %v17505_v1 = vcombine.high %v2877_v36, %v2881_v25  ;;  %v17504_v57 = vcombine.low %v2877_v36, %v2881_v25  ;;  %v2124_v25 = vld [vmem:[%s25117_s4 + $0x1748] sm:$0xff] }
 0x56e   : > { %11901 = vmatpush1.bf16.msra.mxu0 %v16686_v23  ;;  %v2104_v23 = vld [vmem:[%s25117_s4 + $0x16a8] sm:$0xff] }
 0x56f   : > { %12679 = vmatpush1.bf16.msra.mxu1 %v17472_v27  ;;  %11902 = vmatprep.subr.bf16.mxu0 %v16695_v30  ;;  %v2885_v27 = vld [vmem:[%s25117_s4 + $0x2f10] sm:$0xff]  ;;  %v16727_v5 = vcombine.high %v2100_v46, %v2104_v23 }
 0x570   : > { %12680 = vmatprep.subr.bf16.mxu1 %v17481_v38  ;;  %v2889_v30 = vld [vmem:[%s25117_s4 + $0x2f30] sm:$0xff]  ;;  %v16718_v38 = vcombine.low %v2092_v33, %v2096_v35 }
 0x571   : > { %v17513_v22 = vcombine.high %v2885_v27, %v2889_v30  ;;  %v17512_v0 = vcombine.low %v2885_v27, %v2889_v30  ;;  %v2132_v30 = vld [vmem:[%s25117_s4 + $0x1788] sm:$0xff] }
 0x572   : > { %11903 = vmatpush1.bf16.msra.mxu0 %v16694_v59  ;;  %v2112_v59 = vld [vmem:[%s25117_s4 + $0x16e8] sm:$0xff] }
 0x573   : > { %12681 = vmatpush1.bf16.msra.mxu1 %v17480_v47  ;;  %11904 = vmatprep.subr.bf16.mxu0 %v16703_v16  ;;  %v2893_v47 = vld [vmem:[%s25117_s4 + $0x2f50] sm:$0xff]  ;;  %v16735_v32 = vcombine.high %v2108_v62, %v2112_v59 }
 0x574   : > { %12682 = vmatprep.subr.bf16.mxu1 %v17489_v48  ;;  %v2897_v16 = vld [vmem:[%s25117_s4 + $0x2f70] sm:$0xff]  ;;  %v16726_v48 = vcombine.low %v2100_v46, %v2104_v23 }
 0x575   : > { %v17521_v2 = vcombine.high %v2893_v47, %v2897_v16  ;;  %v17520_v33 = vcombine.low %v2893_v47, %v2897_v16  ;;  %v2140_v16 = vld [vmem:[%s25117_s4 + $0x17c8] sm:$0xff] }
 0x576   : > { %11905 = vmatpush1.bf16.msra.mxu0 %v16702_v8  ;;  %v2120_v8 = vld [vmem:[%s25117_s4 + $0x1728] sm:$0xff] }
 0x577   : > { %12683 = vmatpush1.bf16.msra.mxu1 %v17488_v18  ;;  %11906 = vmatprep.subr.bf16.mxu0 %v16711_v26  ;;  %v2901_v18 = vld [vmem:[%s25117_s4 + $0x2f90] sm:$0xff]  ;;  %v16743_v35 = vcombine.high %v2116_v4, %v2120_v8 }
 0x578   : > { %12684 = vmatprep.subr.bf16.mxu1 %v17497_v29  ;;  %v2905_v26 = vld [vmem:[%s25117_s4 + $0x2fb0] sm:$0xff]  ;;  %v16734_v29 = vcombine.low %v2108_v62, %v2112_v59 }
 0x579   : > { %v17529_v36 = vcombine.high %v2901_v18, %v2905_v26  ;;  %v17528_v46 = vcombine.low %v2901_v18, %v2905_v26  ;;  %v2148_v26 = vld [vmem:[%s25117_s4 + $0x1808] sm:$0xff] }
 0x57a   : > { %11907 = vmatpush1.bf16.msra.mxu0 %v16710_v17  ;;  %v2128_v17 = vld [vmem:[%s25117_s4 + $0x1768] sm:$0xff] }
 0x57b   : > { %12685 = vmatpush1.bf16.msra.mxu1 %v17496_v13  ;;  %11908 = vmatprep.subr.bf16.mxu0 %v16719_v15  ;;  %v2909_v13 = vld [vmem:[%s25117_s4 + $0x2fd0] sm:$0xff]  ;;  %v16751_v23 = vcombine.high %v2124_v25, %v2128_v17 }
 0x57c   : > { %12686 = vmatprep.subr.bf16.mxu1 %v17505_v1  ;;  %v2913_v15 = vld [vmem:[%s25117_s4 + $0x2ff0] sm:$0xff]  ;;  %v16742_v1 = vcombine.low %v2116_v4, %v2120_v8 }
 0x57d   : > { %v17537_v27 = vcombine.high %v2909_v13, %v2913_v15  ;;  %v17536_v62 = vcombine.low %v2909_v13, %v2913_v15  ;;  %v2156_v15 = vld [vmem:[%s25117_s4 + $0x1848] sm:$0xff] }
 0x57e   : > { %11909 = vmatpush1.bf16.msra.mxu0 %v16718_v38  ;;  %v2136_v38 = vld [vmem:[%s25117_s4 + $0x17a8] sm:$0xff] }
 0x57f   : > { %12687 = vmatpush1.bf16.msra.mxu1 %v17504_v57  ;;  %11910 = vmatprep.subr.bf16.mxu0 %v16727_v5  ;;  %v1382_v57 = vld [vmem:[%s25117_s4 + $0x18] sm:$0xff]  ;;  %v16759_v59 = vcombine.high %v2132_v30, %v2136_v38 }
 0x580   : > { %12688 = vmatprep.subr.bf16.mxu1 %v17513_v22  ;;  %v1386_v5 = vld [vmem:[%s25117_s4 + $0x38] sm:$0xff]  ;;  %v16750_v22 = vcombine.low %v2124_v25, %v2128_v17 }
 0x581   : > { %v16011_v47 = vcombine.high %v1382_v57, %v1386_v5  ;;  %v16010_v4 = vcombine.low %v1382_v57, %v1386_v5  ;;  %v2164_v57 = vld [vmem:[%s25117_s4 + $0x1888] sm:$0xff] }
 0x582   : > { %11911 = vmatpush1.bf16.msra.mxu0 %v16726_v48  ;;  %v2144_v48 = vld [vmem:[%s25117_s4 + $0x17e8] sm:$0xff] }
 0x583   : > { %12689 = vmatpush1.bf16.msra.mxu1 %v17512_v0  ;;  %11912 = vmatprep.subr.bf16.mxu0 %v16735_v32  ;;  %v1390_v0 = vld [vmem:[%s25117_s4 + $0x58] sm:$0xff]  ;;  %v16767_v8 = vcombine.high %v2140_v16, %v2144_v48  ;;  %v2168_v5 = vld [vmem:[%s25117_s4 + $0x18a8] sm:$0xff] }
 0x584   : > { %12690 = vmatprep.subr.bf16.mxu1 %v17521_v2  ;;  %v1394_v32 = vld [vmem:[%s25117_s4 + $0x78] sm:$0xff]  ;;  %v16758_v2 = vcombine.low %v2132_v30, %v2136_v38 }
 0x585   : > { %v16019_v18 = vcombine.high %v1390_v0, %v1394_v32  ;;  %v16018_v25 = vcombine.low %v1390_v0, %v1394_v32  ;;  %v2172_v0 = vld [vmem:[%s25117_s4 + $0x18c8] sm:$0xff] }
 0x586   : > { %11913 = vmatpush1.bf16.msra.mxu0 %v16734_v29  ;;  %v2152_v29 = vld [vmem:[%s25117_s4 + $0x1828] sm:$0xff] }
 0x587   : > { %12691 = vmatpush1.bf16.msra.mxu1 %v17520_v33  ;;  %11914 = vmatprep.subr.bf16.mxu0 %v16743_v35  ;;  %v1398_v33 = vld [vmem:[%s25117_s4 + $0x98] sm:$0xff]  ;;  %v16775_v17 = vcombine.high %v2148_v26, %v2152_v29  ;;  %v2176_v32 = vld [vmem:[%s25117_s4 + $0x18e8] sm:$0xff] }
 0x588   : > { %12692 = vmatprep.subr.bf16.mxu1 %v17529_v36  ;;  %v1402_v35 = vld [vmem:[%s25117_s4 + $0xb8] sm:$0xff]  ;;  %v16766_v36 = vcombine.low %v2140_v16, %v2144_v48  ;;  %v16791_v16 = vcombine.high %v2164_v57, %v2168_v5 }
 0x589   : > { %v16027_v13 = vcombine.high %v1398_v33, %v1402_v35 }
 0x58a   : > { %11915 = vmatpush1.bf16.msra.mxu0 %v16742_v1  ;;  %v2160_v1 = vld [vmem:[%s25117_s4 + $0x1868] sm:$0xff] }
 0x58b   : > { %12693 = vmatpush1.bf16.msra.mxu1 %v17528_v46  ;;  %11916 = vmatprep.subr.bf16.mxu0 %v16751_v23  ;;  %v1406_v46 = vld [vmem:[%s25117_s4 + $0xd8] sm:$0xff]  ;;  %v16774_v23 = vcombine.low %v2148_v26, %v2152_v29  ;;  %v16783_v30 = vcombine.high %v2156_v15, %v2160_v1  ;;  %v16799_v26 = vcombine.high %v2172_v0, %v2176_v32 }
 0x58c   : > { %12694 = vmatprep.subr.bf16.mxu1 %v17537_v27  ;;  %v16026_v27 = vcombine.low %v1398_v33, %v1402_v35  ;;  %v2180_v33 = vld [vmem:[%s25117_s4 + $0x1908] sm:$0xff] }
 0x58d   : > { %v2184_v35 = vld [vmem:[%s25117_s4 + $0x1928] sm:$0xff] }
 0x58e   : > { %11917 = vmatpush1.bf16.msra.mxu0 %v16750_v22  ;;  %v1414_v22 = vld [vmem:[%s25117_s4 + $0x118] sm:$0xff] }
 0x58f   : > { %12695 = vmatpush1.bf16.msra.mxu1 %v17536_v62  ;;  %11918 = vmatprep.subr.bf16.mxu0 %v16759_v59  ;;  %v1418_v62 = vld [vmem:[%s25117_s4 + $0x138] sm:$0xff]  ;;  %v16782_v59 = vcombine.low %v2156_v15, %v2160_v1  ;;  %v16807_v15 = vcombine.high %v2180_v33, %v2184_v35 }
 0x590   : > { %12707 = vmatprep.subr.bf16.mxu1 %v16011_v47  ;;  %v16043_v48 = vcombine.high %v1414_v22, %v1418_v62 }
 0x592   : > { %12697 = vmatmul.mubr.bf16.vlgmr.msra.gmra.mrb[4].mxu1 %v20036_v31  ;;  %11919 = vmatpush1.bf16.msra.mxu0 %v16758_v2  ;;  %v1422_v2 = vld [vmem:[%s25117_s4 + $0x158] sm:$0xff] }
 0x593   : > { %12708 = vmatpush1.bf16.msra.mxu1 %v16010_v4  ;;  %12739 = vmatprep.mubr.bf16.mxu1 %v19462_v61  ;;  %v1410_v61 = vld [vmem:[%s25117_s4 + $0xf8] sm:$0xff] }
 0x594   : > { %11920 = vmatprep.subr.bf16.mxu0 %v16767_v8  ;;  %12709 = vmatprep.subr.bf16.mxu1 %v16019_v18  ;;  %v16035_v38 = vcombine.high %v1406_v46, %v1410_v61  ;;  %v16034_v47 = vcombine.low %v1406_v46, %v1410_v61  ;;  %v1426_v4 = vld [vmem:[%s25117_s4 + $0x178] sm:$0xff]  ;;  %v16790_v8 = vcombine.low %v2164_v57, %v2168_v5  ;;  %v2188_v46 = vld [vmem:[%s25117_s4 + $0x1948] sm:$0xff] }
 0x595   : > { %v16042_v18 = vcombine.low %v1414_v22, %v1418_v62  ;;  %v16051_v29 = vcombine.high %v1422_v2, %v1426_v4  ;;  %v2192_v61 = vld [vmem:[%s25117_s4 + $0x1968] sm:$0xff] }
 0x596   : > { %11921 = vmatpush1.bf16.msra.mxu0 %v16766_v36  ;;  %v1430_v36 = vld [vmem:[%s25117_s4 + $0x198] sm:$0xff]  ;;  %v16815_v57 = vcombine.high %v2188_v46, %v2192_v61  ;;  %v2196_v22 = vld [vmem:[%s25117_s4 + $0x1988] sm:$0xff] }
 0x597   : > { %12710 = vmatpush1.bf16.msra.mxu1 %v16018_v25  ;;  %11933 = vmatprep.subr.bf16.mxu0 %v16775_v17  ;;  %v1434_v25 = vld [vmem:[%s25117_s4 + $0x1b8] sm:$0xff]  ;;  %v16798_v17 = vcombine.low %v2172_v0, %v2176_v32  ;;  %v2200_v62 = vld [vmem:[%s25117_s4 + $0x19a8] sm:$0xff] }
 0x598   : > { %12711 = vmatprep.subr.bf16.mxu1 %v16027_v13  ;;  %v16050_v13 = vcombine.low %v1422_v2, %v1426_v4  ;;  %v16059_v1 = vcombine.high %v1430_v36, %v1434_v25  ;;  %v16823_v0 = vcombine.high %v2196_v22, %v2200_v62  ;;  %v2204_v2 = vld [vmem:[%s25117_s4 + $0x19c8] sm:$0xff] }
 0x599   : > { %11923 = vmatmul.mubr.bf16.vlgmr.msra.gmra.mrb[52].mxu0 %v19574_v9  ;;  %v2208_v4 = vld [vmem:[%s25117_s4 + $0x19e8] sm:$0xff] }
 0x59a   : > { %11934 = vmatpush1.bf16.msra.mxu0 %v16774_v23  ;;  %11965 = vmatprep.mubr.bf16.mxu0 %v19596_v52  ;;  %v1438_v23 = vld [vmem:[%s25117_s4 + $0x1d8] sm:$0xff] }
 0x59b   : > { %12712 = vmatpush1.bf16.msra.mxu1 %v16026_v27  ;;  %11935 = vmatprep.subr.bf16.mxu0 %v16783_v30  ;;  %v1442_v27 = vld [vmem:[%s25117_s4 + $0x1f8] sm:$0xff]  ;;  %v16806_v30 = vcombine.low %v2180_v33, %v2184_v35  ;;  %v16831_v33 = vcombine.high %v2204_v2, %v2208_v4 }
 0x59c   : > { %12713 = vmatprep.subr.bf16.mxu1 %v16035_v38  ;;  %v16058_v38 = vcombine.low %v1430_v36, %v1434_v25  ;;  %v16067_v5 = vcombine.high %v1438_v23, %v1442_v27  ;;  %v2212_v36 = vld [vmem:[%s25117_s4 + $0x1a08] sm:$0xff] }
 0x59d   : > { %v2216_v25 = vld [vmem:[%s25117_s4 + $0x1a28] sm:$0xff] }
 0x59e   : > { %11936 = vmatpush1.bf16.msra.mxu0 %v16782_v59  ;;  %v1446_v59 = vld [vmem:[%s25117_s4 + $0x218] sm:$0xff] }
 0x59f   : > { %12714 = vmatpush1.bf16.msra.mxu1 %v16034_v47  ;;  %11937 = vmatprep.subr.bf16.mxu0 %v16791_v16  ;;  %v1450_v47 = vld [vmem:[%s25117_s4 + $0x238] sm:$0xff]  ;;  %v16814_v16 = vcombine.low %v2188_v46, %v2192_v61  ;;  %v16839_v46 = vcombine.high %v2212_v36, %v2216_v25 }
 0x5a0   : > { %12715 = vmatprep.subr.bf16.mxu1 %v16043_v48  ;;  %v16066_v48 = vcombine.low %v1438_v23, %v1442_v27  ;;  %v16075_v32 = vcombine.high %v1446_v59, %v1450_v47  ;;  %v2220_v23 = vld [vmem:[%s25117_s4 + $0x1a48] sm:$0xff] }
 0x5a1   : > { %v2224_v27 = vld [vmem:[%s25117_s4 + $0x1a68] sm:$0xff] }
 0x5a2   : > { %11938 = vmatpush1.bf16.msra.mxu0 %v16790_v8  ;;  %v1454_v8 = vld [vmem:[%s25117_s4 + $0x258] sm:$0xff] }
 0x5a3   : > { %12716 = vmatpush1.bf16.msra.mxu1 %v16042_v18  ;;  %11939 = vmatprep.subr.bf16.mxu0 %v16799_v26  ;;  %v1458_v18 = vld [vmem:[%s25117_s4 + $0x278] sm:$0xff]  ;;  %v16822_v26 = vcombine.low %v2196_v22, %v2200_v62  ;;  %v16847_v22 = vcombine.high %v2220_v23, %v2224_v27 }
 0x5a4   : > { %12717 = vmatprep.subr.bf16.mxu1 %v16051_v29  ;;  %v16074_v29 = vcombine.low %v1446_v59, %v1450_v47  ;;  %v16083_v35 = vcombine.high %v1454_v8, %v1458_v18  ;;  %v2228_v59 = vld [vmem:[%s25117_s4 + $0x1a88] sm:$0xff] }
 0x5a5   : > { %v2232_v47 = vld [vmem:[%s25117_s4 + $0x1aa8] sm:$0xff] }
 0x5a6   : > { %11940 = vmatpush1.bf16.msra.mxu0 %v16798_v17  ;;  %v1462_v17 = vld [vmem:[%s25117_s4 + $0x298] sm:$0xff] }
 0x5a7   : > { %12718 = vmatpush1.bf16.msra.mxu1 %v16050_v13  ;;  %11941 = vmatprep.subr.bf16.mxu0 %v16807_v15  ;;  %v1466_v13 = vld [vmem:[%s25117_s4 + $0x2b8] sm:$0xff]  ;;  %v16830_v15 = vcombine.low %v2204_v2, %v2208_v4  ;;  %v16855_v2 = vcombine.high %v2228_v59, %v2232_v47 }
 0x5a8   : > { %12719 = vmatprep.subr.bf16.mxu1 %v16059_v1  ;;  %v16082_v1 = vcombine.low %v1454_v8, %v1458_v18  ;;  %v16091_v61 = vcombine.high %v1462_v17, %v1466_v13  ;;  %v2236_v8 = vld [vmem:[%s25117_s4 + $0x1ac8] sm:$0xff] }
 0x5a9   : > { %v2240_v18 = vld [vmem:[%s25117_s4 + $0x1ae8] sm:$0xff] }
 0x5aa   : > { %11942 = vmatpush1.bf16.msra.mxu0 %v16806_v30  ;;  %v1470_v30 = vld [vmem:[%s25117_s4 + $0x2d8] sm:$0xff] }
 0x5ab   : > { %12720 = vmatpush1.bf16.msra.mxu1 %v16058_v38  ;;  %11943 = vmatprep.subr.bf16.mxu0 %v16815_v57  ;;  %v1474_v38 = vld [vmem:[%s25117_s4 + $0x2f8] sm:$0xff]  ;;  %v16838_v57 = vcombine.low %v2212_v36, %v2216_v25  ;;  %v16863_v36 = vcombine.high %v2236_v8, %v2240_v18 }
 0x5ac   : > { %12721 = vmatprep.subr.bf16.mxu1 %v16067_v5  ;;  %v16090_v5 = vcombine.low %v1462_v17, %v1466_v13  ;;  %v16099_v62 = vcombine.high %v1470_v30, %v1474_v38  ;;  %v2244_v17 = vld [vmem:[%s25117_s4 + $0x1b08] sm:$0xff] }
 0x5ad   : > { %v2248_v13 = vld [vmem:[%s25117_s4 + $0x1b28] sm:$0xff] }
 0x5ae   : > { %11944 = vmatpush1.bf16.msra.mxu0 %v16814_v16  ;;  %v1478_v16 = vld [vmem:[%s25117_s4 + $0x318] sm:$0xff] }
 0x5af   : > { %12722 = vmatpush1.bf16.msra.mxu1 %v16066_v48  ;;  %11945 = vmatprep.subr.bf16.mxu0 %v16823_v0  ;;  %v1482_v48 = vld [vmem:[%s25117_s4 + $0x338] sm:$0xff]  ;;  %v16846_v0 = vcombine.low %v2220_v23, %v2224_v27  ;;  %v16871_v23 = vcombine.high %v2244_v17, %v2248_v13 }
 0x5b0   : > { %12723 = vmatprep.subr.bf16.mxu1 %v16075_v32  ;;  %v16098_v32 = vcombine.low %v1470_v30, %v1474_v38  ;;  %v16107_v4 = vcombine.high %v1478_v16, %v1482_v48  ;;  %v2252_v30 = vld [vmem:[%s25117_s4 + $0x1b48] sm:$0xff] }
 0x5b1   : > { %v2256_v38 = vld [vmem:[%s25117_s4 + $0x1b68] sm:$0xff] }
 0x5b2   : > { %11946 = vmatpush1.bf16.msra.mxu0 %v16822_v26  ;;  %v1486_v26 = vld [vmem:[%s25117_s4 + $0x358] sm:$0xff] }
 0x5b3   : > { %12724 = vmatpush1.bf16.msra.mxu1 %v16074_v29  ;;  %11947 = vmatprep.subr.bf16.mxu0 %v16831_v33  ;;  %v1490_v29 = vld [vmem:[%s25117_s4 + $0x378] sm:$0xff]  ;;  %v16854_v33 = vcombine.low %v2228_v59, %v2232_v47  ;;  %v16879_v59 = vcombine.high %v2252_v30, %v2256_v38 }
 0x5b4   : > { %12725 = vmatprep.subr.bf16.mxu1 %v16083_v35  ;;  %v16106_v35 = vcombine.low %v1478_v16, %v1482_v48  ;;  %v16115_v25 = vcombine.high %v1486_v26, %v1490_v29  ;;  %v2260_v16 = vld [vmem:[%s25117_s4 + $0x1b88] sm:$0xff] }
 0x5b5   : > { %v2264_v48 = vld [vmem:[%s25117_s4 + $0x1ba8] sm:$0xff] }
 0x5b6   : > { %11948 = vmatpush1.bf16.msra.mxu0 %v16830_v15  ;;  %v1494_v15 = vld [vmem:[%s25117_s4 + $0x398] sm:$0xff] }
 0x5b7   : > { %12726 = vmatpush1.bf16.msra.mxu1 %v16082_v1  ;;  %11949 = vmatprep.subr.bf16.mxu0 %v16839_v46  ;;  %v1498_v1 = vld [vmem:[%s25117_s4 + $0x3b8] sm:$0xff]  ;;  %v16862_v46 = vcombine.low %v2236_v8, %v2240_v18  ;;  %v16887_v8 = vcombine.high %v2260_v16, %v2264_v48 }
 0x5b8   : > { %12727 = vmatprep.subr.bf16.mxu1 %v16091_v61  ;;  %v16114_v61 = vcombine.low %v1486_v26, %v1490_v29  ;;  %v16123_v27 = vcombine.high %v1494_v15, %v1498_v1  ;;  %v2268_v26 = vld [vmem:[%s25117_s4 + $0x1bc8] sm:$0xff] }
 0x5b9   : > { %v2272_v29 = vld [vmem:[%s25117_s4 + $0x1be8] sm:$0xff] }
 0x5ba   : > { %11950 = vmatpush1.bf16.msra.mxu0 %v16838_v57  ;;  %v1502_v57 = vld [vmem:[%s25117_s4 + $0x3d8] sm:$0xff] }
 0x5bb   : > { %12728 = vmatpush1.bf16.msra.mxu1 %v16090_v5  ;;  %11951 = vmatprep.subr.bf16.mxu0 %v16847_v22  ;;  %v1506_v5 = vld [vmem:[%s25117_s4 + $0x3f8] sm:$0xff]  ;;  %v16870_v22 = vcombine.low %v2244_v17, %v2248_v13  ;;  %v16895_v17 = vcombine.high %v2268_v26, %v2272_v29 }
 0x5bc   : > { %12729 = vmatprep.subr.bf16.mxu1 %v16099_v62  ;;  %v16122_v62 = vcombine.low %v1494_v15, %v1498_v1  ;;  %v16131_v47 = vcombine.high %v1502_v57, %v1506_v5  ;;  %v1526_v15 = vld [vmem:[%s25117_s4 + $0x498] sm:$0xff] }
 0x5bd   : > { %v1530_v1 = vld [vmem:[%s25117_s4 + $0x4b8] sm:$0xff] }
 0x5be   : > { %11952 = vmatpush1.bf16.msra.mxu0 %v16846_v0  ;;  %v1510_v0 = vld [vmem:[%s25117_s4 + $0x418] sm:$0xff] }
 0x5bf   : > { %12730 = vmatpush1.bf16.msra.mxu1 %v16098_v32  ;;  %11953 = vmatprep.subr.bf16.mxu0 %v16855_v2  ;;  %v1514_v32 = vld [vmem:[%s25117_s4 + $0x438] sm:$0xff]  ;;  %v16878_v2 = vcombine.low %v2252_v30, %v2256_v38  ;;  %v16154_v38 = vcombine.low %v1526_v15, %v1530_v1 }
 0x5c0   : > { %12731 = vmatprep.subr.bf16.mxu1 %v16107_v4  ;;  %v16130_v4 = vcombine.low %v1502_v57, %v1506_v5  ;;  %v16139_v18 = vcombine.high %v1510_v0, %v1514_v32  ;;  %v1534_v30 = vld [vmem:[%s25117_s4 + $0x4d8] sm:$0xff]  ;;  %v18224_v57 = vld [vmem:[%s25122_s9 + $0x24] ss:$16 sps:$4 sm:$0xff]  }
 0x5c2   : > { %11954 = vmatpush1.bf16.msra.mxu0 %v16854_v33  ;;  %v1518_v33 = vld [vmem:[%s25117_s4 + $0x458] sm:$0xff] }
 0x5c3   : > { %12732 = vmatpush1.bf16.msra.mxu1 %v16106_v35  ;;  %11955 = vmatprep.subr.bf16.mxu0 %v16863_v36  ;;  %v1522_v35 = vld [vmem:[%s25117_s4 + $0x478] sm:$0xff]  ;;  %v16886_v36 = vcombine.low %v2260_v16, %v2264_v48  ;;  %v18227_v16 = vld [vmem:[%s25122_s9 + $0x44] ss:$16 sps:$4 sm:$0xff]  }
 0x5c4   : > { %12733 = vmatprep.subr.bf16.mxu1 %v16115_v25  ;;  %v16138_v25 = vcombine.low %v1510_v0, %v1514_v32  ;;  %v16147_v13 = vcombine.high %v1518_v33, %v1522_v35  ;;  %v1550_v0 = vld [vmem:[%s25117_s4 + $0x558] sm:$0xff] }
 0x5c5   : > { %v1554_v32 = vld [vmem:[%s25117_s4 + $0x578] sm:$0xff] }
 0x5c6   : > { %11956 = vmatpush1.bf16.msra.mxu0 %v16862_v46  ;;  %v16894_v46 = vcombine.low %v2268_v26, %v2272_v29  ;;  %v1558_v26 = vld [vmem:[%s25117_s4 + $0x598] sm:$0xff] }
 0x5c7   : > { %12734 = vmatpush1.bf16.msra.mxu1 %v16114_v61  ;;  %11957 = vmatprep.subr.bf16.mxu0 %v16871_v23  ;;  %v16146_v61 = vcombine.low %v1518_v33, %v1522_v35  ;;  %v18221_v23 = vld [vmem:[%s25122_s9 + $0x4] ss:$16 sps:$4 sm:$0xff]   ;;  %v1562_v29 = vld [vmem:[%s25117_s4 + $0x5b8] sm:$0xff]  ;;  %v18228_v33 = vld [vmem:[%s25122_s9 + $0x60] ss:$16 sps:$4 sm:$0xff]   ;;  %v16178_v35 = vcombine.low %v1550_v0, %v1554_v32 }
 0x5c8   : > { %12735 = vmatprep.subr.bf16.mxu1 %v16123_v27  ;;  %v16155_v27 = vcombine.high %v1526_v15, %v1530_v1  ;;  %v18231_v15 = vld [vmem:[%s25122_s9 + $0x80] ss:$16 sps:$4 sm:$0xff]   ;;  %v16186_v1 = vcombine.low %v1558_v26, %v1562_v29 }
 0x5ca   : > { %11958 = vmatpush1.bf16.msra.mxu0 %v16870_v22  ;;  %v1542_v22 = vld [vmem:[%s25117_s4 + $0x518] sm:$0xff] }
 0x5cb   : > { %12736 = vmatpush1.bf16.msra.mxu1 %v16122_v62  ;;  %11959 = vmatprep.subr.bf16.mxu0 %v16879_v59  ;;  %v1546_v62 = vld [vmem:[%s25117_s4 + $0x538] sm:$0xff]  ;;  %v18222_v59 = vld [vmem:[%s25122_s9 + $0x20] ss:$16 sps:$4 sm:$0xff]  }
 0x5cc   : > { %12737 = vmatprep.subr.bf16.mxu1 %v16131_v47  ;;  %v16171_v48 = vcombine.high %v1542_v22, %v1546_v62 }
 0x5ce   : > { %11960 = vmatpush1.bf16.msra.mxu0 %v16878_v2  ;;  %v18225_v2 = vld [vmem:[%s25122_s9 + $0x40] ss:$16 sps:$4 sm:$0xff]  }
 0x5cf   : > { %12738 = vmatpush1.bf16.msra.mxu1 %v16130_v4  ;;  %11961 = vmatprep.subr.bf16.mxu0 %v16887_v8  ;;  %v16170_v4 = vcombine.low %v1542_v22, %v1546_v62  ;;  %v18230_v8 = vld [vmem:[%s25122_s9 + $0x64] ss:$16 sps:$4 sm:$0xff]   ;;  %v18237_v22 = vld [vmem:[%s25122_s9 + $0xc0] ss:$16 sps:$4 sm:$0xff]  }
 0x5d0   : > { %12750 = vmatprep.subr.bf16.mxu1 %v16139_v18  ;;  %v16179_v18 = vcombine.high %v1550_v0, %v1554_v32  ;;  %v18240_v0 = vld [vmem:[%s25122_s9 + $0xe0] ss:$16 sps:$4 sm:$0xff]  }
 0x5d2   : > { %12740 = vmatmul.mubr.bf16.vlgmr.msra.gmra.mrb[8].mxu1 %v19460_v20  ;;  %11962 = vmatpush1.bf16.msra.mxu0 %v16886_v36  ;;  %v1538_v20 = vld [vmem:[%s25117_s4 + $0x4f8] sm:$0xff]  ;;  %v18233_v36 = vld [vmem:[%s25122_s9 + $0x84] ss:$16 sps:$4 sm:$0xff]  }
 0x5d3   : > { %12751 = vmatpush1.bf16.msra.mxu1 %v16138_v25  ;;  %12782 = vmatprep.mubr.bf16.mxu1 %v19487_v21  ;;  %v18219_v21 = vld [vmem:[%s25122_s9] ss:$16 sps:$4 sm:$0xff]   ;;  %v16163_v5 = vcombine.high %v1534_v30, %v1538_v20  ;;  %v16162_v47 = vcombine.low %v1534_v30, %v1538_v20  ;;  %v16187_v25 = vcombine.high %v1558_v26, %v1562_v29 }
 0x5d4   : > { %11963 = vmatprep.subr.bf16.mxu0 %v16895_v17  ;;  %12752 = vmatprep.subr.bf16.mxu1 %v16147_v13  ;;  %v1566_v17 = vld [vmem:[%s25117_s4 + $0x5d8] sm:$0xff]  ;;  %v18234_v30 = vld [vmem:[%s25122_s9 + $0xa0] ss:$16 sps:$4 sm:$0xff]  }
 0x5d5   : > { %v1570_v13 = vld [vmem:[%s25117_s4 + $0x5f8] sm:$0xff]  ;;  %v18243_v26 = vld [vmem:[%s25122_s9 + $0x100] ss:$16 sps:$4 sm:$0xff]  }
 0x5d6   : > { %11964 = vmatpush1.bf16.msra.mxu0 %v16894_v46  ;;  %v18236_v46 = vld [vmem:[%s25122_s9 + $0xa4] ss:$16 sps:$4 sm:$0xff]   ;;  %v16194_v20 = vcombine.low %v1566_v17, %v1570_v13 }
 0x5d7   : > { %12753 = vmatpush1.bf16.msra.mxu1 %v16146_v61  ;;  %14979 = vmatprep.subr.bf16.mxu0 %v18221_v23  ;;  %v16195_v61 = vcombine.high %v1566_v17, %v1570_v13  ;;  %v1574_v23 = vld [vmem:[%s25117_s4 + $0x618] sm:$0xff]  ;;  %v18246_v17 = vld [vmem:[%s25122_s9 + $0x120] ss:$16 sps:$4 sm:$0xff]  }
 0x5d8   : > { %12754 = vmatprep.subr.bf16.mxu1 %v16155_v27  ;;  %v1578_v27 = vld [vmem:[%s25117_s4 + $0x638] sm:$0xff] }
 0x5d9   : > { %11966 = vmatmul.mubr.bf16.vlgmr.msra.gmra.mrb[52].mxu0 %v19594_v51  ;;  %v16202_v62 = vcombine.low %v1574_v23, %v1578_v27 }
 0x5da   : > { %14980 = vmatpush1.bf16.msra.mxu0 %v18219_v21  ;;  %15011 = vmatprep.mubr.bf16.mxu0 %v22363_v58  ;;  %v18239_v21 = vld [vmem:[%s25122_s9 + $0xc4] ss:$16 sps:$4 sm:$0xff]  }
 0x5db   : > { %12755 = vmatpush1.bf16.msra.mxu1 %v16154_v38  ;;  %14981 = vmatprep.subr.bf16.mxu0 %v18224_v57  ;;  %v16203_v38 = vcombine.high %v1574_v23, %v1578_v27  ;;  %v1582_v57 = vld [vmem:[%s25117_s4 + $0x658] sm:$0xff]  ;;  %v18249_v23 = vld [vmem:[%s25122_s9 + $0x140] ss:$16 sps:$4 sm:$0xff]  }
 0x5dc   : > { %12756 = vmatprep.subr.bf16.mxu1 %v16163_v5  ;;  %v1586_v5 = vld [vmem:[%s25117_s4 + $0x678] sm:$0xff] }
 0x5dd   : > { %v16210_v32 = vcombine.low %v1582_v57, %v1586_v5 }
 0x5de   : > { %14982 = vmatpush1.bf16.msra.mxu0 %v18222_v59  ;;  %v18242_v59 = vld [vmem:[%s25122_s9 + $0xe4] ss:$16 sps:$4 sm:$0xff]  }
 0x5df   : > { %12757 = vmatpush1.bf16.msra.mxu1 %v16162_v47  ;;  %14983 = vmatprep.subr.bf16.mxu0 %v18227_v16  ;;  %v16211_v47 = vcombine.high %v1582_v57, %v1586_v5  ;;  %v1590_v16 = vld [vmem:[%s25117_s4 + $0x698] sm:$0xff]  ;;  %v18252_v57 = vld [vmem:[%s25122_s9 + $0x160] ss:$16 sps:$4 sm:$0xff]  }
 0x5e0   : > { %12758 = vmatprep.subr.bf16.mxu1 %v16171_v48  ;;  %v1594_v48 = vld [vmem:[%s25117_s4 + $0x6b8] sm:$0xff] }
 0x5e1   : > { %v16218_v29 = vcombine.low %v1590_v16, %v1594_v48 }
 0x5e2   : > { %14984 = vmatpush1.bf16.msra.mxu0 %v18225_v2  ;;  %v18245_v2 = vld [vmem:[%s25122_s9 + $0x104] ss:$16 sps:$4 sm:$0xff]  }
 0x5e3   : > { %12759 = vmatpush1.bf16.msra.mxu1 %v16170_v4  ;;  %14985 = vmatprep.subr.bf16.mxu0 %v18230_v8  ;;  %v16219_v4 = vcombine.high %v1590_v16, %v1594_v48  ;;  %v1598_v8 = vld [vmem:[%s25117_s4 + $0x6d8] sm:$0xff]  ;;  %v18255_v16 = vld [vmem:[%s25122_s9 + $0x180] ss:$16 sps:$4 sm:$0xff]  }
 0x5e4   : > { %12760 = vmatprep.subr.bf16.mxu1 %v16179_v18  ;;  %v1602_v18 = vld [vmem:[%s25117_s4 + $0x6f8] sm:$0xff] }
 0x5e5   : > { %v16226_v13 = vcombine.low %v1598_v8, %v1602_v18 }
 0x5e6   : > { %14986 = vmatpush1.bf16.msra.mxu0 %v18228_v33  ;;  %v18248_v33 = vld [vmem:[%s25122_s9 + $0x124] ss:$16 sps:$4 sm:$0xff]  }
 0x5e7   : > { %12761 = vmatpush1.bf16.msra.mxu1 %v16178_v35  ;;  %14987 = vmatprep.subr.bf16.mxu0 %v18233_v36  ;;  %v16227_v35 = vcombine.high %v1598_v8, %v1602_v18  ;;  %v1606_v36 = vld [vmem:[%s25117_s4 + $0x718] sm:$0xff]  ;;  %v18258_v8 = vld [vmem:[%s25122_s9 + $0x1a0] ss:$16 sps:$4 sm:$0xff]  }
 0x5e8   : > { %12762 = vmatprep.subr.bf16.mxu1 %v16187_v25  ;;  %v1610_v25 = vld [vmem:[%s25117_s4 + $0x738] sm:$0xff] }
 0x5e9   : > { %v16234_v27 = vcombine.low %v1606_v36, %v1610_v25 }
 0x5ea   : > { %14988 = vmatpush1.bf16.msra.mxu0 %v18231_v15  ;;  %v18251_v15 = vld [vmem:[%s25122_s9 + $0x144] ss:$16 sps:$4 sm:$0xff]  }
 0x5eb   : > { %12763 = vmatpush1.bf16.msra.mxu1 %v16186_v1  ;;  %14989 = vmatprep.subr.bf16.mxu0 %v18236_v46  ;;  %v16235_v1 = vcombine.high %v1606_v36, %v1610_v25  ;;  %v1614_v46 = vld [vmem:[%s25117_s4 + $0x758] sm:$0xff]  ;;  %v18261_v36 = vld [vmem:[%s25122_s9 + $0x1c0] ss:$16 sps:$4 sm:$0xff]  }
 0x5ec   : > { %12764 = vmatprep.subr.bf16.mxu1 %v16195_v61  ;;  %v1618_v61 = vld [vmem:[%s25117_s4 + $0x778] sm:$0xff] }
 0x5ed   : > { %v16242_v5 = vcombine.low %v1614_v46, %v1618_v61 }
 0x5ee   : > { %14990 = vmatpush1.bf16.msra.mxu0 %v18234_v30  ;;  %v18254_v30 = vld [vmem:[%s25122_s9 + $0x164] ss:$16 sps:$4 sm:$0xff]  }
 0x5ef   : > { %12765 = vmatpush1.bf16.msra.mxu1 %v16194_v20  ;;  %14991 = vmatprep.subr.bf16.mxu0 %v18239_v21  ;;  %v16243_v20 = vcombine.high %v1614_v46, %v1618_v61  ;;  %v1622_v21 = vld [vmem:[%s25117_s4 + $0x798] sm:$0xff]  ;;  %v18264_v46 = vld [vmem:[%s25122_s9 + $0x1e0] ss:$16 sps:$4 sm:$0xff]  }
 0x5f0   : > { %12766 = vmatprep.subr.bf16.mxu1 %v16203_v38  ;;  %v1626_v38 = vld [vmem:[%s25117_s4 + $0x7b8] sm:$0xff] }
 0x5f1   : > { %v16250_v48 = vcombine.low %v1622_v21, %v1626_v38 }
 0x5f2   : > { %14992 = vmatpush1.bf16.msra.mxu0 %v18237_v22  ;;  %v18257_v22 = vld [vmem:[%s25122_s9 + $0x184] ss:$16 sps:$4 sm:$0xff]  }
 0x5f3   : > { %12767 = vmatpush1.bf16.msra.mxu1 %v16202_v62  ;;  %14993 = vmatprep.subr.bf16.mxu0 %v18242_v59  ;;  %v16251_v62 = vcombine.high %v1622_v21, %v1626_v38  ;;  %v1630_v59 = vld [vmem:[%s25117_s4 + $0x7d8] sm:$0xff]  ;;  %v18272_v21 = vld [vmem:[%s25122_s9 + $0x224] ss:$16 sps:$4 sm:$0xff]  }
 0x5f4   : > { %12768 = vmatprep.subr.bf16.mxu1 %v16211_v47  ;;  %v1634_v47 = vld [vmem:[%s25117_s4 + $0x7f8] sm:$0xff] }
 0x5f5   : > { %v16258_v18 = vcombine.low %v1630_v59, %v1634_v47 }
 0x5f6   : > { %14994 = vmatpush1.bf16.msra.mxu0 %v18240_v0  ;;  %v18260_v0 = vld [vmem:[%s25122_s9 + $0x1a4] ss:$16 sps:$4 sm:$0xff]  }
 0x5f7   : > { %12769 = vmatpush1.bf16.msra.mxu1 %v16210_v32  ;;  %14995 = vmatprep.subr.bf16.mxu0 %v18245_v2  ;;  %v16259_v32 = vcombine.high %v1630_v59, %v1634_v47  ;;  %v1638_v2 = vld [vmem:[%s25117_s4 + $0x818] sm:$0xff]  ;;  %v18275_v59 = vld [vmem:[%s25122_s9 + $0x244] ss:$16 sps:$4 sm:$0xff]  }
 0x5f8   : > { %12770 = vmatprep.subr.bf16.mxu1 %v16219_v4  ;;  %v1642_v4 = vld [vmem:[%s25117_s4 + $0x838] sm:$0xff] }
 0x5f9   : > { %v16266_v25 = vcombine.low %v1638_v2, %v1642_v4 }
 0x5fa   : > { %14996 = vmatpush1.bf16.msra.mxu0 %v18243_v26  ;;  %v18263_v26 = vld [vmem:[%s25122_s9 + $0x1c4] ss:$16 sps:$4 sm:$0xff]  }
 0x5fb   : > { %12771 = vmatpush1.bf16.msra.mxu1 %v16218_v29  ;;  %14997 = vmatprep.subr.bf16.mxu0 %v18248_v33  ;;  %v16267_v29 = vcombine.high %v1638_v2, %v1642_v4  ;;  %v1646_v33 = vld [vmem:[%s25117_s4 + $0x858] sm:$0xff]  ;;  %v18278_v2 = vld [vmem:[%s25122_s9 + $0x264] ss:$16 sps:$4 sm:$0xff]  }
 0x5fc   : > { %12772 = vmatprep.subr.bf16.mxu1 %v16227_v35  ;;  %v1650_v35 = vld [vmem:[%s25117_s4 + $0x878] sm:$0xff] }
 0x5fd   : > { %v16274_v61 = vcombine.low %v1646_v33, %v1650_v35 }
 0x5fe   : > { %14998 = vmatpush1.bf16.msra.mxu0 %v18246_v17  ;;  %v16275_v17 = vcombine.high %v1646_v33, %v1650_v35  ;;  %v18281_v33 = vld [vmem:[%s25122_s9 + $0x284] ss:$16 sps:$4 sm:$0xff]  }
 0x5ff   : > { %12773 = vmatpush1.bf16.msra.mxu1 %v16226_v13  ;;  %14999 = vmatprep.subr.bf16.mxu0 %v18251_v15  ;;  %v18266_v13 = vld [vmem:[%s25122_s9 + $0x1e4] ss:$16 sps:$4 sm:$0xff]   ;;  %v1654_v15 = vld [vmem:[%s25117_s4 + $0x898] sm:$0xff] }
 0x600   : > { %12774 = vmatprep.subr.bf16.mxu1 %v16235_v1  ;;  %v1658_v1 = vld [vmem:[%s25117_s4 + $0x8b8] sm:$0xff] }
 0x602   : > { %15000 = vmatpush1.bf16.msra.mxu0 %v18249_v23  ;;  %v18269_v23 = vld [vmem:[%s25122_s9 + $0x204] ss:$16 sps:$4 sm:$0xff]  }
 0x603   : > { %12775 = vmatpush1.bf16.msra.mxu1 %v16234_v27  ;;  %15001 = vmatprep.subr.bf16.mxu0 %v18254_v30  ;;  %v16283_v27 = vcombine.high %v1654_v15, %v1658_v1  ;;  %v1666_v30 = vld [vmem:[%s25117_s4 + $0x8f8] sm:$0xff] }
 0x604   : > { %12776 = vmatprep.subr.bf16.mxu1 %v16243_v20  ;;  %v16282_v20 = vcombine.low %v1654_v15, %v1658_v1  ;;  %v18284_v15 = vld [vmem:[%s25122_s9 + $0x2a4] ss:$16 sps:$4 sm:$0xff]  }
 0x606   : > { %15002 = vmatpush1.bf16.msra.mxu0 %v18252_v57  ;;  %v1670_v57 = vld [vmem:[%s25117_s4 + $0x918] sm:$0xff] }
 0x607   : > { %12777 = vmatpush1.bf16.msra.mxu1 %v16242_v5  ;;  %15003 = vmatprep.subr.bf16.mxu0 %v18257_v22  ;;  %v1674_v5 = vld [vmem:[%s25117_s4 + $0x938] sm:$0xff]  ;;  %v18270_v22 = vld [vmem:[%s25122_s9 + $0x220] ss:$16 sps:$4 sm:$0xff]  }
 0x608   : > { %12778 = vmatprep.subr.bf16.mxu1 %v16251_v62  ;;  %v16299_v47 = vcombine.high %v1670_v57, %v1674_v5 }
 0x60a   : > { %15004 = vmatpush1.bf16.msra.mxu0 %v18255_v16  ;;  %v1678_v16 = vld [vmem:[%s25117_s4 + $0x958] sm:$0xff] }
 0x60b   : > { %12779 = vmatpush1.bf16.msra.mxu1 %v16250_v48  ;;  %15005 = vmatprep.subr.bf16.mxu0 %v18260_v0  ;;  %v1682_v48 = vld [vmem:[%s25117_s4 + $0x978] sm:$0xff]  ;;  %v18273_v0 = vld [vmem:[%s25122_s9 + $0x240] ss:$16 sps:$4 sm:$0xff]  }
 0x60c   : > { %12780 = vmatprep.subr.bf16.mxu1 %v16259_v32  ;;  %v16298_v32 = vcombine.low %v1670_v57, %v1674_v5  ;;  %v16307_v4 = vcombine.high %v1678_v16, %v1682_v48  ;;  %v18290_v57 = vld [vmem:[%s25122_s9 + $0x2e4] ss:$16 sps:$4 sm:$0xff]  }
 0x60e   : > { %15006 = vmatpush1.bf16.msra.mxu0 %v18258_v8  ;;  %v1686_v8 = vld [vmem:[%s25117_s4 + $0x998] sm:$0xff] }
 0x60f   : > { %12781 = vmatpush1.bf16.msra.mxu1 %v16258_v18  ;;  %15007 = vmatprep.subr.bf16.mxu0 %v18263_v26  ;;  %v1690_v18 = vld [vmem:[%s25117_s4 + $0x9b8] sm:$0xff]  ;;  %v18276_v26 = vld [vmem:[%s25122_s9 + $0x260] ss:$16 sps:$4 sm:$0xff]  }
 0x610   : > { %12793 = vmatprep.subr.bf16.mxu1 %v16267_v29  ;;  %v16306_v29 = vcombine.low %v1678_v16, %v1682_v48  ;;  %v16315_v35 = vcombine.high %v1686_v8, %v1690_v18  ;;  %v18293_v16 = vld [vmem:[%s25122_s9 + $0x304] ss:$16 sps:$4 sm:$0xff]  }
 0x612   : > { %12783 = vmatmul.mubr.bf16.vlgmr.msra.gmra.mrb[8].mxu1 %v19485_v19  ;;  %15008 = vmatpush1.bf16.msra.mxu0 %v18261_v36  ;;  %v1662_v19 = vld [vmem:[%s25117_s4 + $0x8d8] sm:$0xff] }
 0x613   : > { %12794 = vmatpush1.bf16.msra.mxu1 %v16266_v25  ;;  %12825 = vmatprep.mubr.bf16.mxu1 %v19516_v56  ;;  %v18267_v56 = vld [vmem:[%s25122_s9 + $0x200] ss:$16 sps:$4 sm:$0xff]   ;;  %v16291_v38 = vcombine.high %v1662_v19, %v1666_v30  ;;  %v16290_v62 = vcombine.low %v1662_v19, %v1666_v30  ;;  %v1694_v36 = vld [vmem:[%s25117_s4 + $0x9d8] sm:$0xff]  ;;  %v18287_v19 = vld [vmem:[%s25122_s9 + $0x2c4] ss:$16 sps:$4 sm:$0xff]  }
 0x614   : > { %12795 = vmatprep.subr.bf16.mxu1 %v16275_v17  ;;  %15009 = vmatprep.subr.bf16.mxu0 %v18266_v13  ;;  %v1698_v25 = vld [vmem:[%s25117_s4 + $0x9f8] sm:$0xff]  ;;  %v18279_v17 = vld [vmem:[%s25122_s9 + $0x280] ss:$16 sps:$4 sm:$0xff]   ;;  %v16314_v13 = vcombine.low %v1686_v8, %v1690_v18  ;;  %v18296_v8 = vld [vmem:[%s25122_s9 + $0x324] ss:$16 sps:$4 sm:$0xff]  }
 0x615   : > { %v16323_v1 = vcombine.high %v1694_v36, %v1698_v25 }
 0x616   : > { %15010 = vmatpush1.bf16.msra.mxu0 %v18264_v46  ;;  %v1702_v46 = vld [vmem:[%s25117_s4 + $0xa18] sm:$0xff] }
 0x617   : > { %12796 = vmatpush1.bf16.msra.mxu1 %v16274_v61  ;;  %15022 = vmatprep.subr.bf16.mxu0 %v18269_v23  ;;  %v1706_v61 = vld [vmem:[%s25117_s4 + $0xa38] sm:$0xff]  ;;  %v18282_v23 = vld [vmem:[%s25122_s9 + $0x2a0] ss:$16 sps:$4 sm:$0xff]  }
 0x618   : > { %12797 = vmatprep.subr.bf16.mxu1 %v16283_v27  ;;  %v16322_v27 = vcombine.low %v1694_v36, %v1698_v25  ;;  %v16331_v30 = vcombine.high %v1702_v46, %v1706_v61  ;;  %v18299_v36 = vld [vmem:[%s25122_s9 + $0x344] ss:$16 sps:$4 sm:$0xff]  }
 0x619   : > { %15012 = vmatmul.mubr.bf16.vlgmr.msra.gmra.mrb[56].mxu0 %v22355_v24 }
 0x61a   : > { %15023 = vmatpush1.bf16.msra.mxu0 %v18267_v56  ;;  %v1710_v56 = vld [vmem:[%s25117_s4 + $0xa58] sm:$0xff] }
 0x61b   : > { %12798 = vmatpush1.bf16.msra.mxu1 %v16282_v20  ;;  %15024 = vmatprep.subr.bf16.mxu0 %v18272_v21  ;;  %v1714_v20 = vld [vmem:[%s25117_s4 + $0xa78] sm:$0xff]  ;;  %v18285_v21 = vld [vmem:[%s25122_s9 + $0x2c0] ss:$16 sps:$4 sm:$0xff]  }
 0x61c   : > { %12799 = vmatprep.subr.bf16.mxu1 %v16291_v38  ;;  %v16330_v38 = vcombine.low %v1702_v46, %v1706_v61  ;;  %v16339_v5 = vcombine.high %v1710_v56, %v1714_v20  ;;  %v18302_v46 = vld [vmem:[%s25122_s9 + $0x364] ss:$16 sps:$4 sm:$0xff]  }
 0x61e   : > { %15025 = vmatpush1.bf16.msra.mxu0 %v18270_v22  ;;  %v1718_v22 = vld [vmem:[%s25117_s4 + $0xa98] sm:$0xff] }
 0x61f   : > { %12800 = vmatpush1.bf16.msra.mxu1 %v16290_v62  ;;  %15026 = vmatprep.subr.bf16.mxu0 %v18275_v59  ;;  %v1722_v62 = vld [vmem:[%s25117_s4 + $0xab8] sm:$0xff]  ;;  %v18288_v59 = vld [vmem:[%s25122_s9 + $0x2e0] ss:$16 sps:$4 sm:$0xff]  }
 0x620   : > { %12801 = vmatprep.subr.bf16.mxu1 %v16299_v47  ;;  %v16338_v47 = vcombine.low %v1710_v56, %v1714_v20  ;;  %v16347_v48 = vcombine.high %v1718_v22, %v1722_v62  ;;  %v18305_v56 = vld [vmem:[%s25122_s9 + $0x384] ss:$16 sps:$4 sm:$0xff]  }
 0x622   : > { %15027 = vmatpush1.bf16.msra.mxu0 %v18273_v0  ;;  %v1726_v0 = vld [vmem:[%s25117_s4 + $0xad8] sm:$0xff] }
 0x623   : > { %12802 = vmatpush1.bf16.msra.mxu1 %v16298_v32  ;;  %15028 = vmatprep.subr.bf16.mxu0 %v18278_v2  ;;  %v1730_v32 = vld [vmem:[%s25117_s4 + $0xaf8] sm:$0xff]  ;;  %v18291_v2 = vld [vmem:[%s25122_s9 + $0x300] ss:$16 sps:$4 sm:$0xff]  }
 0x624   : > { %12803 = vmatprep.subr.bf16.mxu1 %v16307_v4  ;;  %v16346_v4 = vcombine.low %v1718_v22, %v1722_v62  ;;  %v16355_v18 = vcombine.high %v1726_v0, %v1730_v32  ;;  %v18308_v22 = vld [vmem:[%s25122_s9 + $0x3a4] ss:$16 sps:$4 sm:$0xff]  }
 0x626   : > { %15029 = vmatpush1.bf16.msra.mxu0 %v18276_v26  ;;  %v1734_v26 = vld [vmem:[%s25117_s4 + $0xb18] sm:$0xff] }
 0x627   : > { %12804 = vmatpush1.bf16.msra.mxu1 %v16306_v29  ;;  %15030 = vmatprep.subr.bf16.mxu0 %v18281_v33  ;;  %v1738_v29 = vld [vmem:[%s25117_s4 + $0xb38] sm:$0xff]  ;;  %v18294_v33 = vld [vmem:[%s25122_s9 + $0x320] ss:$16 sps:$4 sm:$0xff]  }
 0x628   : > { %12805 = vmatprep.subr.bf16.mxu1 %v16315_v35  ;;  %v16354_v35 = vcombine.low %v1726_v0, %v1730_v32  ;;  %v16363_v25 = vcombine.high %v1734_v26, %v1738_v29  ;;  %v18311_v0 = vld [vmem:[%s25122_s9 + $0x3c4] ss:$16 sps:$4 sm:$0xff]  }
 0x62a   : > { %15031 = vmatpush1.bf16.msra.mxu0 %v18279_v17  ;;  %v1742_v17 = vld [vmem:[%s25117_s4 + $0xb58] sm:$0xff] }
 0x62b   : > { %12806 = vmatpush1.bf16.msra.mxu1 %v16314_v13  ;;  %15032 = vmatprep.subr.bf16.mxu0 %v18284_v15  ;;  %v1746_v13 = vld [vmem:[%s25117_s4 + $0xb78] sm:$0xff]  ;;  %v18297_v15 = vld [vmem:[%s25122_s9 + $0x340] ss:$16 sps:$4 sm:$0xff]  }
 0x62c   : > { %12807 = vmatprep.subr.bf16.mxu1 %v16323_v1  ;;  %v16362_v1 = vcombine.low %v1734_v26, %v1738_v29  ;;  %v16371_v61 = vcombine.high %v1742_v17, %v1746_v13  ;;  %v18314_v29 = vld [vmem:[%s25122_s9 + $0x3e4] ss:$16 sps:$4 sm:$0xff]  }
 0x62e   : > { %15033 = vmatpush1.bf16.msra.mxu0 %v18282_v23  ;;  %v1750_v23 = vld [vmem:[%s25117_s4 + $0xb98] sm:$0xff] }
 0x62f   : > { %12808 = vmatpush1.bf16.msra.mxu1 %v16322_v27  ;;  %15034 = vmatprep.subr.bf16.mxu0 %v18287_v19  ;;  %v1754_v27 = vld [vmem:[%s25117_s4 + $0xbb8] sm:$0xff]  ;;  %v18300_v19 = vld [vmem:[%s25122_s9 + $0x360] ss:$16 sps:$4 sm:$0xff]  }
 0x630   : > { %12809 = vmatprep.subr.bf16.mxu1 %v16331_v30  ;;  %v16370_v30 = vcombine.low %v1742_v17, %v1746_v13  ;;  %v16379_v20 = vcombine.high %v1750_v23, %v1754_v27  ;;  %v18317_v17 = vld [vmem:[%s25122_s9 + $0x404] ss:$16 sps:$4 sm:$0xff]  }
 0x632   : > { %15035 = vmatpush1.bf16.msra.mxu0 %v18285_v21  ;;  %v1758_v21 = vld [vmem:[%s25117_s4 + $0xbd8] sm:$0xff] }
 0x633   : > { %12810 = vmatpush1.bf16.msra.mxu1 %v16330_v38  ;;  %15036 = vmatprep.subr.bf16.mxu0 %v18290_v57  ;;  %v1762_v38 = vld [vmem:[%s25117_s4 + $0xbf8] sm:$0xff]  ;;  %v18303_v57 = vld [vmem:[%s25122_s9 + $0x380] ss:$16 sps:$4 sm:$0xff]  }
 0x634   : > { %12811 = vmatprep.subr.bf16.mxu1 %v16339_v5  ;;  %v16378_v5 = vcombine.low %v1750_v23, %v1754_v27  ;;  %v16387_v62 = vcombine.high %v1758_v21, %v1762_v38 }
 0x636   : > { %15037 = vmatpush1.bf16.msra.mxu0 %v18288_v59  ;;  %v1766_v59 = vld [vmem:[%s25117_s4 + $0xc18] sm:$0xff] }
 0x637   : > { %12812 = vmatpush1.bf16.msra.mxu1 %v16338_v47  ;;  %15038 = vmatprep.subr.bf16.mxu0 %v18293_v16  ;;  %v1770_v47 = vld [vmem:[%s25117_s4 + $0xc38] sm:$0xff]  ;;  %v18306_v16 = vld [vmem:[%s25122_s9 + $0x3a0] ss:$16 sps:$4 sm:$0xff]  }
 0x638   : > { %12813 = vmatprep.subr.bf16.mxu1 %v16347_v48  ;;  %v16386_v48 = vcombine.low %v1758_v21, %v1762_v38  ;;  %v16395_v32 = vcombine.high %v1766_v59, %v1770_v47  ;;  %v13247_v21 = vsub.s32 5, %v19433_v41 }
 0x63a   : > { %15039 = vmatpush1.bf16.msra.mxu0 %v18291_v2  ;;  %v1774_v2 = vld [vmem:[%s25117_s4 + $0xc58] sm:$0xff] }
 0x63b   : > { %12814 = vmatpush1.bf16.msra.mxu1 %v16346_v4  ;;  %15040 = vmatprep.subr.bf16.mxu0 %v18296_v8  ;;  %v1778_v4 = vld [vmem:[%s25117_s4 + $0xc78] sm:$0xff]  ;;  %v18309_v8 = vld [vmem:[%s25122_s9 + $0x3c0] ss:$16 sps:$4 sm:$0xff]  }
 0x63c   : > { %12815 = vmatprep.subr.bf16.mxu1 %v16355_v18  ;;  %v16394_v18 = vcombine.low %v1766_v59, %v1770_v47  ;;  %v16403_v26 = vcombine.high %v1774_v2, %v1778_v4 }
 0x63e   : > { %15041 = vmatpush1.bf16.msra.mxu0 %v18294_v33  ;;  %v1782_v33 = vld [vmem:[%s25117_s4 + $0xc98] sm:$0xff] }
 0x63f   : > { %12816 = vmatpush1.bf16.msra.mxu1 %v16354_v35  ;;  %15042 = vmatprep.subr.bf16.mxu0 %v18299_v36  ;;  %v1786_v35 = vld [vmem:[%s25117_s4 + $0xcb8] sm:$0xff]  ;;  %v18312_v36 = vld [vmem:[%s25122_s9 + $0x3e0] ss:$16 sps:$4 sm:$0xff]  }
 0x640   : > { %12817 = vmatprep.subr.bf16.mxu1 %v16363_v25  ;;  %v16402_v25 = vcombine.low %v1774_v2, %v1778_v4  ;;  %v16411_v13 = vcombine.high %v1782_v33, %v1786_v35  ;;  %v23463_v4 = vld [vmem:[%s25120_s7] sm:$0xff] }
 0x642   : > { %15043 = vmatpush1.bf16.msra.mxu0 %v18297_v15  ;;  %v1794_v15 = vld [vmem:[%s25117_s4 + $0xcf8] sm:$0xff] }
 0x643   : > { %12818 = vmatpush1.bf16.msra.mxu1 %v16362_v1  ;;  %15044 = vmatprep.subr.bf16.mxu0 %v18302_v46  ;;  %v16410_v1 = vcombine.low %v1782_v33, %v1786_v35  ;;  %v1798_v46 = vld [vmem:[%s25117_s4 + $0xd18] sm:$0xff] }
 0x644   : > { %12819 = vmatprep.subr.bf16.mxu1 %v16371_v61  ;;  %v1802_v61 = vld [vmem:[%s25117_s4 + $0xd38] sm:$0xff] }
 0x645   : > { %v16427_v27 = vcombine.high %v1798_v46, %v1802_v61 }
 0x646   : > { %15045 = vmatpush1.bf16.msra.mxu0 %v18300_v19  ;;  %v1806_v19 = vld [vmem:[%s25117_s4 + $0xd58] sm:$0xff] }
 0x647   : > { %12820 = vmatpush1.bf16.msra.mxu1 %v16370_v30  ;;  %15046 = vmatprep.subr.bf16.mxu0 %v18305_v56  ;;  %v1810_v30 = vld [vmem:[%s25117_s4 + $0xd78] sm:$0xff]  ;;  %v13243_v56 = vsub.s32 4, %v19433_v41 }
 0x648   : > { %12821 = vmatprep.subr.bf16.mxu1 %v16379_v20  ;;  %v16426_v20 = vcombine.low %v1798_v46, %v1802_v61  ;;  %v16435_v38 = vcombine.high %v1806_v19, %v1810_v30  ;;  %v16434_v47 = vcombine.low %v1806_v19, %v1810_v30  ;;  %v23476_v61 = vld [vmem:[%s25121_s8] sm:$0xff] }
 0x649   : > { %v13380_v30 = vrot.slane %v23476_v61, %v13247_v21 }
 0x64a   : > { %15047 = vmatpush1.bf16.msra.mxu0 %v18303_v57  ;;  %v1814_v57 = vld [vmem:[%s25117_s4 + $0xd98] sm:$0xff] }
 0x64b   : > { %12822 = vmatpush1.bf16.msra.mxu1 %v16378_v5  ;;  %15048 = vmatprep.subr.bf16.mxu0 %v18308_v22  ;;  %v1818_v5 = vld [vmem:[%s25117_s4 + $0xdb8] sm:$0xff]  ;;  %v23450_v22 = vld [vmem:[%s25119_s6] sm:$0xff] }
 0x64c   : > { %12823 = vmatprep.subr.bf16.mxu1 %v16387_v62  ;;  %v13244_v62 = vrot.slane %v23450_v22, %v13243_v56  ;;  %v13248_v59 = vrot.slane %v23450_v22, %v13247_v21  ;;  %v16442_v35 = vcombine.low %v1814_v57, %v1818_v5 }
 0x64e   : > { %15049 = vmatpush1.bf16.msra.mxu0 %v18306_v16  ;;  %v16443_v16 = vcombine.high %v1814_v57, %v1818_v5 }
 0x64f   : > { %12824 = vmatpush1.bf16.msra.mxu1 %v16386_v48  ;;  %15050 = vmatprep.subr.bf16.mxu0 %v18311_v0  ;;  %v1822_v0 = vld [vmem:[%s25117_s4 + $0xdd8] sm:$0xff] }
 0x650   : > { %12836 = vmatprep.subr.bf16.mxu1 %v16395_v32  ;;  %v1826_v32 = vld [vmem:[%s25117_s4 + $0xdf8] sm:$0xff] }
 0x652   : > { %12826 = vmatmul.mubr.bf16.vlgmr.msra.gmra.mrb[8].mxu1 %v19512_v54  ;;  %15051 = vmatpush1.bf16.msra.mxu0 %v18309_v8  ;;  %v1790_v54 = vld [vmem:[%s25117_s4 + $0xcd8] sm:$0xff]  ;;  %v13318_v8 = vrot.slane %v23463_v4, %v13243_v56 }
 0x653   : > { %12837 = vmatpush1.bf16.msra.mxu1 %v16394_v18  ;;  %12868 = vmatprep.mubr.bf16.mxu1 %v19536_v12  ;;  %v16419_v12 = vcombine.high %v1790_v54, %v1794_v15  ;;  %v16418_v23 = vcombine.low %v1790_v54, %v1794_v15 }
 0x654   : > { %12838 = vmatprep.subr.bf16.mxu1 %v16403_v26  ;;  %15052 = vmatprep.subr.bf16.mxu0 %v18314_v29  ;;  %v13322_v29 = vrot.slane %v23463_v4, %v13247_v21 }
 0x656   : > { %15053 = vmatpush1.bf16.msra.mxu0 %v18312_v36 }
 0x657   : > { %12839 = vmatpush1.bf16.msra.mxu1 %v16402_v25  ;;  %15065 = vmatprep.subr.bf16.mxu0 %v18317_v17 }
 0x658   : > { %12840 = vmatprep.subr.bf16.mxu1 %v16411_v13  ;;  %v16451_v13 = vcombine.high %v1822_v0, %v1826_v32 }
 0x65b   : > { %12841 = vmatpush1.bf16.msra.mxu1 %v16410_v1  ;;  %v1830_v1 = vld [vmem:[%s25117_s4 + $0xe18] sm:$0xff] }
 0x65c   : > { %12842 = vmatprep.subr.bf16.mxu1 %v16419_v12  ;;  %v1834_v12 = vld [vmem:[%s25117_s4 + $0xe38] sm:$0xff] }
 0x65d   : > { %v16459_v5 = vcombine.high %v1830_v1, %v1834_v12  ;;  %v16458_v21 = vcombine.low %v1830_v1, %v1834_v12  ;;  %v1870_v12 = vld [vmem:[%s25117_s4 + $0xf58] sm:$0xff] }
 0x65f   : > { %12843 = vmatpush1.bf16.msra.mxu1 %v16418_v23  ;;  %v13376_v23 = vrot.slane %v23476_v61, %v13243_v56 }
 0x660   : > { %12844 = vmatprep.subr.bf16.mxu1 %v16427_v27 }
 0x663   : > { %12845 = vmatpush1.bf16.msra.mxu1 %v16426_v20 }
 0x664   : > { %12846 = vmatprep.subr.bf16.mxu1 %v16435_v38  ;;  %v16450_v38 = vcombine.low %v1822_v0, %v1826_v32  ;;  %v1846_v32 = vld [vmem:[%s25117_s4 + $0xe98] sm:$0xff] }
 0x665   : > { %v12698_v48 = vpop.f32.mrb[4].mxu1 }
 0x666   : > { %v13269_v2 = vadd.f32 %v13244_v62, %v12698_v48  ;;  %v12700_v18 = vpop.f32.mrb[5].mxu1 }
 0x667   : > { %v13270_v26 = vadd.f32 %v13248_v59, %v12700_v18  ;;  %v12702_v33 = vpop.f32.mrb[6].mxu1  ;;  %12847 = vmatpush1.bf16.msra.mxu1 %v16434_v47  ;;  %v1842_v47 = vld [vmem:[%s25117_s4 + $0xe78] sm:$0xff] }
 0x668   : > { %v13285_v36 = vmax.f32 %v13269_v2, 0.0  ;;  %v13277_v25 = vadd.f32 %v13244_v62, %v12702_v33  ;;  %v12704_v17 = vpop.f32.mrb[7].mxu1  ;;  %12848 = vmatprep.subr.bf16.mxu1 %v16443_v16 }
 0x669   : > { %v13286_v54 = vmax.f32 %v13270_v26, 0.0  ;;  %v13278_v15 = vadd.f32 %v13248_v59, %v12704_v17  ;;  %v1838_v59 = vld [vmem:[%s25117_s4 + $0xe58] sm:$0xff] }
 0x66a   : > { %v13343_v46 = vmul.f32 %v13318_v8, %v13285_v36  ;;  %v13293_v27 = vmax.f32 %v13277_v25, 0.0  ;;  %v16467_v0 = vcombine.high %v1838_v59, %v1842_v47  ;;  %v1858_v36 = vld [vmem:[%s25117_s4 + $0xef8] sm:$0xff] }
 0x66b   : > { %v13344_v19 = vmul.f32 %v13322_v29, %v13286_v54  ;;  %v13294_v20 = vmax.f32 %v13278_v15, 0.0  ;;  %12849 = vmatpush1.bf16.msra.mxu1 %v16442_v35  ;;  %v1854_v35 = vld [vmem:[%s25117_s4 + $0xed8] sm:$0xff] }
 0x66c   : > { %v13351_v57 = vmul.f32 %v13318_v8, %v13293_v27  ;;  %12850 = vmatprep.subr.bf16.mxu1 %v16451_v13  ;;  %v13401_v56 = vadd.f32 %v13376_v23, %v13343_v46  ;;  %v1850_v8 = vld [vmem:[%s25117_s4 + $0xeb8] sm:$0xff]  ;;  %v16483_v17 = vcombine.high %v1854_v35, %v1858_v36  ;;  %v16482_v15 = vcombine.low %v1854_v35, %v1858_v36 }
 0x66d   : > { %v13352_v62 = vmul.f32 %v13322_v29, %v13294_v20  ;;  %v13402_v48 = vadd.f32 %v13380_v30, %v13344_v19  ;;  %v16466_v29 = vcombine.low %v1838_v59, %v1842_v47  ;;  %v16475_v33 = vcombine.high %v1846_v32, %v1850_v8  ;;  %v1862_v13 = vld [vmem:[%s25117_s4 + $0xf18] sm:$0xff] }
 0x66e   : > { %v13409_v16 = vadd.f32 %v13376_v23, %v13351_v57  ;;  %v16474_v25 = vcombine.low %v1846_v32, %v1850_v8  ;;  %v1866_v54 = vld [vmem:[%s25117_s4 + $0xf38] sm:$0xff] }
 0x66f   : > { %v13410_v2 = vadd.f32 %v13380_v30, %v13352_v62  ;;  %12851 = vmatpush1.bf16.msra.mxu1 %v16450_v38  ;;  %v16491_v1 = vcombine.high %v1862_v13, %v1866_v54  ;;  %v1874_v46 = vld [vmem:[%s25117_s4 + $0xf78] sm:$0xff]  ;;  %v16490_v23 = vcombine.low %v1862_v13, %v1866_v54 }
 0x670   : > { %v23486_v18 = vpack.c.bf16 %v13409_v16, %v13401_v56  ;;  %12852 = vmatprep.subr.bf16.mxu1 %v16459_v5  ;;  %v16499_v27 = vcombine.high %v1870_v12, %v1874_v46  ;;  %v1878_v19 = vld [vmem:[%s25117_s4 + $0xf98] sm:$0xff]  ;;  %v16498_v20 = vcombine.low %v1870_v12, %v1874_v46 }
 0x671   : > { %v23494_v26 = vpack.c.bf16 %v13410_v2, %v13402_v48  ;;  %v1882_v30 = vld [vmem:[%s25117_s4 + $0xfb8] sm:$0xff] }
 0x672   : > { %v16507_v38 = vcombine.high %v1878_v19, %v1882_v30  ;;  %v1886_v57 = vld [vmem:[%s25117_s4 + $0xfd8] sm:$0xff]  ;;  %v16506_v62 = vcombine.low %v1878_v19, %v1882_v30 }
 0x673   : > { %12853 = vmatpush1.bf16.msra.mxu1 %v16458_v21  ;;  %v1890_v5 = vld [vmem:[%s25117_s4 + $0xff8] sm:$0xff] }
 0x674   : > { %12854 = vmatprep.subr.bf16.mxu1 %v16467_v0  ;;  %v16515_v59 = vcombine.high %v1886_v57, %v1890_v5  ;;  %v1894_v47 = vld [vmem:[%s25117_s4 + $0x1018] sm:$0xff]  ;;  %v16514_v16 = vcombine.low %v1886_v57, %v1890_v5 }
 0x675   : > { %v1898_v56 = vld [vmem:[%s25117_s4 + $0x1038] sm:$0xff] }
 0x676   : > { %v16523_v48 = vcombine.high %v1894_v47, %v1898_v56  ;;  %v1902_v2 = vld [vmem:[%s25117_s4 + $0x1058] sm:$0xff]  ;;  %v16522_v0 = vcombine.low %v1894_v47, %v1898_v56 }
 0x677   : > { %12855 = vmatpush1.bf16.msra.mxu1 %v16466_v29  ;;  %v1906_v21 = vld [vmem:[%s25117_s4 + $0x1078] sm:$0xff] }
 0x678   : > { %12856 = vmatprep.subr.bf16.mxu1 %v16475_v33  ;;  %v16531_v32 = vcombine.high %v1902_v2, %v1906_v21  ;;  %v1910_v8 = vld [vmem:[%s25117_s4 + $0x1098] sm:$0xff]  ;;  %v16530_v33 = vcombine.low %v1902_v2, %v1906_v21 }
 0x679   : > { %v1914_v29 = vld [vmem:[%s25117_s4 + $0x10b8] sm:$0xff] }
 0x67a   : > { %v16539_v35 = vcombine.high %v1910_v8, %v1914_v29  ;;  %v1918_v36 = vld [vmem:[%s25117_s4 + $0x10d8] sm:$0xff] }
 0x67b   : > { %12857 = vmatpush1.bf16.msra.mxu1 %v16474_v25  ;;  %v1922_v25 = vld [vmem:[%s25117_s4 + $0x10f8] sm:$0xff] }
 0x67c   : > { %12858 = vmatprep.subr.bf16.mxu1 %v16483_v17  ;;  %v16538_v17 = vcombine.low %v1910_v8, %v1914_v29  ;;  %v16547_v13 = vcombine.high %v1918_v36, %v1922_v25  ;;  %v16546_v54 = vcombine.low %v1918_v36, %v1922_v25  ;;  %v1938_v12 = vld [vmem:[%s25117_s4 + $0x1178] sm:$0xff] }
 0x67d   : > { %v1946_v19 = vld [vmem:[%s25117_s4 + $0x11b8] sm:$0xff] }
 0x67e   : > { %v1954_v57 = vld [vmem:[%s25117_s4 + $0x11f8] sm:$0xff] }
 0x67f   : > { %12859 = vmatpush1.bf16.msra.mxu1 %v16482_v15  ;;  %v1958_v47 = vld [vmem:[%s25117_s4 + $0x1218] sm:$0xff] }
 0x680   : > { %12860 = vmatprep.subr.bf16.mxu1 %v16491_v1  ;;  %v1934_v1 = vld [vmem:[%s25117_s4 + $0x1158] sm:$0xff] }
 0x681   : > { %v16562_v30 = vcombine.low %v1934_v1, %v1938_v12  ;;  %v1962_v56 = vld [vmem:[%s25117_s4 + $0x1238] sm:$0xff] }
 0x682   : > { %v16587_v21 = vcombine.high %v1958_v47, %v1962_v56  ;;  %v1966_v29 = vld [vmem:[%s25117_s4 + $0x1258] sm:$0xff] }
 0x683   : > { %12861 = vmatpush1.bf16.msra.mxu1 %v16490_v23  ;;  %v16563_v23 = vcombine.high %v1934_v1, %v1938_v12 }
 0x684   : > { %12862 = vmatprep.subr.bf16.mxu1 %v16499_v27  ;;  %v1942_v27 = vld [vmem:[%s25117_s4 + $0x1198] sm:$0xff] }
 0x685   : > { %v16570_v5 = vcombine.low %v1942_v27, %v1946_v19 }
 0x687   : > { %12863 = vmatpush1.bf16.msra.mxu1 %v16498_v20  ;;  %v16571_v20 = vcombine.high %v1942_v27, %v1946_v19 }
 0x688   : > { %12864 = vmatprep.subr.bf16.mxu1 %v16507_v38  ;;  %v1950_v38 = vld [vmem:[%s25117_s4 + $0x11d8] sm:$0xff] }
 0x68b   : > { %12865 = vmatpush1.bf16.msra.mxu1 %v16506_v62  ;;  %v16579_v62 = vcombine.high %v1950_v38, %v1954_v57 }
 0x68c   : > { %12866 = vmatprep.subr.bf16.mxu1 %v16515_v59  ;;  %v23577_v59 = vsub.s32 2, %v19433_v41 }
 0x68f   : > { %12867 = vmatpush1.bf16.msra.mxu1 %v16514_v16  ;;  %v23586_v16 = vsub.s32 3, %v19433_v41 }
 0x690   : > { %12879 = vmatprep.subr.bf16.mxu1 %v16523_v48  ;;  %v16578_v48 = vcombine.low %v1950_v38, %v1954_v57  ;;  %v13368_v38 = vrot.slane %v23476_v61, %v23577_v59 }
 0x691   : > { %v13240_v36 = vrot.slane %v23450_v22, %v23586_v16 }
 0x692   : > { %12869 = vmatmul.mubr.bf16.vlgmr.msra.gmra.mrb[8].mxu1 %v19534_v11  ;;  %v1926_v11 = vld [vmem:[%s25117_s4 + $0x1118] sm:$0xff] }
 0x693   : > { %12880 = vmatpush1.bf16.msra.mxu1 %v16522_v0  ;;  %12911 = vmatprep.mubr.bf16.mxu1 %v19556_v50  ;;  %v1930_v50 = vld [vmem:[%s25117_s4 + $0x1138] sm:$0xff] }
 0x694   : > { %12881 = vmatprep.subr.bf16.mxu1 %v16531_v32  ;;  %v16555_v15 = vcombine.high %v1926_v11, %v1930_v50  ;;  %v16554_v46 = vcombine.low %v1926_v11, %v1930_v50  ;;  %v13236_v32 = vrot.slane %v23450_v22, %v23577_v59  ;;  %v16586_v11 = vcombine.low %v1958_v47, %v1962_v56 }
 0x695   : > { %v13372_v47 = vrot.slane %v23476_v61, %v23586_v16 }
 0x697   : > { %12882 = vmatpush1.bf16.msra.mxu1 %v16530_v33  ;;  %v1970_v33 = vld [vmem:[%s25117_s4 + $0x1278] sm:$0xff] }
 0x698   : > { %12883 = vmatprep.subr.bf16.mxu1 %v16539_v35  ;;  %v16594_v27 = vcombine.low %v1966_v29, %v1970_v33 }
 0x69b   : > { %12884 = vmatpush1.bf16.msra.mxu1 %v16538_v17 }
 0x69c   : > { %12885 = vmatprep.subr.bf16.mxu1 %v16547_v13 }
 0x69f   : > { %12886 = vmatpush1.bf16.msra.mxu1 %v16546_v54 }
 0x6a0   : > { %12887 = vmatprep.subr.bf16.mxu1 %v16555_v15  ;;  %v16595_v15 = vcombine.high %v1966_v29, %v1970_v33  ;;  %v1990_v33 = vld [vmem:[%s25117_s4 + $0x1318] sm:$0xff] }
 0x6a3   : > { %12888 = vmatpush1.bf16.msra.mxu1 %v16554_v46 }
 0x6a4   : > { %12889 = vmatprep.subr.bf16.mxu1 %v16563_v23 }
 0x6a7   : > { %12890 = vmatpush1.bf16.msra.mxu1 %v16562_v30 }
 0x6a8   : > { %12891 = vmatprep.subr.bf16.mxu1 %v16571_v20 }
 0x6ab   : > { %12892 = vmatpush1.bf16.msra.mxu1 %v16570_v5  ;;  %v1982_v5 = vld [vmem:[%s25117_s4 + $0x12d8] sm:$0xff] }
 0x6ac   : > { %v11967_v2 = vpop.f32.mrb[52].mxu0  ;;  %12893 = vmatprep.subr.bf16.mxu1 %v16579_v62 }
 0x6ad   : > { %v17883_v0 = vadd.f32 %v11967_v2, %v19498_v28  ;;  %v11969_v8 = vpop.f32.mrb[53].mxu0 }
 0x6ae   : > { %v17885_v35 = vadd.f32 %v11969_v8, %v19502_v40  ;;  %v11971_v25 = vpop.f32.mrb[54].mxu0  ;;  %v13310_v40 = vrot.slane %v23463_v4, %v23577_v59 }
 0x6af   : > { %v17884_v28 = vadd.f32 %v17883_v0, %v21102_v34  ;;  %v17887_v17 = vadd.f32 %v11971_v25, %v19510_v53  ;;  %12894 = vmatpush1.bf16.msra.mxu1 %v16578_v48  ;;  %v11973_v13 = vpop.f32.mrb[55].mxu0  ;;  %v1974_v34 = vld [vmem:[%s25117_s4 + $0x1298] sm:$0xff] }
 0x6b0   : > { %v17886_v50 = vadd.f32 %v17885_v35, %v21110_v49  ;;  %v17889_v54 = vadd.f32 %v11973_v13, %v19514_v55  ;;  %12895 = vmatprep.subr.bf16.mxu1 %v16587_v21  ;;  %v1978_v53 = vld [vmem:[%s25117_s4 + $0x12b8] sm:$0xff]  ;;  %v13314_v55 = vrot.slane %v23463_v4, %v23586_v16  ;;  %v18320_v13 = vld [vmem:[%s25122_s9 + $0x424] ss:$16 sps:$4 sm:$0xff]  }
 0x6b1   : > { %v13267_v1 = vadd.f32 %v17884_v28, %v13236_v32  ;;  %v17888_v22 = vadd.f32 %v17887_v17, %v21112_v7  ;;  %v16603_v30 = vcombine.high %v1974_v34, %v1978_v53  ;;  %v16602_v48 = vcombine.low %v1974_v34, %v1978_v53  ;;  %v1994_v35 = vld [vmem:[%s25117_s4 + $0x1338] sm:$0xff]  ;;  %v18315_v28 = vld [vmem:[%s25122_s9 + $0x400] ss:$16 sps:$4 sm:$0xff]  }
 0x6b2   : > { %v13268_v12 = vadd.f32 %v17886_v50, %v13240_v36  ;;  %v17890_v49 = vadd.f32 %v17889_v54, %v21114_v14  ;;  %v1986_v14 = vld [vmem:[%s25117_s4 + $0x12f8] sm:$0xff]  ;;  %v16619_v17 = vcombine.high %v1990_v33, %v1994_v35  ;;  %v16618_v54 = vcombine.low %v1990_v33, %v1994_v35  ;;  %v18338_v35 = vld [vmem:[%s25122_s9 + $0x4e4] ss:$16 sps:$4 sm:$0xff]  }
 0x6b3   : > { %v13283_v46 = vmax.f32 %v13267_v1, 0.0  ;;  %v13275_v23 = vadd.f32 %v17888_v22, %v13236_v32  ;;  %12896 = vmatpush1.bf16.msra.mxu1 %v16586_v11  ;;  %v16611_v21 = vcombine.high %v1982_v5, %v1986_v14  ;;  %v16610_v61 = vcombine.low %v1982_v5, %v1986_v14  ;;  %v1998_v11 = vld [vmem:[%s25117_s4 + $0x1358] sm:$0xff]  ;;  %v18327_v5 = vld [vmem:[%s25122_s9 + $0x480] ss:$16 sps:$4 sm:$0xff]  }
 0x6b4   : > { %v13284_v19 = vmax.f32 %v13268_v12, 0.0  ;;  %v13276_v7 = vadd.f32 %v17890_v49, %v13240_v36  ;;  %12897 = vmatprep.subr.bf16.mxu1 %v16595_v15  ;;  %v2002_v50 = vld [vmem:[%s25117_s4 + $0x1378] sm:$0xff]  ;;  %v18318_v15 = vld [vmem:[%s25122_s9 + $0x420] ss:$16 sps:$4 sm:$0xff]   ;;  %v18326_v49 = vld [vmem:[%s25122_s9 + $0x464] ss:$16 sps:$4 sm:$0xff]  }
 0x6b5   : > { %v13341_v20 = vmul.f32 %v13310_v40, %v13283_v46  ;;  %v13291_v57 = vmax.f32 %v13275_v23, 0.0  ;;  %v16627_v1 = vcombine.high %v1998_v11, %v2002_v50  ;;  %v2006_v22 = vld [vmem:[%s25117_s4 + $0x1398] sm:$0xff]  ;;  %v16626_v53 = vcombine.low %v1998_v11, %v2002_v50  ;;  %v18321_v12 = vld [vmem:[%s25122_s9 + $0x440] ss:$16 sps:$4 sm:$0xff]  }
 0x6b6   : > { %v13342_v4 = vmul.f32 %v13314_v55, %v13284_v19  ;;  %v13292_v62 = vmax.f32 %v13276_v7, 0.0  ;;  %v2010_v34 = vld [vmem:[%s25117_s4 + $0x13b8] sm:$0xff]  ;;  %v18324_v19 = vld [vmem:[%s25122_s9 + $0x460] ss:$16 sps:$4 sm:$0xff]  }
 0x6b7   : > { %v13349_v56 = vmul.f32 %v13310_v40, %v13291_v57  ;;  %12898 = vmatpush1.bf16.msra.mxu1 %v16594_v27  ;;  %v13399_v0 = vadd.f32 %v13368_v38, %v13341_v20  ;;  %v18323_v40 = vld [vmem:[%s25122_s9 + $0x444] ss:$16 sps:$4 sm:$0xff]   ;;  %v2014_v46 = vld [vmem:[%s25117_s4 + $0x13d8] sm:$0xff]  ;;  %v16634_v27 = vcombine.low %v2006_v22, %v2010_v34 }
 0x6b8   : > { %v13350_v2 = vmul.f32 %v13314_v55, %v13292_v62  ;;  %12899 = vmatprep.subr.bf16.mxu1 %v16603_v30  ;;  %v13400_v8 = vadd.f32 %v13372_v47, %v13342_v4  ;;  %v16635_v55 = vcombine.high %v2006_v22, %v2010_v34  ;;  %v2018_v23 = vld [vmem:[%s25117_s4 + $0x13f8] sm:$0xff]  ;;  %v18329_v30 = vld [vmem:[%s25122_s9 + $0x484] ss:$16 sps:$4 sm:$0xff]  }
 0x6b9   : > { %v13407_v32 = vadd.f32 %v13368_v38, %v13349_v56  ;;  %v16643_v7 = vcombine.high %v2014_v46, %v2018_v23  ;;  %v2022_v20 = vld [vmem:[%s25117_s4 + $0x1418] sm:$0xff]  ;;  %v16642_v57 = vcombine.low %v2014_v46, %v2018_v23  ;;  %v18332_v4 = vld [vmem:[%s25122_s9 + $0x4a4] ss:$16 sps:$4 sm:$0xff]  }
 0x6ba   : > { %v13408_v29 = vadd.f32 %v13372_v47, %v13350_v2  ;;  %v2026_v38 = vld [vmem:[%s25117_s4 + $0x1438] sm:$0xff] }
 0x6bb   : > { %12900 = vmatpush1.bf16.msra.mxu1 %v16602_v48  ;;  %v23632_v36 = vpack.c.bf16 %v13407_v32, %v13399_v0  ;;  %v16651_v14 = vcombine.high %v2022_v20, %v2026_v38  ;;  %v2030_v62 = vld [vmem:[%s25117_s4 + $0x1458] sm:$0xff]  ;;  %v16650_v56 = vcombine.low %v2022_v20, %v2026_v38  ;;  %v18330_v48 = vld [vmem:[%s25122_s9 + $0x4a0] ss:$16 sps:$4 sm:$0xff]  }
 0x6bc   : > { %12901 = vmatprep.subr.bf16.mxu1 %v16611_v21  ;;  %v23634_v25 = vpack.c.bf16 %v13408_v29, %v13400_v8  ;;  %v2034_v47 = vld [vmem:[%s25117_s4 + $0x1478] sm:$0xff]  ;;  %v18335_v21 = vld [vmem:[%s25122_s9 + $0x4c4] ss:$16 sps:$4 sm:$0xff]   ;;  %v18333_v29 = vld [vmem:[%s25122_s9 + $0x4c0] ss:$16 sps:$4 sm:$0xff]  }
 0x6bd   : > { %v16659_v2 = vcombine.high %v2030_v62, %v2034_v47  ;;  %v2038_v0 = vld [vmem:[%s25117_s4 + $0x1498] sm:$0xff]  ;;  %v16658_v8 = vcombine.low %v2030_v62, %v2034_v47 }
 0x6be   : > { %15054 = vmatprep.mubr.bf16.mxu0 %v23634_v25  ;;  %v2042_v32 = vld [vmem:[%s25117_s4 + $0x14b8] sm:$0xff] }
 0x6bf   : > { %12902 = vmatpush1.bf16.msra.mxu1 %v16610_v61  ;;  %15055 = vmatmul.mubr.bf16.vlgmr.msra.gmra.mrb[56].mxu0 %v23632_v36  ;;  %v16667_v33 = vcombine.high %v2038_v0, %v2042_v32  ;;  %v16666_v61 = vcombine.low %v2038_v0, %v2042_v32  ;;  %v2054_v11 = vld [vmem:[%s25117_s4 + $0x1518] sm:$0xff] }
 0x6c0   : > { %15066 = vmatpush1.bf16.msra.mxu0 %v18315_v28  ;;  %15097 = vmatprep.mubr.bf16.mxu0 %v23494_v26  ;;  %v18336_v28 = vld [vmem:[%s25122_s9 + $0x4e0] ss:$16 sps:$4 sm:$0xff]   ;;  %v2058_v50 = vld [vmem:[%s25117_s4 + $0x1538] sm:$0xff] }
 0x6c1   : > { %12903 = vmatprep.subr.bf16.mxu1 %v16619_v17  ;;  %15067 = vmatprep.subr.bf16.mxu0 %v18320_v13  ;;  %v18341_v13 = vld [vmem:[%s25122_s9 + $0x504] ss:$16 sps:$4 sm:$0xff]   ;;  %v2062_v22 = vld [vmem:[%s25117_s4 + $0x1558] sm:$0xff] }
 0x6c2   : > { %v2066_v34 = vld [vmem:[%s25117_s4 + $0x1578] sm:$0xff] }
 0x6c3   : > { %12904 = vmatpush1.bf16.msra.mxu1 %v16618_v54  ;;  %v2070_v46 = vld [vmem:[%s25117_s4 + $0x1598] sm:$0xff] }
 0x6c4   : > { %15068 = vmatpush1.bf16.msra.mxu0 %v18318_v15  ;;  %12905 = vmatprep.subr.bf16.mxu1 %v16627_v1  ;;  %v18339_v15 = vld [vmem:[%s25122_s9 + $0x500] ss:$16 sps:$4 sm:$0xff]   ;;  %v16683_v1 = vcombine.high %v2054_v11, %v2058_v50  ;;  %v2074_v23 = vld [vmem:[%s25117_s4 + $0x15b8] sm:$0xff] }
 0x6c5   : > { %15069 = vmatprep.subr.bf16.mxu0 %v18323_v40  ;;  %v18344_v40 = vld [vmem:[%s25122_s9 + $0x524] ss:$16 sps:$4 sm:$0xff]   ;;  %v2078_v20 = vld [vmem:[%s25117_s4 + $0x15d8] sm:$0xff] }
 0x6c6   : > { %v2082_v38 = vld [vmem:[%s25117_s4 + $0x15f8] sm:$0xff] }
 0x6c7   : > { %12906 = vmatpush1.bf16.msra.mxu1 %v16626_v53  ;;  %v16682_v53 = vcombine.low %v2054_v11, %v2058_v50  ;;  %v2086_v62 = vld [vmem:[%s25117_s4 + $0x1618] sm:$0xff] }
 0x6c8   : > { %15070 = vmatpush1.bf16.msra.mxu0 %v18321_v12  ;;  %12907 = vmatprep.subr.bf16.mxu1 %v16635_v55  ;;  %v18342_v12 = vld [vmem:[%s25122_s9 + $0x520] ss:$16 sps:$4 sm:$0xff]   ;;  %v16691_v55 = vcombine.high %v2062_v22, %v2066_v34  ;;  %v2090_v47 = vld [vmem:[%s25117_s4 + $0x1638] sm:$0xff] }
 0x6c9   : > { %15071 = vmatprep.subr.bf16.mxu0 %v18326_v49  ;;  %v18347_v49 = vld [vmem:[%s25122_s9 + $0x544] ss:$16 sps:$4 sm:$0xff]   ;;  %v2094_v0 = vld [vmem:[%s25117_s4 + $0x1658] sm:$0xff] }
 0x6ca   : > { %v2098_v32 = vld [vmem:[%s25117_s4 + $0x1678] sm:$0xff] }
 0x6cb   : > { %12908 = vmatpush1.bf16.msra.mxu1 %v16634_v27  ;;  %v16690_v27 = vcombine.low %v2062_v22, %v2066_v34  ;;  %v2110_v11 = vld [vmem:[%s25117_s4 + $0x16d8] sm:$0xff] }
 0x6cc   : > { %15072 = vmatpush1.bf16.msra.mxu0 %v18324_v19  ;;  %12909 = vmatprep.subr.bf16.mxu1 %v16643_v7  ;;  %v18345_v19 = vld [vmem:[%s25122_s9 + $0x540] ss:$16 sps:$4 sm:$0xff]   ;;  %v16699_v7 = vcombine.high %v2070_v46, %v2074_v23  ;;  %v2114_v50 = vld [vmem:[%s25117_s4 + $0x16f8] sm:$0xff] }
 0x6cd   : > { %15073 = vmatprep.subr.bf16.mxu0 %v18329_v30  ;;  %v18350_v30 = vld [vmem:[%s25122_s9 + $0x564] ss:$16 sps:$4 sm:$0xff]   ;;  %v2122_v22 = vld [vmem:[%s25117_s4 + $0x1738] sm:$0xff]  ;;  %v16738_v34 = vcombine.low %v2110_v11, %v2114_v50 }
 0x6cf   : > { %12910 = vmatpush1.bf16.msra.mxu1 %v16642_v57  ;;  %v16698_v57 = vcombine.low %v2070_v46, %v2074_v23  ;;  %v2134_v23 = vld [vmem:[%s25117_s4 + $0x1798] sm:$0xff] }
 0x6d0   : > { %15074 = vmatpush1.bf16.msra.mxu0 %v18327_v5  ;;  %12922 = vmatprep.subr.bf16.mxu1 %v16651_v14  ;;  %v18348_v5 = vld [vmem:[%s25122_s9 + $0x560] ss:$16 sps:$4 sm:$0xff]   ;;  %v16707_v14 = vcombine.high %v2078_v20, %v2082_v38 }
 0x6d1   : > { %15075 = vmatprep.subr.bf16.mxu0 %v18332_v4  ;;  %v18353_v4 = vld [vmem:[%s25122_s9 + $0x584] ss:$16 sps:$4 sm:$0xff]  }
 0x6d2   : > { %12912 = vmatmul.mubr.bf16.vlgmr.msra.gmra.mrb[8].mxu1 %v19554_v37  ;;  %v2046_v37 = vld [vmem:[%s25117_s4 + $0x14d8] sm:$0xff] }
 0x6d3   : > { %12923 = vmatpush1.bf16.msra.mxu1 %v16650_v56  ;;  %12954 = vmatprep.mubr.bf16.mxu1 %v19576_v10  ;;  %v2050_v10 = vld [vmem:[%s25117_s4 + $0x14f8] sm:$0xff]  ;;  %v16706_v56 = vcombine.low %v2078_v20, %v2082_v38 }
 0x6d4   : > { %15076 = vmatpush1.bf16.msra.mxu0 %v18330_v48  ;;  %12924 = vmatprep.subr.bf16.mxu1 %v16659_v2  ;;  %v16675_v17 = vcombine.high %v2046_v37, %v2050_v10  ;;  %v16674_v54 = vcombine.low %v2046_v37, %v2050_v10  ;;  %v18351_v48 = vld [vmem:[%s25122_s9 + $0x580] ss:$16 sps:$4 sm:$0xff]   ;;  %v16715_v2 = vcombine.high %v2086_v62, %v2090_v47  ;;  %v2102_v37 = vld [vmem:[%s25117_s4 + $0x1698] sm:$0xff] }
 0x6d5   : > { %15077 = vmatprep.subr.bf16.mxu0 %v18335_v21  ;;  %v18356_v21 = vld [vmem:[%s25122_s9 + $0x5a4] ss:$16 sps:$4 sm:$0xff]   ;;  %v2106_v10 = vld [vmem:[%s25117_s4 + $0x16b8] sm:$0xff] }
 0x6d6   : > { %v2146_v20 = vld [vmem:[%s25117_s4 + $0x17f8] sm:$0xff] }
 0x6d7   : > { %12925 = vmatpush1.bf16.msra.mxu1 %v16658_v8  ;;  %v16714_v8 = vcombine.low %v2086_v62, %v2090_v47  ;;  %v2158_v47 = vld [vmem:[%s25117_s4 + $0x1858] sm:$0xff] }
 0x6d8   : > { %15078 = vmatpush1.bf16.msra.mxu0 %v18333_v29  ;;  %12926 = vmatprep.subr.bf16.mxu1 %v16667_v33  ;;  %v18354_v29 = vld [vmem:[%s25122_s9 + $0x5a0] ss:$16 sps:$4 sm:$0xff]   ;;  %v16723_v33 = vcombine.high %v2094_v0, %v2098_v32 }
 0x6d9   : > { %15079 = vmatprep.subr.bf16.mxu0 %v18338_v35  ;;  %v18359_v35 = vld [vmem:[%s25122_s9 + $0x5c4] ss:$16 sps:$4 sm:$0xff]  }
 0x6db   : > { %12927 = vmatpush1.bf16.msra.mxu1 %v16666_v61  ;;  %v16722_v61 = vcombine.low %v2094_v0, %v2098_v32  ;;  %v2170_v0 = vld [vmem:[%s25117_s4 + $0x18b8] sm:$0xff] }
 0x6dc   : > { %15080 = vmatpush1.bf16.msra.mxu0 %v18336_v28  ;;  %12928 = vmatprep.subr.bf16.mxu1 %v16675_v17  ;;  %v18357_v28 = vld [vmem:[%s25122_s9 + $0x5c0] ss:$16 sps:$4 sm:$0xff]   ;;  %v16731_v17 = vcombine.high %v2102_v37, %v2106_v10 }
 0x6dd   : > { %15081 = vmatprep.subr.bf16.mxu0 %v18341_v13  ;;  %v18362_v13 = vld [vmem:[%s25122_s9 + $0x5e4] ss:$16 sps:$4 sm:$0xff]  }
 0x6df   : > { %12929 = vmatpush1.bf16.msra.mxu1 %v16674_v54  ;;  %v16730_v54 = vcombine.low %v2102_v37, %v2106_v10 }
 0x6e0   : > { %15082 = vmatpush1.bf16.msra.mxu0 %v18339_v15  ;;  %12930 = vmatprep.subr.bf16.mxu1 %v16683_v1  ;;  %v18360_v15 = vld [vmem:[%s25122_s9 + $0x5e0] ss:$16 sps:$4 sm:$0xff]   ;;  %v16739_v1 = vcombine.high %v2110_v11, %v2114_v50  ;;  %v2198_v50 = vld [vmem:[%s25117_s4 + $0x1998] sm:$0xff] }
 0x6e1   : > { %15083 = vmatprep.subr.bf16.mxu0 %v18344_v40  ;;  %v2118_v40 = vld [vmem:[%s25117_s4 + $0x1718] sm:$0xff] }
 0x6e3   : > { %12931 = vmatpush1.bf16.msra.mxu1 %v16682_v53  ;;  %v16747_v53 = vcombine.high %v2118_v40, %v2122_v22 }
 0x6e4   : > { %15084 = vmatpush1.bf16.msra.mxu0 %v18342_v12  ;;  %12932 = vmatprep.subr.bf16.mxu1 %v16691_v55  ;;  %v2126_v12 = vld [vmem:[%s25117_s4 + $0x1758] sm:$0xff] }
 0x6e5   : > { %15085 = vmatprep.subr.bf16.mxu0 %v18347_v49  ;;  %v2130_v55 = vld [vmem:[%s25117_s4 + $0x1778] sm:$0xff]  ;;  %v16746_v49 = vcombine.low %v2118_v40, %v2122_v22 }
 0x6e6   : > { %v16755_v46 = vcombine.high %v2126_v12, %v2130_v55  ;;  %v2206_v40 = vld [vmem:[%s25117_s4 + $0x19d8] sm:$0xff] }
 0x6e7   : > { %12933 = vmatpush1.bf16.msra.mxu1 %v16690_v27  ;;  %v2138_v27 = vld [vmem:[%s25117_s4 + $0x17b8] sm:$0xff] }
 0x6e8   : > { %15086 = vmatpush1.bf16.msra.mxu0 %v18345_v19  ;;  %12934 = vmatprep.subr.bf16.mxu1 %v16699_v7  ;;  %v16754_v19 = vcombine.low %v2126_v12, %v2130_v55  ;;  %v16763_v7 = vcombine.high %v2134_v23, %v2138_v27  ;;  %v16762_v38 = vcombine.low %v2134_v23, %v2138_v27  ;;  %v2210_v22 = vld [vmem:[%s25117_s4 + $0x19f8] sm:$0xff] }
 0x6e9   : > { %15087 = vmatprep.subr.bf16.mxu0 %v18350_v30  ;;  %v2142_v30 = vld [vmem:[%s25117_s4 + $0x17d8] sm:$0xff] }
 0x6ea   : > { %v2214_v12 = vld [vmem:[%s25117_s4 + $0x1a18] sm:$0xff] }
 0x6eb   : > { %12935 = vmatpush1.bf16.msra.mxu1 %v16698_v57  ;;  %v16771_v57 = vcombine.high %v2142_v30, %v2146_v20  ;;  %v2218_v55 = vld [vmem:[%s25117_s4 + $0x1a38] sm:$0xff] }
 0x6ec   : > { %15088 = vmatpush1.bf16.msra.mxu0 %v18348_v5  ;;  %12936 = vmatprep.subr.bf16.mxu1 %v16707_v14  ;;  %v2150_v5 = vld [vmem:[%s25117_s4 + $0x1818] sm:$0xff] }
 0x6ed   : > { %15089 = vmatprep.subr.bf16.mxu0 %v18353_v4  ;;  %v2154_v14 = vld [vmem:[%s25117_s4 + $0x1838] sm:$0xff]  ;;  %v16770_v4 = vcombine.low %v2142_v30, %v2146_v20 }
 0x6ee   : > { %v16779_v62 = vcombine.high %v2150_v5, %v2154_v14  ;;  %v2222_v23 = vld [vmem:[%s25117_s4 + $0x1a58] sm:$0xff] }
 0x6ef   : > { %12937 = vmatpush1.bf16.msra.mxu1 %v16706_v56  ;;  %v2162_v56 = vld [vmem:[%s25117_s4 + $0x1878] sm:$0xff] }
 0x6f0   : > { %15090 = vmatpush1.bf16.msra.mxu0 %v18351_v48  ;;  %12938 = vmatprep.subr.bf16.mxu1 %v16715_v2  ;;  %v16778_v48 = vcombine.low %v2150_v5, %v2154_v14  ;;  %v16787_v2 = vcombine.high %v2158_v47, %v2162_v56  ;;  %v16786_v32 = vcombine.low %v2158_v47, %v2162_v56  ;;  %v2226_v27 = vld [vmem:[%s25117_s4 + $0x1a78] sm:$0xff] }
 0x6f1   : > { %15091 = vmatprep.subr.bf16.mxu0 %v18356_v21  ;;  %v2166_v21 = vld [vmem:[%s25117_s4 + $0x1898] sm:$0xff] }
 0x6f2   : > { %v2230_v30 = vld [vmem:[%s25117_s4 + $0x1a98] sm:$0xff] }
 0x6f3   : > { %12939 = vmatpush1.bf16.msra.mxu1 %v16714_v8  ;;  %v16795_v8 = vcombine.high %v2166_v21, %v2170_v0  ;;  %v2234_v20 = vld [vmem:[%s25117_s4 + $0x1ab8] sm:$0xff] }
 0x6f4   : > { %15092 = vmatpush1.bf16.msra.mxu0 %v18354_v29  ;;  %12940 = vmatprep.subr.bf16.mxu1 %v16723_v33  ;;  %v2174_v29 = vld [vmem:[%s25117_s4 + $0x18d8] sm:$0xff] }
 0x6f5   : > { %15093 = vmatprep.subr.bf16.mxu0 %v18359_v35  ;;  %v2178_v33 = vld [vmem:[%s25117_s4 + $0x18f8] sm:$0xff]  ;;  %v16794_v35 = vcombine.low %v2166_v21, %v2170_v0 }
 0x6f6   : > { %v16803_v37 = vcombine.high %v2174_v29, %v2178_v33  ;;  %v16802_v10 = vcombine.low %v2174_v29, %v2178_v33  ;;  %v2238_v5 = vld [vmem:[%s25117_s4 + $0x1ad8] sm:$0xff] }
 0x6f7   : > { %12941 = vmatpush1.bf16.msra.mxu1 %v16722_v61  ;;  %v2242_v14 = vld [vmem:[%s25117_s4 + $0x1af8] sm:$0xff] }
 0x6f8   : > { %15094 = vmatpush1.bf16.msra.mxu0 %v18357_v28  ;;  %12942 = vmatprep.subr.bf16.mxu1 %v16731_v17  ;;  %v2190_v28 = vld [vmem:[%s25117_s4 + $0x1958] sm:$0xff] }
 0x6f9   : > { %15095 = vmatprep.subr.bf16.mxu0 %v18362_v13  ;;  %v2194_v17 = vld [vmem:[%s25117_s4 + $0x1978] sm:$0xff] }
 0x6fa   : > { %v16819_v11 = vcombine.high %v2190_v28, %v2194_v17  ;;  %v2246_v47 = vld [vmem:[%s25117_s4 + $0x1b18] sm:$0xff] }
 0x6fb   : > { %12943 = vmatpush1.bf16.msra.mxu1 %v16730_v54  ;;  %v2202_v54 = vld [vmem:[%s25117_s4 + $0x19b8] sm:$0xff] }
 0x6fc   : > { %15096 = vmatpush1.bf16.msra.mxu0 %v18360_v15  ;;  %12944 = vmatprep.subr.bf16.mxu1 %v16739_v1  ;;  %v16818_v15 = vcombine.low %v2190_v28, %v2194_v17  ;;  %v16827_v1 = vcombine.high %v2198_v50, %v2202_v54  ;;  %v2250_v56 = vld [vmem:[%s25117_s4 + $0x1b38] sm:$0xff] }
 0x6fd   : > { %v2254_v21 = vld [vmem:[%s25117_s4 + $0x1b58] sm:$0xff] }
 0x6fe   : > { %v2258_v0 = vld [vmem:[%s25117_s4 + $0x1b78] sm:$0xff] }
 0x6ff   : > { %12945 = vmatpush1.bf16.msra.mxu1 %v16738_v34  ;;  %15098 = vmatmul.mubr.bf16.vlgmr.msra.gmra.mrb[56].mxu0 %v23486_v18  ;;  %v16826_v34 = vcombine.low %v2198_v50, %v2202_v54  ;;  %v2262_v29 = vld [vmem:[%s25117_s4 + $0x1b98] sm:$0xff] }
 0x700   : > { %12946 = vmatprep.subr.bf16.mxu1 %v16747_v53  ;;  %v16835_v53 = vcombine.high %v2206_v40, %v2210_v22  ;;  %v2266_v33 = vld [vmem:[%s25117_s4 + $0x1bb8] sm:$0xff] }
 0x701   : > { %v2278_v28 = vld [vmem:[%s25117_s4 + $0x1c18] sm:$0xff] }
 0x702   : > { %v2282_v17 = vld [vmem:[%s25117_s4 + $0x1c38] sm:$0xff] }
 0x703   : > { %12947 = vmatpush1.bf16.msra.mxu1 %v16746_v49  ;;  %v16834_v49 = vcombine.low %v2206_v40, %v2210_v22  ;;  %v2286_v50 = vld [vmem:[%s25117_s4 + $0x1c58] sm:$0xff] }
 0x704   : > { %12948 = vmatprep.subr.bf16.mxu1 %v16755_v46  ;;  %v16843_v46 = vcombine.high %v2214_v12, %v2218_v55  ;;  %v2290_v54 = vld [vmem:[%s25117_s4 + $0x1c78] sm:$0xff] }
 0x705   : > { %v2294_v40 = vld [vmem:[%s25117_s4 + $0x1c98] sm:$0xff] }
 0x706   : > { %v2298_v22 = vld [vmem:[%s25117_s4 + $0x1cb8] sm:$0xff] }
 0x707   : > { %12949 = vmatpush1.bf16.msra.mxu1 %v16754_v19  ;;  %v16842_v19 = vcombine.low %v2214_v12, %v2218_v55  ;;  %v2302_v12 = vld [vmem:[%s25117_s4 + $0x1cd8] sm:$0xff] }
 0x708   : > { %12950 = vmatprep.subr.bf16.mxu1 %v16763_v7  ;;  %v16851_v7 = vcombine.high %v2222_v23, %v2226_v27  ;;  %v2306_v55 = vld [vmem:[%s25117_s4 + $0x1cf8] sm:$0xff] }
 0x70b   : > { %12951 = vmatpush1.bf16.msra.mxu1 %v16762_v38  ;;  %v16850_v38 = vcombine.low %v2222_v23, %v2226_v27  ;;  %v16930_v23 = vcombine.low %v2302_v12, %v2306_v55 }
 0x70c   : > { %12952 = vmatprep.subr.bf16.mxu1 %v16771_v57  ;;  %v16859_v57 = vcombine.high %v2230_v30, %v2234_v20 }
 0x70f   : > { %12953 = vmatpush1.bf16.msra.mxu1 %v16770_v4  ;;  %v16858_v4 = vcombine.low %v2230_v30, %v2234_v20 }
 0x710   : > { %12965 = vmatprep.subr.bf16.mxu1 %v16779_v62  ;;  %v16867_v62 = vcombine.high %v2238_v5, %v2242_v14 }
 0x712   : > { %12955 = vmatmul.mubr.bf16.vlgmr.msra.gmra.mrb[8].mxu1 %v19574_v9  ;;  %v2182_v9 = vld [vmem:[%s25117_s4 + $0x1918] sm:$0xff] }
 0x713   : > { %12966 = vmatpush1.bf16.msra.mxu1 %v16778_v48  ;;  %12997 = vmatprep.mubr.bf16.mxu1 %v19596_v52  ;;  %v2186_v52 = vld [vmem:[%s25117_s4 + $0x1938] sm:$0xff]  ;;  %v16866_v48 = vcombine.low %v2238_v5, %v2242_v14 }
 0x714   : > { %12967 = vmatprep.subr.bf16.mxu1 %v16787_v2  ;;  %v16811_v61 = vcombine.high %v2182_v9, %v2186_v52  ;;  %v16810_v13 = vcombine.low %v2182_v9, %v2186_v52  ;;  %v16875_v2 = vcombine.high %v2246_v47, %v2250_v56  ;;  %v2270_v9 = vld [vmem:[%s25117_s4 + $0x1bd8] sm:$0xff] }
 0x715   : > { %v2274_v52 = vld [vmem:[%s25117_s4 + $0x1bf8] sm:$0xff] }
 0x717   : > { %12968 = vmatpush1.bf16.msra.mxu1 %v16786_v32  ;;  %v16874_v32 = vcombine.low %v2246_v47, %v2250_v56 }
 0x718   : > { %12969 = vmatprep.subr.bf16.mxu1 %v16795_v8  ;;  %v16883_v8 = vcombine.high %v2254_v21, %v2258_v0 }
 0x71b   : > { %12970 = vmatpush1.bf16.msra.mxu1 %v16794_v35  ;;  %v16882_v35 = vcombine.low %v2254_v21, %v2258_v0 }
 0x71c   : > { %12971 = vmatprep.subr.bf16.mxu1 %v16803_v37  ;;  %v16891_v37 = vcombine.high %v2262_v29, %v2266_v33 }
 0x71f   : > { %12972 = vmatpush1.bf16.msra.mxu1 %v16802_v10  ;;  %v16890_v10 = vcombine.low %v2262_v29, %v2266_v33 }
 0x720   : > { %12973 = vmatprep.subr.bf16.mxu1 %v16811_v61  ;;  %v16899_v61 = vcombine.high %v2270_v9, %v2274_v52 }
 0x723   : > { %12974 = vmatpush1.bf16.msra.mxu1 %v16810_v13  ;;  %v16898_v13 = vcombine.low %v2270_v9, %v2274_v52 }
 0x724   : > { %12975 = vmatprep.subr.bf16.mxu1 %v16819_v11  ;;  %v16907_v11 = vcombine.high %v2278_v28, %v2282_v17 }
 0x727   : > { %12976 = vmatpush1.bf16.msra.mxu1 %v16818_v15  ;;  %v16906_v15 = vcombine.low %v2278_v28, %v2282_v17 }
 0x728   : > { %12977 = vmatprep.subr.bf16.mxu1 %v16827_v1  ;;  %v16915_v1 = vcombine.high %v2286_v50, %v2290_v54 }
 0x72b   : > { %12978 = vmatpush1.bf16.msra.mxu1 %v16826_v34  ;;  %v16914_v34 = vcombine.low %v2286_v50, %v2290_v54 }
 0x72c   : > { %12979 = vmatprep.subr.bf16.mxu1 %v16835_v53  ;;  %v16923_v53 = vcombine.high %v2294_v40, %v2298_v22 }
 0x72f   : > { %12980 = vmatpush1.bf16.msra.mxu1 %v16834_v49  ;;  %v16922_v49 = vcombine.low %v2294_v40, %v2298_v22 }
 0x730   : > { %12981 = vmatprep.subr.bf16.mxu1 %v16843_v46  ;;  %v16931_v46 = vcombine.high %v2302_v12, %v2306_v55 }
 0x733   : > { %12982 = vmatpush1.bf16.msra.mxu1 %v16842_v19  ;;  %v2318_v19 = vld [vmem:[%s25117_s4 + $0x1d58] sm:$0xff] }
 0x734   : > { %12983 = vmatprep.subr.bf16.mxu1 %v16851_v7  ;;  %v2322_v7 = vld [vmem:[%s25117_s4 + $0x1d78] sm:$0xff] }
 0x735   : > { %v16947_v20 = vcombine.high %v2318_v19, %v2322_v7  ;;  %v16946_v5 = vcombine.low %v2318_v19, %v2322_v7 }
 0x737   : > { %12984 = vmatpush1.bf16.msra.mxu1 %v16850_v38  ;;  %v2326_v38 = vld [vmem:[%s25117_s4 + $0x1d98] sm:$0xff] }
 0x738   : > { %12985 = vmatprep.subr.bf16.mxu1 %v16859_v57  ;;  %v2330_v57 = vld [vmem:[%s25117_s4 + $0x1db8] sm:$0xff] }
 0x739   : > { %v16955_v14 = vcombine.high %v2326_v38, %v2330_v57  ;;  %v16954_v47 = vcombine.low %v2326_v38, %v2330_v57 }
 0x73b   : > { %12986 = vmatpush1.bf16.msra.mxu1 %v16858_v4  ;;  %v2334_v4 = vld [vmem:[%s25117_s4 + $0x1dd8] sm:$0xff] }
 0x73c   : > { %12987 = vmatprep.subr.bf16.mxu1 %v16867_v62  ;;  %v2338_v62 = vld [vmem:[%s25117_s4 + $0x1df8] sm:$0xff] }
 0x73d   : > { %v16963_v56 = vcombine.high %v2334_v4, %v2338_v62  ;;  %v16962_v21 = vcombine.low %v2334_v4, %v2338_v62 }
 0x73f   : > { %12988 = vmatpush1.bf16.msra.mxu1 %v16866_v48  ;;  %v2342_v48 = vld [vmem:[%s25117_s4 + $0x1e18] sm:$0xff] }
 0x740   : > { %12989 = vmatprep.subr.bf16.mxu1 %v16875_v2  ;;  %v2346_v2 = vld [vmem:[%s25117_s4 + $0x1e38] sm:$0xff] }
 0x741   : > { %v16971_v0 = vcombine.high %v2342_v48, %v2346_v2  ;;  %v16970_v29 = vcombine.low %v2342_v48, %v2346_v2 }
 0x743   : > { %12990 = vmatpush1.bf16.msra.mxu1 %v16874_v32  ;;  %v2350_v32 = vld [vmem:[%s25117_s4 + $0x1e58] sm:$0xff] }
 0x744   : > { %12991 = vmatprep.subr.bf16.mxu1 %v16883_v8  ;;  %v2354_v8 = vld [vmem:[%s25117_s4 + $0x1e78] sm:$0xff] }
 0x745   : > { %v16979_v33 = vcombine.high %v2350_v32, %v2354_v8  ;;  %v16978_v9 = vcombine.low %v2350_v32, %v2354_v8  ;;  %v2446_v32 = vld [vmem:[%s25117_s4 + $0x2158] sm:$0xff] }
 0x746   : > { %v2450_v8 = vld [vmem:[%s25117_s4 + $0x2178] sm:$0xff] }
 0x747   : > { %12992 = vmatpush1.bf16.msra.mxu1 %v16882_v35  ;;  %v2358_v35 = vld [vmem:[%s25117_s4 + $0x1e98] sm:$0xff] }
 0x748   : > { %12993 = vmatprep.subr.bf16.mxu1 %v16891_v37  ;;  %v2362_v37 = vld [vmem:[%s25117_s4 + $0x1eb8] sm:$0xff] }
 0x749   : > { %v16987_v52 = vcombine.high %v2358_v35, %v2362_v37  ;;  %v16986_v28 = vcombine.low %v2358_v35, %v2362_v37  ;;  %v2454_v35 = vld [vmem:[%s25117_s4 + $0x2198] sm:$0xff] }
 0x74a   : > { %v2458_v37 = vld [vmem:[%s25117_s4 + $0x21b8] sm:$0xff] }
 0x74b   : > { %12994 = vmatpush1.bf16.msra.mxu1 %v16890_v10  ;;  %v2366_v10 = vld [vmem:[%s25117_s4 + $0x1ed8] sm:$0xff] }
 0x74c   : > { %12995 = vmatprep.subr.bf16.mxu1 %v16899_v61  ;;  %v2370_v61 = vld [vmem:[%s25117_s4 + $0x1ef8] sm:$0xff] }
 0x74d   : > { %v16995_v17 = vcombine.high %v2366_v10, %v2370_v61  ;;  %v16994_v50 = vcombine.low %v2366_v10, %v2370_v61  ;;  %v2462_v10 = vld [vmem:[%s25117_s4 + $0x21d8] sm:$0xff] }
 0x74e   : > { %v2466_v61 = vld [vmem:[%s25117_s4 + $0x21f8] sm:$0xff] }
 0x74f   : > { %12996 = vmatpush1.bf16.msra.mxu1 %v16898_v13  ;;  %v2374_v13 = vld [vmem:[%s25117_s4 + $0x1f18] sm:$0xff] }
 0x750   : > { %13008 = vmatprep.subr.bf16.mxu1 %v16907_v11  ;;  %v2378_v11 = vld [vmem:[%s25117_s4 + $0x1f38] sm:$0xff] }
 0x751   : > { %v17003_v54 = vcombine.high %v2374_v13, %v2378_v11  ;;  %v17002_v40 = vcombine.low %v2374_v13, %v2378_v11  ;;  %v2470_v13 = vld [vmem:[%s25117_s4 + $0x2218] sm:$0xff] }
 0x752   : > { %12998 = vmatmul.mubr.bf16.vlgmr.msra.gmra.mrb[8].mxu1 %v19594_v51  ;;  %v2310_v51 = vld [vmem:[%s25117_s4 + $0x1d18] sm:$0xff] }
 0x753   : > { %13009 = vmatpush1.bf16.msra.mxu1 %v16906_v15  ;;  %13040 = vmatprep.mubr.bf16.mxu1 %v19622_v44  ;;  %v2314_v44 = vld [vmem:[%s25117_s4 + $0x1d38] sm:$0xff] }
 0x754   : > { %13010 = vmatprep.subr.bf16.mxu1 %v16915_v1  ;;  %v16939_v27 = vcombine.high %v2310_v51, %v2314_v44  ;;  %v16938_v30 = vcombine.low %v2310_v51, %v2314_v44  ;;  %v2382_v15 = vld [vmem:[%s25117_s4 + $0x1f58] sm:$0xff] }
 0x755   : > { %v2386_v1 = vld [vmem:[%s25117_s4 + $0x1f78] sm:$0xff] }
 0x756   : > { %v17011_v22 = vcombine.high %v2382_v15, %v2386_v1  ;;  %v17010_v12 = vcombine.low %v2382_v15, %v2386_v1  ;;  %v2474_v11 = vld [vmem:[%s25117_s4 + $0x2238] sm:$0xff] }
 0x757   : > { %13011 = vmatpush1.bf16.msra.mxu1 %v16914_v34  ;;  %v2390_v34 = vld [vmem:[%s25117_s4 + $0x1f98] sm:$0xff] }
 0x758   : > { %13012 = vmatprep.subr.bf16.mxu1 %v16923_v53  ;;  %v2394_v53 = vld [vmem:[%s25117_s4 + $0x1fb8] sm:$0xff] }
 0x759   : > { %v17019_v55 = vcombine.high %v2390_v34, %v2394_v53  ;;  %v17018_v51 = vcombine.low %v2390_v34, %v2394_v53  ;;  %v2478_v15 = vld [vmem:[%s25117_s4 + $0x2258] sm:$0xff] }
 0x75a   : > { %v2482_v1 = vld [vmem:[%s25117_s4 + $0x2278] sm:$0xff] }
 0x75b   : > { %13013 = vmatpush1.bf16.msra.mxu1 %v16922_v49  ;;  %v2398_v49 = vld [vmem:[%s25117_s4 + $0x1fd8] sm:$0xff] }
 0x75c   : > { %13014 = vmatprep.subr.bf16.mxu1 %v16931_v46  ;;  %v2402_v46 = vld [vmem:[%s25117_s4 + $0x1ff8] sm:$0xff] }
 0x75d   : > { %v17027_v44 = vcombine.high %v2398_v49, %v2402_v46  ;;  %v17026_v19 = vcombine.low %v2398_v49, %v2402_v46  ;;  %v2486_v34 = vld [vmem:[%s25117_s4 + $0x2298] sm:$0xff] }
 0x75e   : > { %v2490_v53 = vld [vmem:[%s25117_s4 + $0x22b8] sm:$0xff] }
 0x75f   : > { %13015 = vmatpush1.bf16.msra.mxu1 %v16930_v23  ;;  %v2406_v23 = vld [vmem:[%s25117_s4 + $0x2018] sm:$0xff] }
 0x760   : > { %13016 = vmatprep.subr.bf16.mxu1 %v16939_v27  ;;  %v2410_v27 = vld [vmem:[%s25117_s4 + $0x2038] sm:$0xff] }
 0x761   : > { %v17035_v7 = vcombine.high %v2406_v23, %v2410_v27  ;;  %v17034_v38 = vcombine.low %v2406_v23, %v2410_v27  ;;  %v2494_v49 = vld [vmem:[%s25117_s4 + $0x22d8] sm:$0xff] }
 0x762   : > { %v2498_v46 = vld [vmem:[%s25117_s4 + $0x22f8] sm:$0xff] }
 0x763   : > { %13017 = vmatpush1.bf16.msra.mxu1 %v16938_v30  ;;  %v2414_v30 = vld [vmem:[%s25117_s4 + $0x2058] sm:$0xff] }
 0x764   : > { %13018 = vmatprep.subr.bf16.mxu1 %v16947_v20  ;;  %v2418_v20 = vld [vmem:[%s25117_s4 + $0x2078] sm:$0xff] }
 0x765   : > { %v17043_v57 = vcombine.high %v2414_v30, %v2418_v20  ;;  %v17042_v4 = vcombine.low %v2414_v30, %v2418_v20  ;;  %v2502_v23 = vld [vmem:[%s25117_s4 + $0x2318] sm:$0xff] }
 0x766   : > { %v2506_v27 = vld [vmem:[%s25117_s4 + $0x2338] sm:$0xff] }
 0x767   : > { %13019 = vmatpush1.bf16.msra.mxu1 %v16946_v5  ;;  %v2422_v5 = vld [vmem:[%s25117_s4 + $0x2098] sm:$0xff] }
 0x768   : > { %13020 = vmatprep.subr.bf16.mxu1 %v16955_v14  ;;  %v2426_v14 = vld [vmem:[%s25117_s4 + $0x20b8] sm:$0xff] }
 0x769   : > { %v17051_v62 = vcombine.high %v2422_v5, %v2426_v14  ;;  %v17050_v48 = vcombine.low %v2422_v5, %v2426_v14  ;;  %v2510_v30 = vld [vmem:[%s25117_s4 + $0x2358] sm:$0xff] }
 0x76a   : > { %v2514_v20 = vld [vmem:[%s25117_s4 + $0x2378] sm:$0xff] }
 0x76b   : > { %13021 = vmatpush1.bf16.msra.mxu1 %v16954_v47  ;;  %v2430_v47 = vld [vmem:[%s25117_s4 + $0x20d8] sm:$0xff] }
 0x76c   : > { %13022 = vmatprep.subr.bf16.mxu1 %v16963_v56  ;;  %v2434_v56 = vld [vmem:[%s25117_s4 + $0x20f8] sm:$0xff] }
 0x76d   : > { %v17059_v2 = vcombine.high %v2430_v47, %v2434_v56  ;;  %v2518_v5 = vld [vmem:[%s25117_s4 + $0x2398] sm:$0xff] }
 0x76e   : > { %v2522_v14 = vld [vmem:[%s25117_s4 + $0x23b8] sm:$0xff] }
 0x76f   : > { %13023 = vmatpush1.bf16.msra.mxu1 %v16962_v21  ;;  %v17058_v21 = vcombine.low %v2430_v47, %v2434_v56  ;;  %v2526_v47 = vld [vmem:[%s25117_s4 + $0x23d8] sm:$0xff] }
 0x770   : > { %13024 = vmatprep.subr.bf16.mxu1 %v16971_v0  ;;  %v2530_v56 = vld [vmem:[%s25117_s4 + $0x23f8] sm:$0xff] }
 0x773   : > { %13025 = vmatpush1.bf16.msra.mxu1 %v16970_v29 }
 0x774   : > { %13026 = vmatprep.subr.bf16.mxu1 %v16979_v33  ;;  %v17075_v33 = vcombine.high %v2446_v32, %v2450_v8 }
 0x777   : > { %13027 = vmatpush1.bf16.msra.mxu1 %v16978_v9  ;;  %v17074_v9 = vcombine.low %v2446_v32, %v2450_v8  ;;  %v2542_v32 = vld [vmem:[%s25117_s4 + $0x2458] sm:$0xff] }
 0x778   : > { %13028 = vmatprep.subr.bf16.mxu1 %v16987_v52  ;;  %v17083_v52 = vcombine.high %v2454_v35, %v2458_v37  ;;  %v2546_v8 = vld [vmem:[%s25117_s4 + $0x2478] sm:$0xff] }
 0x77b   : > { %13029 = vmatpush1.bf16.msra.mxu1 %v16986_v28  ;;  %v17082_v28 = vcombine.low %v2454_v35, %v2458_v37  ;;  %v2550_v35 = vld [vmem:[%s25117_s4 + $0x2498] sm:$0xff] }
 0x77c   : > { %13030 = vmatprep.subr.bf16.mxu1 %v16995_v17  ;;  %v17091_v17 = vcombine.high %v2462_v10, %v2466_v61  ;;  %v2554_v37 = vld [vmem:[%s25117_s4 + $0x24b8] sm:$0xff] }
 0x77f   : > { %13031 = vmatpush1.bf16.msra.mxu1 %v16994_v50  ;;  %v17090_v50 = vcombine.low %v2462_v10, %v2466_v61  ;;  %v17170_v10 = vcombine.low %v2542_v32, %v2546_v8  ;;  %v17179_v61 = vcombine.high %v2550_v35, %v2554_v37 }
 0x780   : > { %13032 = vmatprep.subr.bf16.mxu1 %v17003_v54  ;;  %v17099_v54 = vcombine.high %v2470_v13, %v2474_v11 }
 0x783   : > { %13033 = vmatpush1.bf16.msra.mxu1 %v17002_v40  ;;  %v17098_v40 = vcombine.low %v2470_v13, %v2474_v11  ;;  %v17178_v13 = vcombine.low %v2550_v35, %v2554_v37 }
 0x784   : > { %13034 = vmatprep.subr.bf16.mxu1 %v17011_v22  ;;  %v17107_v22 = vcombine.high %v2478_v15, %v2482_v1 }
 0x787   : > { %13035 = vmatpush1.bf16.msra.mxu1 %v17010_v12  ;;  %v17106_v12 = vcombine.low %v2478_v15, %v2482_v1 }
 0x788   : > { %13036 = vmatprep.subr.bf16.mxu1 %v17019_v55  ;;  %v17115_v55 = vcombine.high %v2486_v34, %v2490_v53 }
 0x78b   : > { %13037 = vmatpush1.bf16.msra.mxu1 %v17018_v51  ;;  %v17114_v51 = vcombine.low %v2486_v34, %v2490_v53 }
 0x78c   : > { %13038 = vmatprep.subr.bf16.mxu1 %v17027_v44  ;;  %v17123_v44 = vcombine.high %v2494_v49, %v2498_v46 }
 0x78f   : > { %13039 = vmatpush1.bf16.msra.mxu1 %v17026_v19  ;;  %v17122_v19 = vcombine.low %v2494_v49, %v2498_v46 }
 0x790   : > { %13051 = vmatprep.subr.bf16.mxu1 %v17035_v7  ;;  %v17131_v7 = vcombine.high %v2502_v23, %v2506_v27 }
 0x792   : > { %13041 = vmatmul.mubr.bf16.vlgmr.msra.gmra.mrb[8].mxu1 %v19620_v43  ;;  %v2438_v43 = vld [vmem:[%s25117_s4 + $0x2118] sm:$0xff] }
 0x793   : > { %13052 = vmatpush1.bf16.msra.mxu1 %v17034_v38  ;;  %13083 = vmatprep.mubr.bf16.mxu1 %v19659_v3  ;;  %v2442_v3 = vld [vmem:[%s25117_s4 + $0x2138] sm:$0xff]  ;;  %v17130_v38 = vcombine.low %v2502_v23, %v2506_v27 }
 0x794   : > { %13053 = vmatprep.subr.bf16.mxu1 %v17043_v57  ;;  %v17067_v0 = vcombine.high %v2438_v43, %v2442_v3  ;;  %v17066_v29 = vcombine.low %v2438_v43, %v2442_v3  ;;  %v17139_v57 = vcombine.high %v2510_v30, %v2514_v20  ;;  %v2534_v43 = vld [vmem:[%s25117_s4 + $0x2418] sm:$0xff] }
 0x795   : > { %v2538_v3 = vld [vmem:[%s25117_s4 + $0x2438] sm:$0xff] }
 0x797   : > { %13054 = vmatpush1.bf16.msra.mxu1 %v17042_v4  ;;  %v17138_v4 = vcombine.low %v2510_v30, %v2514_v20 }
 0x798   : > { %13055 = vmatprep.subr.bf16.mxu1 %v17051_v62  ;;  %v17147_v62 = vcombine.high %v2518_v5, %v2522_v14 }
 0x79b   : > { %13056 = vmatpush1.bf16.msra.mxu1 %v17050_v48  ;;  %v17146_v48 = vcombine.low %v2518_v5, %v2522_v14 }
 0x79c   : > { %13057 = vmatprep.subr.bf16.mxu1 %v17059_v2  ;;  %v17155_v2 = vcombine.high %v2526_v47, %v2530_v56 }
 0x79f   : > { %13058 = vmatpush1.bf16.msra.mxu1 %v17058_v21  ;;  %v17154_v21 = vcombine.low %v2526_v47, %v2530_v56 }
 0x7a0   : > { %13059 = vmatprep.subr.bf16.mxu1 %v17067_v0  ;;  %v17163_v0 = vcombine.high %v2534_v43, %v2538_v3 }
 0x7a3   : > { %13060 = vmatpush1.bf16.msra.mxu1 %v17066_v29  ;;  %v17162_v29 = vcombine.low %v2534_v43, %v2538_v3 }
 0x7a4   : > { %13061 = vmatprep.subr.bf16.mxu1 %v17075_v33  ;;  %v17171_v33 = vcombine.high %v2542_v32, %v2546_v8 }
 0x7a7   : > { %13062 = vmatpush1.bf16.msra.mxu1 %v17074_v9  ;;  %v25150_v9 = vld [vmem:[#allocation7_spill] sm:$0xff] }
 0x7a8   : > { %13063 = vmatprep.subr.bf16.mxu1 %v17083_v52  ;;  %v25151_v52 = vld [vmem:[#allocation8_spill] sm:$0xff] }
 0x7ab   : > { %13064 = vmatpush1.bf16.msra.mxu1 %v17082_v28  ;;  %v2558_v28 = vld [vmem:[%s25117_s4 + $0x24d8] sm:$0xff] }
 0x7ac   : > { %13065 = vmatprep.subr.bf16.mxu1 %v17091_v17  ;;  %v2562_v17 = vld [vmem:[%s25117_s4 + $0x24f8] sm:$0xff] }
 0x7ad   : > { %v17187_v11 = vcombine.high %v2558_v28, %v2562_v17  ;;  %v17186_v15 = vcombine.low %v2558_v28, %v2562_v17  ;;  %v2654_v28 = vld [vmem:[%s25117_s4 + $0x27d8] sm:$0xff] }
 0x7ae   : > { %v2658_v17 = vld [vmem:[%s25117_s4 + $0x27f8] sm:$0xff] }
 0x7af   : > { %13066 = vmatpush1.bf16.msra.mxu1 %v17090_v50  ;;  %v2566_v50 = vld [vmem:[%s25117_s4 + $0x2518] sm:$0xff] }
 0x7b0   : > { %13067 = vmatprep.subr.bf16.mxu1 %v17099_v54  ;;  %v2570_v54 = vld [vmem:[%s25117_s4 + $0x2538] sm:$0xff] }
 0x7b1   : > { %v17195_v1 = vcombine.high %v2566_v50, %v2570_v54  ;;  %v17194_v34 = vcombine.low %v2566_v50, %v2570_v54  ;;  %v2662_v50 = vld [vmem:[%s25117_s4 + $0x2818] sm:$0xff] }
 0x7b2   : > { %v2666_v54 = vld [vmem:[%s25117_s4 + $0x2838] sm:$0xff] }
 0x7b3   : > { %13068 = vmatpush1.bf16.msra.mxu1 %v17098_v40  ;;  %v2574_v40 = vld [vmem:[%s25117_s4 + $0x2558] sm:$0xff] }
 0x7b4   : > { %13069 = vmatprep.subr.bf16.mxu1 %v17107_v22  ;;  %v2578_v22 = vld [vmem:[%s25117_s4 + $0x2578] sm:$0xff] }
 0x7b5   : > { %v17203_v53 = vcombine.high %v2574_v40, %v2578_v22  ;;  %v17202_v49 = vcombine.low %v2574_v40, %v2578_v22  ;;  %v2670_v40 = vld [vmem:[%s25117_s4 + $0x2858] sm:$0xff] }
 0x7b6   : > { %v2674_v22 = vld [vmem:[%s25117_s4 + $0x2878] sm:$0xff] }
 0x7b7   : > { %13070 = vmatpush1.bf16.msra.mxu1 %v17106_v12  ;;  %v2582_v12 = vld [vmem:[%s25117_s4 + $0x2598] sm:$0xff] }
 0x7b8   : > { %13071 = vmatprep.subr.bf16.mxu1 %v17115_v55  ;;  %v2586_v55 = vld [vmem:[%s25117_s4 + $0x25b8] sm:$0xff] }
 0x7b9   : > { %v17211_v46 = vcombine.high %v2582_v12, %v2586_v55  ;;  %v17210_v23 = vcombine.low %v2582_v12, %v2586_v55  ;;  %v2678_v12 = vld [vmem:[%s25117_s4 + $0x2898] sm:$0xff] }
 0x7ba   : > { %v2682_v55 = vld [vmem:[%s25117_s4 + $0x28b8] sm:$0xff] }
 0x7bb   : > { %13072 = vmatpush1.bf16.msra.mxu1 %v17114_v51  ;;  %v2590_v51 = vld [vmem:[%s25117_s4 + $0x25d8] sm:$0xff] }
 0x7bc   : > { %13073 = vmatprep.subr.bf16.mxu1 %v17123_v44  ;;  %v2594_v44 = vld [vmem:[%s25117_s4 + $0x25f8] sm:$0xff] }
 0x7bd   : > { %v17219_v27 = vcombine.high %v2590_v51, %v2594_v44  ;;  %v17218_v30 = vcombine.low %v2590_v51, %v2594_v44  ;;  %v17298_v51 = vcombine.low %v2670_v40, %v2674_v22  ;;  %v18368_v44 = vld [vmem:[%s25122_s9 + $0x624] ss:$16 sps:$4 sm:$0xff]  }
 0x7bf   : > { %13074 = vmatpush1.bf16.msra.mxu1 %v17122_v19  ;;  %v2598_v19 = vld [vmem:[%s25117_s4 + $0x2618] sm:$0xff] }
 0x7c0   : > { %13075 = vmatprep.subr.bf16.mxu1 %v17131_v7  ;;  %v2602_v7 = vld [vmem:[%s25117_s4 + $0x2638] sm:$0xff] }
 0x7c1   : > { %v17227_v20 = vcombine.high %v2598_v19, %v2602_v7  ;;  %v17226_v5 = vcombine.low %v2598_v19, %v2602_v7  ;;  %v18371_v19 = vld [vmem:[%s25122_s9 + $0x644] ss:$16 sps:$4 sm:$0xff]   ;;  %v17306_v7 = vcombine.low %v2678_v12, %v2682_v55 }
 0x7c3   : > { %13076 = vmatpush1.bf16.msra.mxu1 %v17130_v38  ;;  %v2606_v38 = vld [vmem:[%s25117_s4 + $0x2658] sm:$0xff] }
 0x7c4   : > { %13077 = vmatprep.subr.bf16.mxu1 %v17139_v57  ;;  %v2610_v57 = vld [vmem:[%s25117_s4 + $0x2678] sm:$0xff] }
 0x7c5   : > { %v17235_v14 = vcombine.high %v2606_v38, %v2610_v57  ;;  %v17234_v47 = vcombine.low %v2606_v38, %v2610_v57  ;;  %v2698_v38 = vld [vmem:[%s25117_s4 + $0x2938] sm:$0xff]  ;;  %v18369_v57 = vld [vmem:[%s25122_s9 + $0x640] ss:$16 sps:$4 sm:$0xff]  }
 0x7c7   : > { %13078 = vmatpush1.bf16.msra.mxu1 %v17138_v4  ;;  %v2614_v4 = vld [vmem:[%s25117_s4 + $0x2698] sm:$0xff] }
 0x7c8   : > { %13079 = vmatprep.subr.bf16.mxu1 %v17147_v62  ;;  %v2618_v62 = vld [vmem:[%s25117_s4 + $0x26b8] sm:$0xff] }
 0x7c9   : > { %v17243_v56 = vcombine.high %v2614_v4, %v2618_v62  ;;  %v17242_v43 = vcombine.low %v2614_v4, %v2618_v62  ;;  %v2702_v62 = vld [vmem:[%s25117_s4 + $0x2958] sm:$0xff] }
 0x7cb   : > { %13080 = vmatpush1.bf16.msra.mxu1 %v17146_v48  ;;  %v2622_v48 = vld [vmem:[%s25117_s4 + $0x26d8] sm:$0xff] }
 0x7cc   : > { %13081 = vmatprep.subr.bf16.mxu1 %v17155_v2  ;;  %v2626_v2 = vld [vmem:[%s25117_s4 + $0x26f8] sm:$0xff] }
 0x7cd   : > { %v17251_v3 = vcombine.high %v2622_v48, %v2626_v2  ;;  %v17250_v32 = vcombine.low %v2622_v48, %v2626_v2  ;;  %v18377_v48 = vld [vmem:[%s25122_s9 + $0x684] ss:$16 sps:$4 sm:$0xff]  }
 0x7cf   : > { %13082 = vmatpush1.bf16.msra.mxu1 %v17154_v21  ;;  %v2630_v21 = vld [vmem:[%s25117_s4 + $0x2718] sm:$0xff] }
 0x7d0   : > { %13094 = vmatprep.subr.bf16.mxu1 %v17163_v0  ;;  %v2634_v0 = vld [vmem:[%s25117_s4 + $0x2738] sm:$0xff] }
 0x7d1   : > { %v17259_v8 = vcombine.high %v2630_v21, %v2634_v0  ;;  %v17258_v35 = vcombine.low %v2630_v21, %v2634_v0  ;;  %v2714_v21 = vld [vmem:[%s25117_s4 + $0x29b8] sm:$0xff]  ;;  %v18375_v0 = vld [vmem:[%s25122_s9 + $0x680] ss:$16 sps:$4 sm:$0xff]  }
 0x7d2   : > { %13084 = vmatmul.mubr.bf16.vlgmr.msra.gmra.mrb[8].mxu1 %v25150_v9  ;;  %v2646_v9 = vld [vmem:[%s25117_s4 + $0x2798] sm:$0xff] }
 0x7d3   : > { %13095 = vmatpush1.bf16.msra.mxu1 %v17162_v29  ;;  %13126 = vmatprep.mubr.bf16.mxu1 %v25151_v52  ;;  %v2638_v29 = vld [vmem:[%s25117_s4 + $0x2758] sm:$0xff] }
 0x7d4   : > { %13096 = vmatprep.subr.bf16.mxu1 %v17171_v33  ;;  %v2642_v33 = vld [vmem:[%s25117_s4 + $0x2778] sm:$0xff] }
 0x7d5   : > { %v17267_v37 = vcombine.high %v2638_v29, %v2642_v33  ;;  %v2650_v52 = vld [vmem:[%s25117_s4 + $0x27b8] sm:$0xff] }
 0x7d7   : > { %13097 = vmatpush1.bf16.msra.mxu1 %v17170_v10  ;;  %v17266_v10 = vcombine.low %v2638_v29, %v2642_v33  ;;  %v2718_v33 = vld [vmem:[%s25117_s4 + $0x29d8] sm:$0xff] }
 0x7d8   : > { %13098 = vmatprep.subr.bf16.mxu1 %v17179_v61  ;;  %v17275_v61 = vcombine.high %v2646_v9, %v2650_v52 }
 0x7db   : > { %13099 = vmatpush1.bf16.msra.mxu1 %v17178_v13  ;;  %v17274_v13 = vcombine.low %v2646_v9, %v2650_v52  ;;  %v18383_v9 = vld [vmem:[%s25122_s9 + $0x6c4] ss:$16 sps:$4 sm:$0xff]  }
 0x7dc   : > { %13100 = vmatprep.subr.bf16.mxu1 %v17187_v11  ;;  %v17283_v11 = vcombine.high %v2654_v28, %v2658_v17 }
 0x7df   : > { %13101 = vmatpush1.bf16.msra.mxu1 %v17186_v15  ;;  %v17282_v15 = vcombine.low %v2654_v28, %v2658_v17  ;;  %v2730_v28 = vld [vmem:[%s25117_s4 + $0x2a38] sm:$0xff]  ;;  %v18381_v17 = vld [vmem:[%s25122_s9 + $0x6c0] ss:$16 sps:$4 sm:$0xff]  }
 0x7e0   : > { %13102 = vmatprep.subr.bf16.mxu1 %v17195_v1  ;;  %v17291_v1 = vcombine.high %v2662_v50, %v2666_v54 }
 0x7e3   : > { %13103 = vmatpush1.bf16.msra.mxu1 %v17194_v34  ;;  %v17290_v34 = vcombine.low %v2662_v50, %v2666_v54  ;;  %v2734_v54 = vld [vmem:[%s25117_s4 + $0x2a58] sm:$0xff] }
 0x7e4   : > { %13104 = vmatprep.subr.bf16.mxu1 %v17203_v53  ;;  %v17299_v53 = vcombine.high %v2670_v40, %v2674_v22  ;;  %v18389_v40 = vld [vmem:[%s25122_s9 + $0x704] ss:$16 sps:$4 sm:$0xff]  }
 0x7e7   : > { %13105 = vmatpush1.bf16.msra.mxu1 %v17202_v49  ;;  %v18363_v49 = vld [vmem:[%s25122_s9 + $0x600] ss:$16 sps:$4 sm:$0xff]  }
 0x7e8   : > { %13106 = vmatprep.subr.bf16.mxu1 %v17211_v46  ;;  %v18365_v46 = vld [vmem:[%s25122_s9 + $0x604] ss:$16 sps:$4 sm:$0xff]  }
 0x7e9   : > { %15108 = vmatprep.subr.bf16.mxu0 %v18365_v46 }
 0x7ea   : > { %15109 = vmatpush1.bf16.msra.mxu0 %v18363_v49  ;;  %v18392_v49 = vld [vmem:[%s25122_s9 + $0x724] ss:$16 sps:$4 sm:$0xff]  }
 0x7eb   : > { %13107 = vmatpush1.bf16.msra.mxu1 %v17210_v23  ;;  %v17307_v23 = vcombine.high %v2678_v12, %v2682_v55  ;;  %15110 = vmatprep.subr.bf16.mxu0 %v18368_v44  ;;  %v2746_v12 = vld [vmem:[%s25117_s4 + $0x2ab8] sm:$0xff]  ;;  %v18387_v55 = vld [vmem:[%s25122_s9 + $0x700] ss:$16 sps:$4 sm:$0xff]  }
 0x7ec   : > { %13108 = vmatprep.subr.bf16.mxu1 %v17219_v27  ;;  %v2690_v27 = vld [vmem:[%s25117_s4 + $0x28f8] sm:$0xff] }
 0x7ed   : > { %v2750_v44 = vld [vmem:[%s25117_s4 + $0x2ad8] sm:$0xff] }
 0x7ef   : > { %13109 = vmatpush1.bf16.msra.mxu1 %v17218_v30 }
 0x7f0   : > { %13110 = vmatprep.subr.bf16.mxu1 %v17227_v20  ;;  %v2694_v20 = vld [vmem:[%s25117_s4 + $0x2918] sm:$0xff] }
 0x7f1   : > { %v17323_v4 = vcombine.high %v2694_v20, %v2698_v38  ;;  %v17322_v2 = vcombine.low %v2694_v20, %v2698_v38  ;;  %v18393_v20 = vld [vmem:[%s25122_s9 + $0x740] ss:$16 sps:$4 sm:$0xff]   ;;  %v18398_v38 = vld [vmem:[%s25122_s9 + $0x764] ss:$16 sps:$4 sm:$0xff]  }
 0x7f3   : > { %13111 = vmatpush1.bf16.msra.mxu1 %v17226_v5  ;;  %v18374_v5 = vld [vmem:[%s25122_s9 + $0x664] ss:$16 sps:$4 sm:$0xff]  }
 0x7f4   : > { %13112 = vmatprep.subr.bf16.mxu1 %v17235_v14 }
 0x7f7   : > { %13113 = vmatpush1.bf16.msra.mxu1 %v17234_v47  ;;  %v2706_v47 = vld [vmem:[%s25117_s4 + $0x2978] sm:$0xff] }
 0x7f8   : > { %13114 = vmatprep.subr.bf16.mxu1 %v17243_v56  ;;  %v18372_v56 = vld [vmem:[%s25122_s9 + $0x660] ss:$16 sps:$4 sm:$0xff]  }
 0x7fb   : > { %13115 = vmatpush1.bf16.msra.mxu1 %v17242_v43  ;;  %v17331_v43 = vcombine.high %v2702_v62, %v2706_v47 }
 0x7fc   : > { %13116 = vmatprep.subr.bf16.mxu1 %v17251_v3  ;;  %v2710_v3 = vld [vmem:[%s25117_s4 + $0x2998] sm:$0xff] }
 0x7fd   : > { %v17339_v29 = vcombine.high %v2710_v3, %v2714_v21  ;;  %v17338_v52 = vcombine.low %v2710_v3, %v2714_v21  ;;  %v18399_v3 = vld [vmem:[%s25122_s9 + $0x780] ss:$16 sps:$4 sm:$0xff]  }
 0x7ff   : > { %13117 = vmatpush1.bf16.msra.mxu1 %v17250_v32  ;;  %v18380_v32 = vld [vmem:[%s25122_s9 + $0x6a4] ss:$16 sps:$4 sm:$0xff]  }
 0x800   : > { %13118 = vmatprep.subr.bf16.mxu1 %v17259_v8  ;;  %v17330_v8 = vcombine.low %v2702_v62, %v2706_v47  ;;  %v18396_v62 = vld [vmem:[%s25122_s9 + $0x760] ss:$16 sps:$4 sm:$0xff]   ;;  %v18401_v47 = vld [vmem:[%s25122_s9 + $0x784] ss:$16 sps:$4 sm:$0xff]  }
 0x803   : > { %13119 = vmatpush1.bf16.msra.mxu1 %v17258_v35  ;;  %v2722_v35 = vld [vmem:[%s25117_s4 + $0x29f8] sm:$0xff] }
 0x804   : > { %13120 = vmatprep.subr.bf16.mxu1 %v17267_v37  ;;  %v18378_v37 = vld [vmem:[%s25122_s9 + $0x6a0] ss:$16 sps:$4 sm:$0xff]  }
 0x807   : > { %13121 = vmatpush1.bf16.msra.mxu1 %v17266_v10  ;;  %v17347_v10 = vcombine.high %v2718_v33, %v2722_v35 }
 0x808   : > { %13122 = vmatprep.subr.bf16.mxu1 %v17275_v61  ;;  %v2726_v61 = vld [vmem:[%s25117_s4 + $0x2a18] sm:$0xff] }
 0x809   : > { %v17355_v50 = vcombine.high %v2726_v61, %v2730_v28  ;;  %v17354_v22 = vcombine.low %v2726_v61, %v2730_v28  ;;  %v2802_v61 = vld [vmem:[%s25117_s4 + $0x2c78] sm:$0xff] }
 0x80b   : > { %13123 = vmatpush1.bf16.msra.mxu1 %v17274_v13  ;;  %v18386_v13 = vld [vmem:[%s25122_s9 + $0x6e4] ss:$16 sps:$4 sm:$0xff]  }
 0x80c   : > { %13124 = vmatprep.subr.bf16.mxu1 %v17283_v11  ;;  %v17346_v11 = vcombine.low %v2718_v33, %v2722_v35  ;;  %v2790_v35 = vld [vmem:[%s25117_s4 + $0x2c18] sm:$0xff] }
 0x80f   : > { %13125 = vmatpush1.bf16.msra.mxu1 %v17282_v15  ;;  %v2738_v15 = vld [vmem:[%s25117_s4 + $0x2a78] sm:$0xff] }
 0x810   : > { %13137 = vmatprep.subr.bf16.mxu1 %v17291_v1  ;;  %v18384_v1 = vld [vmem:[%s25122_s9 + $0x6e0] ss:$16 sps:$4 sm:$0xff]   ;;  %v17362_v46 = vcombine.low %v2734_v54, %v2738_v15 }
 0x812   : > { %13127 = vmatmul.mubr.bf16.vlgmr.msra.gmra.mrb[8].mxu1 %v19692_v60  ;;  %v2686_v60 = vld [vmem:[%s25117_s4 + $0x28d8] sm:$0xff] }
 0x813   : > { %13138 = vmatpush1.bf16.msra.mxu1 %v17290_v34  ;;  %13169 = vmatprep.mubr.bf16.mxu1 %v19840_v63  ;;  %v18366_v63 = vld [vmem:[%s25122_s9 + $0x620] ss:$16 sps:$4 sm:$0xff]   ;;  %v17315_v30 = vcombine.high %v2686_v60, %v2690_v27  ;;  %v17314_v14 = vcombine.low %v2686_v60, %v2690_v27  ;;  %v17363_v34 = vcombine.high %v2734_v54, %v2738_v15  ;;  %v18395_v27 = vld [vmem:[%s25122_s9 + $0x744] ss:$16 sps:$4 sm:$0xff]   ;;  %v2814_v15 = vld [vmem:[%s25117_s4 + $0x2cd8] sm:$0xff] }
 0x814   : > { %13139 = vmatprep.subr.bf16.mxu1 %v17299_v53  ;;  %15111 = vmatpush1.bf16.msra.mxu0 %v18366_v63  ;;  %v2742_v53 = vld [vmem:[%s25117_s4 + $0x2a98] sm:$0xff]  ;;  %v18390_v60 = vld [vmem:[%s25122_s9 + $0x720] ss:$16 sps:$4 sm:$0xff]  }
 0x815   : > { %15112 = vmatprep.subr.bf16.mxu0 %v18371_v19  ;;  %v17370_v63 = vcombine.low %v2742_v53, %v2746_v12 }
 0x817   : > { %13140 = vmatpush1.bf16.msra.mxu1 %v17298_v51  ;;  %v17371_v51 = vcombine.high %v2742_v53, %v2746_v12  ;;  %v2830_v12 = vld [vmem:[%s25117_s4 + $0x2d58] sm:$0xff] }
 0x818   : > { %13141 = vmatprep.subr.bf16.mxu1 %v17307_v23  ;;  %15113 = vmatpush1.bf16.msra.mxu0 %v18369_v57  ;;  %v2754_v23 = vld [vmem:[%s25117_s4 + $0x2af8] sm:$0xff] }
 0x819   : > { %15114 = vmatprep.subr.bf16.mxu0 %v18374_v5  ;;  %v17379_v19 = vcombine.high %v2750_v44, %v2754_v23  ;;  %v17378_v57 = vcombine.low %v2750_v44, %v2754_v23  ;;  %v2842_v44 = vld [vmem:[%s25117_s4 + $0x2db8] sm:$0xff] }
 0x81b   : > { %13142 = vmatpush1.bf16.msra.mxu1 %v17306_v7  ;;  %v2758_v7 = vld [vmem:[%s25117_s4 + $0x2b18] sm:$0xff] }
 0x81c   : > { %13143 = vmatprep.subr.bf16.mxu1 %v17315_v30  ;;  %15115 = vmatpush1.bf16.msra.mxu0 %v18372_v56  ;;  %v2762_v30 = vld [vmem:[%s25117_s4 + $0x2b38] sm:$0xff] }
 0x81d   : > { %15116 = vmatprep.subr.bf16.mxu0 %v18377_v48  ;;  %v17387_v5 = vcombine.high %v2758_v7, %v2762_v30  ;;  %v17386_v56 = vcombine.low %v2758_v7, %v2762_v30  ;;  %v2854_v30 = vld [vmem:[%s25117_s4 + $0x2e18] sm:$0xff] }
 0x81f   : > { %13144 = vmatpush1.bf16.msra.mxu1 %v17314_v14  ;;  %v2766_v14 = vld [vmem:[%s25117_s4 + $0x2b58] sm:$0xff] }
 0x820   : > { %13145 = vmatprep.subr.bf16.mxu1 %v17323_v4  ;;  %15117 = vmatpush1.bf16.msra.mxu0 %v18375_v0  ;;  %v2770_v4 = vld [vmem:[%s25117_s4 + $0x2b78] sm:$0xff] }
 0x821   : > { %15118 = vmatprep.subr.bf16.mxu0 %v18380_v32  ;;  %v17395_v48 = vcombine.high %v2766_v14, %v2770_v4  ;;  %v17394_v21 = vcombine.low %v2766_v14, %v2770_v4  ;;  %v2782_v32 = vld [vmem:[%s25117_s4 + $0x2bd8] sm:$0xff] }
 0x822   : > { %v2866_v14 = vld [vmem:[%s25117_s4 + $0x2e78] sm:$0xff] }
 0x823   : > { %13146 = vmatpush1.bf16.msra.mxu1 %v17322_v2  ;;  %v2774_v2 = vld [vmem:[%s25117_s4 + $0x2b98] sm:$0xff] }
 0x824   : > { %13147 = vmatprep.subr.bf16.mxu1 %v17331_v43  ;;  %15119 = vmatpush1.bf16.msra.mxu0 %v18378_v37  ;;  %v2778_v43 = vld [vmem:[%s25117_s4 + $0x2bb8] sm:$0xff] }
 0x825   : > { %15120 = vmatprep.subr.bf16.mxu0 %v18383_v9  ;;  %v17403_v0 = vcombine.high %v2774_v2, %v2778_v43  ;;  %v2794_v37 = vld [vmem:[%s25117_s4 + $0x2c38] sm:$0xff] }
 0x826   : > { %v17418_v28 = vcombine.low %v2790_v35, %v2794_v37 }
 0x827   : > { %13148 = vmatpush1.bf16.msra.mxu1 %v17330_v8  ;;  %v2786_v8 = vld [vmem:[%s25117_s4 + $0x2bf8] sm:$0xff] }
 0x828   : > { %13149 = vmatprep.subr.bf16.mxu1 %v17339_v29  ;;  %15121 = vmatpush1.bf16.msra.mxu0 %v18381_v17  ;;  %v17402_v29 = vcombine.low %v2774_v2, %v2778_v43  ;;  %v17411_v33 = vcombine.high %v2782_v32, %v2786_v8  ;;  %v17410_v9 = vcombine.low %v2782_v32, %v2786_v8  ;;  %v2878_v43 = vld [vmem:[%s25117_s4 + $0x2ed8] sm:$0xff] }
 0x829   : > { %15122 = vmatprep.subr.bf16.mxu0 %v18386_v13  ;;  %v2806_v13 = vld [vmem:[%s25117_s4 + $0x2c98] sm:$0xff] }
 0x82a   : > { %v2886_v32 = vld [vmem:[%s25117_s4 + $0x2f18] sm:$0xff] }
 0x82b   : > { %13150 = vmatpush1.bf16.msra.mxu1 %v17338_v52  ;;  %v17419_v52 = vcombine.high %v2790_v35, %v2794_v37  ;;  %v2890_v8 = vld [vmem:[%s25117_s4 + $0x2f38] sm:$0xff] }
 0x82c   : > { %13151 = vmatprep.subr.bf16.mxu1 %v17347_v10  ;;  %15123 = vmatpush1.bf16.msra.mxu0 %v18384_v1  ;;  %v2798_v10 = vld [vmem:[%s25117_s4 + $0x2c58] sm:$0xff] }
 0x82d   : > { %15124 = vmatprep.subr.bf16.mxu0 %v18389_v40  ;;  %v17427_v17 = vcombine.high %v2798_v10, %v2802_v61  ;;  %v2818_v1 = vld [vmem:[%s25117_s4 + $0x2cf8] sm:$0xff] }
 0x82e   : > { %v2894_v35 = vld [vmem:[%s25117_s4 + $0x2f58] sm:$0xff] }
 0x82f   : > { %13152 = vmatpush1.bf16.msra.mxu1 %v17346_v11  ;;  %v2810_v11 = vld [vmem:[%s25117_s4 + $0x2cb8] sm:$0xff] }
 0x830   : > { %13153 = vmatprep.subr.bf16.mxu1 %v17355_v50  ;;  %15125 = vmatpush1.bf16.msra.mxu0 %v18387_v55  ;;  %v17426_v50 = vcombine.low %v2798_v10, %v2802_v61  ;;  %v17435_v54 = vcombine.high %v2806_v13, %v2810_v11  ;;  %v17434_v40 = vcombine.low %v2806_v13, %v2810_v11  ;;  %v2834_v55 = vld [vmem:[%s25117_s4 + $0x2d78] sm:$0xff] }
 0x831   : > { %15126 = vmatprep.subr.bf16.mxu0 %v18392_v49  ;;  %v17458_v23 = vcombine.low %v2830_v12, %v2834_v55  ;;  %v2898_v37 = vld [vmem:[%s25117_s4 + $0x2f78] sm:$0xff] }
 0x832   : > { %v2902_v10 = vld [vmem:[%s25117_s4 + $0x2f98] sm:$0xff] }
 0x833   : > { %13154 = vmatpush1.bf16.msra.mxu1 %v17354_v22  ;;  %v17443_v22 = vcombine.high %v2814_v15, %v2818_v1  ;;  %v2906_v61 = vld [vmem:[%s25117_s4 + $0x2fb8] sm:$0xff] }
 0x834   : > { %13155 = vmatprep.subr.bf16.mxu1 %v17363_v34  ;;  %15127 = vmatpush1.bf16.msra.mxu0 %v18390_v60  ;;  %v17442_v34 = vcombine.low %v2814_v15, %v2818_v1  ;;  %v2910_v13 = vld [vmem:[%s25117_s4 + $0x2fd8] sm:$0xff]  ;;  %v18404_v1 = vld [vmem:[%s25122_s9 + $0x7a4] ss:$16 sps:$4 sm:$0xff]  }
 0x835   : > { %15128 = vmatprep.subr.bf16.mxu0 %v18395_v27  ;;  %v2846_v27 = vld [vmem:[%s25117_s4 + $0x2dd8] sm:$0xff] }
 0x836   : > { %v2914_v11 = vld [vmem:[%s25117_s4 + $0x2ff8] sm:$0xff] }
 0x837   : > { %13156 = vmatpush1.bf16.msra.mxu1 %v17362_v46  ;;  %v17459_v46 = vcombine.high %v2830_v12, %v2834_v55  ;;  %v17538_v15 = vcombine.low %v2910_v13, %v2914_v11  ;;  %v13255_v12 = vsub.s32 7, %v19433_v41  ;;  %v18646_v55 = vld [vmem:[%s25119_s6] sm:$0xff] }
 0x838   : > { %13157 = vmatprep.subr.bf16.mxu1 %v17371_v51  ;;  %15129 = vmatpush1.bf16.msra.mxu0 %v18393_v20  ;;  %v2838_v51 = vld [vmem:[%s25117_s4 + $0x2d98] sm:$0xff] }
 0x839   : > { %15130 = vmatprep.subr.bf16.mxu0 %v18398_v38  ;;  %v17467_v60 = vcombine.high %v2838_v51, %v2842_v44  ;;  %v2858_v20 = vld [vmem:[%s25117_s4 + $0x2e38] sm:$0xff] }
 0x83a   : > { %v17482_v4 = vcombine.low %v2854_v30, %v2858_v20 }
 0x83b   : > { %13158 = vmatpush1.bf16.msra.mxu1 %v17370_v63  ;;  %v2850_v63 = vld [vmem:[%s25117_s4 + $0x2df8] sm:$0xff] }
 0x83c   : > { %13159 = vmatprep.subr.bf16.mxu1 %v17379_v19  ;;  %15131 = vmatpush1.bf16.msra.mxu0 %v18396_v62  ;;  %v17466_v19 = vcombine.low %v2838_v51, %v2842_v44  ;;  %v17475_v7 = vcombine.high %v2846_v27, %v2850_v63  ;;  %v17474_v38 = vcombine.low %v2846_v27, %v2850_v63 }
 0x83d   : > { %15132 = vmatprep.subr.bf16.mxu0 %v18401_v47  ;;  %v2870_v47 = vld [vmem:[%s25117_s4 + $0x2e98] sm:$0xff] }
 0x83f   : > { %13160 = vmatpush1.bf16.msra.mxu1 %v17378_v57  ;;  %v17483_v57 = vcombine.high %v2854_v30, %v2858_v20 }
 0x840   : > { %13161 = vmatprep.subr.bf16.mxu1 %v17387_v5  ;;  %15133 = vmatpush1.bf16.msra.mxu0 %v18399_v3  ;;  %v2862_v5 = vld [vmem:[%s25117_s4 + $0x2e58] sm:$0xff] }
 0x841   : > { %v17491_v62 = vcombine.high %v2862_v5, %v2866_v14  ;;  %v2882_v3 = vld [vmem:[%s25117_s4 + $0x2ef8] sm:$0xff]  ;;  %15134 = vmatprep.subr.bf16.mxu0 %v18404_v1 }
 0x842   : > { %v18437_v1 = vld [vmem:[%s25122_s9 + $0x10c] ss:$16 sps:$4 sm:$0xff]  }
 0x843   : > { %13162 = vmatpush1.bf16.msra.mxu1 %v17386_v56  ;;  %v2874_v56 = vld [vmem:[%s25117_s4 + $0x2eb8] sm:$0xff] }
 0x844   : > { %13163 = vmatprep.subr.bf16.mxu1 %v17395_v48  ;;  %v17490_v48 = vcombine.low %v2862_v5, %v2866_v14  ;;  %v17499_v2 = vcombine.high %v2870_v47, %v2874_v56  ;;  %v18648_v14 = vld [vmem:[%s25121_s8] sm:$0xff] }
 0x847   : > { %13164 = vmatpush1.bf16.msra.mxu1 %v17394_v21  ;;  %v17498_v21 = vcombine.low %v2870_v47, %v2874_v56  ;;  %v13388_v56 = vrot.slane %v18648_v14, %v13255_v12 }
 0x848   : > { %13165 = vmatprep.subr.bf16.mxu1 %v17403_v0  ;;  %v17507_v0 = vcombine.high %v2878_v43, %v2882_v3 }
 0x84b   : > { %13166 = vmatpush1.bf16.msra.mxu1 %v17402_v29  ;;  %v17506_v29 = vcombine.low %v2878_v43, %v2882_v3 }
 0x84c   : > { %13167 = vmatprep.subr.bf16.mxu1 %v17411_v33  ;;  %v17515_v33 = vcombine.high %v2886_v32, %v2890_v8 }
 0x84f   : > { %13168 = vmatpush1.bf16.msra.mxu1 %v17410_v9  ;;  %v17514_v9 = vcombine.low %v2886_v32, %v2890_v8 }
 0x850   : > { %13180 = vmatprep.subr.bf16.mxu1 %v17419_v52  ;;  %v17523_v52 = vcombine.high %v2894_v35, %v2898_v37 }
 0x852   : > { %13170 = vmatmul.mubr.bf16.vlgmr.msra.gmra.mrb[8].mxu1 %v19832_v39  ;;  %v2822_v39 = vld [vmem:[%s25117_s4 + $0x2d18] sm:$0xff] }
 0x853   : > { %13181 = vmatpush1.bf16.msra.mxu1 %v17418_v28  ;;  %13212 = vmatprep.mubr.bf16.mxu1 %v20044_v6  ;;  %v2826_v6 = vld [vmem:[%s25117_s4 + $0x2d38] sm:$0xff]  ;;  %v17522_v28 = vcombine.low %v2894_v35, %v2898_v37 }
 0x854   : > { %13182 = vmatprep.subr.bf16.mxu1 %v17427_v17  ;;  %v17451_v53 = vcombine.high %v2822_v39, %v2826_v6  ;;  %v17450_v49 = vcombine.low %v2822_v39, %v2826_v6  ;;  %v17531_v17 = vcombine.high %v2902_v10, %v2906_v61  ;;  %v18405_v39 = vld [vmem:[%s25122_s9 + $0x7c0] ss:$16 sps:$4 sm:$0xff]   ;;  %v18416_v35 = vld [vmem:[%s25122_s9 + $0x2c] ss:$16 sps:$4 sm:$0xff]   ;;  %v18414_v37 = vld [vmem:[%s25122_s9 + $0x28] ss:$16 sps:$4 sm:$0xff]  }
 0x855   : > { %v18408_v6 = vld [vmem:[%s25122_s9 + $0x7e0] ss:$16 sps:$4 sm:$0xff]  }
 0x857   : > { %13183 = vmatpush1.bf16.msra.mxu1 %v17426_v50  ;;  %v17530_v50 = vcombine.low %v2902_v10, %v2906_v61  ;;  %v18422_v10 = vld [vmem:[%s25122_s9 + $0x6c] ss:$16 sps:$4 sm:$0xff]  }
 0x858   : > { %13184 = vmatprep.subr.bf16.mxu1 %v17435_v54  ;;  %v17539_v54 = vcombine.high %v2910_v13, %v2914_v11  ;;  %v18425_v61 = vld [vmem:[%s25122_s9 + $0x8c] ss:$16 sps:$4 sm:$0xff]   ;;  %v18426_v13 = vld [vmem:[%s25122_s9 + $0xa8] ss:$16 sps:$4 sm:$0xff]  }
 0x859   : > { %v18431_v11 = vld [vmem:[%s25122_s9 + $0xcc] ss:$16 sps:$4 sm:$0xff]  }
 0x85b   : > { %13185 = vmatpush1.bf16.msra.mxu1 %v17434_v40  ;;  %v18402_v40 = vld [vmem:[%s25122_s9 + $0x7a0] ss:$16 sps:$4 sm:$0xff]  }
 0x85c   : > { %13186 = vmatprep.subr.bf16.mxu1 %v17443_v22  ;;  %15135 = vmatpush1.bf16.msra.mxu0 %v18402_v40  ;;  %v18407_v22 = vld [vmem:[%s25122_s9 + $0x7c4] ss:$16 sps:$4 sm:$0xff]   ;;  %v18435_v40 = vld [vmem:[%s25122_s9 + $0x108] ss:$16 sps:$4 sm:$0xff]  }
 0x85d   : > { %15136 = vmatprep.subr.bf16.mxu0 %v18407_v22  ;;  %v18440_v22 = vld [vmem:[%s25122_s9 + $0x12c] ss:$16 sps:$4 sm:$0xff]  }
 0x85f   : > { %13187 = vmatpush1.bf16.msra.mxu1 %v17442_v34  ;;  %v18413_v34 = vld [vmem:[%s25122_s9 + $0xc] ss:$16 sps:$4 sm:$0xff]  }
 0x860   : > { %13188 = vmatprep.subr.bf16.mxu1 %v17451_v53  ;;  %15137 = vmatpush1.bf16.msra.mxu0 %v18405_v39  ;;  %v13251_v53 = vsub.s32 6, %v19433_v41  ;;  %v18438_v39 = vld [vmem:[%s25122_s9 + $0x128] ss:$16 sps:$4 sm:$0xff]  }
 0x863   : > { %13189 = vmatpush1.bf16.msra.mxu1 %v17450_v49  ;;  %v13252_v49 = vrot.slane %v18646_v55, %v13251_v53 }
 0x864   : > { %13190 = vmatprep.subr.bf16.mxu1 %v17459_v46  ;;  %v13256_v46 = vrot.slane %v18646_v55, %v13255_v12  ;;  %v18447_v55 = vld [vmem:[%s25122_s9 + $0x188] ss:$16 sps:$4 sm:$0xff]  }
 0x867   : > { %13191 = vmatpush1.bf16.msra.mxu1 %v17458_v23  ;;  %v18647_v23 = vld [vmem:[%s25120_s7] sm:$0xff] }
 0x868   : > { %13192 = vmatprep.subr.bf16.mxu1 %v17467_v60  ;;  %v13326_v60 = vrot.slane %v18647_v23, %v13251_v53 }
 0x86b   : > { %13193 = vmatpush1.bf16.msra.mxu1 %v17466_v19  ;;  %v13330_v19 = vrot.slane %v18647_v23, %v13255_v12  ;;  %v18449_v12 = vld [vmem:[%s25122_s9 + $0x18c] ss:$16 sps:$4 sm:$0xff]  }
 0x86c   : > { %13194 = vmatprep.subr.bf16.mxu1 %v17475_v7  ;;  %v18458_v23 = vld [vmem:[%s25122_s9 + $0x1ec] ss:$16 sps:$4 sm:$0xff]  }
 0x86f   : > { %13195 = vmatpush1.bf16.msra.mxu1 %v17474_v38 }
 0x870   : > { %13196 = vmatprep.subr.bf16.mxu1 %v17483_v57 }
 0x873   : > { %13197 = vmatpush1.bf16.msra.mxu1 %v17482_v4  ;;  %v13384_v4 = vrot.slane %v18648_v14, %v13251_v53  ;;  %v18444_v53 = vld [vmem:[%s25122_s9 + $0x168] ss:$16 sps:$4 sm:$0xff]   ;;  %v18479_v14 = vld [vmem:[%s25122_s9 + $0x2cc] ss:$16 sps:$4 sm:$0xff]  }
 0x874   : > { %13198 = vmatprep.subr.bf16.mxu1 %v17491_v62 }
 0x877   : > { %13199 = vmatpush1.bf16.msra.mxu1 %v17490_v48 }
 0x878   : > { %13200 = vmatprep.subr.bf16.mxu1 %v17499_v2 }
 0x87b   : > { %13201 = vmatpush1.bf16.msra.mxu1 %v17498_v21 }
 0x87c   : > { %13202 = vmatprep.subr.bf16.mxu1 %v17507_v0 }
 0x87f   : > { %13203 = vmatpush1.bf16.msra.mxu1 %v17506_v29 }
 0x880   : > { %13204 = vmatprep.subr.bf16.mxu1 %v17515_v33  ;;  %v18411_v33 = vld [vmem:[%s25122_s9 + $0x8] ss:$16 sps:$4 sm:$0xff]  }
 0x883   : > { %13205 = vmatpush1.bf16.msra.mxu1 %v17514_v9  ;;  %v18419_v9 = vld [vmem:[%s25122_s9 + $0x4c] ss:$16 sps:$4 sm:$0xff]  }
 0x884   : > { %13206 = vmatprep.subr.bf16.mxu1 %v17523_v52  ;;  %v18417_v52 = vld [vmem:[%s25122_s9 + $0x48] ss:$16 sps:$4 sm:$0xff]  }
 0x887   : > { %13207 = vmatpush1.bf16.msra.mxu1 %v17522_v28  ;;  %v18423_v28 = vld [vmem:[%s25122_s9 + $0x88] ss:$16 sps:$4 sm:$0xff]  }
 0x888   : > { %13208 = vmatprep.subr.bf16.mxu1 %v17531_v17  ;;  %v18428_v17 = vld [vmem:[%s25122_s9 + $0xac] ss:$16 sps:$4 sm:$0xff]  }
 0x88b   : > { %13209 = vmatpush1.bf16.msra.mxu1 %v17530_v50  ;;  %v18429_v50 = vld [vmem:[%s25122_s9 + $0xc8] ss:$16 sps:$4 sm:$0xff]  }
 0x88c   : > { %13210 = vmatprep.subr.bf16.mxu1 %v17539_v54  ;;  %v18434_v54 = vld [vmem:[%s25122_s9 + $0xec] ss:$16 sps:$4 sm:$0xff]  }
 0x88f   : > { %13211 = vmatpush1.bf16.msra.mxu1 %v17538_v15  ;;  %v18432_v15 = vld [vmem:[%s25122_s9 + $0xe8] ss:$16 sps:$4 sm:$0xff]  }
 0x892   : > { %13213 = vmatmul.mubr.bf16.vlgmr.msra.gmra.mrb[8].mxu1 %v20036_v31  ;;  %v18410_v31 = vld [vmem:[%s25122_s9 + $0x7e4] ss:$16 sps:$4 sm:$0xff]  }
 0x893   : > { %15138 = vmatprep.subr.bf16.mxu0 %v18410_v31  ;;  %v18443_v31 = vld [vmem:[%s25122_s9 + $0x14c] ss:$16 sps:$4 sm:$0xff]  }
 0x894   : > { %15139 = vmatpush1.bf16.msra.mxu0 %v18408_v6  ;;  %v18441_v6 = vld [vmem:[%s25122_s9 + $0x148] ss:$16 sps:$4 sm:$0xff]  }
 0x895   : > { %15151 = vmatprep.subr.bf16.mxu0 %v18413_v34  ;;  %v18446_v34 = vld [vmem:[%s25122_s9 + $0x16c] ss:$16 sps:$4 sm:$0xff]  }
 0x965   : > { %v13214_v51 = vpop.f32.mrb[8].mxu1 }
 0x966   : > { %v13271_v44 = vadd.f32 %v13252_v49, %v13214_v51  ;;  %v13216_v27 = vpop.f32.mrb[9].mxu1  ;;  %v18455_v51 = vld [vmem:[%s25122_s9 + $0x1cc] ss:$16 sps:$4 sm:$0xff]  }
 0x967   : > { %v13272_v63 = vadd.f32 %v13256_v46, %v13216_v27  ;;  %v13218_v7 = vpop.f32.mrb[10].mxu1  ;;  %v18461_v27 = vld [vmem:[%s25122_s9 + $0x20c] ss:$16 sps:$4 sm:$0xff]  }
 0x968   : > { %v13287_v30 = vmax.f32 %v13271_v44, 0.0  ;;  %v13279_v20 = vadd.f32 %v13252_v49, %v13218_v7  ;;  %v13220_v41 = vpop.f32.mrb[11].mxu1  ;;  %v18452_v49 = vld [vmem:[%s25122_s9 + $0x1ac] ss:$16 sps:$4 sm:$0xff]   ;;  %v18453_v44 = vld [vmem:[%s25122_s9 + $0x1c8] ss:$16 sps:$4 sm:$0xff]  }
 0x969   : > { %v13288_v38 = vmax.f32 %v13272_v63, 0.0  ;;  %v13280_v57 = vadd.f32 %v13256_v46, %v13220_v41  ;;  %v18450_v46 = vld [vmem:[%s25122_s9 + $0x1a8] ss:$16 sps:$4 sm:$0xff]   ;;  %v18473_v41 = vld [vmem:[%s25122_s9 + $0x28c] ss:$16 sps:$4 sm:$0xff]  }
 0x96a   : > { %v13345_v5 = vmul.f32 %v13326_v60, %v13287_v30  ;;  %v13295_v62 = vmax.f32 %v13279_v20, 0.0  ;;  %v18459_v63 = vld [vmem:[%s25122_s9 + $0x208] ss:$16 sps:$4 sm:$0xff]   ;;  %v18467_v30 = vld [vmem:[%s25122_s9 + $0x24c] ss:$16 sps:$4 sm:$0xff]  }
 0x96b   : > { %v13346_v47 = vmul.f32 %v13330_v19, %v13288_v38  ;;  %v13296_v48 = vmax.f32 %v13280_v57, 0.0  ;;  %v18462_v7 = vld [vmem:[%s25122_s9 + $0x228] ss:$16 sps:$4 sm:$0xff]   ;;  %v18476_v57 = vld [vmem:[%s25122_s9 + $0x2ac] ss:$16 sps:$4 sm:$0xff]  }
 0x96c   : > { %v13353_v2 = vmul.f32 %v13326_v60, %v13295_v62  ;;  %v13403_v3 = vadd.f32 %v13384_v4, %v13345_v5  ;;  %v18456_v60 = vld [vmem:[%s25122_s9 + $0x1e8] ss:$16 sps:$4 sm:$0xff]   ;;  %v18482_v62 = vld [vmem:[%s25122_s9 + $0x2ec] ss:$16 sps:$4 sm:$0xff]  }
 0x96d   : > { %v13354_v43 = vmul.f32 %v13330_v19, %v13296_v48  ;;  %v13404_v0 = vadd.f32 %v13388_v56, %v13346_v47  ;;  %v18464_v19 = vld [vmem:[%s25122_s9 + $0x22c] ss:$16 sps:$4 sm:$0xff]   ;;  %v18465_v20 = vld [vmem:[%s25122_s9 + $0x248] ss:$16 sps:$4 sm:$0xff]  }
 0x96e   : > { %v13411_v21 = vadd.f32 %v13384_v4, %v13353_v2  ;;  %v18471_v38 = vld [vmem:[%s25122_s9 + $0x288] ss:$16 sps:$4 sm:$0xff]   ;;  %v18488_v2 = vld [vmem:[%s25122_s9 + $0x32c] ss:$16 sps:$4 sm:$0xff]  }
 0x96f   : > { %v13412_v32 = vadd.f32 %v13388_v56, %v13354_v43  ;;  %v18474_v5 = vld [vmem:[%s25122_s9 + $0x2a8] ss:$16 sps:$4 sm:$0xff]   ;;  %v18485_v56 = vld [vmem:[%s25122_s9 + $0x30c] ss:$16 sps:$4 sm:$0xff]  }
 0x970   : > { %v24548_v8 = vpack.c.bf16 %v13411_v21, %v13403_v3  ;;  %v18477_v4 = vld [vmem:[%s25122_s9 + $0x2c8] ss:$16 sps:$4 sm:$0xff]   ;;  %v18491_v3 = vld [vmem:[%s25122_s9 + $0x34c] ss:$16 sps:$4 sm:$0xff]  }
 0x971   : > { %v24550_v29 = vpack.c.bf16 %v13412_v32, %v13404_v0  ;;  %v18480_v47 = vld [vmem:[%s25122_s9 + $0x2e8] ss:$16 sps:$4 sm:$0xff]   ;;  %v18494_v0 = vld [vmem:[%s25122_s9 + $0x36c] ss:$16 sps:$4 sm:$0xff]  }
 0x972   : > { %v18483_v48 = vld [vmem:[%s25122_s9 + $0x308] ss:$16 sps:$4 sm:$0xff]  }
 0x973   : > { %15140 = vmatprep.mubr.bf16.mxu0 %v24550_v29  ;;  %v18486_v43 = vld [vmem:[%s25122_s9 + $0x328] ss:$16 sps:$4 sm:$0xff]  }
 0x974   : > { %15141 = vmatmul.mubr.bf16.vlgmr.msra.gmra.mrb[56].mxu0 %v24548_v8  ;;  %v18489_v21 = vld [vmem:[%s25122_s9 + $0x348] ss:$16 sps:$4 sm:$0xff]  }
 0x975   : > { %15152 = vmatpush1.bf16.msra.mxu0 %v18411_v33  ;;  %15183 = vmatprep.mubr.bf16.mxu0 %v22363_v58  ;;  %v18420_v58 = vld [vmem:[%s25122_s9 + $0x68] ss:$16 sps:$4 sm:$0xff]   ;;  %v18497_v33 = vld [vmem:[%s25122_s9 + $0x38c] ss:$16 sps:$4 sm:$0xff]  }
 0x976   : > { %15153 = vmatprep.subr.bf16.mxu0 %v18416_v35  ;;  %v18492_v32 = vld [vmem:[%s25122_s9 + $0x368] ss:$16 sps:$4 sm:$0xff]  }
 0x977   : > { %v18495_v35 = vld [vmem:[%s25122_s9 + $0x388] ss:$16 sps:$4 sm:$0xff]  }
 0x979   : > { %15154 = vmatpush1.bf16.msra.mxu0 %v18414_v37  ;;  %v18500_v37 = vld [vmem:[%s25122_s9 + $0x3ac] ss:$16 sps:$4 sm:$0xff]  }
 0x97a   : > { %15155 = vmatprep.subr.bf16.mxu0 %v18419_v9  ;;  %v18498_v9 = vld [vmem:[%s25122_s9 + $0x3a8] ss:$16 sps:$4 sm:$0xff]  }
 0x97d   : > { %15156 = vmatpush1.bf16.msra.mxu0 %v18417_v52  ;;  %v18503_v52 = vld [vmem:[%s25122_s9 + $0x3cc] ss:$16 sps:$4 sm:$0xff]  }
 0x97e   : > { %15157 = vmatprep.subr.bf16.mxu0 %v18422_v10  ;;  %v18501_v10 = vld [vmem:[%s25122_s9 + $0x3c8] ss:$16 sps:$4 sm:$0xff]  }
 0x981   : > { %15158 = vmatpush1.bf16.msra.mxu0 %v18420_v58  ;;  %v18506_v58 = vld [vmem:[%s25122_s9 + $0x3ec] ss:$16 sps:$4 sm:$0xff]  }
 0x982   : > { %15159 = vmatprep.subr.bf16.mxu0 %v18425_v61  ;;  %v18504_v61 = vld [vmem:[%s25122_s9 + $0x3e8] ss:$16 sps:$4 sm:$0xff]  }
 0x985   : > { %15160 = vmatpush1.bf16.msra.mxu0 %v18423_v28  ;;  %v18509_v28 = vld [vmem:[%s25122_s9 + $0x40c] ss:$16 sps:$4 sm:$0xff]  }
 0x986   : > { %15161 = vmatprep.subr.bf16.mxu0 %v18428_v17  ;;  %v18507_v17 = vld [vmem:[%s25122_s9 + $0x408] ss:$16 sps:$4 sm:$0xff]  }
 0x989   : > { %15162 = vmatpush1.bf16.msra.mxu0 %v18426_v13  ;;  %v18512_v13 = vld [vmem:[%s25122_s9 + $0x42c] ss:$16 sps:$4 sm:$0xff]  }
 0x98a   : > { %15163 = vmatprep.subr.bf16.mxu0 %v18431_v11  ;;  %v18510_v11 = vld [vmem:[%s25122_s9 + $0x428] ss:$16 sps:$4 sm:$0xff]  }
 0x98d   : > { %15164 = vmatpush1.bf16.msra.mxu0 %v18429_v50  ;;  %v18515_v50 = vld [vmem:[%s25122_s9 + $0x44c] ss:$16 sps:$4 sm:$0xff]  }
 0x98e   : > { %15165 = vmatprep.subr.bf16.mxu0 %v18434_v54  ;;  %v18513_v54 = vld [vmem:[%s25122_s9 + $0x448] ss:$16 sps:$4 sm:$0xff]  }
 0x991   : > { %15166 = vmatpush1.bf16.msra.mxu0 %v18432_v15  ;;  %v18521_v15 = vld [vmem:[%s25122_s9 + $0x48c] ss:$16 sps:$4 sm:$0xff]  }
 0x992   : > { %15167 = vmatprep.subr.bf16.mxu0 %v18437_v1  ;;  %v18519_v1 = vld [vmem:[%s25122_s9 + $0x488] ss:$16 sps:$4 sm:$0xff]  }
 0x995   : > { %15168 = vmatpush1.bf16.msra.mxu0 %v18435_v40  ;;  %v18524_v40 = vld [vmem:[%s25122_s9 + $0x4ac] ss:$16 sps:$4 sm:$0xff]  }
 0x996   : > { %15169 = vmatprep.subr.bf16.mxu0 %v18440_v22  ;;  %v18522_v22 = vld [vmem:[%s25122_s9 + $0x4a8] ss:$16 sps:$4 sm:$0xff]  }
 0x999   : > { %15170 = vmatpush1.bf16.msra.mxu0 %v18438_v39  ;;  %v18527_v39 = vld [vmem:[%s25122_s9 + $0x4cc] ss:$16 sps:$4 sm:$0xff]  }
 0x99a   : > { %15171 = vmatprep.subr.bf16.mxu0 %v18443_v31  ;;  %v18525_v31 = vld [vmem:[%s25122_s9 + $0x4c8] ss:$16 sps:$4 sm:$0xff]  }
 0x99d   : > { %15172 = vmatpush1.bf16.msra.mxu0 %v18441_v6  ;;  %v18530_v6 = vld [vmem:[%s25122_s9 + $0x4ec] ss:$16 sps:$4 sm:$0xff]  }
 0x99e   : > { %15173 = vmatprep.subr.bf16.mxu0 %v18446_v34  ;;  %v18528_v34 = vld [vmem:[%s25122_s9 + $0x4e8] ss:$16 sps:$4 sm:$0xff]  }
 0x9a1   : > { %15174 = vmatpush1.bf16.msra.mxu0 %v18444_v53  ;;  %v18533_v53 = vld [vmem:[%s25122_s9 + $0x50c] ss:$16 sps:$4 sm:$0xff]  }
 0x9a2   : > { %15175 = vmatprep.subr.bf16.mxu0 %v18449_v12  ;;  %v18531_v12 = vld [vmem:[%s25122_s9 + $0x508] ss:$16 sps:$4 sm:$0xff]  }
 0x9a5   : > { %15176 = vmatpush1.bf16.msra.mxu0 %v18447_v55  ;;  %v18536_v55 = vld [vmem:[%s25122_s9 + $0x52c] ss:$16 sps:$4 sm:$0xff]  }
 0x9a6   : > { %15177 = vmatprep.subr.bf16.mxu0 %v18452_v49  ;;  %v18534_v49 = vld [vmem:[%s25122_s9 + $0x528] ss:$16 sps:$4 sm:$0xff]  }
 0x9a9   : > { %15178 = vmatpush1.bf16.msra.mxu0 %v18450_v46  ;;  %v18539_v46 = vld [vmem:[%s25122_s9 + $0x54c] ss:$16 sps:$4 sm:$0xff]  }
 0x9aa   : > { %15179 = vmatprep.subr.bf16.mxu0 %v18455_v51  ;;  %v18537_v51 = vld [vmem:[%s25122_s9 + $0x548] ss:$16 sps:$4 sm:$0xff]  }
 0x9ad   : > { %15180 = vmatpush1.bf16.msra.mxu0 %v18453_v44  ;;  %v18542_v44 = vld [vmem:[%s25122_s9 + $0x56c] ss:$16 sps:$4 sm:$0xff]  }
 0x9ae   : > { %15181 = vmatprep.subr.bf16.mxu0 %v18458_v23  ;;  %v18540_v23 = vld [vmem:[%s25122_s9 + $0x568] ss:$16 sps:$4 sm:$0xff]  }
 0x9b1   : > { %15182 = vmatpush1.bf16.msra.mxu0 %v18456_v60  ;;  %v18545_v60 = vld [vmem:[%s25122_s9 + $0x58c] ss:$16 sps:$4 sm:$0xff]  }
 0x9b2   : > { %15194 = vmatprep.subr.bf16.mxu0 %v18461_v27  ;;  %v18543_v27 = vld [vmem:[%s25122_s9 + $0x588] ss:$16 sps:$4 sm:$0xff]  }
 0x9b4   : > { %15184 = vmatmul.mubr.bf16.vlgmr.msra.gmra.mrb[60].mxu0 %v22355_v24  ;;  %v18470_v24 = vld [vmem:[%s25122_s9 + $0x26c] ss:$16 sps:$4 sm:$0xff]  }
 0x9b5   : > { %15195 = vmatpush1.bf16.msra.mxu0 %v18459_v63  ;;  %15226 = vmatprep.mubr.bf16.mxu0 %v23634_v25  ;;  %v18468_v25 = vld [vmem:[%s25122_s9 + $0x268] ss:$16 sps:$4 sm:$0xff]   ;;  %v18548_v63 = vld [vmem:[%s25122_s9 + $0x5ac] ss:$16 sps:$4 sm:$0xff]  }
 0x9b6   : > { %15196 = vmatprep.subr.bf16.mxu0 %v18464_v19  ;;  %v18546_v19 = vld [vmem:[%s25122_s9 + $0x5a8] ss:$16 sps:$4 sm:$0xff]  }
 0x9b9   : > { %15197 = vmatpush1.bf16.msra.mxu0 %v18462_v7  ;;  %v18551_v7 = vld [vmem:[%s25122_s9 + $0x5cc] ss:$16 sps:$4 sm:$0xff]  }
 0x9ba   : > { %15198 = vmatprep.subr.bf16.mxu0 %v18467_v30  ;;  %v18549_v30 = vld [vmem:[%s25122_s9 + $0x5c8] ss:$16 sps:$4 sm:$0xff]  }
 0x9bd   : > { %15199 = vmatpush1.bf16.msra.mxu0 %v18465_v20  ;;  %v18554_v20 = vld [vmem:[%s25122_s9 + $0x5ec] ss:$16 sps:$4 sm:$0xff]  }
 0x9be   : > { %15200 = vmatprep.subr.bf16.mxu0 %v18470_v24  ;;  %v18552_v24 = vld [vmem:[%s25122_s9 + $0x5e8] ss:$16 sps:$4 sm:$0xff]  }
 0x9c1   : > { %15201 = vmatpush1.bf16.msra.mxu0 %v18468_v25  ;;  %v18557_v25 = vld [vmem:[%s25122_s9 + $0x60c] ss:$16 sps:$4 sm:$0xff]  }
 0x9c2   : > { %15202 = vmatprep.subr.bf16.mxu0 %v18473_v41  ;;  %v18555_v41 = vld [vmem:[%s25122_s9 + $0x608] ss:$16 sps:$4 sm:$0xff]  }
 0x9c5   : > { %15203 = vmatpush1.bf16.msra.mxu0 %v18471_v38  ;;  %v18560_v38 = vld [vmem:[%s25122_s9 + $0x62c] ss:$16 sps:$4 sm:$0xff]  }
 0x9c6   : > { %15204 = vmatprep.subr.bf16.mxu0 %v18476_v57  ;;  %v18558_v57 = vld [vmem:[%s25122_s9 + $0x628] ss:$16 sps:$4 sm:$0xff]  }
 0x9c9   : > { %15205 = vmatpush1.bf16.msra.mxu0 %v18474_v5  ;;  %v18563_v5 = vld [vmem:[%s25122_s9 + $0x64c] ss:$16 sps:$4 sm:$0xff]  }
 0x9ca   : > { %15206 = vmatprep.subr.bf16.mxu0 %v18479_v14  ;;  %v18561_v14 = vld [vmem:[%s25122_s9 + $0x648] ss:$16 sps:$4 sm:$0xff]  }
 0x9cd   : > { %15207 = vmatpush1.bf16.msra.mxu0 %v18477_v4  ;;  %v18569_v4 = vld [vmem:[%s25122_s9 + $0x68c] ss:$16 sps:$4 sm:$0xff]  }
 0x9ce   : > { %15208 = vmatprep.subr.bf16.mxu0 %v18482_v62  ;;  %v18567_v62 = vld [vmem:[%s25122_s9 + $0x688] ss:$16 sps:$4 sm:$0xff]  }
 0x9d1   : > { %15209 = vmatpush1.bf16.msra.mxu0 %v18480_v47  ;;  %v24879_v47 = vld [vmem:[%s25123_s10] sm:$0xf] }
 0x9d2   : > { %15210 = vmatprep.subr.bf16.mxu0 %v18485_v56  ;;  %v18572_v56 = vld [vmem:[%s25122_s9 + $0x6ac] ss:$16 sps:$4 sm:$0xff]  }
 0x9d5   : > { %15211 = vmatpush1.bf16.msra.mxu0 %v18483_v48  ;;  %v13682_v48 = vrot.slane %v24879_v47, %v19436_v42 }
 0x9d6   : > { %15212 = vmatprep.subr.bf16.mxu0 %v18488_v2  ;;  %v24889_v2 = vld [vmem:[%s25124_s11] sm:$0xf] }
 0x9d9   : > { %15213 = vmatpush1.bf16.msra.mxu0 %v18486_v43  ;;  %v18570_v43 = vld [vmem:[%s25122_s9 + $0x6a8] ss:$16 sps:$4 sm:$0xff]  }
 0x9da   : > { %15214 = vmatprep.subr.bf16.mxu0 %v18491_v3  ;;  %v13686_v3 = vrot.slane %v24879_v47, %v19442_v45 }
 0x9dd   : > { %15215 = vmatpush1.bf16.msra.mxu0 %v18489_v21  ;;  %v18575_v21 = vld [vmem:[%s25122_s9 + $0x6cc] ss:$16 sps:$4 sm:$0xff]  }
 0x9de   : > { %15216 = vmatprep.subr.bf16.mxu0 %v18494_v0 }
 0x9e1   : > { %15217 = vmatpush1.bf16.msra.mxu0 %v18492_v32 }
 0x9e2   : > { %15218 = vmatprep.subr.bf16.mxu0 %v18497_v33  ;;  %v15336_v33 = vrot.slane %v24889_v2, %v19436_v42 }
 0x9e5   : > { %15219 = vmatpush1.bf16.msra.mxu0 %v18495_v35 }
 0x9e6   : > { %15220 = vmatprep.subr.bf16.mxu0 %v18500_v37  ;;  %v24904_v37 = vld [vmem:[%s25125_s12] sm:$0xf] }
 0x9e9   : > { %15221 = vmatpush1.bf16.msra.mxu0 %v18498_v9 }
 0x9ea   : > { %15222 = vmatprep.subr.bf16.mxu0 %v18503_v52  ;;  %v15340_v52 = vrot.slane %v24889_v2, %v19442_v45 }
 0x9ed   : > { %15223 = vmatpush1.bf16.msra.mxu0 %v18501_v10 }
 0x9ee   : > { %15224 = vmatprep.subr.bf16.mxu0 %v18506_v58  ;;  %v18573_v58 = vld [vmem:[%s25122_s9 + $0x6c8] ss:$16 sps:$4 sm:$0xff]  }
 0x9f1   : > { %15225 = vmatpush1.bf16.msra.mxu0 %v18504_v61 }
 0x9f2   : > { %15237 = vmatprep.subr.bf16.mxu0 %v18509_v28 }
 0x9f4   : > { %15227 = vmatmul.mubr.bf16.vlgmr.msra.gmra.mrb[60].mxu0 %v23632_v36  ;;  %v18518_v36 = vld [vmem:[%s25122_s9 + $0x46c] ss:$16 sps:$4 sm:$0xff]  }
 0x9f5   : > { %15238 = vmatpush1.bf16.msra.mxu0 %v18507_v17  ;;  %15269 = vmatprep.mubr.bf16.mxu0 %v23494_v26  ;;  %v18516_v26 = vld [vmem:[%s25122_s9 + $0x468] ss:$16 sps:$4 sm:$0xff]  }
 0x9f6   : > { %15239 = vmatprep.subr.bf16.mxu0 %v18512_v13  ;;  %v18578_v13 = vld [vmem:[%s25122_s9 + $0x6ec] ss:$16 sps:$4 sm:$0xff]  }
 0x9f9   : > { %15240 = vmatpush1.bf16.msra.mxu0 %v18510_v11 }
 0x9fa   : > { %15241 = vmatprep.subr.bf16.mxu0 %v18515_v50 }
 0x9fd   : > { %15242 = vmatpush1.bf16.msra.mxu0 %v18513_v54 }
 0x9fe   : > { %15243 = vmatprep.subr.bf16.mxu0 %v18518_v36  ;;  %v15366_v36 = vrot.slane %v24904_v37, %v19436_v42 }
 0xa01   : > { %15244 = vmatpush1.bf16.msra.mxu0 %v18516_v26 }
 0xa02   : > { %15245 = vmatprep.subr.bf16.mxu0 %v18521_v15 }
 0xa05   : > { %15246 = vmatpush1.bf16.msra.mxu0 %v18519_v1  ;;  %v15370_v1 = vrot.slane %v24904_v37, %v19442_v45  ;;  %v18579_v45 = vld [vmem:[%s25122_s9 + $0x708] ss:$16 sps:$4 sm:$0xff]  }
 0xa06   : > { %15247 = vmatprep.subr.bf16.mxu0 %v18524_v40 }
 0xa09   : > { %15248 = vmatpush1.bf16.msra.mxu0 %v18522_v22  ;;  %v18576_v22 = vld [vmem:[%s25122_s9 + $0x6e8] ss:$16 sps:$4 sm:$0xff]  }
 0xa0a   : > { %15249 = vmatprep.subr.bf16.mxu0 %v18527_v39 }
 0xa0d   : > { %15250 = vmatpush1.bf16.msra.mxu0 %v18525_v31  ;;  %v18581_v31 = vld [vmem:[%s25122_s9 + $0x70c] ss:$16 sps:$4 sm:$0xff]  }
 0xa0e   : > { %15251 = vmatprep.subr.bf16.mxu0 %v18530_v6 }
 0xa11   : > { %15252 = vmatpush1.bf16.msra.mxu0 %v18528_v34 }
 0xa12   : > { %15253 = vmatprep.subr.bf16.mxu0 %v18533_v53 }
 0xa15   : > { %15254 = vmatpush1.bf16.msra.mxu0 %v18531_v12 }
 0xa16   : > { %15255 = vmatprep.subr.bf16.mxu0 %v18536_v55 }
 0xa19   : > { %15256 = vmatpush1.bf16.msra.mxu0 %v18534_v49  ;;  %v18584_v49 = vld [vmem:[%s25122_s9 + $0x72c] ss:$16 sps:$4 sm:$0xff]  }
 0xa1a   : > { %15257 = vmatprep.subr.bf16.mxu0 %v18539_v46 }
 0xa1d   : > { %15258 = vmatpush1.bf16.msra.mxu0 %v18537_v51  ;;  %v18582_v51 = vld [vmem:[%s25122_s9 + $0x728] ss:$16 sps:$4 sm:$0xff]  }
 0xa1e   : > { %15259 = vmatprep.subr.bf16.mxu0 %v18542_v44  ;;  %v18587_v44 = vld [vmem:[%s25122_s9 + $0x74c] ss:$16 sps:$4 sm:$0xff]  }
 0xa21   : > { %15260 = vmatpush1.bf16.msra.mxu0 %v18540_v23  ;;  %v18585_v23 = vld [vmem:[%s25122_s9 + $0x748] ss:$16 sps:$4 sm:$0xff]  }
 0xa22   : > { %15261 = vmatprep.subr.bf16.mxu0 %v18545_v60  ;;  %v18590_v60 = vld [vmem:[%s25122_s9 + $0x76c] ss:$16 sps:$4 sm:$0xff]  }
 0xa25   : > { %15262 = vmatpush1.bf16.msra.mxu0 %v18543_v27  ;;  %v18588_v27 = vld [vmem:[%s25122_s9 + $0x768] ss:$16 sps:$4 sm:$0xff]  }
 0xa26   : > { %15263 = vmatprep.subr.bf16.mxu0 %v18548_v63  ;;  %v18593_v63 = vld [vmem:[%s25122_s9 + $0x78c] ss:$16 sps:$4 sm:$0xff]  }
 0xa29   : > { %15264 = vmatpush1.bf16.msra.mxu0 %v18546_v19  ;;  %v18591_v19 = vld [vmem:[%s25122_s9 + $0x788] ss:$16 sps:$4 sm:$0xff]  }
 0xa2a   : > { %15265 = vmatprep.subr.bf16.mxu0 %v18551_v7  ;;  %v18596_v7 = vld [vmem:[%s25122_s9 + $0x7ac] ss:$16 sps:$4 sm:$0xff]  }
 0xa2d   : > { %15266 = vmatpush1.bf16.msra.mxu0 %v18549_v30  ;;  %v18594_v30 = vld [vmem:[%s25122_s9 + $0x7a8] ss:$16 sps:$4 sm:$0xff]  }
 0xa2e   : > { %15267 = vmatprep.subr.bf16.mxu0 %v18554_v20  ;;  %v18599_v20 = vld [vmem:[%s25122_s9 + $0x7cc] ss:$16 sps:$4 sm:$0xff]  }
 0xa31   : > { %15268 = vmatpush1.bf16.msra.mxu0 %v18552_v24  ;;  %v18597_v24 = vld [vmem:[%s25122_s9 + $0x7c8] ss:$16 sps:$4 sm:$0xff]  }
 0xa32   : > { %15280 = vmatprep.subr.bf16.mxu0 %v18557_v25  ;;  %v18602_v25 = vld [vmem:[%s25122_s9 + $0x7ec] ss:$16 sps:$4 sm:$0xff]  }
 0xa34   : > { %15270 = vmatmul.mubr.bf16.vlgmr.msra.gmra.mrb[60].mxu0 %v23486_v18  ;;  %v18566_v18 = vld [vmem:[%s25122_s9 + $0x66c] ss:$16 sps:$4 sm:$0xff]  }
 0xa35   : > { %15281 = vmatpush1.bf16.msra.mxu0 %v18555_v41  ;;  %15312 = vmatprep.mubr.bf16.mxu0 %v24550_v29  ;;  %v18564_v29 = vld [vmem:[%s25122_s9 + $0x668] ss:$16 sps:$4 sm:$0xff]  }
 0xa36   : > { %15282 = vmatprep.subr.bf16.mxu0 %v18560_v38  ;;  %v18600_v41 = vld [vmem:[%s25122_s9 + $0x7e8] ss:$16 sps:$4 sm:$0xff]   ;;  %v18603_v38 = vld [vmem:[%s25126_s13 + $0x40] sm:$0xff]  }
 0xa39   : > { %15283 = vmatpush1.bf16.msra.mxu0 %v18558_v57  ;;  %v18604_v57 = vld [vmem:[%s25126_s13] sm:$0xff]  }
 0xa3a   : > { %15284 = vmatprep.subr.bf16.mxu0 %v18563_v5  ;;  %v18605_v5 = vld [vmem:[%s25126_s13 + $0x48] sm:$0xff]  }
 0xa3d   : > { %15285 = vmatpush1.bf16.msra.mxu0 %v18561_v14  ;;  %v18606_v14 = vld [vmem:[%s25126_s13 + $0x8] sm:$0xff]  }
 0xa3e   : > { %15286 = vmatprep.subr.bf16.mxu0 %v18566_v18  ;;  %v18607_v18 = vld [vmem:[%s25126_s13 + $0x50] sm:$0xff]  }
 0xa41   : > { %15287 = vmatpush1.bf16.msra.mxu0 %v18564_v29  ;;  %v18608_v29 = vld [vmem:[%s25126_s13 + $0x10] sm:$0xff]  }
 0xa42   : > { %15288 = vmatprep.subr.bf16.mxu0 %v18569_v4  ;;  %v18610_v4 = vld [vmem:[%s25126_s13 + $0x18] sm:$0xff]  }
 0xa45   : > { %15289 = vmatpush1.bf16.msra.mxu0 %v18567_v62  ;;  %v18611_v62 = vld [vmem:[%s25126_s13 + $0x60] sm:$0xff]  }
 0xa46   : > { %15290 = vmatprep.subr.bf16.mxu0 %v18572_v56  ;;  %v18612_v56 = vld [vmem:[%s25126_s13 + $0x20] sm:$0xff]  }
 0xa47   : > { %v15142_v0 = vpop.f32.mrb[56].mxu0 }
 0xa48   : > { %v17891_v32 = vadd.f32 %v15142_v0, %v13682_v48  ;;  %v15144_v35 = vpop.f32.mrb[57].mxu0  ;;  %v18617_v0 = vld [vmem:[%s25126_s13 + $0x78] sm:$0xff]  }
 0xa49   : > { %v17892_v9 = vadd.f32 %v15144_v35, %v13686_v3  ;;  %15291 = vmatpush1.bf16.msra.mxu0 %v18570_v43  ;;  %v15146_v10 = vpop.f32.mrb[58].mxu0  ;;  %v18614_v43 = vld [vmem:[%s25126_s13 + $0x28] sm:$0xff]   ;;  %v18620_v35 = vld [vmem:[%s25126_s13 + $0x80] sm:$0xff]  }
 0xa4a   : > { %v15323_v61 = vmax.f32 %v17891_v32, 0.0  ;;  %v17893_v28 = vadd.f32 %v15146_v10, %v13682_v48  ;;  %v15148_v17 = vpop.f32.mrb[59].mxu0  ;;  %15292 = vmatprep.subr.bf16.mxu0 %v18575_v21  ;;  %v18613_v48 = vld [vmem:[%s25126_s13 + $0x68] sm:$0xff]   ;;  %v18616_v21 = vld [vmem:[%s25126_s13 + $0x30] sm:$0xff]   ;;  %v18618_v32 = vld [vmem:[%s25126_s13 + $0x38] sm:$0xff]  }
 0xa4b   : > { %v15324_v11 = vmax.f32 %v17892_v9, 0.0  ;;  %v17894_v50 = vadd.f32 %v15148_v17, %v13686_v3  ;;  %v18615_v3 = vld [vmem:[%s25126_s13 + $0x70] sm:$0xff]   ;;  %v18621_v9 = vld [vmem:[%s25126_s13 + $0xc8] sm:$0xff]   ;;  %v18627_v17 = vld [vmem:[%s25126_s13 + $0xe0] sm:$0xff]  }
 0xa4c   : > { %v15353_v54 = vmul.f32 %v15336_v33, %v15323_v61  ;;  %v15327_v26 = vmax.f32 %v17893_v28, 0.0  ;;  %v18623_v10 = vld [vmem:[%s25126_s13 + $0xd0] sm:$0xff]   ;;  %v18625_v61 = vld [vmem:[%s25126_s13 + $0xd8] sm:$0xff]  }
 0xa4d   : > { %v15354_v15 = vmul.f32 %v15340_v52, %v15324_v11  ;;  %v15328_v40 = vmax.f32 %v17894_v50, 0.0  ;;  %15293 = vmatpush1.bf16.msra.mxu0 %v18573_v58  ;;  %v18624_v58 = vld [vmem:[%s25126_s13 + $0x90] sm:$0xff]   ;;  %v18626_v28 = vld [vmem:[%s25126_s13 + $0x98] sm:$0xff]   ;;  %v18629_v11 = vld [vmem:[%s25126_s13 + $0xe8] sm:$0xff]  }
 0xa4e   : > { %v15357_v39 = vmul.f32 %v15336_v33, %v15327_v26  ;;  %15294 = vmatprep.subr.bf16.mxu0 %v18578_v13  ;;  %v24924_v34 = vadd.f32 %v15366_v36, %v15353_v54  ;;  %v18619_v33 = vld [vmem:[%s25126_s13 + $0xc0] sm:$0xff]   ;;  %v18630_v50 = vld [vmem:[%s25126_s13 + $0xa8] sm:$0xff]   ;;  %v18631_v54 = vld [vmem:[%s25126_s13 + $0xf0] sm:$0xff]  }
 0xa4f   : > { %v15358_v6 = vmul.f32 %v15340_v52, %v15328_v40  ;;  %v15384_v53 = vadd.f32 %v15370_v1, %v15354_v15  ;;  %v18622_v52 = vld [vmem:[%s25126_s13 + $0x88] sm:$0xff]   ;;  %v18628_v13 = vld [vmem:[%s25126_s13 + $0xa0] sm:$0xff]   ;;  %v18633_v26 = vld [vmem:[%s25126_s13 + $0xf8] sm:$0xff]   ;;  %v13694_v40 = vrot.slane %v24879_v47, %v23586_v16 }
 0xa50   : > { %v24926_v42 = vadd.f32 %v15366_v36, %v15357_v39  ;;  %v18632_v36 = vld [vmem:[%s25126_s13 + $0xb0] sm:$0xff]   ;;  %v18634_v15 = vld [vmem:[%s25126_s13 + $0xb8] sm:$0xff]  }
 0xa51   : > { %v15388_v12 = vadd.f32 %v15370_v1, %v15358_v6  ;;  %15295 = vmatpush1.bf16.msra.mxu0 %v18576_v22  ;;  %v13690_v1 = vrot.slane %v24879_v47, %v23577_v59  ;;  %v15374_v47 = vrot.slane %v24904_v37, %v23577_v59 }
 0xa52   : > { %v15391_v55 = vpack.c.bf16 %v24926_v42, %v24924_v34  ;;  %15296 = vmatprep.subr.bf16.mxu0 %v18581_v31  ;;  %v15344_v31 = vrot.slane %v24889_v2, %v23577_v59  ;;  %v15348_v42 = vrot.slane %v24889_v2, %v23586_v16 }
 0xa53   : > { %v15392_v46 = vpack.c.bf16 %v15388_v12, %v15384_v53 }
 0xa55   : > { %15297 = vmatpush1.bf16.msra.mxu0 %v18579_v45 }
 0xa56   : > { %15298 = vmatprep.subr.bf16.mxu0 %v18584_v49 }
 0xa59   : > { %15299 = vmatpush1.bf16.msra.mxu0 %v18582_v51 }
 0xa5a   : > { %15300 = vmatprep.subr.bf16.mxu0 %v18587_v44 }
 0xa5d   : > { %15301 = vmatpush1.bf16.msra.mxu0 %v18585_v23 }
 0xa5e   : > { %15302 = vmatprep.subr.bf16.mxu0 %v18590_v60  ;;  %v15378_v60 = vrot.slane %v24904_v37, %v23586_v16  ;;  %v17796_v16 = vld [vmem:[%s25127_s14] ss:$0 sm:$0xff] }
 0xa61   : > { %15303 = vmatpush1.bf16.msra.mxu0 %v18588_v27 }
 0xa62   : > { %15304 = vmatprep.subr.bf16.mxu0 %v18593_v63 }
 0xa65   : > { %15305 = vmatpush1.bf16.msra.mxu0 %v18591_v19 }
 0xa66   : > { %15306 = vmatprep.subr.bf16.mxu0 %v18596_v7 }
 0xa69   : > { %15307 = vmatpush1.bf16.msra.mxu0 %v18594_v30 }
 0xa6a   : > { %15308 = vmatprep.subr.bf16.mxu0 %v18599_v20 }
 0xa6d   : > { %15309 = vmatpush1.bf16.msra.mxu0 %v18597_v24 }
 0xa6e   : > { %15310 = vmatprep.subr.bf16.mxu0 %v18602_v25 }
 0xa71   : > { %15311 = vmatpush1.bf16.msra.mxu0 %v18600_v41 }
 0xa72   : > { %17839 = vmatprep.subr.bf16.mxu0 %v18603_v38 }
 0xa74   : > { %15313 = vmatmul.mubr.bf16.vlgmr.msra.gmra.mrb[60].mxu0 %v24548_v8  ;;  %v18609_v8 = vld [vmem:[%s25126_s13 + $0x58] sm:$0xff]  }
 0xa75   : > { %17840 = vmatpush3.bf16.msra.mxu0 %v18604_v57  ;;  %15690 = vmatprep.mubr.bf16.mxu0 %v15392_v46 }
 0xa76   : > { %17841 = vmatprep.subr.bf16.mxu0 %v18605_v5 }
 0xa79   : > { %17842 = vmatpush3.bf16.msra.mxu0 %v18606_v14 }
 0xa7a   : > { %17843 = vmatprep.subr.bf16.mxu0 %v18607_v18 }
 0xa7d   : > { %17844 = vmatpush3.bf16.msra.mxu0 %v18608_v29 }
 0xa7e   : > { %17845 = vmatprep.subr.bf16.mxu0 %v18609_v8 }
 0xa81   : > { %17846 = vmatpush3.bf16.msra.mxu0 %v18610_v4 }
 0xa82   : > { %17847 = vmatprep.subr.bf16.mxu0 %v18611_v62 }
 0xa85   : > { %17848 = vmatpush3.bf16.msra.mxu0 %v18612_v56 }
 0xa86   : > { %17849 = vmatprep.subr.bf16.mxu0 %v18613_v48 }
 0xa89   : > { %17850 = vmatpush3.bf16.msra.mxu0 %v18614_v43 }
 0xa8a   : > { %17851 = vmatprep.subr.bf16.mxu0 %v18615_v3  ;;  %v17829_v3 = vld [vmem:[%s25128_s15] ss:$0 sm:$0xff] }
 0xa8d   : > { %17852 = vmatpush3.bf16.msra.mxu0 %v18616_v21 }
 0xa8e   : > { %17853 = vmatprep.subr.bf16.mxu0 %v18617_v0 }
 0xa91   : > { %17854 = vmatpush3.bf16.msra.mxu0 %v18618_v32  ;;  %v17830_v32 = vld [vmem:[%s25129_s16] ss:$0 sm:$0xff] }
 0xa92   : > { %17861 = vmatprep.subr.bf16.mxu0 %v18619_v33 }
 0xa94   : > { %15691 = vmatmul.mubr.bf16.vlgmr.msra.gmra.mrb[64].mxu0 %v15391_v55 }
 0xa95   : > { %17862 = vmatpush3.bf16.msra.mxu0 %v18620_v35 }
 0xa96   : > { %17863 = vmatprep.subr.bf16.mxu0 %v18621_v9  ;;  %v17831_v9 = vld [vmem:[%s25130_s17] ss:$0 sm:$0xff] }
 0xa99   : > { %17864 = vmatpush3.bf16.msra.mxu0 %v18622_v52 }
 0xa9a   : > { %17865 = vmatprep.subr.bf16.mxu0 %v18623_v10 }
 0xa9d   : > { %17866 = vmatpush3.bf16.msra.mxu0 %v18624_v58 }
 0xa9e   : > { %17867 = vmatprep.subr.bf16.mxu0 %v18625_v61 }
 0xaa1   : > { %17868 = vmatpush3.bf16.msra.mxu0 %v18626_v28 }
 0xaa2   : > { %17869 = vmatprep.subr.bf16.mxu0 %v18627_v17  ;;  %v17832_v17 = vld [vmem:[#allocation3] ss:$0 sm:$0xff] }
 0xaa5   : > { %17870 = vmatpush3.bf16.msra.mxu0 %v18628_v13 }
 0xaa6   : > { %17871 = vmatprep.subr.bf16.mxu0 %v18629_v11 }
 0xaa9   : > { %17872 = vmatpush3.bf16.msra.mxu0 %v18630_v50 }
 0xaaa   : > { %17873 = vmatprep.subr.bf16.mxu0 %v18631_v54 }
 0xaad   : > { %17874 = vmatpush3.bf16.msra.mxu0 %v18632_v36 }
 0xaae   : > { %17875 = vmatprep.subr.bf16.mxu0 %v18633_v26 }
 0xab1   : > { %17876 = vmatpush3.bf16.msra.mxu0 %v18634_v15 }
 0xb47   : > { %v15314_v22 = vpop.f32.mrb[60].mxu0 }
 0xb48   : > { %v17895_v39 = vadd.f32 %v15314_v22, %v13690_v1  ;;  %v15316_v6 = vpop.f32.mrb[61].mxu0 }
 0xb49   : > { %v17896_v34 = vadd.f32 %v15316_v6, %v13694_v40  ;;  %v15318_v53 = vpop.f32.mrb[62].mxu0 }
 0xb4a   : > { %v15325_v12 = vmax.f32 %v17895_v39, 0.0  ;;  %v17897_v45 = vadd.f32 %v15318_v53, %v13690_v1  ;;  %v15320_v55 = vpop.f32.mrb[63].mxu0 }
 0xb4b   : > { %v15326_v49 = vmax.f32 %v17896_v34, 0.0  ;;  %v17898_v46 = vadd.f32 %v15320_v55, %v13694_v40 }
 0xb4c   : > { %v15355_v51 = vmul.f32 %v15344_v31, %v15325_v12  ;;  %v15329_v44 = vmax.f32 %v17897_v45, 0.0 }
 0xb4d   : > { %v15356_v23 = vmul.f32 %v15348_v42, %v15326_v49  ;;  %v15330_v27 = vmax.f32 %v17898_v46, 0.0 }
 0xb4e   : > { %v15359_v63 = vmul.f32 %v15344_v31, %v15329_v44  ;;  %v15385_v7 = vadd.f32 %v15374_v47, %v15355_v51 }
 0xb4f   : > { %v15360_v19 = vmul.f32 %v15348_v42, %v15330_v27  ;;  %v15386_v30 = vadd.f32 %v15378_v60, %v15356_v23 }
 0xb50   : > { %v15389_v2 = vadd.f32 %v15374_v47, %v15359_v63 }
 0xb51   : > { %v15390_v20 = vadd.f32 %v15378_v60, %v15360_v19 }
 0xb52   : > { %v15393_v24 = vpack.c.bf16 %v15389_v2, %v15385_v7 }
 0xb53   : > { %v15394_v25 = vpack.c.bf16 %v15390_v20, %v15386_v30 }
 0xb55   : > { %15731 = vmatprep.mubr.bf16.mxu0 %v15394_v25 }
 0xb56   : > { %15732 = vmatmul.mubr.bf16.vlgmr.msra.gmra.mrb[68].mxu0 %v15393_v24 }
 0xb67   : > { %v17855_v41 = vpop.f32.mrb[64].mxu0 }
 0xb68   : > { %v17856_v38 = vpop.f32.mrb[65].mxu0 }
 0xb69   : > { %v17857_v57 = vadd.f32 %v17856_v38, %v17855_v41  ;;  %v17858_v59 = vpop.f32.mrb[66].mxu0 }
 0xb6a   : > { %v17859_v5 = vpop.f32.mrb[67].mxu0 }
 0xb6b   : > { %v17860_v14 = vadd.f32 %v17859_v5, %v17858_v59  ;;  %v15693_v29 = vadd.f32 %v17857_v57, %v17796_v16 }
 0xb6d   : > { %v15696_v56 = vadd.f32 %v17860_v14, %v17796_v16 }
 0xc29   : > { %v17877_v37 = vpop.f32.mrb[68].mxu0 }
 0xc2a   : > { %v17878_v18 = vpop.f32.mrb[69].mxu0 }
 0xc2b   : > { %v17879_v8 = vadd.f32 %v17878_v18, %v17877_v37  ;;  %v17880_v4 = vpop.f32.mrb[70].mxu0 }
 0xc2c   : > { %v17881_v62 = vpop.f32.mrb[71].mxu0 }
 0xc2d   : > { %v15734_v48 = vadd.f32 %v17879_v8, %v15693_v29  ;;  %v17882_v43 = vadd.f32 %v17881_v62, %v17880_v4 }
 0xc2f   : > { %v15740_v21 = vmax.f32 %v15734_v48, 0.0  ;;  %v15737_v0 = vadd.f32 %v17882_v43, %v15696_v56 }
 0xc31   : > { %v15741_v33 = vmax.f32 %v15737_v0, 0.0  ;;  %v15749_v35 = vmul.f32 %v17829_v3, %v15740_v21 }
 0xc33   : > { %v15750_v52 = vmul.f32 %v17829_v3, %v15741_v33  ;;  %v15758_v10 = vadd.f32 %v17830_v32, %v15749_v35 }
 0xc35   : > { %v15767_v58 = vmul.f32 %v17831_v9, %v15758_v10  ;;  %v15759_v61 = vadd.f32 %v17830_v32, %v15750_v52 }
 0xc37   : > { %15769 = vadd.xlane.f32.xlu0 %v15767_v58  ;;  %v15768_v28 = vmul.f32 %v17831_v9, %v15759_v61 }
 0xc3b   : > { %15771 = vadd.xlane.f32.xlu0 %v15768_v28 }
 0xcc4   : > { %v15770_v13 = vpop.xlane.xlu0 %15769 }
 0xcc5   : > { %v15780_v11 = vadd.f32 %v17832_v17, %v15770_v13 }
 0xcc7   : > { %v17833_v50 = vmul.f32 -1.442695, %v15780_v11 }
 0xcc8   : > { %v15772_v54 = vpop.xlane.xlu0 %15771 }
 0xcc9   : > { %18635 = vpow2.f32 %v17833_v50  ;;  %v15781_v36 = vadd.f32 %v17832_v17, %v15772_v54 }
 0xccb   : > { %v17834_v26 = vmul.f32 -1.442695, %v15781_v36 }
 0xccd   : > { %18637 = vpow2.f32 %v17834_v26 }
 0xcd3   : > { %v18636_v15 = vpop.eup %18635 }
 0xcd4   : > { %v15788_v1 = vadd.f32 1.0, %v18636_v15 }
 0xcd6   : > { %18639 = vrcp.f32 %v15788_v1 }
 0xcd7   : > { %v18638_v40 = vpop.eup %18637 }
 0xcd8   : > { %v15789_v22 = vadd.f32 1.0, %v18638_v40 }
 0xcda   : > { %18641 = vrcp.f32 %v15789_v22 }
 0xce0   : > { %v18640_v39 = vpop.eup %18639 }
 0xce1   : > { %15795 = vst.msk [vmem:[%s755_s27] sm:$0xff] %vm15794_vm0, %v18640_v39 }
 0xce4   : > { %v18642_v31 = vpop.eup %18641 }
 0xce5   : > { %15796 = vst.msk [vmem:[%s755_s27 + $0x8] sm:$0xff] %vm15794_vm0, %v18642_v31 }
 0xce6 PF: > { %s25152_s20 = sld [smem:[#allocation5_spill]]  ;;  %s25153_s21 = sld [smem:[#allocation6_spill]] }
 0xce7   : > { %p28_p9 = scmp.ge.s32.totalorder %s18794_s22, 4   ;;  %s25154_s1 = smov %s18794_s22 }
 0xce9   :  { %30 = sbr.rel (!%p28_p9) target bundleno = 7 (0x7), region = 172 }

</bundles_post_ra>
